<compile_context>
chip_gen: v5e
topology: v5e:2x2
jax: 0.10.0
libtpu: 0.0.40
codegen_flags: <defaults>
</compile_context>

<pallas_src>
import functools

import jax
import jax.numpy as jnp
from jax.experimental import pallas as pl
from jax.experimental.pallas import tpu as pltpu


# ----------------------------------------------------------------------------
# Fused DenseBlock kernel (all layers, one batch element per grid step)
# ----------------------------------------------------------------------------
def _dense_block_kernel(x_ref, scale_ref, shift_ref, w_ref, b_ref, out_ref,
                        apad_ref, *, H, W, C0, G, L, CF):
    # x_ref     : (1, H, W, C0)       input features
    # scale_ref : (L, 1, 1, CF)       folded BN scale per layer (zero past Cin_l)
    # shift_ref : (L, 1, 1, CF)       folded BN shift per layer (zero past Cin_l)
    # w_ref     : (L, 9*CF, G)        conv weights, rows ordered (dy, dx, cin), zero-padded
    # b_ref     : (L, 1, G)           conv bias
    # out_ref   : (1, H, W, CF)       final concatenated output; ALSO the growing feature
    #                                 accumulator (stays resident in VMEM for all layers)
    # apad_ref  : (1, H+2, W+2, CF)   zero-bordered post-BN/ReLU activation scratch

    # Zero-init: channels not yet produced must be exact zeros so their (zeroed) BN params
    # and (zeroed) weight rows contribute nothing, and so no uninitialized-VMEM NaN/Inf can
    # leak through 0 * garbage.
    out_ref[...] = jnp.zeros_like(out_ref)
    apad_ref[...] = jnp.zeros_like(apad_ref)          # border stays zero ('same' padding)
    out_ref[:, :, :, 0:C0] = x_ref[...]

    scale_all = scale_ref[...]                        # (L, 1, 1, CF) — resident, loaded once
    shift_all = shift_ref[...]
    w_all = w_ref[...]                                # (L, 9*CF, G)
    b_all = b_ref[...]                                # (L, 1, G)

    for l in range(L):                                # unrolled: L is a Python constant
        cin = C0 + l * G

        # Eval-mode BN (folded) + ReLU in f32 over all CF channels; inactive channels are
        # 0 * 0 + 0 = 0, which exactly matches padding the post-activation with zeros.
        feat = out_ref[...].astype(jnp.float32)                       # (1, H, W, CF)
        a = jnp.maximum(feat * scale_all[l] + shift_all[l], 0.0)
        apad_ref[:, 1:H + 1, 1:W + 1, :] = a

        # im2col: one lane-dense (H*W, 9*CF) slab -> a single MXU contraction per layer.
        ap = apad_ref[...]                                            # (1, H+2, W+2, CF)
        parts = [ap[0, dy:dy + H, dx:dx + W, :].reshape(H * W, CF)
                 for dy in range(3) for dx in range(3)]
        patches = jnp.concatenate(parts, axis=1)                      # (H*W, 9*CF)

        acc = jnp.dot(patches, w_all[l],
                      preferred_element_type=jnp.float32)             # (H*W, G)
        acc = acc + b_all[l]

        # Dense connectivity: append the new features in place (VMEM resident, no HBM concat).
        out_ref[:, :, :, cin:cin + G] = acc.reshape(1, H, W, G).astype(out_ref.dtype)


def dense_block_pallas_nhwc(x, params, eps=1e-5):
    """Fused DenseBlock. x: (N, H, W, C0) -> (N, H, W, C0 + L*G)."""
    N, H, W, C0 = x.shape
    L = len(params)
    G = params[0]['w'].shape[-1]
    CF = C0 + L * G

    # Host-side parameter packing: fold BN (eval mode) and zero-pad every layer's
    # per-channel params / weight rows out to CF so the kernel uses uniform shapes.
    scales, shifts, ws, bs = [], [], [], []
    for l, p in enumerate(params):
        cin = C0 + l * G
        scale = (p['gamma'] / jnp.sqrt(p['var'] + eps)).astype(jnp.float32)
        shift = (p['beta'] - p['mean'] * scale).astype(jnp.float32)
        scales.append(jnp.pad(scale, (0, CF - cin)))
        shifts.append(jnp.pad(shift, (0, CF - cin)))
        w_pad = jnp.zeros((3, 3, CF, G), jnp.float32).at[:, :, :cin, :].set(
            p['w'].astype(jnp.float32))
        ws.append(w_pad.reshape(9 * CF, G))           # rows ordered (dy, dx, cin)
        bs.append(p['b'].astype(jnp.float32))
    scale_all = jnp.stack(scales).reshape(L, 1, 1, CF)
    shift_all = jnp.stack(shifts).reshape(L, 1, 1, CF)
    w_all = jnp.stack(ws)                             # (L, 9*CF, G)
    b_all = jnp.stack(bs).reshape(L, 1, G)

    kernel = functools.partial(_dense_block_kernel,
                               H=H, W=W, C0=C0, G=G, L=L, CF=CF)

    flops = int(2 * N * H * W * 9 * CF * G * L)
    bytes_accessed = int(4 * (x.size + N * H * W * CF + w_all.size
                              + scale_all.size + shift_all.size + b_all.size))

    # TODO(synk): for large H/W add an H-tiled "parallel" grid axis with an L-row halo
    # (and bf16 MXU inputs at DenseNet-scale channel counts); unnecessary at this toy size.
    return pl.pallas_call(
        kernel,
        out_shape=jax.ShapeDtypeStruct((N, H, W, CF), x.dtype),
        grid=(N,),
        in_specs=[
            pl.BlockSpec((1, H, W, C0), lambda n: (n, 0, 0, 0)),
            pl.BlockSpec((L, 1, 1, CF), lambda n: (0, 0, 0, 0)),
            pl.BlockSpec((L, 1, 1, CF), lambda n: (0, 0, 0, 0)),
            pl.BlockSpec((L, 9 * CF, G), lambda n: (0, 0, 0)),
            pl.BlockSpec((L, 1, G), lambda n: (0, 0, 0)),
        ],
        out_specs=pl.BlockSpec((1, H, W, CF), lambda n: (n, 0, 0, 0)),
        scratch_shapes=[pltpu.VMEM((1, H + 2, W + 2, CF), jnp.float32)],
        compiler_params=pltpu.CompilerParams(
            dimension_semantics=("parallel",)),
        cost_estimate=pl.CostEstimate(flops=flops, transcendentals=0,
                                      bytes_accessed=bytes_accessed),
    )(x, scale_all, shift_all, w_all, b_all)


# ----------------------------------------------------------------------------
# DenseBlock: parameter init + PyTorch-facing (NCHW) forward + pure-JAX reference
# ----------------------------------------------------------------------------
def init_dense_block_params(key, in_channels, growth_rate, n_layers):
    params = []
    for l in range(n_layers):
        cin = in_channels + growth_rate * l
        k = jax.random.fold_in(key, l)
        kw, kcb, kg, kb, km, kv = jax.random.split(k, 6)
        params.append(dict(
            # conv weight in HWIO (== PyTorch OIHW transposed (2,3,1,0)); cross-correlation.
            w=0.1 * jax.random.normal(kw, (3, 3, cin, growth_rate), jnp.float32),
            b=0.1 * jax.random.normal(kcb, (growth_rate,), jnp.float32),
            gamma=1.0 + 0.1 * jax.random.normal(kg, (cin,), jnp.float32),
            beta=0.1 * jax.random.normal(kb, (cin,), jnp.float32),
            mean=0.1 * jax.random.normal(km, (cin,), jnp.float32),
            var=1.0 + 0.1 * jnp.abs(jax.random.normal(kv, (cin,), jnp.float32)),
        ))
    return params


def dense_block_forward(x_nchw, params):
    # PyTorch-facing entry point: NCHW in, NCHW out.
    x = jnp.transpose(x_nchw, (0, 2, 3, 1))
    y = dense_block_pallas_nhwc(x, params)
    return jnp.transpose(y, (0, 3, 1, 2))


def _dense_block_reference_nhwc(x, params, eps=1e-5):
    # Pure-JAX reference (eval-mode BN -> ReLU -> 3x3 'same' conv -> concat).
    for p in params:
        scale = p['gamma'] / jnp.sqrt(p['var'] + eps)
        shift = p['beta'] - p['mean'] * scale
        a = jnp.maximum(x * scale + shift, 0.0)
        out = jax.lax.conv_general_dilated(
            a, p['w'], window_strides=(1, 1), padding='SAME',
            dimension_numbers=('NHWC', 'HWIO', 'NHWC')) + p['b']
        x = jnp.concatenate([x, out], axis=-1)
    return x


if __name__ == "__main__":
    key = jax.random.PRNGKey(0)
    kx, kp = jax.random.split(key)

    N, C, Hh, Ww = 2, 4, 16, 16          # NCHW input, as in the PyTorch module
    growth_rate, n_layers = 4, 3

    x = jax.random.normal(kx, (N, C, Hh, Ww), jnp.float32)
    params = init_dense_block_params(kp, C, growth_rate, n_layers)

    y = dense_block_forward(x, params)
    y = jax.block_until_ready(y)

    expected_c = C + growth_rate * n_layers
    assert y.shape == (N, expected_c, Hh, Ww), y.shape
    assert bool(jnp.all(jnp.isfinite(y)))

    # Numerical check against a pure-JAX reference of the same forward semantics.
    x_nhwc = jnp.transpose(x, (0, 2, 3, 1))
    y_ref = jnp.transpose(_dense_block_reference_nhwc(x_nhwc, params), (0, 3, 1, 2))
    assert bool(jnp.allclose(y, y_ref, atol=1e-3, rtol=1e-3)), \
        float(jnp.max(jnp.abs(y - y_ref)))

    # TODO(synk): `create_bn_act_drop_conv` source is not given; assumed the standard
    # pre-activation order BN->ReLU->Dropout(p=0)->Conv (DenseNet convention), eval-mode BN.
    print("KERNEL_OK")
</pallas_src>

<mosaic_0001>
module attributes {stable_mosaic.version = 11 : i64} {
  func.func @_dense_block_kernel(%arg0: i32, %arg1: memref<1x16x16x4xf32, #tpu.memory_space<vmem>>, %arg2: memref<3x1x1x16xf32, #tpu.memory_space<vmem>>, %arg3: memref<3x1x1x16xf32, #tpu.memory_space<vmem>>, %arg4: memref<3x144x4xf32, #tpu.memory_space<vmem>>, %arg5: memref<3x1x4xf32, #tpu.memory_space<vmem>>, %arg6: memref<1x16x16x16xf32, #tpu.memory_space<vmem>>, %arg7: memref<1x18x18x16xf32, #tpu.memory_space<vmem>>) attributes {dimension_semantics = [#tpu.dimension_semantics<parallel>], iteration_bounds = array<i64: 2>, scalar_prefetch = 0 : i64, scratch_operands = 1 : i64, tpu.core_type = #tpu.core_type<tc>, window_params = [{transform_indices = @transform_0, window_bounds = array<i64: 1, 16, 16, 4>}, {pipeline_mode = #tpu.pipeline_mode<synchronous>, transform_indices = @transform_1, window_bounds = array<i64: 3, 1, 1, 16>}, {pipeline_mode = #tpu.pipeline_mode<synchronous>, transform_indices = @transform_2, window_bounds = array<i64: 3, 1, 1, 16>}, {pipeline_mode = #tpu.pipeline_mode<synchronous>, transform_indices = @transform_3, window_bounds = array<i64: 3, 144, 4>}, {pipeline_mode = #tpu.pipeline_mode<synchronous>, transform_indices = @transform_4, window_bounds = array<i64: 3, 1, 4>}, {transform_indices = @transform_5, window_bounds = array<i64: 1, 16, 16, 16>}]} {
    %cst = arith.constant 0.000000e+00 : f32
    %0 = vector.broadcast %cst : f32 to vector<1x16x16x16xf32>
    %c0 = arith.constant 0 : index
    %c0_0 = arith.constant 0 : index
    %c0_1 = arith.constant 0 : index
    %c0_2 = arith.constant 0 : index
    %1 = vector.load %arg6[%c0, %c0_0, %c0_1, %c0_2] : memref<1x16x16x16xf32, #tpu.memory_space<vmem>>, vector<1x16x16x16xf32>
    tpu.vector_store %arg6[%c0, %c0_0, %c0_1, %c0_2], %0 {strides = array<i32>} : memref<1x16x16x16xf32, #tpu.memory_space<vmem>>, vector<1x16x16x16xf32>,
    %cst_3 = arith.constant 0.000000e+00 : f32
    %2 = vector.broadcast %cst_3 : f32 to vector<1x18x18x16xf32>
    %c0_4 = arith.constant 0 : index
    %c0_5 = arith.constant 0 : index
    %c0_6 = arith.constant 0 : index
    %c0_7 = arith.constant 0 : index
    %3 = vector.load %arg7[%c0_4, %c0_5, %c0_6, %c0_7] : memref<1x18x18x16xf32, #tpu.memory_space<vmem>>, vector<1x18x18x16xf32>
    tpu.vector_store %arg7[%c0_4, %c0_5, %c0_6, %c0_7], %2 {strides = array<i32>} : memref<1x18x18x16xf32, #tpu.memory_space<vmem>>, vector<1x18x18x16xf32>,
    %c0_8 = arith.constant 0 : index
    %c0_9 = arith.constant 0 : index
    %c0_10 = arith.constant 0 : index
    %c0_11 = arith.constant 0 : index
    %4 = vector.load %arg1[%c0_8, %c0_9, %c0_10, %c0_11] : memref<1x16x16x4xf32, #tpu.memory_space<vmem>>, vector<1x16x16x4xf32>
    %c0_12 = arith.constant 0 : index
    %c0_13 = arith.constant 0 : index
    %c0_14 = arith.constant 0 : index
    %c0_15 = arith.constant 0 : index
    %5 = vector.load %arg6[%c0_12, %c0_13, %c0_14, %c0_15] : memref<1x16x16x16xf32, #tpu.memory_space<vmem>>, vector<1x16x16x4xf32>
    tpu.vector_store %arg6[%c0_12, %c0_13, %c0_14, %c0_15], %4 {strides = array<i32>} : memref<1x16x16x16xf32, #tpu.memory_space<vmem>>, vector<1x16x16x4xf32>,
    %c0_16 = arith.constant 0 : index
    %c0_17 = arith.constant 0 : index
    %c0_18 = arith.constant 0 : index
    %c0_19 = arith.constant 0 : index
    %6 = vector.load %arg2[%c0_16, %c0_17, %c0_18, %c0_19] : memref<3x1x1x16xf32, #tpu.memory_space<vmem>>, vector<3x1x1x16xf32>
    %c0_20 = arith.constant 0 : index
    %c0_21 = arith.constant 0 : index
    %c0_22 = arith.constant 0 : index
    %c0_23 = arith.constant 0 : index
    %7 = vector.load %arg3[%c0_20, %c0_21, %c0_22, %c0_23] : memref<3x1x1x16xf32, #tpu.memory_space<vmem>>, vector<3x1x1x16xf32>
    %c0_24 = arith.constant 0 : index
    %c0_25 = arith.constant 0 : index
    %c0_26 = arith.constant 0 : index
    %8 = vector.load %arg4[%c0_24, %c0_25, %c0_26] : memref<3x144x4xf32, #tpu.memory_space<vmem>>, vector<3x144x4xf32>
    %c0_27 = arith.constant 0 : index
    %c0_28 = arith.constant 0 : index
    %c0_29 = arith.constant 0 : index
    %9 = vector.load %arg5[%c0_27, %c0_28, %c0_29] : memref<3x1x4xf32, #tpu.memory_space<vmem>>, vector<3x1x4xf32>
    %c0_30 = arith.constant 0 : index
    %c0_31 = arith.constant 0 : index
    %c0_32 = arith.constant 0 : index
    %c0_33 = arith.constant 0 : index
    %10 = vector.load %arg6[%c0_30, %c0_31, %c0_32, %c0_33] : memref<1x16x16x16xf32, #tpu.memory_space<vmem>>, vector<1x16x16x16xf32>
    %11 = vector.extract_strided_slice %6 {offsets = [0, 0, 0, 0], sizes = [1, 1, 1, 16], strides = [1, 1, 1, 1]} : vector<3x1x1x16xf32> to vector<1x1x1x16xf32>
    %12 = vector.shape_cast %11 : vector<1x1x1x16xf32> to vector<1x1x16xf32>
    %13 = vector.shape_cast %12 : vector<1x1x16xf32> to vector<1x1x1x16xf32>
    %14 = vector.broadcast %13 : vector<1x1x1x16xf32> to vector<1x16x16x16xf32>
    %15 = arith.mulf %10, %14 : vector<1x16x16x16xf32>
    %16 = vector.extract_strided_slice %7 {offsets = [0, 0, 0, 0], sizes = [1, 1, 1, 16], strides = [1, 1, 1, 1]} : vector<3x1x1x16xf32> to vector<1x1x1x16xf32>
    %17 = vector.shape_cast %16 : vector<1x1x1x16xf32> to vector<1x1x16xf32>
    %18 = vector.shape_cast %17 : vector<1x1x16xf32> to vector<1x1x1x16xf32>
    %19 = vector.broadcast %18 : vector<1x1x1x16xf32> to vector<1x16x16x16xf32>
    %20 = arith.addf %15, %19 : vector<1x16x16x16xf32>
    %cst_34 = arith.constant 0.000000e+00 : f32
    %21 = vector.broadcast %cst_34 : f32 to vector<1x16x16x16xf32>
    %22 = arith.maximumf %20, %21 : vector<1x16x16x16xf32>
    %c0_35 = arith.constant 0 : index
    %c1 = arith.constant 1 : index
    %c1_36 = arith.constant 1 : index
    %c0_37 = arith.constant 0 : index
    %23 = vector.load %arg7[%c0_35, %c1, %c1_36, %c0_37] : memref<1x18x18x16xf32, #tpu.memory_space<vmem>>, vector<1x16x16x16xf32>
    tpu.vector_store %arg7[%c0_35, %c1, %c1_36, %c0_37], %22 {strides = array<i32>} : memref<1x18x18x16xf32, #tpu.memory_space<vmem>>, vector<1x16x16x16xf32>,
    %c0_38 = arith.constant 0 : index
    %c0_39 = arith.constant 0 : index
    %c0_40 = arith.constant 0 : index
    %c0_41 = arith.constant 0 : index
    %24 = vector.load %arg7[%c0_38, %c0_39, %c0_40, %c0_41] : memref<1x18x18x16xf32, #tpu.memory_space<vmem>>, vector<1x18x18x16xf32>
    %25 = vector.extract_strided_slice %24 {offsets = [0, 0, 0, 0], sizes = [1, 16, 16, 16], strides = [1, 1, 1, 1]} : vector<1x18x18x16xf32> to vector<1x16x16x16xf32>
    %26 = vector.shape_cast %25 : vector<1x16x16x16xf32> to vector<16x16x16xf32>
    %27 = vector.shape_cast %26 : vector<16x16x16xf32> to vector<256x16xf32>
    %28 = vector.extract_strided_slice %24 {offsets = [0, 0, 1, 0], sizes = [1, 16, 16, 16], strides = [1, 1, 1, 1]} : vector<1x18x18x16xf32> to vector<1x16x16x16xf32>
    %29 = vector.shape_cast %28 : vector<1x16x16x16xf32> to vector<16x16x16xf32>
    %30 = vector.shape_cast %29 : vector<16x16x16xf32> to vector<256x16xf32>
    %31 = vector.extract_strided_slice %24 {offsets = [0, 0, 2, 0], sizes = [1, 16, 16, 16], strides = [1, 1, 1, 1]} : vector<1x18x18x16xf32> to vector<1x16x16x16xf32>
    %32 = vector.shape_cast %31 : vector<1x16x16x16xf32> to vector<16x16x16xf32>
    %33 = vector.shape_cast %32 : vector<16x16x16xf32> to vector<256x16xf32>
    %34 = vector.extract_strided_slice %24 {offsets = [0, 1, 0, 0], sizes = [1, 16, 16, 16], strides = [1, 1, 1, 1]} : vector<1x18x18x16xf32> to vector<1x16x16x16xf32>
    %35 = vector.shape_cast %34 : vector<1x16x16x16xf32> to vector<16x16x16xf32>
    %36 = vector.shape_cast %35 : vector<16x16x16xf32> to vector<256x16xf32>
    %37 = vector.extract_strided_slice %24 {offsets = [0, 1, 1, 0], sizes = [1, 16, 16, 16], strides = [1, 1, 1, 1]} : vector<1x18x18x16xf32> to vector<1x16x16x16xf32>
    %38 = vector.shape_cast %37 : vector<1x16x16x16xf32> to vector<16x16x16xf32>
    %39 = vector.shape_cast %38 : vector<16x16x16xf32> to vector<256x16xf32>
    %40 = vector.extract_strided_slice %24 {offsets = [0, 1, 2, 0], sizes = [1, 16, 16, 16], strides = [1, 1, 1, 1]} : vector<1x18x18x16xf32> to vector<1x16x16x16xf32>
    %41 = vector.shape_cast %40 : vector<1x16x16x16xf32> to vector<16x16x16xf32>
    %42 = vector.shape_cast %41 : vector<16x16x16xf32> to vector<256x16xf32>
    %43 = vector.extract_strided_slice %24 {offsets = [0, 2, 0, 0], sizes = [1, 16, 16, 16], strides = [1, 1, 1, 1]} : vector<1x18x18x16xf32> to vector<1x16x16x16xf32>
    %44 = vector.shape_cast %43 : vector<1x16x16x16xf32> to vector<16x16x16xf32>
    %45 = vector.shape_cast %44 : vector<16x16x16xf32> to vector<256x16xf32>
    %46 = vector.extract_strided_slice %24 {offsets = [0, 2, 1, 0], sizes = [1, 16, 16, 16], strides = [1, 1, 1, 1]} : vector<1x18x18x16xf32> to vector<1x16x16x16xf32>
    %47 = vector.shape_cast %46 : vector<1x16x16x16xf32> to vector<16x16x16xf32>
    %48 = vector.shape_cast %47 : vector<16x16x16xf32> to vector<256x16xf32>
    %49 = vector.extract_strided_slice %24 {offsets = [0, 2, 2, 0], sizes = [1, 16, 16, 16], strides = [1, 1, 1, 1]} : vector<1x18x18x16xf32> to vector<1x16x16x16xf32>
    %50 = vector.shape_cast %49 : vector<1x16x16x16xf32> to vector<16x16x16xf32>
    %51 = vector.shape_cast %50 : vector<16x16x16xf32> to vector<256x16xf32>
    %52 = tpu.concatenate %27, %30, %33, %36, %39, %42, %45, %48, %51 in 1 : vector<256x16xf32>, vector<256x16xf32>, vector<256x16xf32>, vector<256x16xf32>, vector<256x16xf32>, vector<256x16xf32>, vector<256x16xf32>, vector<256x16xf32>, vector<256x16xf32> -> vector<256x144xf32>
    %53 = vector.extract_strided_slice %8 {offsets = [0, 0, 0], sizes = [1, 144, 4], strides = [1, 1, 1]} : vector<3x144x4xf32> to vector<1x144x4xf32>
    %54 = vector.shape_cast %53 : vector<1x144x4xf32> to vector<144x4xf32>
    %cst_42 = arith.constant dense<0.000000e+00> : vector<256x4xf32>
    %55 = tpu.matmul %52, %54, %cst_42 {dimension_numbers = #tpu.dot_dimension_numbers<[1], [0], [0], [1], [0, 0, 1, 1], [], []>} : vector<256x144xf32>, vector<144x4xf32>, vector<256x4xf32> -> vector<256x4xf32>
    %56 = vector.extract_strided_slice %9 {offsets = [0, 0, 0], sizes = [1, 1, 4], strides = [1, 1, 1]} : vector<3x1x4xf32> to vector<1x1x4xf32>
    %57 = vector.shape_cast %56 : vector<1x1x4xf32> to vector<1x4xf32>
    %58 = vector.broadcast %57 : vector<1x4xf32> to vector<256x4xf32>
    %59 = arith.addf %55, %58 : vector<256x4xf32>
    %60 = vector.shape_cast %59 : vector<256x4xf32> to vector<1x16x16x4xf32>
    %c0_43 = arith.constant 0 : index
    %c0_44 = arith.constant 0 : index
    %c0_45 = arith.constant 0 : index
    %c4 = arith.constant 4 : index
    %61 = vector.load %arg6[%c0_43, %c0_44, %c0_45, %c4] : memref<1x16x16x16xf32, #tpu.memory_space<vmem>>, vector<1x16x16x4xf32>
    tpu.vector_store %arg6[%c0_43, %c0_44, %c0_45, %c4], %60 {strides = array<i32>} : memref<1x16x16x16xf32, #tpu.memory_space<vmem>>, vector<1x16x16x4xf32>,
    %c0_46 = arith.constant 0 : index
    %c0_47 = arith.constant 0 : index
    %c0_48 = arith.constant 0 : index
    %c0_49 = arith.constant 0 : index
    %62 = vector.load %arg6[%c0_46, %c0_47, %c0_48, %c0_49] : memref<1x16x16x16xf32, #tpu.memory_space<vmem>>, vector<1x16x16x16xf32>
    %63 = vector.extract_strided_slice %6 {offsets = [1, 0, 0, 0], sizes = [1, 1, 1, 16], strides = [1, 1, 1, 1]} : vector<3x1x1x16xf32> to vector<1x1x1x16xf32>
    %64 = vector.shape_cast %63 : vector<1x1x1x16xf32> to vector<1x1x16xf32>
    %65 = vector.shape_cast %64 : vector<1x1x16xf32> to vector<1x1x1x16xf32>
    %66 = vector.broadcast %65 : vector<1x1x1x16xf32> to vector<1x16x16x16xf32>
    %67 = arith.mulf %62, %66 : vector<1x16x16x16xf32>
    %68 = vector.extract_strided_slice %7 {offsets = [1, 0, 0, 0], sizes = [1, 1, 1, 16], strides = [1, 1, 1, 1]} : vector<3x1x1x16xf32> to vector<1x1x1x16xf32>
    %69 = vector.shape_cast %68 : vector<1x1x1x16xf32> to vector<1x1x16xf32>
    %70 = vector.shape_cast %69 : vector<1x1x16xf32> to vector<1x1x1x16xf32>
    %71 = vector.broadcast %70 : vector<1x1x1x16xf32> to vector<1x16x16x16xf32>
    %72 = arith.addf %67, %71 : vector<1x16x16x16xf32>
    %cst_50 = arith.constant 0.000000e+00 : f32
    %73 = vector.broadcast %cst_50 : f32 to vector<1x16x16x16xf32>
    %74 = arith.maximumf %72, %73 : vector<1x16x16x16xf32>
    %c0_51 = arith.constant 0 : index
    %c1_52 = arith.constant 1 : index
    %c1_53 = arith.constant 1 : index
    %c0_54 = arith.constant 0 : index
    %75 = vector.load %arg7[%c0_51, %c1_52, %c1_53, %c0_54] : memref<1x18x18x16xf32, #tpu.memory_space<vmem>>, vector<1x16x16x16xf32>
    tpu.vector_store %arg7[%c0_51, %c1_52, %c1_53, %c0_54], %74 {strides = array<i32>} : memref<1x18x18x16xf32, #tpu.memory_space<vmem>>, vector<1x16x16x16xf32>,
    %c0_55 = arith.constant 0 : index
    %c0_56 = arith.constant 0 : index
    %c0_57 = arith.constant 0 : index
    %c0_58 = arith.constant 0 : index
    %76 = vector.load %arg7[%c0_55, %c0_56, %c0_57, %c0_58] : memref<1x18x18x16xf32, #tpu.memory_space<vmem>>, vector<1x18x18x16xf32>
    %77 = vector.extract_strided_slice %76 {offsets = [0, 0, 0, 0], sizes = [1, 16, 16, 16], strides = [1, 1, 1, 1]} : vector<1x18x18x16xf32> to vector<1x16x16x16xf32>
    %78 = vector.shape_cast %77 : vector<1x16x16x16xf32> to vector<16x16x16xf32>
    %79 = vector.shape_cast %78 : vector<16x16x16xf32> to vector<256x16xf32>
    %80 = vector.extract_strided_slice %76 {offsets = [0, 0, 1, 0], sizes = [1, 16, 16, 16], strides = [1, 1, 1, 1]} : vector<1x18x18x16xf32> to vector<1x16x16x16xf32>
    %81 = vector.shape_cast %80 : vector<1x16x16x16xf32> to vector<16x16x16xf32>
    %82 = vector.shape_cast %81 : vector<16x16x16xf32> to vector<256x16xf32>
    %83 = vector.extract_strided_slice %76 {offsets = [0, 0, 2, 0], sizes = [1, 16, 16, 16], strides = [1, 1, 1, 1]} : vector<1x18x18x16xf32> to vector<1x16x16x16xf32>
    %84 = vector.shape_cast %83 : vector<1x16x16x16xf32> to vector<16x16x16xf32>
    %85 = vector.shape_cast %84 : vector<16x16x16xf32> to vector<256x16xf32>
    %86 = vector.extract_strided_slice %76 {offsets = [0, 1, 0, 0], sizes = [1, 16, 16, 16], strides = [1, 1, 1, 1]} : vector<1x18x18x16xf32> to vector<1x16x16x16xf32>
    %87 = vector.shape_cast %86 : vector<1x16x16x16xf32> to vector<16x16x16xf32>
    %88 = vector.shape_cast %87 : vector<16x16x16xf32> to vector<256x16xf32>
    %89 = vector.extract_strided_slice %76 {offsets = [0, 1, 1, 0], sizes = [1, 16, 16, 16], strides = [1, 1, 1, 1]} : vector<1x18x18x16xf32> to vector<1x16x16x16xf32>
    %90 = vector.shape_cast %89 : vector<1x16x16x16xf32> to vector<16x16x16xf32>
    %91 = vector.shape_cast %90 : vector<16x16x16xf32> to vector<256x16xf32>
    %92 = vector.extract_strided_slice %76 {offsets = [0, 1, 2, 0], sizes = [1, 16, 16, 16], strides = [1, 1, 1, 1]} : vector<1x18x18x16xf32> to vector<1x16x16x16xf32>
    %93 = vector.shape_cast %92 : vector<1x16x16x16xf32> to vector<16x16x16xf32>
    %94 = vector.shape_cast %93 : vector<16x16x16xf32> to vector<256x16xf32>
    %95 = vector.extract_strided_slice %76 {offsets = [0, 2, 0, 0], sizes = [1, 16, 16, 16], strides = [1, 1, 1, 1]} : vector<1x18x18x16xf32> to vector<1x16x16x16xf32>
    %96 = vector.shape_cast %95 : vector<1x16x16x16xf32> to vector<16x16x16xf32>
    %97 = vector.shape_cast %96 : vector<16x16x16xf32> to vector<256x16xf32>
    %98 = vector.extract_strided_slice %76 {offsets = [0, 2, 1, 0], sizes = [1, 16, 16, 16], strides = [1, 1, 1, 1]} : vector<1x18x18x16xf32> to vector<1x16x16x16xf32>
    %99 = vector.shape_cast %98 : vector<1x16x16x16xf32> to vector<16x16x16xf32>
    %100 = vector.shape_cast %99 : vector<16x16x16xf32> to vector<256x16xf32>
    %101 = vector.extract_strided_slice %76 {offsets = [0, 2, 2, 0], sizes = [1, 16, 16, 16], strides = [1, 1, 1, 1]} : vector<1x18x18x16xf32> to vector<1x16x16x16xf32>
    %102 = vector.shape_cast %101 : vector<1x16x16x16xf32> to vector<16x16x16xf32>
    %103 = vector.shape_cast %102 : vector<16x16x16xf32> to vector<256x16xf32>
    %104 = tpu.concatenate %79, %82, %85, %88, %91, %94, %97, %100, %103 in 1 : vector<256x16xf32>, vector<256x16xf32>, vector<256x16xf32>, vector<256x16xf32>, vector<256x16xf32>, vector<256x16xf32>, vector<256x16xf32>, vector<256x16xf32>, vector<256x16xf32> -> vector<256x144xf32>
    %105 = vector.extract_strided_slice %8 {offsets = [1, 0, 0], sizes = [1, 144, 4], strides = [1, 1, 1]} : vector<3x144x4xf32> to vector<1x144x4xf32>
    %106 = vector.shape_cast %105 : vector<1x144x4xf32> to vector<144x4xf32>
    %cst_59 = arith.constant dense<0.000000e+00> : vector<256x4xf32>
    %107 = tpu.matmul %104, %106, %cst_59 {dimension_numbers = #tpu.dot_dimension_numbers<[1], [0], [0], [1], [0, 0, 1, 1], [], []>} : vector<256x144xf32>, vector<144x4xf32>, vector<256x4xf32> -> vector<256x4xf32>
    %108 = vector.extract_strided_slice %9 {offsets = [1, 0, 0], sizes = [1, 1, 4], strides = [1, 1, 1]} : vector<3x1x4xf32> to vector<1x1x4xf32>
    %109 = vector.shape_cast %108 : vector<1x1x4xf32> to vector<1x4xf32>
    %110 = vector.broadcast %109 : vector<1x4xf32> to vector<256x4xf32>
    %111 = arith.addf %107, %110 : vector<256x4xf32>
    %112 = vector.shape_cast %111 : vector<256x4xf32> to vector<1x16x16x4xf32>
    %c0_60 = arith.constant 0 : index
    %c0_61 = arith.constant 0 : index
    %c0_62 = arith.constant 0 : index
    %c8 = arith.constant 8 : index
    %113 = vector.load %arg6[%c0_60, %c0_61, %c0_62, %c8] : memref<1x16x16x16xf32, #tpu.memory_space<vmem>>, vector<1x16x16x4xf32>
    tpu.vector_store %arg6[%c0_60, %c0_61, %c0_62, %c8], %112 {strides = array<i32>} : memref<1x16x16x16xf32, #tpu.memory_space<vmem>>, vector<1x16x16x4xf32>,
    %c0_63 = arith.constant 0 : index
    %c0_64 = arith.constant 0 : index
    %c0_65 = arith.constant 0 : index
    %c0_66 = arith.constant 0 : index
    %114 = vector.load %arg6[%c0_63, %c0_64, %c0_65, %c0_66] : memref<1x16x16x16xf32, #tpu.memory_space<vmem>>, vector<1x16x16x16xf32>
    %115 = vector.extract_strided_slice %6 {offsets = [2, 0, 0, 0], sizes = [1, 1, 1, 16], strides = [1, 1, 1, 1]} : vector<3x1x1x16xf32> to vector<1x1x1x16xf32>
    %116 = vector.shape_cast %115 : vector<1x1x1x16xf32> to vector<1x1x16xf32>
    %117 = vector.shape_cast %116 : vector<1x1x16xf32> to vector<1x1x1x16xf32>
    %118 = vector.broadcast %117 : vector<1x1x1x16xf32> to vector<1x16x16x16xf32>
    %119 = arith.mulf %114, %118 : vector<1x16x16x16xf32>
    %120 = vector.extract_strided_slice %7 {offsets = [2, 0, 0, 0], sizes = [1, 1, 1, 16], strides = [1, 1, 1, 1]} : vector<3x1x1x16xf32> to vector<1x1x1x16xf32>
    %121 = vector.shape_cast %120 : vector<1x1x1x16xf32> to vector<1x1x16xf32>
    %122 = vector.shape_cast %121 : vector<1x1x16xf32> to vector<1x1x1x16xf32>
    %123 = vector.broadcast %122 : vector<1x1x1x16xf32> to vector<1x16x16x16xf32>
    %124 = arith.addf %119, %123 : vector<1x16x16x16xf32>
    %cst_67 = arith.constant 0.000000e+00 : f32
    %125 = vector.broadcast %cst_67 : f32 to vector<1x16x16x16xf32>
    %126 = arith.maximumf %124, %125 : vector<1x16x16x16xf32>
    %c0_68 = arith.constant 0 : index
    %c1_69 = arith.constant 1 : index
    %c1_70 = arith.constant 1 : index
    %c0_71 = arith.constant 0 : index
    %127 = vector.load %arg7[%c0_68, %c1_69, %c1_70, %c0_71] : memref<1x18x18x16xf32, #tpu.memory_space<vmem>>, vector<1x16x16x16xf32>
    tpu.vector_store %arg7[%c0_68, %c1_69, %c1_70, %c0_71], %126 {strides = array<i32>} : memref<1x18x18x16xf32, #tpu.memory_space<vmem>>, vector<1x16x16x16xf32>,
    %c0_72 = arith.constant 0 : index
    %c0_73 = arith.constant 0 : index
    %c0_74 = arith.constant 0 : index
    %c0_75 = arith.constant 0 : index
    %128 = vector.load %arg7[%c0_72, %c0_73, %c0_74, %c0_75] : memref<1x18x18x16xf32, #tpu.memory_space<vmem>>, vector<1x18x18x16xf32>
    %129 = vector.extract_strided_slice %128 {offsets = [0, 0, 0, 0], sizes = [1, 16, 16, 16], strides = [1, 1, 1, 1]} : vector<1x18x18x16xf32> to vector<1x16x16x16xf32>
    %130 = vector.shape_cast %129 : vector<1x16x16x16xf32> to vector<16x16x16xf32>
    %131 = vector.shape_cast %130 : vector<16x16x16xf32> to vector<256x16xf32>
    %132 = vector.extract_strided_slice %128 {offsets = [0, 0, 1, 0], sizes = [1, 16, 16, 16], strides = [1, 1, 1, 1]} : vector<1x18x18x16xf32> to vector<1x16x16x16xf32>
    %133 = vector.shape_cast %132 : vector<1x16x16x16xf32> to vector<16x16x16xf32>
    %134 = vector.shape_cast %133 : vector<16x16x16xf32> to vector<256x16xf32>
    %135 = vector.extract_strided_slice %128 {offsets = [0, 0, 2, 0], sizes = [1, 16, 16, 16], strides = [1, 1, 1, 1]} : vector<1x18x18x16xf32> to vector<1x16x16x16xf32>
    %136 = vector.shape_cast %135 : vector<1x16x16x16xf32> to vector<16x16x16xf32>
    %137 = vector.shape_cast %136 : vector<16x16x16xf32> to vector<256x16xf32>
    %138 = vector.extract_strided_slice %128 {offsets = [0, 1, 0, 0], sizes = [1, 16, 16, 16], strides = [1, 1, 1, 1]} : vector<1x18x18x16xf32> to vector<1x16x16x16xf32>
    %139 = vector.shape_cast %138 : vector<1x16x16x16xf32> to vector<16x16x16xf32>
    %140 = vector.shape_cast %139 : vector<16x16x16xf32> to vector<256x16xf32>
    %141 = vector.extract_strided_slice %128 {offsets = [0, 1, 1, 0], sizes = [1, 16, 16, 16], strides = [1, 1, 1, 1]} : vector<1x18x18x16xf32> to vector<1x16x16x16xf32>
    %142 = vector.shape_cast %141 : vector<1x16x16x16xf32> to vector<16x16x16xf32>
    %143 = vector.shape_cast %142 : vector<16x16x16xf32> to vector<256x16xf32>
    %144 = vector.extract_strided_slice %128 {offsets = [0, 1, 2, 0], sizes = [1, 16, 16, 16], strides = [1, 1, 1, 1]} : vector<1x18x18x16xf32> to vector<1x16x16x16xf32>
    %145 = vector.shape_cast %144 : vector<1x16x16x16xf32> to vector<16x16x16xf32>
    %146 = vector.shape_cast %145 : vector<16x16x16xf32> to vector<256x16xf32>
    %147 = vector.extract_strided_slice %128 {offsets = [0, 2, 0, 0], sizes = [1, 16, 16, 16], strides = [1, 1, 1, 1]} : vector<1x18x18x16xf32> to vector<1x16x16x16xf32>
    %148 = vector.shape_cast %147 : vector<1x16x16x16xf32> to vector<16x16x16xf32>
    %149 = vector.shape_cast %148 : vector<16x16x16xf32> to vector<256x16xf32>
    %150 = vector.extract_strided_slice %128 {offsets = [0, 2, 1, 0], sizes = [1, 16, 16, 16], strides = [1, 1, 1, 1]} : vector<1x18x18x16xf32> to vector<1x16x16x16xf32>
    %151 = vector.shape_cast %150 : vector<1x16x16x16xf32> to vector<16x16x16xf32>
    %152 = vector.shape_cast %151 : vector<16x16x16xf32> to vector<256x16xf32>
    %153 = vector.extract_strided_slice %128 {offsets = [0, 2, 2, 0], sizes = [1, 16, 16, 16], strides = [1, 1, 1, 1]} : vector<1x18x18x16xf32> to vector<1x16x16x16xf32>
    %154 = vector.shape_cast %153 : vector<1x16x16x16xf32> to vector<16x16x16xf32>
    %155 = vector.shape_cast %154 : vector<16x16x16xf32> to vector<256x16xf32>
    %156 = tpu.concatenate %131, %134, %137, %140, %143, %146, %149, %152, %155 in 1 : vector<256x16xf32>, vector<256x16xf32>, vector<256x16xf32>, vector<256x16xf32>, vector<256x16xf32>, vector<256x16xf32>, vector<256x16xf32>, vector<256x16xf32>, vector<256x16xf32> -> vector<256x144xf32>
    %157 = vector.extract_strided_slice %8 {offsets = [2, 0, 0], sizes = [1, 144, 4], strides = [1, 1, 1]} : vector<3x144x4xf32> to vector<1x144x4xf32>
    %158 = vector.shape_cast %157 : vector<1x144x4xf32> to vector<144x4xf32>
    %cst_76 = arith.constant dense<0.000000e+00> : vector<256x4xf32>
    %159 = tpu.matmul %156, %158, %cst_76 {dimension_numbers = #tpu.dot_dimension_numbers<[1], [0], [0], [1], [0, 0, 1, 1], [], []>} : vector<256x144xf32>, vector<144x4xf32>, vector<256x4xf32> -> vector<256x4xf32>
    %160 = vector.extract_strided_slice %9 {offsets = [2, 0, 0], sizes = [1, 1, 4], strides = [1, 1, 1]} : vector<3x1x4xf32> to vector<1x1x4xf32>
    %161 = vector.shape_cast %160 : vector<1x1x4xf32> to vector<1x4xf32>
    %162 = vector.broadcast %161 : vector<1x4xf32> to vector<256x4xf32>
    %163 = arith.addf %159, %162 : vector<256x4xf32>
    %164 = vector.shape_cast %163 : vector<256x4xf32> to vector<1x16x16x4xf32>
    %c0_77 = arith.constant 0 : index
    %c0_78 = arith.constant 0 : index
    %c0_79 = arith.constant 0 : index
    %c12 = arith.constant 12 : index
    %165 = vector.load %arg6[%c0_77, %c0_78, %c0_79, %c12] : memref<1x16x16x16xf32, #tpu.memory_space<vmem>>, vector<1x16x16x4xf32>
    tpu.vector_store %arg6[%c0_77, %c0_78, %c0_79, %c12], %164 {strides = array<i32>} : memref<1x16x16x16xf32, #tpu.memory_space<vmem>>, vector<1x16x16x4xf32>,
    return
  }
  func.func @transform_0(%arg0: i32) -> (i32, i32, i32, i32) {
    %c0_i32 = arith.constant 0 : i32
    %c0_i32_0 = arith.constant 0 : i32
    %c0_i32_1 = arith.constant 0 : i32
    %c0_i32_2 = arith.constant 0 : i32
    return %arg0, %c0_i32, %c0_i32_0, %c0_i32_1 : i32, i32, i32, i32
  }
  func.func @transform_1(%arg0: i32) -> (i32, i32, i32, i32) {
    %c0_i32 = arith.constant 0 : i32
    %c0_i32_0 = arith.constant 0 : i32
    %c0_i32_1 = arith.constant 0 : i32
    %c0_i32_2 = arith.constant 0 : i32
    %c0_i32_3 = arith.constant 0 : i32
    return %c0_i32, %c0_i32_0, %c0_i32_1, %c0_i32_2 : i32, i32, i32, i32
  }
  func.func @transform_2(%arg0: i32) -> (i32, i32, i32, i32) {
    %c0_i32 = arith.constant 0 : i32
    %c0_i32_0 = arith.constant 0 : i32
    %c0_i32_1 = arith.constant 0 : i32
    %c0_i32_2 = arith.constant 0 : i32
    %c0_i32_3 = arith.constant 0 : i32
    return %c0_i32, %c0_i32_0, %c0_i32_1, %c0_i32_2 : i32, i32, i32, i32
  }
  func.func @transform_3(%arg0: i32) -> (i32, i32, i32) {
    %c0_i32 = arith.constant 0 : i32
    %c0_i32_0 = arith.constant 0 : i32
    %c0_i32_1 = arith.constant 0 : i32
    %c0_i32_2 = arith.constant 0 : i32
    return %c0_i32, %c0_i32_0, %c0_i32_1 : i32, i32, i32
  }
  func.func @transform_4(%arg0: i32) -> (i32, i32, i32) {
    %c0_i32 = arith.constant 0 : i32
    %c0_i32_0 = arith.constant 0 : i32
    %c0_i32_1 = arith.constant 0 : i32
    %c0_i32_2 = arith.constant 0 : i32
    return %c0_i32, %c0_i32_0, %c0_i32_1 : i32, i32, i32
  }
  func.func @transform_5(%arg0: i32) -> (i32, i32, i32, i32) {
    %c0_i32 = arith.constant 0 : i32
    %c0_i32_0 = arith.constant 0 : i32
    %c0_i32_1 = arith.constant 0 : i32
    %c0_i32_2 = arith.constant 0 : i32
    return %arg0, %c0_i32, %c0_i32_0, %c0_i32_1 : i32, i32, i32, i32
  }
}

</mosaic_0001>

<bundles_post_ra>
// kernel: tpu_custom_call.1
= control target key start
LH: loop header
LB: loop body
LE: loop exit
PB: predicated region body
PF: predicated region fallthrough
CT: control target
= control target key end

     0   :  { %10 = vsyncpa [#allocation4], 0  ;;  %s13013_s0 = inlined_call_operand.vmem [shape: f32[2,16,16,4], index: 0, kind: input, shape index: {}]   ;;  %s13014_s1 = inlined_call_operand.vmem [shape: f32[3,1,1,16], index: 1, kind: input, shape index: {}]   ;;  %s13015_s2 = inlined_call_operand.vmem [shape: f32[3,1,1,16], index: 2, kind: input, shape index: {}]   ;;  %s13016_s3 = inlined_call_operand.vmem [shape: f32[3,144,4], index: 3, kind: input, shape index: {}]   ;;  %s13017_s4 = inlined_call_operand.vmem [shape: f32[3,1,4], index: 4, kind: input, shape index: {}]   ;;  %s13018_s5 = inlined_call_operand.hbm [shape: f32[2,16,16,16], index: 5, kind: output, shape index: {}]  }
   0x1   :  { %12 = vsyncpa [#allocation4 + $0x1], 0  ;;  %s7964_s18 = smov 0   ;;  %s7966_s19 = smov 0  }
   0x2   :  { %s7968_s20 = smov 0   ;;  %s7970_s21 = smov 0  }
   0x3 LB: > { %s7985_s22 = sadd.s32 4294967295, %s7920_s21   ;;  %s5938_s23 = sadd.s32 4294967294, %s7920_s21   ;;  %s7920_s21 = sphi %s7970_s21, %s13574_s21   ;;  %s7916_s20 = sphi %s7968_s20, %s13573_s20   ;;  %s7912_s19 = sphi %s7966_s19, %s13572_s19   ;;  %s7908_s18 = sphi %s7964_s18, %s13571_s18  }
   0x4   : > { %s7989_s24 = sadd.s32 1, %s7920_s21   ;;  %s135_s25 = sadd.s32 1, %s7916_s20 }
   0x5   : > { %s132_s26 = ssub.s32 %s7920_s21, %s7989_s24  ;;  %p145_p0 = scmp.ne.s32.totalorder %s7916_s20, %s7912_s19 }
   0x6   : > { %p133_p1 = scmp.eq.s32.totalorder %s132_s26, 0  ;;  %p146_p2 = scmp.eq.s32.totalorder %s7985_s22, 1 }
   0x7   : > { %p151_p3 = scmp.ne.s32.totalorder %s7912_s19, %s7908_s18  ;;  %p152_p4 = scmp.eq.s32.totalorder %s5938_s23, 1 }
   0x8   : > { %s8000_s27 = scalar_select %p133_p1, %s7916_s20, %s135_s25  }
   0x9   : > { %p8002_p5 = por %p146_p2, %p145_p0  ;;  %p8006_p6 = por %p152_p4, %p151_p3 }
   0xa   : > { %p5941_p7 = scmp.ge.s32.totalorder %s7920_s21, 1  ;;  %p190_p8 = scmp.lt.s32.totalorder %s7920_s21, 3 }
   0xc   : > { %p191_p9 = pnand %p5941_p7, %p190_p8 }
   0xe   : > { %194 = sbr.rel (%p191_p9) target bundleno = 2466 (0x9a2), region = 40 }
  0x13   : > { %vm223_vm0 = vcmask 130048   ;;  %vm258_vm1 = vcmask 123904   ;;  %v7922_v0 = vmov 0.0   ;;  %vm708_vm2 = vcmask 1046528   ;;  %s7923_s30 = smov 16   ;;  %p218_p10 = scmp.lt.s32.totalorder %s7985_s22, 1 }
  0x14   : > { %256 = vst.msk [vmem:[#allocation2] sm:$0xff] %vm223_vm0, %v7922_v0  ;;  %s13100_s7 = sand.u32 1, %s7912_s19   ;;  %vm343_vm3 = vcmask 31744   ;;  %v8165_v12 = vld [vmem:[%s13014_s1] ss:$0 sm:$0xff]  ;;  %vm789_vm4 = vcmask 1045504  }
  0x15   : > { %257 = vst.msk [vmem:[#allocation2 + $0x8] sm:$0xff] %vm223_vm0, %v7922_v0  ;;  %s219_s6 = scalar_select %p218_p10, %s7985_s22, 1  ;;  %v8176_v13 = vld [vmem:[%s13015_s2] ss:$0 sm:$0xff]  ;;  %vm1633_vm5 = vcmask 392192   ;;  %vm1600_vm6 = vcmask 261120  }
  0x16   : > { %259 = vst.msk [vmem:[#allocation2 + $0x10] sm:$0x3] %vm258_vm1, %v7922_v0  ;;  %s5942_s9 = sshll.u32 %s13100_s7, 8  ;;  %s7924_s23 = smov 32   ;;  %vm1666_vm7 = vcmask 523264   ;;  %vm1732_vm8 = vcmask 785408  }
  0x17   : > { %260 = vst.msk [vmem:[#allocation2 + $0x18] sm:$0xff] %vm223_vm0, %v7922_v0  ;;  %s6046_s8 = sshll.u32 %s219_s6, 8  ;;  %s8143_s13 = scalar_lea.vmem [#allocation3], %s5942_s9  ;;  %vm1699_vm9 = vcmask 654336   ;;  %vm1765_vm10 = vcmask 916480   ;;  %vm2219_vm11 = vcmask 64544  }
  0x18   : > { %261 = vst.msk [vmem:[#allocation2 + $0x20] sm:$0xff] %vm223_vm0, %v7922_v0  ;;  %s8134_s12 = scalar_lea.vmem %s13013_s0, %s6046_s8  ;;  %s7925_s25 = smov 48   ;;  %vm4023_vm12 = vcmask 97344   ;;  %vm5827_vm13 = vcmask 130144  }
  0x19   : > { %262 = vst.msk [vmem:[#allocation2 + $0x28] sm:$0x3] %vm258_vm1, %v7922_v0  ;;  %v317_v10 = vld [vmem:[%s8134_s12 + $0x30] sm:$0xff]  ;;  %v318_v11 = vld [vmem:[%s8134_s12 + $0x38] sm:$0xff]  ;;  %v311_v33 = vld [vmem:[%s8134_s12] sm:$0xff]  ;;  %s7926_s26 = smov 64  }
  0x1a   : > { %263 = vst.msk [vmem:[#allocation2 + $0x30] sm:$0xff] %vm223_vm0, %v7922_v0  ;;  %v313_v31 = vld [vmem:[%s8134_s12 + $0x10] sm:$0xff]  ;;  %v314_v32 = vld [vmem:[%s8134_s12 + $0x18] sm:$0xff]  ;;  %v312_v34 = vld [vmem:[%s8134_s12 + $0x8] sm:$0xff]  ;;  %s7927_s6 = smov 80   ;;  %s7928_s8 = smov 96  }
  0x1b   : > { %v8026_v1 = vld [vmem:[#allocation2] sm:$0xff]  ;;  %264 = vst.msk [vmem:[#allocation2 + $0x38] sm:$0xff] %vm223_vm0, %v7922_v0  ;;  %v320_v36 = vld [vmem:[%s8134_s12 + $0x48] sm:$0xff]  ;;  %v321_v39 = vld [vmem:[%s8134_s12 + $0x50] sm:$0xff]  ;;  %s7929_s9 = smov 112   ;;  %s7930_s17 = smov 4  }
  0x1c   : > { %v8030_v2 = vld [vmem:[#allocation2 + $0x8] sm:$0xff]  ;;  %v709_v3 = vrot.slane %v8026_v1, 1  ;;  %265 = vst.msk [vmem:[#allocation2 + $0x40] sm:$0x3] %vm258_vm1, %v7922_v0  ;;  %v319_v35 = vld [vmem:[%s8134_s12 + $0x40] sm:$0xff]  ;;  %v322_v40 = vld [vmem:[%s8134_s12 + $0x58] sm:$0xff] }
  0x1d   : > { %v8035_v4 = vld [vmem:[#allocation2 + $0x10] sm:$0x3]  ;;  %v710_v5 = vrot.slane %v8030_v2, 1  ;;  %266 = vst.msk [vmem:[#allocation2 + $0x48] sm:$0xff] %vm223_vm0, %v7922_v0  ;;  %v315_v37 = vld [vmem:[%s8134_s12 + $0x20] sm:$0xff]  ;;  %v316_v38 = vld [vmem:[%s8134_s12 + $0x28] sm:$0xff] }
  0x1e   : > { %v712_v6 = vrot.slane %v8035_v4, 1  ;;  %267 = vst.msk [vmem:[#allocation2 + $0x50] sm:$0xff] %vm223_vm0, %v7922_v0  ;;  %v325_v42 = vld [vmem:[%s8134_s12 + $0x70] sm:$0xff]  ;;  %v326_v45 = vld [vmem:[%s8134_s12 + $0x78] sm:$0xff]  ;;  %v323_v48 = vld [vmem:[%s8134_s12 + $0x60] sm:$0xff]  ;;  %s7931_s14 = smov 8  }
  0x1f   : > { %v711_v7 = vsel %vm708_vm2, %v709_v3, %v710_v5  ;;  %268 = vst.msk [vmem:[#allocation2 + $0x58] sm:$0x3] %vm258_vm1, %v7922_v0  ;;  %v324_v52 = vld [vmem:[%s8134_s12 + $0x68] sm:$0xff]  ;;  %s5873_s10 = sshll.u32 %s8143_s13, 4  ;;  %s5874_s10 = int_to_ptr.vmem [resolvable:$true] %s5873_s10 }
  0x20   : > { %v713_v8 = vsel %vm708_vm2, %v710_v5, %v712_v6  ;;  %269 = vst.msk [vmem:[#allocation2 + $0x60] sm:$0xff] %vm223_vm0, %v7922_v0 }
  0x21   : > { %v6103_v9 = vpack.i.bf16 %v713_v8, %v711_v7  ;;  %270 = vst.msk [vmem:[#allocation2 + $0x68] sm:$0xff] %vm223_vm0, %v7922_v0 }
  0x22   : > { %271 = vst.msk [vmem:[#allocation2 + $0x70] sm:$0x3] %vm258_vm1, %v7922_v0 }
  0x23   : > { %6104 = vrot.lane.b32.xlu0 %v6103_v9, %s7923_s30  ;;  %272 = vst.msk [vmem:[#allocation2 + $0x78] sm:$0xff] %vm223_vm0, %v7922_v0 }
  0x24   : > { %273 = vst.msk [vmem:[#allocation2 + $0x80] sm:$0xff] %vm223_vm0, %v7922_v0 }
  0x25   : > { %274 = vst.msk [vmem:[#allocation2 + $0x88] sm:$0x3] %vm258_vm1, %v7922_v0 }
  0x26   : > { %275 = vst.msk [vmem:[#allocation2 + $0x90] sm:$0xff] %vm223_vm0, %v7922_v0 }
  0x27   : > { %276 = vst.msk [vmem:[#allocation2 + $0x98] sm:$0xff] %vm223_vm0, %v7922_v0 }
  0x28   : > { %277 = vst.msk [vmem:[#allocation2 + $0xa0] sm:$0x3] %vm258_vm1, %v7922_v0 }
  0x29   : > { %278 = vst.msk [vmem:[#allocation2 + $0xa8] sm:$0xff] %vm223_vm0, %v7922_v0 }
  0x2a   : > { %279 = vst.msk [vmem:[#allocation2 + $0xb0] sm:$0xff] %vm223_vm0, %v7922_v0 }
  0x2b   : > { %280 = vst.msk [vmem:[#allocation2 + $0xb8] sm:$0x3] %vm258_vm1, %v7922_v0 }
  0x2c   : > { %281 = vst.msk [vmem:[#allocation2 + $0xc0] sm:$0xff] %vm223_vm0, %v7922_v0 }
  0x2d   : > { %282 = vst.msk [vmem:[#allocation2 + $0xc8] sm:$0xff] %vm223_vm0, %v7922_v0 }
  0x2e   : > { %283 = vst.msk [vmem:[#allocation2 + $0xd0] sm:$0x3] %vm258_vm1, %v7922_v0 }
  0x2f   : > { %284 = vst.msk [vmem:[#allocation2 + $0xd8] sm:$0xff] %vm223_vm0, %v7922_v0 }
  0x30   : > { %285 = vst.msk [vmem:[#allocation2 + $0xe0] sm:$0xff] %vm223_vm0, %v7922_v0 }
  0x31   : > { %286 = vst.msk [vmem:[#allocation2 + $0xe8] sm:$0x3] %vm258_vm1, %v7922_v0 }
  0x32   : > { %287 = vst.msk [vmem:[#allocation2 + $0xf0] sm:$0xff] %vm223_vm0, %v7922_v0 }
  0x33   : > { %288 = vst.msk [vmem:[#allocation2 + $0xf8] sm:$0xff] %vm223_vm0, %v7922_v0 }
  0x34   : > { %289 = vst.msk [vmem:[#allocation2 + $0x100] sm:$0x3] %vm258_vm1, %v7922_v0 }
  0x35   : > { %290 = vst.msk [vmem:[#allocation2 + $0x108] sm:$0xff] %vm223_vm0, %v7922_v0 }
  0x36   : > { %291 = vst.msk [vmem:[#allocation2 + $0x110] sm:$0xff] %vm223_vm0, %v7922_v0 }
  0x37   : > { %292 = vst.msk [vmem:[#allocation2 + $0x118] sm:$0x3] %vm258_vm1, %v7922_v0 }
  0x38   : > { %293 = vst.msk [vmem:[#allocation2 + $0x120] sm:$0xff] %vm223_vm0, %v7922_v0 }
  0x39   : > { %294 = vst.msk [vmem:[#allocation2 + $0x128] sm:$0xff] %vm223_vm0, %v7922_v0 }
  0x3a   : > { %295 = vst.msk [vmem:[#allocation2 + $0x130] sm:$0x3] %vm258_vm1, %v7922_v0 }
  0x3b   : > { %296 = vst.msk [vmem:[#allocation2 + $0x138] sm:$0xff] %vm223_vm0, %v7922_v0 }
  0x3c   : > { %297 = vst.msk [vmem:[#allocation2 + $0x140] sm:$0xff] %vm223_vm0, %v7922_v0 }
  0x3d   : > { %298 = vst.msk [vmem:[#allocation2 + $0x148] sm:$0x3] %vm258_vm1, %v7922_v0 }
  0x3e   : > { %299 = vst.msk [vmem:[#allocation2 + $0x150] sm:$0xff] %vm223_vm0, %v7922_v0 }
  0x3f   : > { %300 = vst.msk [vmem:[#allocation2 + $0x158] sm:$0xff] %vm223_vm0, %v7922_v0 }
  0x40   : > { %301 = vst.msk [vmem:[#allocation2 + $0x160] sm:$0x3] %vm258_vm1, %v7922_v0 }
  0x41   : > { %302 = vst.msk [vmem:[#allocation2 + $0x168] sm:$0xff] %vm223_vm0, %v7922_v0 }
  0x42   : > { %303 = vst.msk [vmem:[#allocation2 + $0x170] sm:$0xff] %vm223_vm0, %v7922_v0 }
  0x43   : > { %304 = vst.msk [vmem:[#allocation2 + $0x178] sm:$0x3] %vm258_vm1, %v7922_v0 }
  0x44   : > { %305 = vst.msk [vmem:[#allocation2 + $0x180] sm:$0xff] %vm223_vm0, %v7922_v0 }
  0x45   : > { %306 = vst.msk [vmem:[#allocation2 + $0x188] sm:$0xff] %vm223_vm0, %v7922_v0 }
  0x46   : > { %307 = vst.msk [vmem:[#allocation2 + $0x190] sm:$0x3] %vm258_vm1, %v7922_v0 }
  0x47   : > { %308 = vst.msk [vmem:[#allocation2 + $0x198] sm:$0xff] %vm223_vm0, %v7922_v0 }
  0x48   : > { %309 = vst.msk [vmem:[#allocation2 + $0x1a0] sm:$0xff] %vm223_vm0, %v7922_v0 }
  0x49   : > { %310 = vst.msk [vmem:[#allocation2 + $0x1a8] sm:$0x3] %vm258_vm1, %v7922_v0 }
  0x4a   : > { %230 = vst.msk [vmem:[%s8143_s13 + $0x30] sm:$0xff] %vm223_vm0, %v7922_v0 }
  0x4b   : > { %231 = vst.msk [vmem:[%s8143_s13 + $0x38] sm:$0xff] %vm223_vm0, %v7922_v0 }
  0x4c   : > { %350 = vst.msk [vmem:[%s8143_s13 + $0x30] sm:$0xff] %vm343_vm3, %v317_v10 }
  0x4d   : > { %351 = vst.msk [vmem:[%s8143_s13 + $0x38] sm:$0xff] %vm343_vm3, %v318_v11 }
  0x4e   : > { %224 = vst.msk [vmem:[%s8143_s13] sm:$0xff] %vm223_vm0, %v7922_v0 }
  0x4f   : > { %225 = vst.msk [vmem:[%s8143_s13 + $0x8] sm:$0xff] %vm223_vm0, %v7922_v0 }
  0x50   : > { %226 = vst.msk [vmem:[%s8143_s13 + $0x10] sm:$0xff] %vm223_vm0, %v7922_v0 }
  0x51   : > { %227 = vst.msk [vmem:[%s8143_s13 + $0x18] sm:$0xff] %vm223_vm0, %v7922_v0 }
  0x52   : > { %13207 = vst [vmem:[#allocation6_spill] sm:$0xff] %v8176_v13 }
  0x53   : > { %228 = vst.msk [vmem:[%s8143_s13 + $0x20] sm:$0xff] %vm223_vm0, %v7922_v0  ;;  %v445_v14 = vld [vmem:[%s8143_s13 + $0x30] sm:$0xff] }
  0x54   : > { %229 = vst.msk [vmem:[%s8143_s13 + $0x28] sm:$0xff] %vm223_vm0, %v7922_v0  ;;  %v446_v15 = vld [vmem:[%s8143_s13 + $0x38] sm:$0xff]  ;;  %v480_v16 = vmul.f32 %v8165_v12, %v445_v14 }
  0x55   : > { %232 = vst.msk [vmem:[%s8143_s13 + $0x40] sm:$0xff] %vm223_vm0, %v7922_v0  ;;  %v481_v17 = vmul.f32 %v8165_v12, %v446_v15 }
  0x56   : > { %233 = vst.msk [vmem:[%s8143_s13 + $0x48] sm:$0xff] %vm223_vm0, %v7922_v0  ;;  %v515_v18 = vadd.f32 %v8176_v13, %v480_v16 }
  0x57   : > { %234 = vst.msk [vmem:[%s8143_s13 + $0x50] sm:$0xff] %vm223_vm0, %v7922_v0  ;;  %v516_v19 = vadd.f32 %v8176_v13, %v481_v17 }
  0x58   : > { %235 = vst.msk [vmem:[%s8143_s13 + $0x58] sm:$0xff] %vm223_vm0, %v7922_v0  ;;  %v547_v20 = vmax.f32 %v515_v18, 0.0 }
  0x59   : > { %236 = vst.msk [vmem:[%s8143_s13 + $0x60] sm:$0xff] %vm223_vm0, %v7922_v0  ;;  %v548_v21 = vmax.f32 %v516_v19, 0.0 }
  0x5a   : > { %237 = vst.msk [vmem:[%s8143_s13 + $0x68] sm:$0xff] %vm223_vm0, %v7922_v0 }
  0x5b   : > { %580 = vst.msk [vmem:[#allocation2 + $0x61] sm:$0xff] %vm223_vm0, %v547_v20 }
  0x5c   : > { %581 = vst.msk [vmem:[#allocation2 + $0x69] sm:$0xff] %vm223_vm0, %v548_v21 }
  0x5d   : > { %238 = vst.msk [vmem:[%s8143_s13 + $0x70] sm:$0xff] %vm223_vm0, %v7922_v0 }
  0x5e   : > { %239 = vst.msk [vmem:[%s8143_s13 + $0x78] sm:$0xff] %vm223_vm0, %v7922_v0 }
  0x5f   : > { %240 = vst.msk [vmem:[%s8143_s13 + $0x80] sm:$0xff] %vm223_vm0, %v7922_v0 }
  0x60   : > { %241 = vst.msk [vmem:[%s8143_s13 + $0x88] sm:$0xff] %vm223_vm0, %v7922_v0 }
  0x61   : > { %242 = vst.msk [vmem:[%s8143_s13 + $0x90] sm:$0xff] %vm223_vm0, %v7922_v0 }
  0x62   : > { %v8225_v22 = vld [vmem:[#allocation2 + $0x60] sm:$0xff]  ;;  %243 = vst.msk [vmem:[%s8143_s13 + $0x98] sm:$0xff] %vm223_vm0, %v7922_v0 }
  0x63   : > { %v8230_v23 = vld [vmem:[#allocation2 + $0x68] sm:$0xff]  ;;  %v8232_v24 = vld [vmem:[#allocation2 + $0x70] sm:$0x3]  ;;  %v729_v25 = vrot.slane %v8225_v22, 1  ;;  %244 = vst.msk [vmem:[%s8143_s13 + $0xa0] sm:$0xff] %vm223_vm0, %v7922_v0 }
  0x64   : > { %v730_v26 = vrot.slane %v8230_v23, 1  ;;  %v732_v27 = vrot.slane %v8232_v24, 1  ;;  %245 = vst.msk [vmem:[%s8143_s13 + $0xa8] sm:$0xff] %vm223_vm0, %v7922_v0 }
  0x65   : > { %246 = vst.msk [vmem:[%s8143_s13 + $0xb0] sm:$0xff] %vm223_vm0, %v7922_v0 }
  0x66   : > { %v731_v28 = vsel %vm708_vm2, %v729_v25, %v730_v26  ;;  %v733_v29 = vsel %vm708_vm2, %v730_v26, %v732_v27  ;;  %247 = vst.msk [vmem:[%s8143_s13 + $0xb8] sm:$0xff] %vm223_vm0, %v7922_v0 }
  0x67   : > { %v8251_v30 = vpack.i.bf16 %v733_v29, %v731_v28  ;;  %248 = vst.msk [vmem:[%s8143_s13 + $0xc0] sm:$0xff] %vm223_vm0, %v7922_v0 }
  0x68   : > { %249 = vst.msk [vmem:[%s8143_s13 + $0xc8] sm:$0xff] %vm223_vm0, %v7922_v0 }
  0x69   : > { %13208 = vst [vmem:[#allocation7_spill] sm:$0xff] %v8251_v30  ;;  %6124 = vrot.lane.b32.xlu2 %v8251_v30, %s7923_s30 }
  0x6a   : > { %250 = vst.msk [vmem:[%s8143_s13 + $0xd0] sm:$0xff] %vm223_vm0, %v7922_v0 }
  0x6b   : > { %251 = vst.msk [vmem:[%s8143_s13 + $0xd8] sm:$0xff] %vm223_vm0, %v7922_v0 }
  0x6c   : > { %252 = vst.msk [vmem:[%s8143_s13 + $0xe0] sm:$0xff] %vm223_vm0, %v7922_v0 }
  0x6d   : > { %253 = vst.msk [vmem:[%s8143_s13 + $0xe8] sm:$0xff] %vm223_vm0, %v7922_v0 }
  0x6e   : > { %254 = vst.msk [vmem:[%s8143_s13 + $0xf0] sm:$0xff] %vm223_vm0, %v7922_v0 }
  0x6f   : > { %255 = vst.msk [vmem:[%s8143_s13 + $0xf8] sm:$0xff] %vm223_vm0, %v7922_v0 }
  0x70   : > { %346 = vst.msk [vmem:[%s8143_s13 + $0x10] sm:$0xff] %vm343_vm3, %v313_v31 }
  0x71   : > { %347 = vst.msk [vmem:[%s8143_s13 + $0x18] sm:$0xff] %vm343_vm3, %v314_v32 }
  0x72   : > { %344 = vst.msk [vmem:[%s8143_s13] sm:$0xff] %vm343_vm3, %v311_v33 }
  0x73   : > { %345 = vst.msk [vmem:[%s8143_s13 + $0x8] sm:$0xff] %vm343_vm3, %v312_v34 }
  0x74   : > { %352 = vst.msk [vmem:[%s8143_s13 + $0x40] sm:$0xff] %vm343_vm3, %v319_v35 }
  0x75   : > { %353 = vst.msk [vmem:[%s8143_s13 + $0x48] sm:$0xff] %vm343_vm3, %v320_v36 }
  0x76   : > { %348 = vst.msk [vmem:[%s8143_s13 + $0x20] sm:$0xff] %vm343_vm3, %v315_v37 }
  0x77   : > { %v441_v41 = vld [vmem:[%s8143_s13 + $0x10] sm:$0xff]  ;;  %349 = vst.msk [vmem:[%s8143_s13 + $0x28] sm:$0xff] %vm343_vm3, %v316_v38 }
  0x78   : > { %v442_v43 = vld [vmem:[%s8143_s13 + $0x18] sm:$0xff]  ;;  %v476_v44 = vmul.f32 %v8165_v12, %v441_v41  ;;  %354 = vst.msk [vmem:[%s8143_s13 + $0x50] sm:$0xff] %vm343_vm3, %v321_v39 }
  0x79   : > { %v477_v46 = vmul.f32 %v8165_v12, %v442_v43  ;;  %v439_v47 = vld [vmem:[%s8143_s13] sm:$0xff]  ;;  %355 = vst.msk [vmem:[%s8143_s13 + $0x58] sm:$0xff] %vm343_vm3, %v322_v40 }
  0x7a   : > { %v511_v49 = vadd.f32 %v8176_v13, %v476_v44  ;;  %v440_v50 = vld [vmem:[%s8143_s13 + $0x8] sm:$0xff]  ;;  %v474_v51 = vmul.f32 %v8165_v12, %v439_v47  ;;  %358 = vst.msk [vmem:[%s8143_s13 + $0x70] sm:$0xff] %vm343_vm3, %v325_v42 }
  0x7b   : > { %v512_v53 = vadd.f32 %v8176_v13, %v477_v46  ;;  %v475_v54 = vmul.f32 %v8165_v12, %v440_v50  ;;  %v447_v55 = vld [vmem:[%s8143_s13 + $0x40] sm:$0xff]  ;;  %359 = vst.msk [vmem:[%s8143_s13 + $0x78] sm:$0xff] %vm343_vm3, %v326_v45 }
  0x7c   : > { %v543_v56 = vmax.f32 %v511_v49, 0.0  ;;  %v509_v57 = vadd.f32 %v8176_v13, %v474_v51  ;;  %v448_v58 = vld [vmem:[%s8143_s13 + $0x48] sm:$0xff]  ;;  %v482_v59 = vmul.f32 %v8165_v12, %v447_v55  ;;  %356 = vst.msk [vmem:[%s8143_s13 + $0x60] sm:$0xff] %vm343_vm3, %v323_v48  ;;  %v327_v51 = vld [vmem:[%s8134_s12 + $0x80] sm:$0xff] }
  0x7d   : > { %v544_v60 = vmax.f32 %v512_v53, 0.0  ;;  %v510_v61 = vadd.f32 %v8176_v13, %v475_v54  ;;  %v483_v62 = vmul.f32 %v8165_v12, %v448_v58  ;;  %v443_v63 = vld [vmem:[%s8143_s13 + $0x20] sm:$0xff]  ;;  %357 = vst.msk [vmem:[%s8143_s13 + $0x68] sm:$0xff] %vm343_vm3, %v324_v52 }
  0x7e   : > { %576 = vst.msk [vmem:[#allocation2 + $0x31] sm:$0xff] %vm223_vm0, %v543_v56  ;;  %v541_v0 = vmax.f32 %v509_v57, 0.0  ;;  %v517_v3 = vadd.f32 %v8176_v13, %v482_v59  ;;  %v444_v5 = vld [vmem:[%s8143_s13 + $0x28] sm:$0xff]  ;;  %v478_v6 = vmul.f32 %v8165_v12, %v443_v63 }
  0x7f   : > { %577 = vst.msk [vmem:[#allocation2 + $0x39] sm:$0xff] %vm223_vm0, %v544_v60  ;;  %v542_v7 = vmax.f32 %v510_v61, 0.0  ;;  %v518_v8 = vadd.f32 %v8176_v13, %v483_v62  ;;  %v479_v9 = vmul.f32 %v8165_v12, %v444_v5  ;;  %v449_v10 = vld [vmem:[%s8143_s13 + $0x50] sm:$0xff]  ;;  %v328_v61 = vld [vmem:[%s8134_s12 + $0x88] sm:$0xff] }
  0x80   : > { %574 = vst.msk [vmem:[#allocation2 + $0x19] sm:$0xff] %vm223_vm0, %v541_v0  ;;  %v549_v11 = vmax.f32 %v517_v3, 0.0  ;;  %v513_v14 = vadd.f32 %v8176_v13, %v478_v6  ;;  %v450_v15 = vld [vmem:[%s8143_s13 + $0x58] sm:$0xff]  ;;  %v484_v16 = vmul.f32 %v8165_v12, %v449_v10 }
  0x81   : > { %575 = vst.msk [vmem:[#allocation2 + $0x21] sm:$0xff] %vm223_vm0, %v542_v7  ;;  %v550_v17 = vmax.f32 %v518_v8, 0.0  ;;  %v514_v18 = vadd.f32 %v8176_v13, %v479_v9  ;;  %v485_v19 = vmul.f32 %v8165_v12, %v450_v15  ;;  %v453_v20 = vld [vmem:[%s8143_s13 + $0x70] sm:$0xff] }
  0x82   : > { %582 = vst.msk [vmem:[#allocation2 + $0x79] sm:$0xff] %vm223_vm0, %v549_v11  ;;  %v545_v21 = vmax.f32 %v513_v14, 0.0  ;;  %v519_v25 = vadd.f32 %v8176_v13, %v484_v16  ;;  %v454_v26 = vld [vmem:[%s8143_s13 + $0x78] sm:$0xff]  ;;  %v488_v27 = vmul.f32 %v8165_v12, %v453_v20  ;;  %v331_v11 = vld [vmem:[%s8134_s12 + $0xa0] sm:$0xff] }
  0x83   : > { %583 = vst.msk [vmem:[#allocation2 + $0x81] sm:$0xff] %vm223_vm0, %v550_v17  ;;  %v546_v28 = vmax.f32 %v514_v18, 0.0  ;;  %v520_v29 = vadd.f32 %v8176_v13, %v485_v19  ;;  %v489_v31 = vmul.f32 %v8165_v12, %v454_v26  ;;  %v451_v32 = vld [vmem:[%s8143_s13 + $0x60] sm:$0xff]  ;;  %v332_v18 = vld [vmem:[%s8134_s12 + $0xa8] sm:$0xff] }
  0x84   : > { %578 = vst.msk [vmem:[#allocation2 + $0x49] sm:$0xff] %vm223_vm0, %v545_v21  ;;  %v551_v33 = vmax.f32 %v519_v25, 0.0  ;;  %v523_v34 = vadd.f32 %v8176_v13, %v488_v27  ;;  %v452_v35 = vld [vmem:[%s8143_s13 + $0x68] sm:$0xff]  ;;  %v486_v36 = vmul.f32 %v8165_v12, %v451_v32  ;;  %v329_v27 = vld [vmem:[%s8134_s12 + $0x90] sm:$0xff] }
  0x85   : > { %v8366_v37 = vld [vmem:[#allocation2 + $0x30] sm:$0xff]  ;;  %579 = vst.msk [vmem:[#allocation2 + $0x51] sm:$0xff] %vm223_vm0, %v546_v28  ;;  %v552_v38 = vmax.f32 %v520_v29, 0.0  ;;  %v524_v39 = vadd.f32 %v8176_v13, %v489_v31  ;;  %v487_v40 = vmul.f32 %v8165_v12, %v452_v35 }
  0x86   : > { %v8371_v41 = vld [vmem:[#allocation2 + $0x38] sm:$0xff]  ;;  %v8373_v42 = vld [vmem:[#allocation2 + $0x40] sm:$0x3]  ;;  %v719_v43 = vrot.slane %v8366_v37, 1  ;;  %584 = vst.msk [vmem:[#allocation2 + $0x91] sm:$0xff] %vm223_vm0, %v551_v33  ;;  %v555_v44 = vmax.f32 %v523_v34, 0.0  ;;  %v521_v45 = vadd.f32 %v8176_v13, %v486_v36 }
  0x87   : > { %v720_v46 = vrot.slane %v8371_v41, 1  ;;  %v722_v47 = vrot.slane %v8373_v42, 1  ;;  %v8380_v48 = vld [vmem:[#allocation2 + $0x18] sm:$0xff]  ;;  %585 = vst.msk [vmem:[#allocation2 + $0x99] sm:$0xff] %vm223_vm0, %v552_v38  ;;  %v556_v49 = vmax.f32 %v524_v39, 0.0  ;;  %v522_v50 = vadd.f32 %v8176_v13, %v487_v40  ;;  %v333_v40 = vld [vmem:[%s8134_s12 + $0xb0] sm:$0xff] }
  0x88   : > { %v8385_v52 = vld [vmem:[#allocation2 + $0x20] sm:$0xff]  ;;  %v8387_v53 = vld [vmem:[#allocation2 + $0x28] sm:$0x3]  ;;  %v714_v54 = vrot.slane %v8380_v48, 1  ;;  %588 = vst.msk [vmem:[#allocation2 + $0xc1] sm:$0xff] %vm223_vm0, %v555_v44  ;;  %v553_v55 = vmax.f32 %v521_v45, 0.0 }
  0x89   : > { %v721_v56 = vsel %vm708_vm2, %v719_v43, %v720_v46  ;;  %v723_v57 = vsel %vm708_vm2, %v720_v46, %v722_v47  ;;  %v715_v58 = vrot.slane %v8385_v52, 1  ;;  %v717_v59 = vrot.slane %v8387_v53, 1  ;;  %v8395_v60 = vld [vmem:[#allocation2 + $0x78] sm:$0xff]  ;;  %589 = vst.msk [vmem:[#allocation2 + $0xc9] sm:$0xff] %vm223_vm0, %v556_v49 }
  0x8a   : > { %v8399_v62 = vpack.i.bf16 %v723_v57, %v721_v56  ;;  %v8401_v63 = vld [vmem:[#allocation2 + $0x80] sm:$0xff]  ;;  %v8403_v0 = vld [vmem:[#allocation2 + $0x88] sm:$0x3]  ;;  %v734_v3 = vrot.slane %v8395_v60, 1  ;;  %v554_v5 = vmax.f32 %v522_v50, 0.0  ;;  %586 = vst.msk [vmem:[#allocation2 + $0xa9] sm:$0xff] %vm223_vm0, %v553_v55 }
  0x8b   : > { %v716_v6 = vsel %vm708_vm2, %v714_v54, %v715_v58  ;;  %v718_v7 = vsel %vm708_vm2, %v715_v58, %v717_v59  ;;  %v735_v8 = vrot.slane %v8401_v63, 1  ;;  %v737_v9 = vrot.slane %v8403_v0, 1  ;;  %v8411_v10 = vld [vmem:[#allocation2 + $0x48] sm:$0xff]  ;;  %360 = vst.msk [vmem:[%s8143_s13 + $0x80] sm:$0xff] %vm343_vm3, %v327_v51  ;;  %v330_v33 = vld [vmem:[%s8134_s12 + $0x98] sm:$0xff]  ;;  %v337_v56 = vld [vmem:[%s8134_s12 + $0xd0] sm:$0xff] }
  0x8c   : > { %13209 = vst [vmem:[#allocation8_spill] sm:$0xff] %v8399_v62  ;;  %6114 = vrot.lane.b32.xlu1 %v8399_v62, %s7923_s30  ;;  %v8418_v14 = vpack.i.bf16 %v718_v7, %v716_v6  ;;  %v8420_v15 = vld [vmem:[#allocation2 + $0x50] sm:$0xff]  ;;  %v8422_v16 = vld [vmem:[#allocation2 + $0x58] sm:$0x3]  ;;  %v724_v17 = vrot.slane %v8411_v10, 1  ;;  %v795_v30 = vrot.slane %v8380_v48, 2 }
  0x8d   : > { %587 = vst.msk [vmem:[#allocation2 + $0xb1] sm:$0xff] %vm223_vm0, %v554_v5  ;;  %v736_v19 = vsel %vm708_vm2, %v734_v3, %v735_v8  ;;  %v738_v20 = vsel %vm708_vm2, %v735_v8, %v737_v9  ;;  %v725_v21 = vrot.slane %v8420_v15, 1  ;;  %v727_v25 = vrot.slane %v8422_v16, 1  ;;  %v8431_v26 = vld [vmem:[#allocation2 + $0x90] sm:$0xff]  ;;  %v334_v47 = vld [vmem:[%s8134_s12 + $0xb8] sm:$0xff]  ;;  %v335_v9 = vld [vmem:[%s8134_s12 + $0xc0] sm:$0xff] }
  0x8e   : > { %13210 = vst [vmem:[#allocation9_spill] sm:$0xff] %v8418_v14  ;;  %6109 = vrot.lane.b32.xlu0 %v8418_v14, %s7923_s30  ;;  %v8438_v28 = vpack.i.bf16 %v738_v20, %v736_v19  ;;  %v8440_v29 = vld [vmem:[#allocation2 + $0x98] sm:$0xff]  ;;  %v8442_v31 = vld [vmem:[#allocation2 + $0xa0] sm:$0x3]  ;;  %v739_v32 = vrot.slane %v8431_v26, 1  ;;  %v336_v20 = vld [vmem:[%s8134_s12 + $0xc8] sm:$0xff] }
  0x8f   : > { %361 = vst.msk [vmem:[%s8143_s13 + $0x88] sm:$0xff] %vm343_vm3, %v328_v61  ;;  %v726_v34 = vsel %vm708_vm2, %v724_v17, %v725_v21  ;;  %v728_v35 = vsel %vm708_vm2, %v725_v21, %v727_v25  ;;  %v740_v36 = vrot.slane %v8440_v29, 1  ;;  %v742_v38 = vrot.slane %v8442_v31, 1  ;;  %v8452_v39 = vld [vmem:[#allocation2 + $0xc0] sm:$0xff]  ;;  %v338_v61 = vld [vmem:[%s8134_s12 + $0xd8] sm:$0xff] }
  0x90   : > { %13211 = vst [vmem:[#allocation10_spill] sm:$0xff] %v8438_v28  ;;  %6129 = vrot.lane.b32.xlu2 %v8438_v28, %s7923_s30  ;;  %v8459_v43 = vpack.i.bf16 %v728_v35, %v726_v34  ;;  %v8461_v44 = vld [vmem:[#allocation2 + $0xc8] sm:$0xff]  ;;  %v8463_v45 = vld [vmem:[#allocation2 + $0xd0] sm:$0x3]  ;;  %v749_v46 = vrot.slane %v8452_v39, 1  ;;  %v798_v14 = vrot.slane %v8387_v53, 2 }
  0x91   : > { %364 = vst.msk [vmem:[%s8143_s13 + $0xa0] sm:$0xff] %vm343_vm3, %v331_v11  ;;  %v741_v49 = vsel %vm708_vm2, %v739_v32, %v740_v36  ;;  %v743_v50 = vsel %vm708_vm2, %v740_v36, %v742_v38  ;;  %v750_v51 = vrot.slane %v8461_v44, 1  ;;  %v752_v54 = vrot.slane %v8463_v45, 1  ;;  %v8473_v55 = vld [vmem:[#allocation2 + $0xa8] sm:$0xff]  ;;  %v339_v32 = vld [vmem:[%s8134_s12 + $0xe0] sm:$0xff] }
  0x92   : > { %365 = vst.msk [vmem:[%s8143_s13 + $0xa8] sm:$0xff] %vm343_vm3, %v332_v18  ;;  %v8478_v57 = vpack.i.bf16 %v743_v50, %v741_v49  ;;  %v744_v58 = vrot.slane %v8473_v55, 1  ;;  %v455_v59 = vld [vmem:[%s8143_s13 + $0x80] sm:$0xff]  ;;  %v340_v49 = vld [vmem:[%s8134_s12 + $0xe8] sm:$0xff] }
  0x93   : > { %13212 = vst [vmem:[#allocation11_spill] sm:$0xff] %v8459_v43  ;;  %v751_v3 = vsel %vm708_vm2, %v749_v46, %v750_v51  ;;  %v753_v5 = vsel %vm708_vm2, %v750_v51, %v752_v54  ;;  %v490_v8 = vmul.f32 %v8165_v12, %v455_v59 }
  0x94   : > { %362 = vst.msk [vmem:[%s8143_s13 + $0x90] sm:$0xff] %vm343_vm3, %v329_v27  ;;  %v8487_v6 = vld [vmem:[#allocation2 + $0xb0] sm:$0xff]  ;;  %v8489_v7 = vld [vmem:[#allocation2 + $0xb8] sm:$0x3]  ;;  %6119 = vrot.lane.b32.xlu1 %v8459_v43, %s7923_s30  ;;  %v8497_v11 = vpack.i.bf16 %v753_v5, %v751_v3 }
  0x95   : > { %363 = vst.msk [vmem:[%s8143_s13 + $0x98] sm:$0xff] %vm343_vm3, %v330_v33  ;;  %v745_v17 = vrot.slane %v8487_v6, 1  ;;  %v747_v18 = vrot.slane %v8489_v7, 1  ;;  %v525_v25 = vadd.f32 %v8176_v13, %v490_v8 }
  0x96   : > { %13213 = vst [vmem:[#allocation12_spill] sm:$0xff] %v8478_v57  ;;  %v456_v19 = vld [vmem:[%s8143_s13 + $0x88] sm:$0xff]  ;;  %6134 = vrot.lane.b32.xlu0 %v8478_v57, %s7923_s30 }
  0x97   : > { %366 = vst.msk [vmem:[%s8143_s13 + $0xb0] sm:$0xff] %vm343_vm3, %v333_v40  ;;  %v491_v21 = vmul.f32 %v8165_v12, %v456_v19  ;;  %v746_v33 = vsel %vm708_vm2, %v744_v58, %v745_v17  ;;  %v748_v34 = vsel %vm708_vm2, %v745_v17, %v747_v18  ;;  %v557_v40 = vmax.f32 %v525_v25, 0.0 }
  0x98   : > { %367 = vst.msk [vmem:[%s8143_s13 + $0xb8] sm:$0xff] %vm343_vm3, %v334_v47  ;;  %v459_v27 = vld [vmem:[%s8143_s13 + $0xa0] sm:$0xff]  ;;  %6144 = vrot.lane.b32.xlu2 %v8497_v11, %s7923_s30  ;;  %v8527_v50 = vpack.i.bf16 %v748_v34, %v746_v33 }
  0x99   : > { %13214 = vst [vmem:[#allocation13_spill] sm:$0xff] %v8497_v11  ;;  %v460_v35 = vld [vmem:[%s8143_s13 + $0xa8] sm:$0xff]  ;;  %v494_v36 = vmul.f32 %v8165_v12, %v459_v27  ;;  %v526_v38 = vadd.f32 %v8176_v13, %v491_v21 }
  0x9a   : > { %370 = vst.msk [vmem:[%s8143_s13 + $0xd0] sm:$0xff] %vm343_vm3, %v337_v56  ;;  %v495_v46 = vmul.f32 %v8165_v12, %v460_v35 }
  0x9b   : > { %371 = vst.msk [vmem:[%s8143_s13 + $0xd8] sm:$0xff] %vm343_vm3, %v338_v61  ;;  %v457_v47 = vld [vmem:[%s8143_s13 + $0x90] sm:$0xff]  ;;  %v529_v51 = vadd.f32 %v8176_v13, %v494_v36  ;;  %v558_v58 = vmax.f32 %v526_v38, 0.0 }
  0x9c   : > { %368 = vst.msk [vmem:[%s8143_s13 + $0xc0] sm:$0xff] %vm343_vm3, %v335_v9  ;;  %v458_v54 = vld [vmem:[%s8143_s13 + $0x98] sm:$0xff]  ;;  %v492_v56 = vmul.f32 %v8165_v12, %v457_v47  ;;  %v530_v59 = vadd.f32 %v8176_v13, %v495_v46  ;;  %6139 = vrot.lane.b32.xlu1 %v8527_v50, %s7923_s30 }
  0x9d   : > { %369 = vst.msk [vmem:[%s8143_s13 + $0xc8] sm:$0xff] %vm343_vm3, %v336_v20  ;;  %v493_v61 = vmul.f32 %v8165_v12, %v458_v54  ;;  %v561_v5 = vmax.f32 %v529_v51, 0.0 }
  0x9e   : > { %13215 = vst [vmem:[#allocation14_spill] sm:$0xff] %v8527_v50  ;;  %v461_v3 = vld [vmem:[%s8143_s13 + $0xb0] sm:$0xff]  ;;  %v527_v8 = vadd.f32 %v8176_v13, %v492_v56  ;;  %v562_v18 = vmax.f32 %v530_v59, 0.0 }
  0x9f   : > { %372 = vst.msk [vmem:[%s8143_s13 + $0xe0] sm:$0xff] %vm343_vm3, %v339_v32  ;;  %v462_v9 = vld [vmem:[%s8143_s13 + $0xb8] sm:$0xff]  ;;  %v496_v17 = vmul.f32 %v8165_v12, %v461_v3  ;;  %v528_v19 = vadd.f32 %v8176_v13, %v493_v61 }
  0xa0   : > { %590 = vst.msk [vmem:[#allocation2 + $0xd9] sm:$0xff] %vm223_vm0, %v557_v40  ;;  %v497_v20 = vmul.f32 %v8165_v12, %v462_v9  ;;  %v559_v25 = vmax.f32 %v527_v8, 0.0 }
  0xa1   : > { %373 = vst.msk [vmem:[%s8143_s13 + $0xe8] sm:$0xff] %vm343_vm3, %v340_v49  ;;  %v465_v21 = vld [vmem:[%s8143_s13 + $0xd0] sm:$0xff]  ;;  %v531_v27 = vadd.f32 %v8176_v13, %v496_v17  ;;  %v560_v34 = vmax.f32 %v528_v19, 0.0 }
  0xa2   : > { %591 = vst.msk [vmem:[#allocation2 + $0xe1] sm:$0xff] %vm223_vm0, %v558_v58  ;;  %v466_v32 = vld [vmem:[%s8143_s13 + $0xd8] sm:$0xff]  ;;  %v500_v33 = vmul.f32 %v8165_v12, %v465_v21  ;;  %v532_v35 = vadd.f32 %v8176_v13, %v497_v20 }
  0xa3   : > { %594 = vst.msk [vmem:[#allocation2 + $0x109] sm:$0xff] %vm223_vm0, %v561_v5  ;;  %v501_v36 = vmul.f32 %v8165_v12, %v466_v32  ;;  %v463_v38 = vld [vmem:[%s8143_s13 + $0xc0] sm:$0xff]  ;;  %v563_v40 = vmax.f32 %v531_v27, 0.0 }
  0xa4   : > { %595 = vst.msk [vmem:[#allocation2 + $0x111] sm:$0xff] %vm223_vm0, %v562_v18  ;;  %v535_v46 = vadd.f32 %v8176_v13, %v500_v33  ;;  %v464_v47 = vld [vmem:[%s8143_s13 + $0xc8] sm:$0xff]  ;;  %v498_v49 = vmul.f32 %v8165_v12, %v463_v38  ;;  %v564_v51 = vmax.f32 %v532_v35, 0.0 }
  0xa5   : > { %592 = vst.msk [vmem:[#allocation2 + $0xf1] sm:$0xff] %vm223_vm0, %v559_v25  ;;  %v536_v54 = vadd.f32 %v8176_v13, %v501_v36  ;;  %v499_v56 = vmul.f32 %v8165_v12, %v464_v47 }
  0xa6   : > { %593 = vst.msk [vmem:[#allocation2 + $0xf9] sm:$0xff] %vm223_vm0, %v560_v34  ;;  %v467_v58 = vld [vmem:[%s8143_s13 + $0xe0] sm:$0xff]  ;;  %v567_v61 = vmax.f32 %v535_v46, 0.0  ;;  %v533_v3 = vadd.f32 %v8176_v13, %v498_v49 }
  0xa7   : > { %v8565_v59 = vld [vmem:[#allocation2 + $0xd8] sm:$0xff]  ;;  %596 = vst.msk [vmem:[#allocation2 + $0x121] sm:$0xff] %vm223_vm0, %v563_v40  ;;  %v502_v5 = vmul.f32 %v8165_v12, %v467_v58  ;;  %v568_v9 = vmax.f32 %v536_v54, 0.0  ;;  %v534_v17 = vadd.f32 %v8176_v13, %v499_v56 }
  0xa8   : > { %v754_v8 = vrot.slane %v8565_v59, 1  ;;  %597 = vst.msk [vmem:[#allocation2 + $0x129] sm:$0xff] %vm223_vm0, %v564_v51  ;;  %v468_v18 = vld [vmem:[%s8143_s13 + $0xe8] sm:$0xff]  ;;  %v565_v21 = vmax.f32 %v533_v3, 0.0 }
  0xa9   : > { %v8574_v19 = vld [vmem:[#allocation2 + $0xe0] sm:$0xff]  ;;  %v8576_v20 = vld [vmem:[#allocation2 + $0xe8] sm:$0x3]  ;;  %600 = vst.msk [vmem:[#allocation2 + $0x151] sm:$0xff] %vm223_vm0, %v567_v61  ;;  %v503_v25 = vmul.f32 %v8165_v12, %v468_v18  ;;  %v537_v27 = vadd.f32 %v8176_v13, %v502_v5  ;;  %v566_v35 = vmax.f32 %v534_v17, 0.0 }
  0xaa   : > { %v755_v32 = vrot.slane %v8574_v19, 1  ;;  %v757_v33 = vrot.slane %v8576_v20, 1  ;;  %v8583_v34 = vld [vmem:[#allocation2 + $0x108] sm:$0xff]  ;;  %601 = vst.msk [vmem:[#allocation2 + $0x159] sm:$0xff] %vm223_vm0, %v568_v9 }
  0xab   : > { %v8586_v36 = vld [vmem:[#allocation2 + $0x110] sm:$0xff]  ;;  %v8588_v38 = vld [vmem:[#allocation2 + $0x118] sm:$0x3]  ;;  %v764_v40 = vrot.slane %v8583_v34, 1  ;;  %598 = vst.msk [vmem:[#allocation2 + $0x139] sm:$0xff] %vm223_vm0, %v565_v21  ;;  %v538_v46 = vadd.f32 %v8176_v13, %v503_v25  ;;  %v569_v47 = vmax.f32 %v537_v27, 0.0 }
  0xac   : > { %v756_v49 = vsel %vm708_vm2, %v754_v8, %v755_v32  ;;  %v758_v51 = vsel %vm708_vm2, %v755_v32, %v757_v33  ;;  %v765_v54 = vrot.slane %v8586_v36, 1  ;;  %v767_v56 = vrot.slane %v8588_v38, 1  ;;  %v8597_v58 = vld [vmem:[#allocation2 + $0xf0] sm:$0xff]  ;;  %599 = vst.msk [vmem:[#allocation2 + $0x141] sm:$0xff] %vm223_vm0, %v566_v35 }
  0xad   : > { %v8600_v61 = vpack.i.bf16 %v758_v51, %v756_v49  ;;  %v8602_v3 = vld [vmem:[#allocation2 + $0xf8] sm:$0xff]  ;;  %v8604_v5 = vld [vmem:[#allocation2 + $0x100] sm:$0x3]  ;;  %v759_v9 = vrot.slane %v8597_v58, 1  ;;  %v570_v17 = vmax.f32 %v538_v46, 0.0  ;;  %602 = vst.msk [vmem:[#allocation2 + $0x169] sm:$0xff] %vm223_vm0, %v569_v47 }
  0xae   : > { %v766_v8 = vsel %vm708_vm2, %v764_v40, %v765_v54  ;;  %v768_v18 = vsel %vm708_vm2, %v765_v54, %v767_v56  ;;  %v760_v21 = vrot.slane %v8602_v3, 1  ;;  %v762_v25 = vrot.slane %v8604_v5, 1  ;;  %v8612_v27 = vld [vmem:[#allocation2 + $0x120] sm:$0xff] }
  0xaf   : > { %13216 = vst [vmem:[#allocation15_spill] sm:$0xff] %v8600_v61  ;;  %6149 = vrot.lane.b32.xlu0 %v8600_v61, %s7923_s30  ;;  %v8616_v32 = vpack.i.bf16 %v768_v18, %v766_v8  ;;  %v8618_v33 = vld [vmem:[#allocation2 + $0x128] sm:$0xff]  ;;  %v8620_v35 = vld [vmem:[#allocation2 + $0x130] sm:$0x3]  ;;  %v769_v46 = vrot.slane %v8612_v27, 1 }
  0xb0   : > { %603 = vst.msk [vmem:[#allocation2 + $0x171] sm:$0xff] %vm223_vm0, %v570_v17  ;;  %v761_v40 = vsel %vm708_vm2, %v759_v9, %v760_v21  ;;  %v763_v47 = vsel %vm708_vm2, %v760_v21, %v762_v25  ;;  %v770_v49 = vrot.slane %v8618_v33, 1  ;;  %v772_v51 = vrot.slane %v8620_v35, 1  ;;  %v8628_v54 = vld [vmem:[#allocation2 + $0x150] sm:$0xff] }
  0xb1   : > { %13217 = vst [vmem:[#allocation16_spill] sm:$0xff] %v8616_v32  ;;  %6159 = vrot.lane.b32.xlu2 %v8616_v32, %s7923_s30  ;;  %v8632_v56 = vpack.i.bf16 %v763_v47, %v761_v40  ;;  %v8634_v8 = vld [vmem:[#allocation2 + $0x158] sm:$0xff]  ;;  %v8636_v18 = vld [vmem:[#allocation2 + $0x160] sm:$0x3]  ;;  %v779_v17 = vrot.slane %v8628_v54, 1 }
  0xb2   : > { %v771_v9 = vsel %vm708_vm2, %v769_v46, %v770_v49  ;;  %v773_v21 = vsel %vm708_vm2, %v770_v49, %v772_v51  ;;  %v780_v25 = vrot.slane %v8634_v8, 1  ;;  %v782_v11 = vrot.slane %v8636_v18, 1  ;;  %v8643_v61 = vld [vmem:[#allocation2 + $0x138] sm:$0xff] }
  0xb3   : > { %13218 = vst [vmem:[#allocation17_spill] sm:$0xff] %v8632_v56  ;;  %6154 = vrot.lane.b32.xlu1 %v8632_v56, %s7923_s30  ;;  %v8647_v40 = vpack.i.bf16 %v773_v21, %v771_v9  ;;  %v8649_v47 = vld [vmem:[#allocation2 + $0x140] sm:$0xff]  ;;  %v8651_v32 = vld [vmem:[#allocation2 + $0x148] sm:$0x3]  ;;  %v774_v50 = vrot.slane %v8643_v61, 1  ;;  %v790_v21 = vrot.slane %v8026_v1, 2 }
  0xb4   : > { %v781_v46 = vsel %vm708_vm2, %v779_v17, %v780_v25  ;;  %v783_v49 = vsel %vm708_vm2, %v780_v25, %v782_v11  ;;  %v775_v51 = vrot.slane %v8649_v47, 1  ;;  %v777_v28 = vrot.slane %v8651_v32, 1  ;;  %v8658_v57 = vld [vmem:[#allocation2 + $0x168] sm:$0xff] }
  0xb5   : > { %13219 = vst [vmem:[#allocation18_spill] sm:$0xff] %v8647_v40  ;;  %v8660_v56 = vpack.i.bf16 %v783_v49, %v781_v46  ;;  %v784_v9 = vrot.slane %v8658_v57, 1  ;;  %v796_v25 = vrot.slane %v8385_v52, 2 }
  0xb6   : > { %v776_v62 = vsel %vm708_vm2, %v774_v50, %v775_v51  ;;  %v778_v17 = vsel %vm708_vm2, %v775_v51, %v777_v28  ;;  %v791_v50 = vrot.slane %v8030_v2, 2  ;;  %v793_v28 = vrot.slane %v8035_v4, 2 }
  0xb7   : > { %13220 = vst [vmem:[#allocation19_spill] sm:$0xff] %v8660_v56  ;;  %v8667_v43 = vld [vmem:[#allocation2 + $0x170] sm:$0xff]  ;;  %v8669_v11 = vld [vmem:[#allocation2 + $0x178] sm:$0x3]  ;;  %6164 = vrot.lane.b32.xlu0 %v8647_v40, %s7923_s30  ;;  %v8675_v46 = vpack.i.bf16 %v778_v17, %v776_v62  ;;  %v797_v13 = vsel %vm789_vm4, %v795_v30, %v796_v25  ;;  %v799_v62 = vsel %vm789_vm4, %v796_v25, %v798_v14  ;;  %v800_v40 = vrot.slane %v8366_v37, 2 }
  0xb8   : > { %v785_v1 = vrot.slane %v8667_v43, 1  ;;  %v787_v49 = vrot.slane %v8669_v11, 1  ;;  %v792_v2 = vsel %vm789_vm4, %v790_v21, %v791_v50  ;;  %v794_v4 = vsel %vm789_vm4, %v791_v50, %v793_v28 }
  0xb9   : > { %6174 = vrot.lane.b32.xlu2 %v8660_v56, %s7923_s30  ;;  %v801_v56 = vrot.slane %v8371_v41, 2  ;;  %v810_v30 = vrot.slane %v8225_v22, 2  ;;  %v811_v14 = vrot.slane %v8230_v23, 2  ;;  %v813_v25 = vrot.slane %v8232_v24, 2 }
  0xba   : > { %v786_v51 = vsel %vm708_vm2, %v784_v9, %v785_v1  ;;  %v788_v53 = vsel %vm708_vm2, %v785_v1, %v787_v49  ;;  %v803_v9 = vrot.slane %v8373_v42, 2  ;;  %v8696_v1 = vpack.i.bf16 %v799_v62, %v797_v13 }
  0xbb   : > { %6169 = vrot.lane.b32.xlu1 %v8675_v46, %s7923_s30  ;;  %v8689_v17 = vpack.i.bf16 %v788_v53, %v786_v51  ;;  %v6183_v21 = vpack.i.bf16 %v794_v4, %v792_v2  ;;  %v805_v49 = vrot.slane %v8411_v10, 2  ;;  %v806_v50 = vrot.slane %v8420_v15, 2 }
  0xbc   : > { %v8706_v28 = vsel %vm789_vm4, %v800_v40, %v801_v56  ;;  %v8709_v13 = vsel %vm789_vm4, %v801_v56, %v803_v9  ;;  %v808_v42 = vrot.slane %v8422_v16, 2  ;;  %v8715_v24 = vsel %vm789_vm4, %v810_v30, %v811_v14 }
  0xbd   : > { %13221 = vst [vmem:[#allocation20_spill] sm:$0xff] %v8706_v28  ;;  %v8718_v51 = vsel %vm789_vm4, %v811_v14, %v813_v25  ;;  %v8723_v40 = vpack.i.bf16 %v8709_v13, %v8706_v28  ;;  %v8726_v56 = vsel %vm789_vm4, %v805_v49, %v806_v50  ;;  %v815_v53 = vrot.slane %v8395_v60, 2  ;;  %v341_v28 = vld [vmem:[%s8134_s12 + $0xf0] sm:$0xff] }
  0xbe   : > { %13222 = vst [vmem:[#allocation21_spill] sm:$0xff] %v8709_v13  ;;  %v8729_v16 = vsel %vm789_vm4, %v806_v50, %v808_v42  ;;  %v816_v62 = vrot.slane %v8401_v63, 2  ;;  %v818_v2 = vrot.slane %v8403_v0, 2  ;;  %v8736_v4 = vpack.i.bf16 %v8718_v51, %v8715_v24 }
  0xbf   : > { %6179 = vrot.lane.b32.xlu0 %v8689_v17, %s7923_s30  ;;  %13223 = vst [vmem:[#allocation22_spill] sm:$0xff] %v8715_v24  ;;  %v825_v9 = vrot.slane %v8473_v55, 2  ;;  %v826_v30 = vrot.slane %v8487_v6, 2  ;;  %v828_v14 = vrot.slane %v8489_v7, 2  ;;  %v8745_v25 = vpack.i.bf16 %v8729_v16, %v8726_v56 }
  0xc0   : > { %13224 = vst [vmem:[#allocation23_spill] sm:$0xff] %v8718_v51  ;;  %v821_v0 = vrot.slane %v8440_v29, 2  ;;  %v8750_v49 = vsel %vm789_vm4, %v815_v53, %v816_v62  ;;  %v8753_v50 = vsel %vm789_vm4, %v816_v62, %v818_v2  ;;  %v823_v42 = vrot.slane %v8442_v31, 2 }
  0xc1   : > { %6189 = vrot.lane.b32.xlu2 %v8696_v1, %s7924_s23  ;;  %13225 = vst [vmem:[#allocation24_spill] sm:$0xff] %v8726_v56  ;;  %v8759_v7 = vsel %vm789_vm4, %v825_v9, %v826_v30  ;;  %v8762_v51 = vsel %vm789_vm4, %v826_v30, %v828_v14  ;;  %v8768_v53 = vpack.i.bf16 %v8753_v50, %v8750_v49  ;;  %v830_v2 = vrot.slane %v8452_v39, 2 }
  0xc2   : > { %13226 = vst [vmem:[#allocation25_spill] sm:$0xff] %v8729_v16  ;;  %v8774_v31 = vsel %vm789_vm4, %v821_v0, %v823_v42  ;;  %v831_v9 = vrot.slane %v8461_v44, 2  ;;  %v833_v30 = vrot.slane %v8463_v45, 2  ;;  %v8781_v14 = vpack.i.bf16 %v8762_v51, %v8759_v7 }
  0xc3   : > { %6184 = vrot.lane.b32.xlu1 %v6183_v21, %s7924_s23  ;;  %v820_v21 = vrot.slane %v8431_v26, 2  ;;  %13227 = vst [vmem:[#allocation26_spill] sm:$0xff] %v8750_v49  ;;  %v840_v24 = vrot.slane %v8597_v58, 2  ;;  %v835_v42 = vrot.slane %v8565_v59, 2  ;;  %v836_v45 = vrot.slane %v8574_v19, 2 }
  0xc4   : > { %13228 = vst [vmem:[#allocation27_spill] sm:$0xff] %v8753_v50  ;;  %v841_v50 = vrot.slane %v8602_v3, 2  ;;  %v838_v49 = vrot.slane %v8576_v20, 2 }
  0xc5   : > { %13229 = vst [vmem:[#allocation28_spill] sm:$0xff] %v8759_v7  ;;  %v8771_v62 = vsel %vm789_vm4, %v820_v21, %v821_v0  ;;  %v843_v21 = vrot.slane %v8604_v5, 2  ;;  %v8798_v7 = vsel %vm789_vm4, %v831_v9, %v833_v30  ;;  %v845_v30 = vrot.slane %v8583_v34, 2 }
  0xc6   : > { %13230 = vst [vmem:[#allocation29_spill] sm:$0xff] %v8762_v51  ;;  %v8790_v0 = vpack.i.bf16 %v8774_v31, %v8771_v62  ;;  %v8795_v51 = vsel %vm789_vm4, %v830_v2, %v831_v9  ;;  %v8804_v5 = vsel %vm789_vm4, %v840_v24, %v841_v50  ;;  %v8816_v9 = vsel %vm789_vm4, %v835_v42, %v836_v45 }
  0xc7   : > { %6194 = vrot.lane.b32.xlu0 %v8723_v40, %s7924_s23  ;;  %13231 = vst [vmem:[#allocation30_spill] sm:$0xff] %v8771_v62  ;;  %v8813_v2 = vpack.i.bf16 %v8798_v7, %v8795_v51  ;;  %v8819_v20 = vsel %vm789_vm4, %v836_v45, %v838_v49  ;;  %v846_v24 = vrot.slane %v8586_v36, 2  ;;  %v855_v62 = vrot.slane %v8643_v61, 2 }
  0xc8   : > { %13232 = vst [vmem:[#allocation31_spill] sm:$0xff] %v8774_v31  ;;  %v8807_v31 = vsel %vm789_vm4, %v841_v50, %v843_v21  ;;  %v848_v50 = vrot.slane %v8588_v38, 2  ;;  %v858_v42 = vrot.slane %v8651_v32, 2  ;;  %v8835_v49 = vpack.i.bf16 %v8819_v20, %v8816_v9 }
  0xc9   : > { %6204 = vrot.lane.b32.xlu2 %v8736_v4, %s7924_s23  ;;  %13233 = vst [vmem:[#allocation32_spill] sm:$0xff] %v8795_v51  ;;  %v8826_v21 = vpack.i.bf16 %v8807_v31, %v8804_v5  ;;  %v850_v45 = vrot.slane %v8612_v27, 2  ;;  %v851_v38 = vrot.slane %v8618_v33, 2  ;;  %v8840_v51 = vsel %vm789_vm4, %v845_v30, %v846_v24 }
  0xca   : > { %13234 = vst [vmem:[#allocation33_spill] sm:$0xff] %v8798_v7  ;;  %v856_v7 = vrot.slane %v8649_v47, 2  ;;  %v8843_v16 = vsel %vm789_vm4, %v846_v24, %v848_v50  ;;  %v853_v32 = vrot.slane %v8620_v35, 2  ;;  %v861_v50 = vrot.slane %v8634_v8, 2 }
  0xcb   : > { %6199 = vrot.lane.b32.xlu1 %v8745_v25, %s7924_s23  ;;  %13235 = vst [vmem:[#allocation34_spill] sm:$0xff] %v8804_v5  ;;  %v8858_v30 = vpack.i.bf16 %v8843_v16, %v8840_v51  ;;  %v8861_v24 = vsel %vm789_vm4, %v850_v45, %v851_v38  ;;  %v13273_v5 = vld [vmem:[#allocation19_spill] sm:$0xff] }
  0xcc   : > { %13236 = vst [vmem:[#allocation35_spill] sm:$0xff] %v8807_v31  ;;  %v8849_v56 = vsel %vm789_vm4, %v855_v62, %v856_v7  ;;  %v8852_v13 = vsel %vm789_vm4, %v856_v7, %v858_v42  ;;  %v8864_v35 = vsel %vm789_vm4, %v851_v38, %v853_v32  ;;  %v860_v62 = vrot.slane %v8628_v54, 2 }
  0xcd   : > { %13237 = vst [vmem:[#allocation36_spill] sm:$0xff] %v8819_v20  ;;  %v863_v7 = vrot.slane %v8636_v18, 2  ;;  %v8871_v42 = vpack.i.bf16 %v8852_v13, %v8849_v56  ;;  %v8879_v45 = vpack.i.bf16 %v8864_v35, %v8861_v24  ;;  %v865_v38 = vrot.slane %v8658_v57, 2 }
  0xce   : > { %13238 = vst [vmem:[#allocation37_spill] sm:$0xff] %v8840_v51  ;;  %v8885_v18 = vsel %vm789_vm4, %v860_v62, %v861_v50 }
  0xcf   : > { %6209 = vrot.lane.b32.xlu0 %v8768_v53, %s7924_s23  ;;  %13239 = vst [vmem:[#allocation38_spill] sm:$0xff] %v8843_v16  ;;  %v342_v16 = vld [vmem:[%s8134_s12 + $0xf8] sm:$0xff]  ;;  %v8888_v32 = vsel %vm789_vm4, %v861_v50, %v863_v7  ;;  %s13570_s12 = sand.u32 1, %s7912_s19  }
  0xd0   : > { %13240 = vst [vmem:[#allocation39_spill] sm:$0xff] %v8849_v56  ;;  %v868_v56 = vrot.slane %v8669_v11, 2  ;;  %v6263_v11 = vpack.i.bf16 %v8385_v52, %v8380_v48  ;;  %v6268_v52 = vpack.i.bf16 %v8371_v41, %v8366_v37  ;;  %v8953_v37 = vpack.i.bf16 %v8440_v29, %v8431_v26  ;;  %v8985_v29 = vpop.permute.xlu0 %6104 }
  0xd1   : > { %6219 = vrot.lane.b32.xlu2 %v8781_v14, %s7924_s23  ;;  %13241 = vst [vmem:[#allocation40_spill] sm:$0xff] %v8852_v13  ;;  %v866_v13 = vrot.slane %v8667_v43, 2  ;;  %v8983_v26 = vpack.i.bf16 %v8586_v36, %v8583_v34 }
  0xd2   : > { %13242 = vst [vmem:[#allocation41_spill] sm:$0xff] %v8861_v24 }
  0xd3   : > { %6214 = vrot.lane.b32.xlu1 %v8790_v0, %s7924_s23  ;;  %13243 = vst [vmem:[#allocation42_spill] sm:$0xff] %v8864_v35  ;;  %v8903_v62 = vsel %vm789_vm4, %v865_v38, %v866_v13  ;;  %v8906_v50 = vsel %vm789_vm4, %v866_v13, %v868_v56  ;;  %v13248_v13 = vld [vmem:[#allocation6_spill] sm:$0xff] }
  0xd4   : > { %374 = vst.msk [vmem:[%s8143_s13 + $0xf0] sm:$0xff] %vm343_vm3, %v341_v28  ;;  %v8900_v28 = vpack.i.bf16 %v8888_v32, %v8885_v18  ;;  %v8915_v7 = vpack.i.bf16 %v8906_v50, %v8903_v62 }
  0xd5   : > { %13244 = vst [vmem:[#allocation43_spill] sm:$0xff] %v8885_v18  ;;  %v8929_v18 = vpop.permute.xlu2 %6124 }
  0xd6   : > { %13245 = vst [vmem:[#allocation44_spill] sm:$0xff] %v8888_v32 }
  0xd7   : > { %6224 = vrot.lane.b32.xlu0 %v8813_v2, %s7924_s23  ;;  %375 = vst.msk [vmem:[%s8143_s13 + $0xf8] sm:$0xff] %vm343_vm3, %v342_v16 }
  0xd8   : > { %13246 = vst [vmem:[#allocation45_spill] sm:$0xff] %v8903_v62 }
  0xd9   : > { %6234 = vrot.lane.b32.xlu2 %v8826_v21, %s7924_s23  ;;  %13247 = vst [vmem:[#allocation46_spill] sm:$0xff] %v8906_v50 }
  0xdb   : > { %6229 = vrot.lane.b32.xlu1 %v8835_v49, %s7924_s23  ;;  %v469_v16 = vld [vmem:[%s8143_s13 + $0xf0] sm:$0xff] }
  0xdc   : > { %v504_v32 = vmul.f32 %v8165_v12, %v469_v16  ;;  %v6278_v16 = vpack.i.bf16 %v8230_v23, %v8225_v22  ;;  %v8943_v22 = vpack.i.bf16 %v8401_v63, %v8395_v60  ;;  %v8947_v23 = vpack.i.bf16 %v8487_v6, %v8473_v55 }
  0xdd   : > { %v8963_v60 = vpack.i.bf16 %v8461_v44, %v8452_v39  ;;  %v8967_v63 = vpack.i.bf16 %v8602_v3, %v8597_v58  ;;  %v8989_v39 = vpack.i.bf16 %v8649_v47, %v8643_v61  ;;  %v8995_v44 = vpack.i.bf16 %v8618_v33, %v8612_v27  ;;  %v13252_v33 = vld [vmem:[#allocation9_spill] sm:$0xff] }
  0xde   : > { %v470_v35 = vld [vmem:[%s8143_s13 + $0xf8] sm:$0xff]  ;;  %v539_v56 = vadd.f32 %v13248_v13, %v504_v32  ;;  %v9023_v61 = vpack.i.bf16 %v8667_v43, %v8658_v57  ;;  %v13255_v43 = vld [vmem:[#allocation8_spill] sm:$0xff] }
  0xdf   : > { %6239 = vrot.lane.b32.xlu0 %v8858_v30, %s7924_s23  ;;  %v505_v38 = vmul.f32 %v8165_v12, %v470_v35  ;;  %v8936_v12 = vpack.i.bf16 %v8420_v15, %v8411_v10  ;;  %v8973_v10 = vpack.i.bf16 %v8574_v19, %v8565_v59  ;;  %v9009_v19 = vpack.i.bf16 %v8634_v8, %v8628_v54  ;;  %v13254_v8 = vld [vmem:[#allocation11_spill] sm:$0xff] }
  0xe0   : > { %v571_v50 = vmax.f32 %v539_v56, 0.0  ;;  %v13257_v35 = vld [vmem:[#allocation7_spill] sm:$0xff] }
  0xe1   : > { %6249 = vrot.lane.b32.xlu2 %v8871_v42, %s7924_s23  ;;  %v540_v48 = vadd.f32 %v13248_v13, %v505_v38  ;;  %v13262_v13 = vld [vmem:[#allocation14_spill] sm:$0xff] }
  0xe2   : > { %604 = vst.msk [vmem:[#allocation2 + $0x181] sm:$0xff] %vm223_vm0, %v571_v50  ;;  %v13260_v50 = vld [vmem:[#allocation10_spill] sm:$0xff] }
  0xe3   : > { %6244 = vrot.lane.b32.xlu1 %v8879_v45, %s7924_s23  ;;  %v572_v62 = vmax.f32 %v540_v48, 0.0  ;;  %v13264_v48 = vld [vmem:[#allocation15_spill] sm:$0xff] }
  0xe5   : > { %605 = vst.msk [vmem:[#allocation2 + $0x189] sm:$0xff] %vm223_vm0, %v572_v62  ;;  %v13259_v62 = vld [vmem:[#allocation12_spill] sm:$0xff] }
  0xe7   : > { %6254 = vrot.lane.b32.xlu0 %v8900_v28, %s7924_s23 }
  0xe9   : > { %6264 = vrot.lane.b32.xlu2 %v6263_v11, %s7925_s25  ;;  %v9001_v6 = vld [vmem:[#allocation2 + $0x180] sm:$0xff] }
  0xea   : > { %v8955_v41 = vpop.permute.xlu2 %6129  ;;  %v873_v24 = vrot.slane %v9001_v6, 1 }
  0xeb   : > { %6259 = vrot.lane.b32.xlu1 %v8915_v7, %s7924_s23 }
  0xec   : > { %v9003_v59 = vld [vmem:[#allocation2 + $0x188] sm:$0xff] }
  0xed   : > { %v9017_v58 = vpack.i.bf16 %v9003_v59, %v9001_v6 }
  0xef   : > { %6269 = vrot.lane.b32.xlu0 %v6268_v52, %s7925_s25  ;;  %v13265_v52 = vld [vmem:[#allocation13_spill] sm:$0xff] }
  0xf1   : > { %6279 = vrot.lane.b32.xlu2 %v6278_v16, %s7925_s25 }
  0xf2   : > { %v8977_v15 = vpop.permute.xlu2 %6144 }
  0xf3   : > { %6274 = vrot.lane.b32.xlu1 %v8936_v12, %s7925_s25  ;;  %13249 = vst [vmem:[#allocation6_spill] sm:$0xff] %v8977_v15  ;;  %v874_v15 = vrot.slane %v9003_v59, 1 }
  0xf7   : > { %6284 = vrot.lane.b32.xlu0 %v8943_v22, %s7925_s25 }
  0xf9   : > { %6294 = vrot.lane.b32.xlu2 %v8947_v23, %s7925_s25 }
  0xfb   : > { %6289 = vrot.lane.b32.xlu1 %v8953_v37, %s7925_s25 }
  0xfe   : > { %v8997_v55 = vpop.permute.xlu1 %6114 }
  0xff   : > { %6299 = vrot.lane.b32.xlu0 %v8963_v60, %s7925_s25 }
 0x100   : > { %v9013_v36 = vpop.permute.xlu0 %6109 }
 0x101   : > { %6309 = vrot.lane.b32.xlu2 %v8967_v63, %s7925_s25 }
 0x103   : > { %6304 = vrot.lane.b32.xlu1 %v8973_v10, %s7925_s25 }
 0x106   : > { %v9027_v3 = vpop.permute.xlu1 %6119 }
 0x107   : > { %6314 = vrot.lane.b32.xlu0 %v8983_v26, %s7925_s25 }
 0x108   : > { %v9035_v54 = vpop.permute.xlu0 %6134 }
 0x109   : > { %6324 = vrot.lane.b32.xlu2 %v8989_v39, %s7925_s25  ;;  %13253 = vst [vmem:[#allocation9_spill] sm:$0xff] %v9035_v54 }
 0x10b   : > { %6319 = vrot.lane.b32.xlu1 %v8995_v44, %s7925_s25  ;;  %v9011_v34 = vpop.permute.xlu2 %6159 }
 0x10c   : > { %13250 = vst [vmem:[#allocation47_spill] sm:$0xff] %v9011_v34 }
 0x10e   : > { %v9041_v57 = vpop.permute.xlu1 %6139 }
 0x10f   : > { %6329 = vrot.lane.b32.xlu0 %v9009_v19, %s7925_s25  ;;  %13256 = vst [vmem:[#allocation11_spill] sm:$0xff] %v9041_v57 }
 0x111   : > { %6339 = vrot.lane.b32.xlu2 %v9017_v58, %s7925_s25 }
 0x113   : > { %6334 = vrot.lane.b32.xlu1 %v9023_v61, %s7925_s25  ;;  %v9031_v27 = vpop.permute.xlu2 %6174 }
 0x114   : > { %13251 = vst [vmem:[#allocation48_spill] sm:$0xff] %v9031_v27  ;;  %v13268_v27 = vld [vmem:[#allocation17_spill] sm:$0xff] }
 0x117   : > { %6344 = vrot.lane.b32.xlu0 %v13252_v33, %s7926_s26 }
 0x119   : > { %6354 = vrot.lane.b32.xlu2 %v13254_v8, %s7926_s26 }
 0x11b   : > { %6349 = vrot.lane.b32.xlu1 %v13255_v43, %s7926_s26  ;;  %v9043_v47 = vpop.permute.xlu2 %6189 }
 0x11f   : > { %6359 = vrot.lane.b32.xlu0 %v13257_v35, %s7926_s26 }
 0x121   : > { %v9047_v32 = vpop.permute.xlu0 %6149  ;;  %6369 = vrot.lane.b32.xlu2 %v13259_v62, %s7926_s26 }
 0x122   : > { %13258 = vst [vmem:[#allocation8_spill] sm:$0xff] %v9047_v32  ;;  %v656_v32 = vld [vmem:[#allocation2 + $0x190] sm:$0x3] }
 0x123   : > { %6364 = vrot.lane.b32.xlu1 %v13260_v50, %s7926_s26  ;;  %v9053_v11 = vpop.permute.xlu2 %6204  ;;  %v876_v51 = vrot.slane %v656_v32, 1 }
 0x125   : > { %v9055_v38 = vpop.permute.xlu1 %6154 }
 0x126   : > { %13261 = vst [vmem:[#allocation7_spill] sm:$0xff] %v9055_v38  ;;  %v13270_v38 = vld [vmem:[#allocation18_spill] sm:$0xff] }
 0x127   : > { %6374 = vrot.lane.b32.xlu0 %v13262_v13, %s7926_s26 }
 0x129   : > { %v9059_v56 = vpop.permute.xlu0 %6164  ;;  %6384 = vrot.lane.b32.xlu2 %v13264_v48, %s7926_s26 }
 0x12a   : > { %13263 = vst [vmem:[#allocation12_spill] sm:$0xff] %v9059_v56  ;;  %v13271_v56 = vld [vmem:[#allocation16_spill] sm:$0xff] }
 0x12b   : > { %6379 = vrot.lane.b32.xlu1 %v13265_v52, %s7926_s26  ;;  %v9065_v16 = vpop.permute.xlu2 %6219 }
 0x12c   : > { %13266 = vst [vmem:[#allocation10_spill] sm:$0xff] %v9065_v16  ;;  %v877_v16 = vsel %vm708_vm2, %v874_v15, %v876_v51 }
 0x12d   : > { %v9067_v33 = vpop.permute.xlu1 %6169 }
 0x12e   : > { %13267 = vst [vmem:[#allocation14_spill] sm:$0xff] %v9067_v33 }
 0x12f   : > { %6389 = vrot.lane.b32.xlu0 %v13268_v27, %s7926_s26 }
 0x131   : > { %v9071_v34 = vpop.permute.xlu0 %6179  ;;  %6399 = vrot.lane.b32.xlu2 %v13270_v38, %s7926_s26 }
 0x132   : > { %13269 = vst [vmem:[#allocation15_spill] sm:$0xff] %v9071_v34  ;;  %v875_v34 = vsel %vm708_vm2, %v873_v24, %v874_v15 }
 0x133   : > { %6394 = vrot.lane.b32.xlu1 %v13271_v56, %s7926_s26  ;;  %v9081_v33 = vpop.permute.xlu2 %6234  ;;  %v9093_v20 = vpack.i.bf16 %v877_v16, %v875_v34 }
 0x134   : > { %13272 = vst [vmem:[#allocation13_spill] sm:$0xff] %v9081_v33 }
 0x135   : > { %v9079_v31 = vpop.permute.xlu1 %6184 }
 0x137   : > { %6404 = vrot.lane.b32.xlu0 %v8675_v46, %s7926_s26 }
 0x139   : > { %v9087_v57 = vpop.permute.xlu0 %6194  ;;  %6414 = vrot.lane.b32.xlu2 %v8689_v17, %s7926_s26 }
 0x13b   : > { %6409 = vrot.lane.b32.xlu1 %v13273_v5, %s7926_s26  ;;  %v9099_v33 = vpop.permute.xlu2 %6249 }
 0x13c   : > { %13274 = vst [vmem:[#allocation17_spill] sm:$0xff] %v9099_v33 }
 0x13d   : > { %v9095_v54 = vpop.permute.xlu1 %6199 }
 0x13f   : > { %6419 = vrot.lane.b32.xlu0 %v9093_v20, %s7926_s26 }
 0x141   : > { %v9101_v24 = vpop.permute.xlu0 %6209  ;;  %6429 = vrot.lane.b32.xlu2 %v8723_v40, %s7927_s6 }
 0x143   : > { %6424 = vrot.lane.b32.xlu1 %v8696_v1, %s7927_s6  ;;  %v9111_v15 = vpop.permute.xlu2 %6264 }
 0x145   : > { %v9107_v51 = vpop.permute.xlu1 %6214 }
 0x147   : > { %6434 = vrot.lane.b32.xlu0 %v8745_v25, %s7927_s6 }
 0x149   : > { %v9113_v34 = vpop.permute.xlu0 %6224  ;;  %6444 = vrot.lane.b32.xlu2 %v8768_v53, %s7927_s6 }
 0x14a   : > { %13275 = vst [vmem:[#allocation18_spill] sm:$0xff] %v9113_v34  ;;  %v6107_v34 = vunpack.i.h.bf16 %v8985_v29 }
 0x14b   : > { %6439 = vrot.lane.b32.xlu1 %v8736_v4, %s7927_s6  ;;  %v9127_v40 = vpop.permute.xlu2 %6279 }
 0x14d   : > { %v9119_v16 = vpop.permute.xlu1 %6229 }
 0x14e   : > { %13276 = vst [vmem:[#allocation16_spill] sm:$0xff] %v9119_v16 }
 0x14f   : > { %6449 = vrot.lane.b32.xlu0 %v8790_v0, %s7927_s6 }
 0x151   : > { %v9123_v1 = vpop.permute.xlu0 %6239  ;;  %6459 = vrot.lane.b32.xlu2 %v8813_v2, %s7927_s6  ;;  %v879_v2 = vrot.slane %v9003_v59, 2  ;;  %v9165_v59 = vld [vmem:[#allocation2 + $0x38] sm:$0xff] }
 0x152   : > { %13277 = vst [vmem:[#allocation19_spill] sm:$0xff] %v9123_v1 }
 0x153   : > { %6454 = vrot.lane.b32.xlu1 %v8781_v14, %s7927_s6  ;;  %v9141_v53 = vpop.permute.xlu2 %6294  ;;  %v878_v14 = vrot.slane %v9001_v6, 2  ;;  %v9163_v6 = vld [vmem:[#allocation2 + $0x30] sm:$0xff] }
 0x155   : > { %v9131_v25 = vpop.permute.xlu1 %6244 }
 0x156   : > { %13278 = vst [vmem:[#allocation49_spill] sm:$0xff] %v9131_v25 }
 0x157   : > { %6464 = vrot.lane.b32.xlu0 %v8835_v49, %s7927_s6  ;;  %v881_v49 = vrot.slane %v656_v32, 2  ;;  %v6503_v32 = vpack.i.bf16 %v9165_v59, %v9163_v6 }
 0x159   : > { %v9135_v4 = vpop.permute.xlu0 %6254  ;;  %6474 = vrot.lane.b32.xlu2 %v8858_v30, %s7927_s6  ;;  %v9159_v30 = vsel %vm789_vm4, %v879_v2, %v881_v49  ;;  %v9185_v49 = vld [vmem:[#allocation2 + $0x68] sm:$0xff] }
 0x15a   : > { %13279 = vst [vmem:[#allocation50_spill] sm:$0xff] %v9135_v4 }
 0x15b   : > { %6469 = vrot.lane.b32.xlu1 %v8826_v21, %s7927_s6  ;;  %v9156_v21 = vsel %vm789_vm4, %v878_v14, %v879_v2  ;;  %13282 = vst [vmem:[#allocation53_spill] sm:$0xff] %v9159_v30  ;;  %v9183_v2 = vld [vmem:[#allocation2 + $0x60] sm:$0xff] }
 0x15c   : > { %13281 = vst [vmem:[#allocation52_spill] sm:$0xff] %v9156_v21 }
 0x15d   : > { %v9143_v0 = vpop.permute.xlu1 %6259 }
 0x15e   : > { %13280 = vst [vmem:[#allocation51_spill] sm:$0xff] %v9143_v0  ;;  %v9169_v0 = vpop.permute.xlu2 %6309 }
 0x15f   : > { %6479 = vrot.lane.b32.xlu0 %v8879_v45, %s7927_s6  ;;  %13283 = vst [vmem:[#allocation54_spill] sm:$0xff] %v9169_v0 }
 0x161   : > { %v9149_v33 = vpop.permute.xlu0 %6269  ;;  %6489 = vrot.lane.b32.xlu2 %v8900_v28, %s7927_s6 }
 0x163   : > { %6484 = vrot.lane.b32.xlu1 %v8871_v42, %s7927_s6  ;;  %v6498_v42 = vpack.i.bf16 %v9159_v30, %v9156_v21 }
 0x165   : > { %v9161_v45 = vpop.permute.xlu1 %6274 }
 0x166   : > { %v9189_v4 = vpop.permute.xlu2 %6324 }
 0x167   : > { %6494 = vrot.lane.b32.xlu0 %v8915_v7, %s7927_s6  ;;  %v6513_v7 = vpack.i.bf16 %v9185_v49, %v9183_v2  ;;  %13284 = vst [vmem:[#allocation55_spill] sm:$0xff] %v9189_v4  ;;  %v391_v4 = vld [vmem:[%s13016_s3 + $0x48] sm:$0xff] }
 0x169   : > { %v9175_v28 = vpop.permute.xlu0 %6284  ;;  %6504 = vrot.lane.b32.xlu2 %v6503_v32, %s7928_s8 }
 0x16b   : > { %6499 = vrot.lane.b32.xlu1 %v6498_v42, %s7927_s6 }
 0x16d   : > { %v9179_v14 = vpop.permute.xlu1 %6289 }
 0x16e   : > { %v9204_v42 = vpop.permute.xlu2 %6339 }
 0x16f   : > { %6509 = vrot.lane.b32.xlu0 %v8936_v12, %s7928_s8  ;;  %13287 = vst [vmem:[#allocation58_spill] sm:$0xff] %v9204_v42 }
 0x171   : > { %v9191_v30 = vpop.permute.xlu0 %6299  ;;  %6519 = vrot.lane.b32.xlu2 %v8943_v22, %s7928_s8 }
 0x173   : > { %6514 = vrot.lane.b32.xlu1 %v6513_v7, %s7928_s8  ;;  %v658_v7 = vld [vmem:[#allocation2 + $0x1a0] sm:$0xff] }
 0x175   : > { %v9196_v32 = vpop.permute.xlu1 %6304 }
 0x176   : > { %13285 = vst [vmem:[#allocation56_spill] sm:$0xff] %v9196_v32 }
 0x177   : > { %6524 = vrot.lane.b32.xlu0 %v8953_v37, %s7928_s8  ;;  %v9218_v37 = vpop.permute.xlu2 %6354 }
 0x179   : > { %v9200_v12 = vpop.permute.xlu0 %6314  ;;  %6534 = vrot.lane.b32.xlu2 %v8963_v60, %s7928_s8 }
 0x17a   : > { %13286 = vst [vmem:[#allocation57_spill] sm:$0xff] %v9200_v12  ;;  %v6106_v12 = vunpack.i.l.bf16 %v8985_v29 }
 0x17b   : > { %6529 = vrot.lane.b32.xlu1 %v8947_v23, %s7928_s8 }
 0x17d   : > { %v9208_v21 = vpop.permute.xlu1 %6319 }
 0x17e   : > { %13288 = vst [vmem:[#allocation59_spill] sm:$0xff] %v9208_v21 }
 0x17f   : > { %6539 = vrot.lane.b32.xlu0 %v8973_v10, %s7928_s8  ;;  %v657_v10 = vld [vmem:[#allocation2 + $0x198] sm:$0xff]  ;;  %v9234_v42 = vpop.permute.xlu2 %6369 }
 0x181   : > { %v9212_v22 = vpop.permute.xlu0 %6329  ;;  %6549 = vrot.lane.b32.xlu2 %v8983_v26, %s7928_s8 }
 0x182   : > { %13289 = vst [vmem:[#allocation60_spill] sm:$0xff] %v9212_v22 }
 0x183   : > { %6544 = vrot.lane.b32.xlu1 %v8967_v63, %s7928_s8  ;;  %v9232_v63 = vpack.i.bf16 %v658_v7, %v657_v10 }
 0x185   : > { %v9220_v60 = vpop.permute.xlu1 %6334  ;;  %13291 = vst [vmem:[#allocation62_spill] sm:$0xff] %v9232_v63 }
 0x186   : > { %13290 = vst [vmem:[#allocation61_spill] sm:$0xff] %v9220_v60 }
 0x187   : > { %6554 = vrot.lane.b32.xlu0 %v8995_v44, %s7928_s8 }
 0x189   : > { %v9224_v23 = vpop.permute.xlu0 %6344  ;;  %6564 = vrot.lane.b32.xlu2 %v9009_v19, %s7928_s8 }
 0x18a   : > { %v6346_v0 = vunpack.i.l.bf16 %v9224_v23 }
 0x18b   : > { %6559 = vrot.lane.b32.xlu1 %v8989_v39, %s7928_s8  ;;  %v9248_v39 = vpop.permute.xlu2 %6384 }
 0x18c   : > { %13292 = vst [vmem:[#allocation63_spill] sm:$0xff] %v9248_v39 }
 0x18d   : > { %v9230_v26 = vpop.permute.xlu1 %6349 }
 0x18f   : > { %6569 = vrot.lane.b32.xlu0 %v9023_v61, %s7928_s8 }
 0x191   : > { %v9238_v44 = vpop.permute.xlu0 %6359  ;;  %6579 = vrot.lane.b32.xlu2 %v9232_v63, %s7928_s8 }
 0x193   : > { %6574 = vrot.lane.b32.xlu1 %v9017_v58, %s7928_s8 }
 0x195   : > { %v9244_v19 = vpop.permute.xlu1 %6364 }
 0x197   : > { %6584 = vrot.lane.b32.xlu0 %v13255_v43, %s7929_s9  ;;  %v9264_v43 = vpop.permute.xlu2 %6399 }
 0x198   : > { %13294 = vst [vmem:[#allocation65_spill] sm:$0xff] %v9264_v43 }
 0x199   : > { %v9250_v60 = vpop.permute.xlu0 %6374  ;;  %6594 = vrot.lane.b32.xlu2 %v13257_v35, %s7929_s9 }
 0x19b   : > { %6589 = vrot.lane.b32.xlu1 %v13254_v8, %s7929_s9 }
 0x19d   : > { %v9256_v61 = vpop.permute.xlu1 %6379 }
 0x19f   : > { %6599 = vrot.lane.b32.xlu0 %v13260_v50, %s7929_s9  ;;  %v9278_v35 = vpop.permute.xlu2 %6414 }
 0x1a0   : > { %13297 = vst [vmem:[#allocation68_spill] sm:$0xff] %v9278_v35 }
 0x1a1   : > { %v9260_v58 = vpop.permute.xlu0 %6389  ;;  %6609 = vrot.lane.b32.xlu2 %v13262_v13, %s7929_s9  ;;  %v659_v13 = vld [vmem:[#allocation2 + $0x1a8] sm:$0x3] }
 0x1a2   : > { %13293 = vst [vmem:[#allocation64_spill] sm:$0xff] %v9260_v58  ;;  %v6266_v58 = vunpack.i.l.bf16 %v9111_v15 }
 0x1a3   : > { %6604 = vrot.lane.b32.xlu1 %v13259_v62, %s7929_s9 }
 0x1a5   : > { %v9268_v63 = vpop.permute.xlu1 %6394 }
 0x1a6   : > { %13295 = vst [vmem:[#allocation66_spill] sm:$0xff] %v9268_v63 }
 0x1a7   : > { %6614 = vrot.lane.b32.xlu0 %v13265_v52, %s7929_s9  ;;  %v886_v52 = vrot.slane %v657_v10, 1  ;;  %v9294_v35 = vpop.permute.xlu2 %6429 }
 0x1a9   : > { %v9272_v8 = vpop.permute.xlu0 %6404  ;;  %6624 = vrot.lane.b32.xlu2 %v13268_v27, %s7929_s9  ;;  %v9290_v27 = vrot.slane %v658_v7, 1 }
 0x1aa   : > { %13296 = vst [vmem:[#allocation67_spill] sm:$0xff] %v9272_v8 }
 0x1ab   : > { %6619 = vrot.lane.b32.xlu1 %v13264_v48, %s7929_s9  ;;  %13300 = vst [vmem:[#allocation71_spill] sm:$0xff] %v9290_v27  ;;  %v889_v48 = vrot.slane %v659_v13, 1 }
 0x1ad   : > { %v9280_v50 = vpop.permute.xlu1 %6409 }
 0x1ae   : > { %13298 = vst [vmem:[#allocation69_spill] sm:$0xff] %v9280_v50  ;;  %v393_v50 = vld [vmem:[%s13016_s3 + $0x58] sm:$0xff] }
 0x1af   : > { %6629 = vrot.lane.b32.xlu0 %v13271_v56, %s7929_s9  ;;  %v9300_v56 = vsel %vm708_vm2, %v886_v52, %v9290_v27 }
 0x1b0   : > { %13301 = vst [vmem:[#allocation72_spill] sm:$0xff] %v9300_v56 }
 0x1b1   : > { %v9284_v62 = vpop.permute.xlu0 %6419  ;;  %6639 = vrot.lane.b32.xlu2 %v8675_v46, %s7929_s9  ;;  %v890_v46 = vsel %vm708_vm2, %v9290_v27, %v889_v48  ;;  %v394_v27 = vld [vmem:[%s13016_s3 + $0x60] sm:$0xff] }
 0x1b2   : > { %13299 = vst [vmem:[#allocation70_spill] sm:$0xff] %v9284_v62 }
 0x1b3   : > { %6634 = vrot.lane.b32.xlu1 %v13270_v38, %s7929_s9  ;;  %v6658_v38 = vpack.i.bf16 %v890_v46, %v9300_v56  ;;  %v395_v56 = vld [vmem:[%s13016_s3 + $0x68] sm:$0xff] }
 0x1b5   : > { %v9292_v22 = vpop.permute.xlu1 %6424 }
 0x1b7   : > { %6644 = vrot.lane.b32.xlu0 %v13273_v5, %s7929_s9  ;;  %v9314_v5 = vpop.permute.xlu2 %6444 }
 0x1b9   : > { %v9304_v62 = vpop.permute.xlu0 %6434  ;;  %6654 = vrot.lane.b32.xlu2 %v9093_v20, %s7929_s9  ;;  %v397_v20 = vld [vmem:[%s13016_s3 + $0x78] sm:$0xff] }
 0x1ba   : > { %1865 = vmatpush.msra.mxu0 %v397_v20 }
 0x1bb   : > { %6649 = vrot.lane.b32.xlu1 %v8689_v17, %s7929_s9  ;;  %v396_v17 = vld [vmem:[%s13016_s3 + $0x70] sm:$0xff] }
 0x1bc   : > { %1866 = vmatpush.msra.mxu0 %v396_v17  ;;  %v392_v17 = vld [vmem:[%s13016_s3 + $0x50] sm:$0xff] }
 0x1bd   : > { %v9311_v10 = vpop.permute.xlu1 %6439 }
 0x1be   : > { %1867 = vmatpush.msra.mxu0 %v395_v56 }
 0x1bf   : > { %6659 = vrot.lane.b32.xlu0 %v6658_v38, %s7929_s9  ;;  %v9328_v48 = vpop.permute.xlu2 %6459 }
 0x1c0   : > { %13303 = vst [vmem:[#allocation74_spill] sm:$0xff] %v9328_v48  ;;  %1868 = vmatpush.msra.mxu0 %v394_v27  ;;  %v390_v27 = vld [vmem:[%s13016_s3 + $0x40] sm:$0xff] }
 0x1c1   : > { %v9316_v7 = vpop.permute.xlu0 %6449 }
 0x1c2   : > { %1869 = vmatpush.msra.mxu0 %v393_v50  ;;  %v388_v50 = vld [vmem:[%s13016_s3 + $0x30] sm:$0xff] }
 0x1c4   : > { %1870 = vmatpush.msra.mxu0 %v392_v17 }
 0x1c5   : > { %v9318_v13 = vpop.permute.xlu1 %6454 }
 0x1c6   : > { %1871 = vmatpush.msra.mxu0 %v391_v4 }
 0x1c7   : > { %v9343_v20 = vpop.permute.xlu2 %6474 }
 0x1c8   : > { %13306 = vst [vmem:[#allocation77_spill] sm:$0xff] %v9343_v20  ;;  %1872 = vmatpush.msra.mxu0 %v390_v27  ;;  %v386_v27 = vld [vmem:[%s13016_s3 + $0x20] sm:$0xff] }
 0x1c9   : > { %v9320_v52 = vpop.permute.xlu0 %6464 }
 0x1ca   : > { %13302 = vst [vmem:[#allocation73_spill] sm:$0xff] %v9320_v52 }
 0x1cd   : > { %v9330_v46 = vpop.permute.xlu1 %6469 }
 0x1ce   : > { %13304 = vst [vmem:[#allocation75_spill] sm:$0xff] %v9330_v46  ;;  %v6186_v46 = vunpack.i.l.bf16 %v9079_v31 }
 0x1cf   : > { %v9366_v17 = vpop.permute.xlu2 %6489 }
 0x1d0   : > { %13310 = vst [vmem:[#allocation81_spill] sm:$0xff] %v9366_v17 }
 0x1d1   : > { %v9332_v38 = vpop.permute.xlu0 %6479 }
 0x1d2   : > { %13305 = vst [vmem:[#allocation76_spill] sm:$0xff] %v9332_v38 }
 0x1d5   : > { %v9345_v8 = vpop.permute.xlu1 %6484 }
 0x1d6   : > { %13307 = vst [vmem:[#allocation78_spill] sm:$0xff] %v9345_v8  ;;  %v389_v8 = vld [vmem:[%s13016_s3 + $0x38] sm:$0xff] }
 0x1d7   : > { %1873 = vmatpush.msra.mxu0 %v389_v8  ;;  %v6505_v17 = vpop.permute.xlu2 %6504 }
 0x1d9   : > { %v9350_v56 = vpop.permute.xlu0 %6494  ;;  %1874 = vmatpush.msra.mxu0 %v388_v50  ;;  %v384_v50 = vld [vmem:[%s13016_s3 + $0x10] sm:$0xff] }
 0x1da   : > { %13308 = vst [vmem:[#allocation79_spill] sm:$0xff] %v9350_v56  ;;  %v387_v56 = vld [vmem:[%s13016_s3 + $0x28] sm:$0xff] }
 0x1db   : > { %1875 = vmatpush.msra.mxu0 %v387_v56  ;;  %v383_v56 = vld [vmem:[%s13016_s3 + $0x8] sm:$0xff] }
 0x1dd   : > { %v9361_v25 = vpop.permute.xlu1 %6499  ;;  %1876 = vmatpush.msra.mxu0 %v386_v27  ;;  %v382_v27 = vld [vmem:[%s13016_s3] sm:$0xff] }
 0x1de   : > { %13309 = vst [vmem:[#allocation80_spill] sm:$0xff] %v9361_v25  ;;  %v385_v25 = vld [vmem:[%s13016_s3 + $0x18] sm:$0xff] }
 0x1df   : > { %1877 = vmatpush.msra.mxu0 %v385_v25  ;;  %v399_v25 = vld [vmem:[%s13016_s3 + $0x88] sm:$0xff] }
 0x1e0   : > { %6048 = vmatpush.msra.mxu1 %v399_v25 }
 0x1e1   : > { %v9368_v4 = vpop.permute.xlu0 %6509  ;;  %1878 = vmatpush.msra.mxu0 %v384_v50  ;;  %v9399_v50 = vpop.permute.xlu2 %6519 }
 0x1e3   : > { %1879 = vmatpush.msra.mxu0 %v383_v56 }
 0x1e5   : > { %v9379_v8 = vpop.permute.xlu1 %6514  ;;  %1880 = vmatpush.msra.mxu0 %v382_v27 }
 0x1e7   : > { %1992 = vmatpush.msrb.mxu0 %v399_v25  ;;  %v7781_v25 = vld [vmem:[#allocation2] sm:$0xff] }
 0x1e8   : > { %v1568_v16 = vsel %vm223_vm0, %v7781_v25, %v6106_v12  ;;  %v6187_v25 = vunpack.i.h.bf16 %v9079_v31  ;;  %v6507_v31 = vunpack.i.h.bf16 %v6505_v17 }
 0x1e9   : > { %v9384_v38 = vpop.permute.xlu0 %6524  ;;  %v9405_v20 = vpop.permute.xlu2 %6534 }
 0x1ed   : > { %v9392_v43 = vpop.permute.xlu1 %6529 }
 0x1f1   : > { %v9394_v21 = vpop.permute.xlu0 %6539  ;;  %v9418_v52 = vpop.permute.xlu2 %6549 }
 0x1f2   : > { %13311 = vst [vmem:[#allocation82_spill] sm:$0xff] %v9394_v21 }
 0x1f5   : > { %v9401_v1 = vpop.permute.xlu1 %6544 }
 0x1f6   : > { %13312 = vst [vmem:[#allocation83_spill] sm:$0xff] %v9401_v1  ;;  %v1601_v1 = vsel %vm1600_vm6, %v1568_v16, %v6186_v46  ;;  %v6347_v46 = vunpack.i.h.bf16 %v9224_v23 }
 0x1f9   : > { %v9403_v56 = vpop.permute.xlu0 %6554 }
 0x1fa   : > { %13313 = vst [vmem:[#allocation84_spill] sm:$0xff] %v9403_v56  ;;  %v6426_v56 = vunpack.i.l.bf16 %v9292_v22 }
 0x1fd   : > { %v9407_v63 = vpop.permute.xlu1 %6559 }
 0x1fe   : > { %13314 = vst [vmem:[#allocation85_spill] sm:$0xff] %v9407_v63  ;;  %v6506_v63 = vunpack.i.l.bf16 %v6505_v17  ;;  %v6351_v17 = vunpack.i.l.bf16 %v9230_v26 }
 0x201   : > { %v9409_v27 = vpop.permute.xlu0 %6569 }
 0x202   : > { %13315 = vst [vmem:[#allocation86_spill] sm:$0xff] %v9409_v27  ;;  %v1634_v27 = vsel %vm1633_vm5, %v1601_v1, %v6266_v58  ;;  %v6267_v1 = vunpack.i.h.bf16 %v9111_v15 }
 0x203   : > { %v1667_v32 = vsel %vm1666_vm7, %v1634_v27, %v6346_v0  ;;  %v7782_v0 = vld [vmem:[#allocation2 + $0x8] sm:$0xff]  ;;  %v6427_v27 = vunpack.i.h.bf16 %v9292_v22  ;;  %v6271_v22 = vunpack.i.l.bf16 %v9149_v33 }
 0x204   : > { %v1700_v12 = vsel %vm1699_vm9, %v1667_v32, %v6426_v56  ;;  %v1569_v29 = vsel %vm223_vm0, %v7782_v0, %v6107_v34  ;;  %v6511_v0 = vunpack.i.l.bf16 %v9368_v4 }
 0x205   : > { %v9425_v48 = vpop.permute.xlu1 %6574  ;;  %v1733_v16 = vsel %vm1732_vm8, %v1700_v12, %v6506_v63  ;;  %v1602_v32 = vsel %vm1600_vm6, %v1569_v29, %v6187_v25  ;;  %v9435_v63 = vpop.permute.xlu2 %6564  ;;  %v6191_v12 = vunpack.i.l.bf16 %v9043_v47 }
 0x206   : > { %13316 = vst [vmem:[#allocation87_spill] sm:$0xff] %v9425_v48  ;;  %v1635_v56 = vsel %vm1633_vm5, %v1602_v32, %v6267_v1 }
 0x207   : > { %v1668_v15 = vsel %vm1666_vm7, %v1635_v56, %v6347_v46  ;;  %v6192_v56 = vunpack.i.h.bf16 %v9043_v47  ;;  %v6512_v47 = vunpack.i.h.bf16 %v9368_v4 }
 0x208   : > { %v1701_v23 = vsel %vm1699_vm9, %v1668_v15, %v6427_v27 }
 0x209   : > { %v6585_v39 = vpop.permute.xlu0 %6584  ;;  %v1734_v34 = vsel %vm1732_vm8, %v1701_v23, %v6507_v31  ;;  %v6272_v23 = vunpack.i.h.bf16 %v9149_v33  ;;  %v6116_v33 = vunpack.i.l.bf16 %v8997_v55 }
 0x20a   : > { %v6586_v21 = vunpack.i.l.bf16 %v6585_v39  ;;  %v6587_v48 = vunpack.i.h.bf16 %v6585_v39  ;;  %v7783_v39 = vld [vmem:[#allocation2 + $0x18] sm:$0xff] }
 0x20c   : > { %v1766_v58 = vsel %vm1765_vm10, %v1733_v16, %v6586_v21  ;;  %v6111_v21 = vunpack.i.l.bf16 %v9013_v36  ;;  %v1767_v25 = vsel %vm1765_vm10, %v1734_v34, %v6587_v48  ;;  %v6112_v48 = vunpack.i.h.bf16 %v9013_v36 }
 0x20d   : > { %1881 = vmatmul.f32.vlgmr.msra.gmra.mxu0 %v1766_v58  ;;  %v6590_v16 = vpop.permute.xlu1 %6589  ;;  %v6431_v58 = vunpack.i.l.bf16 %v9294_v35  ;;  %v9454_v15 = vpop.permute.xlu2 %6579  ;;  %v6352_v34 = vunpack.i.h.bf16 %v9230_v26  ;;  %v6432_v36 = vunpack.i.h.bf16 %v9294_v35  ;;  %v6196_v26 = vunpack.i.l.bf16 %v9087_v57 }
 0x20e   : > { %v1570_v1 = vsel %vm223_vm0, %v7783_v39, %v6111_v21  ;;  %v6591_v27 = vunpack.i.l.bf16 %v6590_v16 }
 0x20f   : > { %v1603_v46 = vsel %vm1600_vm6, %v1570_v1, %v6191_v12  ;;  %v6592_v1 = vunpack.i.h.bf16 %v6590_v16  ;;  %v1572_v16 = vsel %vm223_vm0, %v9163_v6, %v6116_v33  ;;  %v6277_v6 = vunpack.i.h.bf16 %v9161_v45 }
 0x210   : > { %v1636_v29 = vsel %vm1633_vm5, %v1603_v46, %v6271_v22  ;;  %v7784_v22 = vld [vmem:[#allocation2 + $0x20] sm:$0xff] }
 0x211   : > { %v1669_v32 = vsel %vm1666_vm7, %v1636_v29, %v6351_v17  ;;  %v6276_v29 = vunpack.i.l.bf16 %v9161_v45  ;;  %v6121_v45 = vunpack.i.l.bf16 %v9027_v3 }
 0x212   : > { %v1702_v31 = vsel %vm1699_vm9, %v1669_v32, %v6431_v58  ;;  %v6436_v32 = vunpack.i.l.bf16 %v9304_v62 }
 0x213   : > { %v1735_v21 = vsel %vm1732_vm8, %v1702_v31, %v6511_v0  ;;  %v6516_v31 = vunpack.i.l.bf16 %v9379_v8 }
 0x214   : > { %v1768_v12 = vsel %vm1765_vm10, %v1735_v21, %v6591_v27  ;;  %v6356_v27 = vunpack.i.l.bf16 %v9218_v37 }
 0x215   : > { %1884 = vmatmul.f32.gmra.mxu0 %v1767_v25  ;;  %v1571_v25 = vsel %vm223_vm0, %v7784_v22, %v6112_v48  ;;  %v6595_v4 = vpop.permute.xlu2 %6594  ;;  %v1605_v48 = vsel %vm1600_vm6, %v1572_v16, %v6196_v26  ;;  %v6197_v22 = vunpack.i.h.bf16 %v9087_v57  ;;  %v6521_v16 = vunpack.i.l.bf16 %v9399_v50 }
 0x216   : > { %v1604_v17 = vsel %vm1600_vm6, %v1571_v25, %v6192_v56  ;;  %v1638_v56 = vsel %vm1633_vm5, %v1605_v48, %v6276_v29  ;;  %v6596_v21 = vunpack.i.l.bf16 %v6595_v4  ;;  %v7785_v29 = vld [vmem:[#allocation2 + $0x48] sm:$0xff] }
 0x217   : > { %v1637_v39 = vsel %vm1633_vm5, %v1604_v17, %v6272_v23  ;;  %v1671_v23 = vsel %vm1666_vm7, %v1638_v56, %v6356_v27  ;;  %v6357_v17 = vunpack.i.h.bf16 %v9218_v37  ;;  %v6201_v37 = vunpack.i.l.bf16 %v9095_v54 }
 0x218   : > { %v1670_v58 = vsel %vm1666_vm7, %v1637_v39, %v6352_v34  ;;  %v1704_v34 = vsel %vm1699_vm9, %v1671_v23, %v6436_v32  ;;  %v6437_v39 = vunpack.i.h.bf16 %v9304_v62  ;;  %v6441_v27 = vunpack.i.l.bf16 %v9311_v10 }
 0x219   : > { %v1703_v46 = vsel %vm1699_vm9, %v1670_v58, %v6432_v36  ;;  %v1737_v25 = vsel %vm1732_vm8, %v1704_v34, %v6516_v31  ;;  %v6597_v58 = vunpack.i.h.bf16 %v6595_v4  ;;  %v6122_v56 = vunpack.i.h.bf16 %v9027_v3 }
 0x21a   : > { %v1736_v0 = vsel %vm1732_vm8, %v1703_v46, %v6512_v47  ;;  %v1770_v36 = vsel %vm1765_vm10, %v1737_v25, %v6596_v21  ;;  %v6202_v23 = vunpack.i.h.bf16 %v9095_v54  ;;  %v6282_v34 = vunpack.i.h.bf16 %v9127_v40 }
 0x21b   : > { %v1769_v35 = vsel %vm1765_vm10, %v1736_v0, %v6592_v1  ;;  %v6517_v1 = vunpack.i.h.bf16 %v9379_v8  ;;  %v6361_v0 = vunpack.i.l.bf16 %v9238_v44  ;;  %v6600_v8 = vpop.permute.xlu0 %6599  ;;  %v6362_v25 = vunpack.i.h.bf16 %v9238_v44 }
 0x21c   : > { %v6601_v48 = vunpack.i.l.bf16 %v6600_v8  ;;  %v6126_v54 = vunpack.i.l.bf16 %v8929_v18  ;;  %v6206_v44 = vunpack.i.l.bf16 %v9053_v11 }
 0x21d   : > { %1887 = vmatmul.f32.gmra.mxu0 %v1768_v12  ;;  %v6117_v12 = vunpack.i.h.bf16 %v8997_v55 }
 0x21f   : > { %v1573_v47 = vsel %vm223_vm0, %v9165_v59, %v6117_v12  ;;  %v6281_v59 = vunpack.i.l.bf16 %v9127_v40 }
 0x220   : > { %v1606_v55 = vsel %vm1600_vm6, %v1573_v47, %v6197_v22  ;;  %v6522_v47 = vunpack.i.h.bf16 %v9399_v50 }
 0x221   : > { %v1639_v57 = vsel %vm1633_vm5, %v1606_v55, %v6277_v6  ;;  %v7786_v6 = vld [vmem:[#allocation2 + $0x50] sm:$0xff]  ;;  %v6602_v55 = vunpack.i.h.bf16 %v6600_v8 }
 0x222   : > { %v1672_v33 = vsel %vm1666_vm7, %v1639_v57, %v6357_v17  ;;  %v6442_v17 = vunpack.i.h.bf16 %v9311_v10  ;;  %v1576_v10 = vsel %vm223_vm0, %v9183_v2, %v6126_v54 }
 0x223   : > { %v1705_v46 = vsel %vm1699_vm9, %v1672_v33, %v6437_v39  ;;  %v6366_v33 = vunpack.i.l.bf16 %v9244_v19 }
 0x224   : > { %v1738_v26 = vsel %vm1732_vm8, %v1705_v46, %v6517_v1  ;;  %v6446_v46 = vunpack.i.l.bf16 %v9314_v5 }
 0x225   : > { %1890 = vmatmul.f32.gmra.mxu0 %v1769_v35  ;;  %v1771_v62 = vsel %vm1765_vm10, %v1738_v26, %v6597_v58  ;;  %v1574_v35 = vsel %vm223_vm0, %v7785_v29, %v6121_v45  ;;  %v6286_v58 = vunpack.i.l.bf16 %v9175_v28  ;;  %v6605_v45 = vpop.permute.xlu1 %6604  ;;  %v6526_v26 = vunpack.i.l.bf16 %v9384_v38 }
 0x226   : > { %v1607_v4 = vsel %vm1600_vm6, %v1574_v35, %v6201_v37  ;;  %v1609_v37 = vsel %vm1600_vm6, %v1576_v10, %v6206_v44  ;;  %v6207_v29 = vunpack.i.h.bf16 %v9053_v11  ;;  %v6292_v44 = vunpack.i.h.bf16 %v9179_v14 }
 0x227   : > { %v1640_v32 = vsel %vm1633_vm5, %v1607_v4, %v6281_v59  ;;  %v6127_v59 = vunpack.i.h.bf16 %v8929_v18  ;;  %v6287_v4 = vunpack.i.h.bf16 %v9175_v28  ;;  %v6367_v18 = vunpack.i.h.bf16 %v9244_v19 }
 0x228   : > { %v1673_v31 = vsel %vm1666_vm7, %v1640_v32, %v6361_v0  ;;  %v6606_v0 = vunpack.i.l.bf16 %v6605_v45  ;;  %v6447_v32 = vunpack.i.h.bf16 %v9314_v5  ;;  %v6372_v10 = vunpack.i.h.bf16 %v9234_v42 }
 0x229   : > { %v1706_v21 = vsel %vm1699_vm9, %v1673_v31, %v6441_v27  ;;  %v1577_v27 = vsel %vm223_vm0, %v9185_v49, %v6127_v59  ;;  %v6527_v31 = vunpack.i.h.bf16 %v9384_v38  ;;  %v6131_v49 = vunpack.i.l.bf16 %v8955_v41  ;;  %v6610_v38 = vpop.permute.xlu2 %6609 }
 0x22a   : > { %v1739_v12 = vsel %vm1732_vm8, %v1706_v21, %v6521_v16 }
 0x22b   : > { %v1772_v22 = vsel %vm1765_vm10, %v1739_v12, %v6601_v48  ;;  %v1610_v48 = vsel %vm1600_vm6, %v1577_v27, %v6207_v29  ;;  %v6291_v12 = vunpack.i.l.bf16 %v9179_v14  ;;  %v6532_v14 = vunpack.i.h.bf16 %v9392_v43 }
 0x22c   : > { %v1643_v11 = vsel %vm1633_vm5, %v1610_v48, %v6287_v4  ;;  %v6536_v4 = vunpack.i.l.bf16 %v9405_v20 }
 0x22d   : > { %1893 = vmatmul.f32.gmra.mxu0 %v1770_v36  ;;  %v1575_v36 = vsel %vm223_vm0, %v7786_v6, %v6122_v56  ;;  %v6607_v56 = vunpack.i.h.bf16 %v6605_v45  ;;  %v1676_v21 = vsel %vm1666_vm7, %v1643_v11, %v6367_v18  ;;  %v6451_v6 = vunpack.i.l.bf16 %v9316_v7 }
 0x22e   : > { %v1608_v3 = vsel %vm1600_vm6, %v1575_v36, %v6202_v23  ;;  %v1709_v28 = vsel %vm1699_vm9, %v1676_v21, %v6447_v32  ;;  %v6211_v23 = vunpack.i.l.bf16 %v9101_v24  ;;  %v6612_v45 = vunpack.i.h.bf16 %v6610_v38 }
 0x22f   : > { %v1641_v39 = vsel %vm1633_vm5, %v1608_v3, %v6282_v34  ;;  %v1742_v19 = vsel %vm1732_vm8, %v1709_v28, %v6527_v31  ;;  %v6371_v34 = vunpack.i.l.bf16 %v9234_v42 }
 0x230   : > { %v1674_v40 = vsel %vm1666_vm7, %v1641_v39, %v6362_v25  ;;  %v1775_v5 = vsel %vm1765_vm10, %v1742_v19, %v6607_v56  ;;  %v6132_v39 = vunpack.i.h.bf16 %v8955_v41  ;;  %v6217_v56 = vunpack.i.h.bf16 %v9107_v51  ;;  %v7790_v19 = vld [vmem:[#allocation2 + $0x98] sm:$0xff] }
 0x231   : > { %v1707_v1 = vsel %vm1699_vm9, %v1674_v40, %v6442_v17  ;;  %v6531_v17 = vunpack.i.l.bf16 %v9392_v43  ;;  %v6212_v40 = vunpack.i.h.bf16 %v9101_v24 }
 0x232   : > { %v1740_v57 = vsel %vm1732_vm8, %v1707_v1, %v6522_v47  ;;  %v6611_v47 = vunpack.i.l.bf16 %v6610_v38  ;;  %v6537_v38 = vunpack.i.h.bf16 %v9405_v20 }
 0x233   : > { %v1773_v50 = vsel %vm1765_vm10, %v1740_v57, %v6602_v55 }
 0x235   : > { %1896 = vmatmul.f32.gmra.mxu0 %v1771_v62  ;;  %v1642_v62 = vsel %vm1633_vm5, %v1609_v37, %v6286_v58  ;;  %v398_v58 = vld [vmem:[%s13016_s3 + $0x80] sm:$0xff]  ;;  %v13317_v37 = vld [vmem:[#allocation9_spill] sm:$0xff] }
 0x236   : > { %v1675_v2 = vsel %vm1666_vm7, %v1642_v62, %v6366_v33  ;;  %v6452_v33 = vunpack.i.h.bf16 %v9316_v7  ;;  %6049 = vmatpush.msra.mxu1 %v398_v58  ;;  %1993 = vmatpush.msrb.mxu0 %v398_v58  ;;  %v6216_v7 = vunpack.i.l.bf16 %v9107_v51  ;;  %v6137_v31 = vunpack.i.h.bf16 %v13317_v37 }
 0x237   : > { %v1708_v8 = vsel %vm1699_vm9, %v1675_v2, %v6446_v46  ;;  %5959 = vmatmul.msk.f32.vlgmr.msra.gmra.mxu1 %vm223_vm0, %v8816_v9  ;;  %v6376_v2 = vunpack.i.l.bf16 %v9250_v60  ;;  %v6615_v9 = vpop.permute.xlu0 %6614 }
 0x238   : > { %v1741_v35 = vsel %vm1732_vm8, %v1708_v8, %v6526_v26  ;;  %v6136_v26 = vunpack.i.l.bf16 %v13317_v37  ;;  %v7789_v8 = vld [vmem:[#allocation2 + $0x90] sm:$0xff]  ;;  %v6616_v32 = vunpack.i.l.bf16 %v6615_v9  ;;  %v6302_v37 = vunpack.i.h.bf16 %v9191_v30 }
 0x239   : > { %v1774_v16 = vsel %vm1765_vm10, %v1741_v35, %v6606_v0  ;;  %v6296_v0 = vunpack.i.l.bf16 %v9141_v53  ;;  %v6456_v35 = vunpack.i.l.bf16 %v9318_v13 }
 0x23a   : > { %v1580_v29 = vsel %vm223_vm0, %v7789_v8, %v6136_v26 }
 0x23b   : > { %v1613_v27 = vsel %vm1600_vm6, %v1580_v29, %v6216_v7  ;;  %v7792_v7 = vld [vmem:[#allocation2 + $0xb0] sm:$0xff] }
 0x23c   : > { %v1646_v18 = vsel %vm1633_vm5, %v1613_v27, %v6296_v0 }
 0x23d   : > { %1899 = vmatmul.f32.gmra.mxu0 %v1772_v22  ;;  %v7787_v22 = vld [vmem:[#allocation2 + $0x78] sm:$0xff]  ;;  %v1679_v48 = vsel %vm1666_vm7, %v1646_v18, %v6376_v2 }
 0x23e   : > { %v1578_v25 = vsel %vm223_vm0, %v7787_v22, %v6131_v49  ;;  %v1712_v11 = vsel %vm1699_vm9, %v1679_v48, %v6456_v35  ;;  %v6297_v49 = vunpack.i.h.bf16 %v9141_v53  ;;  %v13319_v22 = vld [vmem:[#allocation34_spill] sm:$0xff]  ;;  %v6617_v53 = vunpack.i.h.bf16 %v6615_v9  ;;  %v13325_v9 = vld [vmem:[#allocation37_spill] sm:$0xff] }
 0x23f   : > { %v1611_v36 = vsel %vm1600_vm6, %v1578_v25, %v6211_v23  ;;  %v1745_v21 = vsel %vm1732_vm8, %v1712_v11, %v6536_v4  ;;  %v6377_v23 = vunpack.i.h.bf16 %v9250_v60  ;;  %v13326_v35 = vld [vmem:[#allocation6_spill] sm:$0xff]  ;;  %v13329_v11 = vld [vmem:[#allocation63_spill] sm:$0xff] }
 0x240   : > { %v1644_v3 = vsel %vm1633_vm5, %v1611_v36, %v6291_v12  ;;  %v1778_v28 = vsel %vm1765_vm10, %v1745_v21, %v6616_v32  ;;  %v1581_v12 = vsel %vm223_vm0, %v7790_v19, %v6137_v31  ;;  %v13327_v4 = vld [vmem:[#allocation18_spill] sm:$0xff]  ;;  %v13328_v32 = vld [vmem:[#allocation56_spill] sm:$0xff]  ;;  %v6625_v21 = vpop.permute.xlu2 %6624 }
 0x241   : > { %v1677_v54 = vsel %vm1666_vm7, %v1644_v3, %v6371_v34  ;;  %v1614_v34 = vsel %vm1600_vm6, %v1581_v12, %v6217_v56  ;;  %v6306_v48 = vunpack.i.l.bf16 %v13328_v32  ;;  %v6386_v56 = vunpack.i.l.bf16 %v13329_v11 }
 0x242   : > { %v1710_v55 = vsel %vm1699_vm9, %v1677_v54, %v6451_v6  ;;  %v1647_v51 = vsel %vm1633_vm5, %v1614_v34, %v6297_v49  ;;  %v13320_v6 = vld [vmem:[#allocation11_spill] sm:$0xff]  ;;  %v6381_v54 = vunpack.i.l.bf16 %v9256_v61  ;;  %v7793_v49 = vld [vmem:[#allocation2 + $0xc0] sm:$0xff] }
 0x243   : > { %v1743_v1 = vsel %vm1732_vm8, %v1710_v55, %v6531_v17  ;;  %v1680_v25 = vsel %vm1666_vm7, %v1647_v51, %v6377_v23  ;;  %v6141_v60 = vunpack.i.l.bf16 %v13320_v6  ;;  %v13321_v17 = vld [vmem:[#allocation10_spill] sm:$0xff]  ;;  %v7791_v55 = vld [vmem:[#allocation2 + $0xa8] sm:$0xff]  ;;  %v6626_v51 = vunpack.i.l.bf16 %v6625_v21 }
 0x244   : > { %v1776_v57 = vsel %vm1765_vm10, %v1743_v1, %v6611_v47  ;;  %v6221_v3 = vunpack.i.l.bf16 %v13321_v17  ;;  %v6301_v47 = vunpack.i.l.bf16 %v9191_v30  ;;  %v13322_v1 = vld [vmem:[#allocation74_spill] sm:$0xff]  ;;  %v13330_v23 = vld [vmem:[#allocation73_spill] sm:$0xff] }
 0x245   : > { %1902 = vmatmul.f32.gmra.mxu0 %v1773_v50  ;;  %v7788_v50 = vld [vmem:[#allocation2 + $0x80] sm:$0xff]  ;;  %v6462_v0 = vunpack.i.h.bf16 %v13322_v1  ;;  %v6466_v19 = vunpack.i.l.bf16 %v13330_v23 }
 0x246   : > { %v1579_v41 = vsel %vm223_vm0, %v7788_v50, %v6132_v39  ;;  %v6620_v39 = vpop.permute.xlu1 %6619  ;;  %v13324_v50 = vld [vmem:[#allocation35_spill] sm:$0xff] }
 0x247   : > { %v1612_v24 = vsel %vm1600_vm6, %v1579_v41, %v6212_v40  ;;  %v1582_v40 = vsel %vm223_vm0, %v7791_v55, %v6141_v60  ;;  %v6622_v30 = vunpack.i.h.bf16 %v6620_v39 }
 0x248   : > { %v1645_v42 = vsel %vm1633_vm5, %v1612_v24, %v6292_v44  ;;  %v6461_v44 = vunpack.i.l.bf16 %v13322_v1  ;;  %v13333_v1 = vld [vmem:[#allocation41_spill] sm:$0xff] }
 0x249   : > { %v1678_v46 = vsel %vm1666_vm7, %v1645_v42, %v6372_v10  ;;  %v13323_v10 = vld [vmem:[#allocation82_spill] sm:$0xff] }
 0x24a   : > { %v1711_v59 = vsel %vm1699_vm9, %v1678_v46, %v6452_v33  ;;  %v6541_v58 = vunpack.i.l.bf16 %v13323_v10  ;;  %v6621_v33 = vunpack.i.l.bf16 %v6620_v39  ;;  %v6542_v2 = vunpack.i.h.bf16 %v13323_v10 }
 0x24b   : > { %v1744_v62 = vsel %vm1732_vm8, %v1711_v59, %v6532_v14  ;;  %v6142_v14 = vunpack.i.h.bf16 %v13320_v6  ;;  %v6382_v59 = vunpack.i.h.bf16 %v9256_v61  ;;  %v6146_v61 = vunpack.i.l.bf16 %v13326_v35 }
 0x24c   : > { %v1777_v43 = vsel %vm1765_vm10, %v1744_v62, %v6612_v45  ;;  %v6222_v45 = vunpack.i.h.bf16 %v13321_v17  ;;  %v6467_v39 = vunpack.i.h.bf16 %v13330_v23  ;;  %v6552_v23 = vunpack.i.h.bf16 %v9418_v52 }
 0x24d   : > { %1905 = vmatmul.f32.gmra.mxu0 %v1774_v16  ;;  %v13318_v16 = vld [vmem:[#allocation36_spill] sm:$0xff]  ;;  %v1583_v62 = vsel %vm223_vm0, %v7792_v7, %v6142_v14  ;;  %v6630_v7 = vpop.permute.xlu0 %6629 }
 0x24e   : > { %5960 = vmatmul.msk.f32.gmra.mxu1 %vm223_vm0, %v13318_v16  ;;  %v6226_v16 = vunpack.i.l.bf16 %v13327_v4 }
 0x255   : > { %1908 = vmatmul.f32.gmra.mxu0 %v1775_v5  ;;  %v6457_v5 = vunpack.i.h.bf16 %v9318_v13 }
 0x256   : > { %5961 = vmatmul.msk.f32.gmra.mxu1 %vm223_vm0, %v13319_v22 }
 0x257   : > { %v1713_v36 = vsel %vm1699_vm9, %v1680_v25, %v6457_v5  ;;  %v13331_v5 = vld [vmem:[#allocation83_spill] sm:$0xff]  ;;  %v6147_v25 = vunpack.i.h.bf16 %v13326_v35  ;;  %v6631_v35 = vunpack.i.l.bf16 %v6630_v7 }
 0x258   : > { %v1746_v13 = vsel %vm1732_vm8, %v1713_v36, %v6537_v38  ;;  %v6546_v34 = vunpack.i.l.bf16 %v13331_v5  ;;  %v13332_v38 = vld [vmem:[#allocation38_spill] sm:$0xff]  ;;  %v6227_v36 = vunpack.i.h.bf16 %v13327_v4 }
 0x259   : > { %v1779_v20 = vsel %vm1765_vm10, %v1746_v13, %v6617_v53 }
 0x25d   : > { %1911 = vmatmul.f32.gmra.mxu0 %v1776_v57  ;;  %v1615_v57 = vsel %vm1600_vm6, %v1582_v40, %v6221_v3  ;;  %v6307_v3 = vunpack.i.h.bf16 %v13328_v32  ;;  %v6547_v40 = vunpack.i.h.bf16 %v13331_v5  ;;  %v6632_v5 = vunpack.i.h.bf16 %v6630_v7  ;;  %v7798_v7 = vld [vmem:[#allocation2 + $0xf8] sm:$0xff] }
 0x25e   : > { %5962 = vmatmul.msk.f32.gmra.mxu1 %vm223_vm0, %v13324_v50  ;;  %v1648_v41 = vsel %vm1633_vm5, %v1615_v57, %v6301_v47  ;;  %v6387_v47 = vunpack.i.h.bf16 %v13329_v11  ;;  %v6627_v57 = vunpack.i.h.bf16 %v6625_v21 }
 0x25f   : > { %v1681_v24 = vsel %vm1666_vm7, %v1648_v41, %v6381_v54 }
 0x260   : > { %v1714_v42 = vsel %vm1699_vm9, %v1681_v24, %v6461_v44  ;;  %v13335_v24 = vld [vmem:[#allocation16_spill] sm:$0xff] }
 0x261   : > { %v1747_v46 = vsel %vm1732_vm8, %v1714_v42, %v6541_v58  ;;  %v13334_v58 = vld [vmem:[#allocation8_spill] sm:$0xff]  ;;  %v6231_v14 = vunpack.i.l.bf16 %v13335_v24 }
 0x262   : > { %v1780_v26 = vsel %vm1765_vm10, %v1747_v46, %v6621_v33  ;;  %v6151_v50 = vunpack.i.l.bf16 %v13334_v58 }
 0x265   : > { %1914 = vmatmul.f32.gmra.mxu0 %v1777_v43  ;;  %v1616_v43 = vsel %vm1600_vm6, %v1583_v62, %v6222_v45  ;;  %v13336_v45 = vld [vmem:[#allocation54_spill] sm:$0xff]  ;;  %v7795_v62 = vld [vmem:[#allocation2 + $0xd8] sm:$0xff] }
 0x266   : > { %5963 = vmatmul.msk.f32.gmra.mxu1 %vm223_vm0, %v13325_v9  ;;  %v1649_v8 = vsel %vm1633_vm5, %v1616_v43, %v6302_v37  ;;  %v6311_v46 = vunpack.i.l.bf16 %v13336_v45  ;;  %v13338_v43 = vld [vmem:[#allocation75_spill] sm:$0xff] }
 0x267   : > { %v1682_v29 = vsel %vm1666_vm7, %v1649_v8, %v6382_v59  ;;  %v6551_v8 = vunpack.i.l.bf16 %v9418_v52 }
 0x268   : > { %v1715_v27 = vsel %vm1699_vm9, %v1682_v29, %v6462_v0  ;;  %v1586_v0 = vsel %vm223_vm0, %v7795_v62, %v6151_v50 }
 0x269   : > { %v1748_v18 = vsel %vm1732_vm8, %v1715_v27, %v6542_v2  ;;  %v6471_v2 = vunpack.i.l.bf16 %v13338_v43  ;;  %v1619_v9 = vsel %vm1600_vm6, %v1586_v0, %v6231_v14  ;;  %v6152_v27 = vunpack.i.h.bf16 %v13334_v58 }
 0x26a   : > { %v1781_v31 = vsel %vm1765_vm10, %v1748_v18, %v6622_v30  ;;  %v13339_v30 = vld [vmem:[#allocation42_spill] sm:$0xff]  ;;  %v1652_v29 = vsel %vm1633_vm5, %v1619_v9, %v6311_v46  ;;  %v6232_v18 = vunpack.i.h.bf16 %v13335_v24  ;;  %v13348_v9 = vld [vmem:[#allocation43_spill] sm:$0xff] }
 0x26d   : > { %1917 = vmatmul.f32.gmra.mxu0 %v1778_v28  ;;  %v1584_v28 = vsel %vm223_vm0, %v7793_v49, %v6146_v61  ;;  %v6472_v49 = vunpack.i.h.bf16 %v13338_v43 }
 0x26e   : > { %v1617_v12 = vsel %vm1600_vm6, %v1584_v28, %v6226_v16  ;;  %5964 = vmatmul.msk.f32.gmra.mxu1 %vm223_vm0, %v13332_v38  ;;  %v13341_v38 = vld [vmem:[#allocation7_spill] sm:$0xff] }
 0x26f   : > { %v1650_v22 = vsel %vm1633_vm5, %v1617_v12, %v6306_v48  ;;  %v6312_v48 = vunpack.i.h.bf16 %v13336_v45  ;;  %v6157_v24 = vunpack.i.h.bf16 %v13341_v38 }
 0x270   : > { %v1683_v53 = vsel %vm1666_vm7, %v1650_v22, %v6386_v56  ;;  %v7796_v56 = vld [vmem:[#allocation2 + $0xe0] sm:$0xff]  ;;  %v6156_v22 = vunpack.i.l.bf16 %v13341_v38  ;;  %v13354_v38 = vld [vmem:[#allocation85_spill] sm:$0xff] }
 0x271   : > { %v1716_v60 = vsel %vm1699_vm9, %v1683_v53, %v6466_v19  ;;  %v1587_v21 = vsel %vm223_vm0, %v7796_v56, %v6152_v27  ;;  %v13340_v19 = vld [vmem:[#allocation39_spill] sm:$0xff]  ;;  %v1589_v62 = vsel %vm223_vm0, %v7798_v7, %v6157_v24  ;;  %v13357_v24 = vld [vmem:[#allocation12_spill] sm:$0xff] }
 0x272   : > { %v1749_v17 = vsel %vm1732_vm8, %v1716_v60, %v6546_v34  ;;  %v1620_v28 = vsel %vm1600_vm6, %v1587_v21, %v6232_v18  ;;  %v13350_v18 = vld [vmem:[#allocation19_spill] sm:$0xff]  ;;  %v13352_v21 = vld [vmem:[#allocation65_spill] sm:$0xff] }
 0x273   : > { %v1782_v13 = vsel %vm1765_vm10, %v1749_v17, %v6626_v51  ;;  %v1653_v12 = vsel %vm1633_vm5, %v1620_v28, %v6312_v48  ;;  %v13343_v17 = vld [vmem:[#allocation57_spill] sm:$0xff]  ;;  %v6640_v28 = vpop.permute.xlu2 %6639  ;;  %v13359_v7 = vld [vmem:[#allocation55_spill] sm:$0xff] }
 0x274   : > { %v6316_v52 = vunpack.i.l.bf16 %v13343_v17 }
 0x275   : > { %1920 = vmatmul.f32.gmra.mxu0 %v1779_v20  ;;  %v7794_v20 = vld [vmem:[#allocation2 + $0xc8] sm:$0xff] }
 0x276   : > { %v1585_v54 = vsel %vm223_vm0, %v7794_v20, %v6147_v25  ;;  %5965 = vmatmul.msk.f32.gmra.mxu1 %vm223_vm0, %v13333_v1  ;;  %v13342_v25 = vld [vmem:[#allocation13_spill] sm:$0xff]  ;;  %v6635_v20 = vpop.permute.xlu1 %6634 }
 0x277   : > { %v1618_v55 = vsel %vm1600_vm6, %v1585_v54, %v6227_v36  ;;  %v6236_v60 = vunpack.i.l.bf16 %v13342_v25  ;;  %v7797_v54 = vld [vmem:[#allocation2 + $0xf0] sm:$0xff]  ;;  %v6636_v50 = vunpack.i.l.bf16 %v6635_v20  ;;  %v6237_v45 = vunpack.i.h.bf16 %v13342_v25 }
 0x278   : > { %v1651_v44 = vsel %vm1633_vm5, %v1618_v55, %v6307_v3  ;;  %v13345_v55 = vld [vmem:[#allocation77_spill] sm:$0xff] }
 0x279   : > { %v1684_v10 = vsel %vm1666_vm7, %v1651_v44, %v6387_v47  ;;  %v13346_v44 = vld [vmem:[#allocation84_spill] sm:$0xff]  ;;  %v6477_v0 = vunpack.i.h.bf16 %v13345_v55  ;;  %v1622_v43 = vsel %vm1600_vm6, %v1589_v62, %v6237_v45  ;;  %v6326_v62 = vunpack.i.l.bf16 %v13359_v7 }
 0x27a   : > { %v1717_v33 = vsel %vm1699_vm9, %v1684_v10, %v6467_v39  ;;  %v1588_v39 = vsel %vm223_vm0, %v7797_v54, %v6156_v22  ;;  %v13347_v10 = vld [vmem:[#allocation40_spill] sm:$0xff]  ;;  %v6561_v22 = vunpack.i.l.bf16 %v13354_v38 }
 0x27b   : > { %v1750_v42 = vsel %vm1732_vm8, %v1717_v33, %v6547_v40  ;;  %v6476_v40 = vunpack.i.l.bf16 %v13345_v55  ;;  %v1621_v1 = vsel %vm1600_vm6, %v1588_v39, %v6236_v60  ;;  %v6641_v60 = vunpack.i.l.bf16 %v6640_v28  ;;  %v7800_v55 = vld [vmem:[#allocation2 + $0x110] sm:$0xff] }
 0x27c   : > { %v1783_v37 = vsel %vm1765_vm10, %v1750_v42, %v6627_v57  ;;  %v6556_v57 = vunpack.i.l.bf16 %v13346_v44  ;;  %v1654_v58 = vsel %vm1633_vm5, %v1621_v1, %v6316_v52  ;;  %v6402_v39 = vunpack.i.h.bf16 %v13352_v21 }
 0x27d   : > { %1923 = vmatmul.f32.gmra.mxu0 %v1780_v26  ;;  %v13337_v26 = vld [vmem:[#allocation64_spill] sm:$0xff] }
 0x27e   : > { %v6391_v59 = vunpack.i.l.bf16 %v13337_v26  ;;  %5966 = vmatmul.msk.f32.gmra.mxu1 %vm223_vm0, %v13339_v30  ;;  %v6392_v11 = vunpack.i.h.bf16 %v13337_v26  ;;  %v6637_v30 = vunpack.i.h.bf16 %v6635_v20 }
 0x280   : > { %v1685_v61 = vsel %vm1666_vm7, %v1652_v29, %v6391_v59  ;;  %v1686_v34 = vsel %vm1666_vm7, %v1653_v12, %v6392_v11  ;;  %v13353_v12 = vld [vmem:[#allocation76_spill] sm:$0xff] }
 0x281   : > { %v1718_v16 = vsel %vm1699_vm9, %v1685_v61, %v6471_v2  ;;  %v1719_v53 = vsel %vm1699_vm9, %v1686_v34, %v6472_v49  ;;  %v6557_v2 = vunpack.i.h.bf16 %v13346_v44  ;;  %v6401_v49 = vunpack.i.l.bf16 %v13352_v21 }
 0x282   : > { %v1751_v32 = vsel %vm1732_vm8, %v1718_v16, %v6551_v8  ;;  %v1752_v36 = vsel %vm1732_vm8, %v1719_v53, %v6552_v23  ;;  %v7799_v23 = vld [vmem:[#allocation2 + $0x108] sm:$0xff]  ;;  %v13355_v53 = vld [vmem:[#allocation44_spill] sm:$0xff]  ;;  %v6482_v1 = vunpack.i.h.bf16 %v13353_v12 }
 0x283   : > { %v1785_v3 = vsel %vm1765_vm10, %v1752_v36, %v6632_v5  ;;  %v6481_v5 = vunpack.i.l.bf16 %v13353_v12 }
 0x285   : > { %1926 = vmatmul.f32.gmra.mxu0 %v1781_v31  ;;  %v1784_v31 = vsel %vm1765_vm10, %v1751_v32, %v6631_v35  ;;  %v13349_v35 = vld [vmem:[#allocation47_spill] sm:$0xff]  ;;  %v6241_v32 = vunpack.i.l.bf16 %v13350_v18 }
 0x286   : > { %5967 = vmatmul.msk.f32.gmra.mxu1 %vm223_vm0, %v13340_v19  ;;  %v6161_v61 = vunpack.i.l.bf16 %v13349_v35 }
 0x288   : > { %v1590_v19 = vsel %vm223_vm0, %v7799_v23, %v6161_v61  ;;  %v6327_v23 = vunpack.i.h.bf16 %v13359_v7 }
 0x289   : > { %v1623_v34 = vsel %vm1600_vm6, %v1590_v19, %v6241_v32 }
 0x28a   : > { %v9655_v6 = vpop.f32.mrf.mxu0 }
 0x28d   : > { %1929 = vmatmul.f32.gmra.mxu0 %v1782_v13  ;;  %v13344_v13 = vld [vmem:[#allocation66_spill] sm:$0xff] }
 0x28e   : > { %v6396_v47 = vunpack.i.l.bf16 %v13344_v13  ;;  %5968 = vmatmul.msk.f32.gmra.mxu1 %vm223_vm0, %v13347_v10  ;;  %v6397_v59 = vunpack.i.h.bf16 %v13344_v13  ;;  %v6242_v13 = vunpack.i.h.bf16 %v13350_v18  ;;  %v13356_v10 = vld [vmem:[#allocation45_spill] sm:$0xff]  ;;  %v13362_v18 = vld [vmem:[#allocation46_spill] sm:$0xff] }
 0x290   : > { %v1687_v33 = vsel %vm1666_vm7, %v1654_v58, %v6396_v47 }
 0x291   : > { %v1720_v42 = vsel %vm1699_vm9, %v1687_v33, %v6476_v40 }
 0x292   : > { %v9672_v41 = vpop.f32.mrf.mxu0  ;;  %v1753_v46 = vsel %vm1732_vm8, %v1720_v42, %v6556_v57  ;;  %v6562_v57 = vunpack.i.h.bf16 %v13354_v38  ;;  %v6166_v42 = vunpack.i.l.bf16 %v13357_v24 }
 0x293   : > { %v1786_v26 = vsel %vm1765_vm10, %v1753_v46, %v6636_v50  ;;  %v6642_v50 = vunpack.i.h.bf16 %v6640_v28 }
 0x295   : > { %1932 = vmatmul.f32.gmra.mxu0 %v1783_v37  ;;  %v6317_v37 = vunpack.i.h.bf16 %v13343_v17  ;;  %v6162_v17 = vunpack.i.h.bf16 %v13349_v35 }
 0x296   : > { %5969 = vmatmul.msk.f32.gmra.mxu1 %vm223_vm0, %v13348_v9  ;;  %v6645_v9 = vpop.permute.xlu0 %6644 }
 0x297   : > { %v1655_v8 = vsel %vm1633_vm5, %v1622_v43, %v6317_v37  ;;  %v1591_v40 = vsel %vm223_vm0, %v7800_v55, %v6162_v17  ;;  %v13358_v37 = vld [vmem:[#allocation49_spill] sm:$0xff]  ;;  %v13360_v43 = vld [vmem:[#allocation67_spill] sm:$0xff]  ;;  %v13364_v17 = vld [vmem:[#allocation14_spill] sm:$0xff] }
 0x298   : > { %v1688_v29 = vsel %vm1666_vm7, %v1655_v8, %v6397_v59  ;;  %v1624_v44 = vsel %vm1600_vm6, %v1591_v40, %v6242_v13  ;;  %v7801_v8 = vld [vmem:[#allocation2 + $0x120] sm:$0xff]  ;;  %v6407_v12 = vunpack.i.h.bf16 %v13360_v43  ;;  %v13365_v13 = vld [vmem:[#allocation17_spill] sm:$0xff]  ;;  %v2420_v55 = vld [vmem:[#allocation2 + $0x10] sm:$0x3] }
 0x299   : > { %v1721_v16 = vsel %vm1699_vm9, %v1688_v29, %v6477_v0  ;;  %v13361_v29 = vld [vmem:[#allocation78_spill] sm:$0xff] }
 0x29a   : > { %v9689_v4 = vpop.f32.mrf.mxu0  ;;  %v1754_v48 = vsel %vm1732_vm8, %v1721_v16, %v6557_v2  ;;  %v6406_v2 = vunpack.i.l.bf16 %v13360_v43  ;;  %v6486_v35 = vunpack.i.l.bf16 %v13361_v29  ;;  %v6566_v16 = vunpack.i.l.bf16 %v9435_v63 }
 0x29b   : > { %v1787_v56 = vsel %vm1765_vm10, %v1754_v48, %v6637_v30  ;;  %v1592_v30 = vsel %vm223_vm0, %v7801_v8, %v6166_v42  ;;  %v6646_v48 = vunpack.i.l.bf16 %v6645_v9  ;;  %v6487_v38 = vunpack.i.h.bf16 %v13361_v29 }
 0x29d   : > { %1935 = vmatmul.f32.gmra.mxu0 %v1784_v31  ;;  %v13351_v31 = vld [vmem:[#allocation59_spill] sm:$0xff] }
 0x29e   : > { %v6321_v11 = vunpack.i.l.bf16 %v13351_v31  ;;  %5970 = vmatmul.msk.f32.gmra.mxu1 %vm223_vm0, %v13355_v53  ;;  %v6322_v20 = vunpack.i.h.bf16 %v13351_v31  ;;  %v6567_v53 = vunpack.i.h.bf16 %v9435_v63 }
 0x2a0   : > { %v1656_v25 = vsel %vm1633_vm5, %v1623_v34, %v6321_v11  ;;  %v1657_v58 = vsel %vm1633_vm5, %v1624_v44, %v6322_v20  ;;  %v6167_v11 = vunpack.i.h.bf16 %v13357_v24  ;;  %v13366_v24 = vld [vmem:[#allocation60_spill] sm:$0xff] }
 0x2a1   : > { %v1689_v36 = vsel %vm1666_vm7, %v1656_v25, %v6401_v49  ;;  %v1690_v33 = vsel %vm1666_vm7, %v1657_v58, %v6402_v39  ;;  %v6247_v49 = vunpack.i.h.bf16 %v13358_v37  ;;  %v13363_v25 = vld [vmem:[#allocation52_spill] sm:$0xff]  ;;  %v2419_v39 = vld [vmem:[#allocation2 + $0x8] sm:$0xff]  ;;  %v6331_v42 = vunpack.i.l.bf16 %v13366_v24 }
 0x2a2   : > { %v9706_v51 = vpop.f32.mrf.mxu0  ;;  %v1723_v46 = vsel %vm1699_vm9, %v1690_v33, %v6482_v1  ;;  %v2521_v44 = vrot.slane %v2419_v39, 1  ;;  %v2603_v33 = vrot.slane %v2420_v55, 2 }
 0x2a3   : > { %v1756_v59 = vsel %vm1732_vm8, %v1723_v46, %v6562_v57  ;;  %v2523_v57 = vrot.slane %v2420_v55, 1  ;;  %v13371_v55 = vld [vmem:[#allocation62_spill] sm:$0xff] }
 0x2a4   : > { %v1789_v0 = vsel %vm1765_vm10, %v1756_v59, %v6642_v50  ;;  %v2601_v50 = vrot.slane %v2419_v39, 2  ;;  %v13367_v59 = vld [vmem:[#allocation69_spill] sm:$0xff] }
 0x2a5   : > { %1938 = vmatmul.f32.gmra.mxu0 %v1785_v3  ;;  %v1722_v3 = vsel %vm1699_vm9, %v1689_v36, %v6481_v5  ;;  %v7802_v5 = vld [vmem:[#allocation2 + $0x128] sm:$0xff]  ;;  %v6647_v36 = vunpack.i.h.bf16 %v6645_v9  ;;  %v6411_v7 = vunpack.i.l.bf16 %v13367_v59  ;;  %v7803_v9 = vld [vmem:[#allocation2 + $0x138] sm:$0xff] }
 0x2a6   : > { %v1755_v47 = vsel %vm1732_vm8, %v1722_v3, %v6561_v22  ;;  %5971 = vmatmul.msk.f32.gmra.mxu1 %vm223_vm0, %v13356_v10  ;;  %v1593_v34 = vsel %vm223_vm0, %v7802_v5, %v6167_v11  ;;  %v6171_v3 = vunpack.i.l.bf16 %v13364_v17 }
 0x2a7   : > { %v1788_v54 = vsel %vm1765_vm10, %v1755_v47, %v6641_v60  ;;  %v1626_v22 = vsel %vm1600_vm6, %v1593_v34, %v6247_v49  ;;  %v6251_v47 = vunpack.i.l.bf16 %v13365_v13 }
 0x2a8   : > { %v1659_v60 = vsel %vm1633_vm5, %v1626_v22, %v6327_v23  ;;  %v1594_v8 = vsel %vm223_vm0, %v7803_v9, %v6171_v3  ;;  %v6252_v23 = vunpack.i.h.bf16 %v13365_v13  ;;  %v7804_v22 = vld [vmem:[#allocation2 + $0x198] sm:$0xff] }
 0x2a9   : > { %v1692_v20 = vsel %vm1666_vm7, %v1659_v60, %v6407_v12  ;;  %v6332_v12 = vunpack.i.h.bf16 %v13366_v24  ;;  %v13374_v24 = vld [vmem:[#allocation61_spill] sm:$0xff]  ;;  %v13376_v9 = vld [vmem:[#allocation79_spill] sm:$0xff] }
 0x2aa   : > { %v9723_v14 = vpop.f32.mrf.mxu0  ;;  %v1725_v1 = vsel %vm1699_vm9, %v1692_v20, %v6487_v38  ;;  %v6412_v38 = vunpack.i.h.bf16 %v13367_v59 }
 0x2ab   : > { %v1758_v10 = vsel %vm1732_vm8, %v1725_v1, %v6567_v53  ;;  %v891_v53 = vrot.slane %v7804_v22, 2 }
 0x2ac   : > { %v1791_v46 = vsel %vm1765_vm10, %v1758_v10, %v6647_v36  ;;  %v7806_v36 = vld [vmem:[#allocation2 + $0x140] sm:$0xff] }
 0x2ad   : > { %1941 = vmatmul.f32.gmra.mxu0 %v1786_v26  ;;  %v6246_v26 = vunpack.i.l.bf16 %v13358_v37 }
 0x2ae   : > { %5972 = vmatmul.msk.f32.gmra.mxu1 %vm223_vm0, %v13362_v18 }
 0x2af   : > { %v1625_v61 = vsel %vm1600_vm6, %v1592_v30, %v6246_v26  ;;  %v2524_v26 = vsel %vm708_vm2, %v2521_v44, %v2523_v57  ;;  %v13368_v30 = vld [vmem:[#allocation81_spill] sm:$0xff] }
 0x2b0   : > { %v1658_v32 = vsel %vm1633_vm5, %v1625_v61, %v6326_v62  ;;  %v6650_v62 = vpop.permute.xlu1 %6649  ;;  %v6491_v29 = vunpack.i.l.bf16 %v13368_v30  ;;  %v1627_v61 = vsel %vm1600_vm6, %v1594_v8, %v6251_v47  ;;  %v6492_v3 = vunpack.i.h.bf16 %v13368_v30 }
 0x2b1   : > { %v1691_v31 = vsel %vm1666_vm7, %v1658_v32, %v6406_v2  ;;  %v2604_v2 = vsel %vm789_vm4, %v2601_v50, %v2603_v33  ;;  %v13370_v32 = vld [vmem:[#allocation53_spill] sm:$0xff]  ;;  %v6652_v39 = vunpack.i.h.bf16 %v6650_v62  ;;  %v6496_v8 = vunpack.i.l.bf16 %v13376_v9 }
 0x2b2   : > { %v9740_v27 = vpop.f32.mrf.mxu0  ;;  %v1724_v21 = vsel %vm1699_vm9, %v1691_v31, %v6486_v35  ;;  %v6651_v31 = vunpack.i.l.bf16 %v6650_v62  ;;  %v7807_v62 = vld [vmem:[#allocation2 + $0x1a8] sm:$0x3] }
 0x2b3   : > { %v1757_v28 = vsel %vm1732_vm8, %v1724_v21, %v6566_v16  ;;  %v13369_v16 = vld [vmem:[#allocation86_spill] sm:$0xff]  ;;  %v6172_v21 = vunpack.i.h.bf16 %v13364_v17 }
 0x2b4   : > { %v1790_v19 = vsel %vm1765_vm10, %v1757_v28, %v6646_v48  ;;  %v6571_v18 = vunpack.i.l.bf16 %v13369_v16  ;;  %v1660_v48 = vsel %vm1633_vm5, %v1627_v61, %v6331_v42  ;;  %v9838_v34 = vpop.f32.mrf.mxu1  ;;  %v6572_v47 = vunpack.i.h.bf16 %v13369_v16 }
 0x2b5   : > { %1944 = vmatmul.f32.gmra.mxu0 %v1787_v56  ;;  %v1693_v11 = vsel %vm1666_vm7, %v1660_v48, %v6411_v7  ;;  %v1595_v17 = vsel %vm223_vm0, %v7806_v36, %v6172_v21  ;;  %v6336_v42 = vunpack.i.l.bf16 %v13374_v24  ;;  %v6655_v7 = vpop.permute.xlu2 %6654 }
 0x2b6   : > { %5973 = vmatmul.msk.f32.gmra.mxu1 %vm223_vm0, %v13363_v25  ;;  %v1726_v28 = vsel %vm1699_vm9, %v1693_v11, %v6491_v29  ;;  %v7805_v25 = vld [vmem:[#allocation2 + $0x1a0] sm:$0xff]  ;;  %v1628_v13 = vsel %vm1600_vm6, %v1595_v17, %v6252_v23  ;;  %v13377_v29 = vld [vmem:[#allocation87_spill] sm:$0xff]  ;;  %v6337_v23 = vunpack.i.h.bf16 %v13374_v24  ;;  %v6657_v17 = vunpack.i.h.bf16 %v6655_v7  ;;  %v7810_v24 = vld [vmem:[#allocation2 + $0x168] sm:$0xff] }
 0x2b7   : > { %v892_v60 = vrot.slane %v7805_v25, 2 }
 0x2b9   : > { %v893_v20 = vsel %vm789_vm4, %v891_v53, %v892_v60  ;;  %v6497_v53 = vunpack.i.h.bf16 %v13376_v9  ;;  %v9905_v9 = vld [vmem:[%s13017_s4] ss:$0 sm:$0xff] }
 0x2ba   : > { %v9757_v52 = vpop.f32.mrf.mxu0 }
 0x2bd   : > { %1947 = vmatmul.f32.gmra.mxu0 %v1788_v54  ;;  %v2418_v54 = vld [vmem:[#allocation2] sm:$0xff] }
 0x2be   : > { %v2520_v63 = vrot.slane %v2418_v54, 1  ;;  %v2600_v58 = vrot.slane %v2418_v54, 2  ;;  %5974 = vmatmul.msk.f32.gmra.mxu1 %vm223_vm0, %v13370_v32  ;;  %v1661_v54 = vsel %vm1633_vm5, %v1628_v13, %v6332_v12  ;;  %v13378_v13 = vld [vmem:[#allocation15_spill] sm:$0xff] }
 0x2bf   : > { %v1694_v1 = vsel %vm1666_vm7, %v1661_v54, %v6412_v38  ;;  %v7809_v38 = vld [vmem:[#allocation2 + $0x158] sm:$0xff] }
 0x2c0   : > { %v2522_v37 = vsel %vm708_vm2, %v2520_v63, %v2521_v44  ;;  %v2602_v43 = vsel %vm789_vm4, %v2600_v58, %v2601_v50  ;;  %v13372_v63 = vld [vmem:[#allocation48_spill] sm:$0xff]  ;;  %v1727_v10 = vsel %vm1699_vm9, %v1694_v1, %v6492_v3  ;;  %v13373_v58 = vld [vmem:[#allocation50_spill] sm:$0xff] }
 0x2c1   : > { %v6668_v35 = vpack.i.bf16 %v2604_v2, %v2602_v43  ;;  %v6176_v44 = vunpack.i.l.bf16 %v13372_v63  ;;  %v6256_v50 = vunpack.i.l.bf16 %v13373_v58  ;;  %v1760_v33 = vsel %vm1732_vm8, %v1727_v10, %v6572_v47  ;;  %v7808_v43 = vld [vmem:[#allocation2 + $0x150] sm:$0xff] }
 0x2c2   : > { %v9774_v45 = vpop.f32.mrf.mxu0  ;;  %v6177_v48 = vunpack.i.h.bf16 %v13372_v63  ;;  %v6257_v21 = vunpack.i.h.bf16 %v13373_v58  ;;  %v6181_v47 = vunpack.i.l.bf16 %v13378_v13  ;;  %v13380_v63 = vld [vmem:[#allocation58_spill] sm:$0xff] }
 0x2c3   : > { %6669 = vrot.lane.b32.xlu1 %v6668_v35, %s7924_s23  ;;  %v1596_v2 = vsel %vm223_vm0, %v7808_v43, %v6176_v44  ;;  %v6576_v35 = vunpack.i.l.bf16 %v13377_v29  ;;  %v6341_v44 = vunpack.i.l.bf16 %v13380_v63  ;;  %v13381_v58 = vld [vmem:[#allocation70_spill] sm:$0xff] }
 0x2c4   : > { %v1629_v30 = vsel %vm1600_vm6, %v1596_v2, %v6256_v50  ;;  %v1597_v22 = vsel %vm223_vm0, %v7809_v38, %v6177_v48  ;;  %v6421_v50 = vunpack.i.l.bf16 %v13381_v58  ;;  %v6422_v48 = vunpack.i.h.bf16 %v13381_v58 }
 0x2c5   : > { %1950 = vmatmul.f32.gmra.mxu0 %v1789_v0  ;;  %v6663_v0 = vpack.i.bf16 %v2524_v26, %v2522_v37  ;;  %v13375_v26 = vld [vmem:[#allocation68_spill] sm:$0xff]  ;;  %v1662_v16 = vsel %vm1633_vm5, %v1629_v30, %v6336_v42  ;;  %v1630_v25 = vsel %vm1600_vm6, %v1597_v22, %v6257_v21  ;;  %v1598_v42 = vsel %vm223_vm0, %v7810_v24, %v6181_v47  ;;  %v7811_v21 = vld [vmem:[#allocation2 + $0x170] sm:$0xff] }
 0x2c6   : > { %5975 = vmatmul.msk.f32.gmra.mxu1 %vm223_vm0, %v893_v20  ;;  %v6416_v59 = vunpack.i.l.bf16 %v13375_v26  ;;  %v1663_v36 = vsel %vm1633_vm5, %v1630_v25, %v6337_v23 }
 0x2c7   : > { %6664 = vrot.lane.b32.xlu0 %v6663_v0, %s7923_s30  ;;  %v894_v0 = vrot.slane %v7807_v62, 2  ;;  %v6581_v62 = vunpack.i.l.bf16 %v9454_v15 }
 0x2c8   : > { %v1695_v32 = vsel %vm1666_vm7, %v1662_v16, %v6416_v59 }
 0x2c9   : > { %v895_v61 = vsel %vm789_vm4, %v892_v60, %v894_v0  ;;  %v1728_v11 = vsel %vm1699_vm9, %v1695_v32, %v6496_v8  ;;  %v6577_v60 = vunpack.i.h.bf16 %v13377_v29  ;;  %v6182_v8 = vunpack.i.h.bf16 %v13378_v13 }
 0x2ca   : > { %v9791_v56 = vpop.f32.mrf.mxu0 }
 0x2cb   : > { %6674 = vrot.lane.b32.xlu1 %v13371_v55, %s7928_s8  ;;  %v9859_v37 = vpop.f32.mrf.mxu1 }
 0x2cd   : > { %1953 = vmatmul.f32.gmra.mxu0 %v1790_v19  ;;  %v1759_v19 = vsel %vm1732_vm8, %v1726_v28, %v6571_v18  ;;  %v6656_v18 = vunpack.i.l.bf16 %v6655_v7  ;;  %v1761_v28 = vsel %vm1732_vm8, %v1728_v11, %v6576_v35 }
 0x2ce   : > { %v1792_v5 = vsel %vm1765_vm10, %v1759_v19, %v6651_v31  ;;  %5976 = vmatmul.msk.f32.gmra.mxu1 %vm223_vm0, %v895_v61 }
 0x2cf   : > { %v1794_v19 = vsel %vm1765_vm10, %v1761_v28, %v6656_v18  ;;  %v6342_v18 = vunpack.i.h.bf16 %v13380_v63  ;;  %v1599_v28 = vsel %vm223_vm0, %v7811_v21, %v6182_v8 }
 0x2d2   : > { %v9809_v40 = vpop.f32.mrf.mxu0 }
 0x2d3   : > { %v9878_v12 = vpop.f32.mrf.mxu1 }
 0x2d5   : > { %1956 = vmatmul.f32.gmra.mxu0 %v1791_v46  ;;  %v1793_v46 = vsel %vm1765_vm10, %v1760_v33, %v6652_v39  ;;  %v13379_v39 = vld [vmem:[#allocation51_spill] sm:$0xff]  ;;  %v6660_v33 = vpop.permute.xlu0 %6659 }
 0x2d6   : > { %v6261_v55 = vunpack.i.l.bf16 %v13379_v39  ;;  %v6661_v43 = vunpack.i.l.bf16 %v6660_v33  ;;  %v6262_v35 = vunpack.i.h.bf16 %v13379_v39  ;;  %v6662_v22 = vunpack.i.h.bf16 %v6660_v33 }
 0x2d8   : > { %v1631_v7 = vsel %vm1600_vm6, %v1598_v42, %v6261_v55  ;;  %v13383_v55 = vld [vmem:[#allocation20_spill] sm:$0xff] }
 0x2d9   : > { %v1664_v0 = vsel %vm1633_vm5, %v1631_v7, %v6341_v44 }
 0x2da   : > { %v9831_v49 = vpop.f32.mrf.mxu0  ;;  %v1697_v2 = vsel %vm1666_vm7, %v1664_v0, %v6421_v50 }
 0x2db   : > { %v2046_v59 = vpop.f32.mrf.mxu1 }
 0x2dd   : > { %1959 = vmatmul.f32.gmra.mxu0 %v1792_v5  ;;  %v6417_v5 = vunpack.i.h.bf16 %v13375_v26 }
 0x2df   : > { %v1696_v3 = vsel %vm1666_vm7, %v1663_v36, %v6417_v5  ;;  %v6582_v5 = vunpack.i.h.bf16 %v9454_v15 }
 0x2e0   : > { %v1729_v54 = vsel %vm1699_vm9, %v1696_v3, %v6497_v53 }
 0x2e1   : > { %v1762_v1 = vsel %vm1732_vm8, %v1729_v54, %v6577_v60 }
 0x2e2   : > { %v9852_v57 = vpop.f32.mrf.mxu0  ;;  %v1795_v10 = vsel %vm1765_vm10, %v1762_v1, %v6657_v17 }
 0x2e3   : > { %v2049_v53 = vpop.f32.mrf.mxu1 }
 0x2e5   : > { %1962 = vmatmul.f32.gmra.mxu0 %v1793_v46  ;;  %v13382_v46 = vld [vmem:[#allocation80_spill] sm:$0xff] }
 0x2e6   : > { %v6501_v26 = vunpack.i.l.bf16 %v13382_v46  ;;  %v6502_v23 = vunpack.i.h.bf16 %v13382_v46 }
 0x2e8   : > { %v1730_v29 = vsel %vm1699_vm9, %v1697_v2, %v6501_v26  ;;  %v13387_v2 = vld [vmem:[#allocation22_spill] sm:$0xff] }
 0x2e9   : > { %v1763_v16 = vsel %vm1732_vm8, %v1730_v29, %v6581_v62 }
 0x2ea   : > { %v9871_v31 = vpop.f32.mrf.mxu0  ;;  %v1796_v32 = vsel %vm1765_vm10, %v1763_v16, %v6661_v43 }
 0x2eb   : > { %v2052_v47 = vpop.f32.mrf.mxu1 }
 0x2ed   : > { %1965 = vmatmul.f32.gmra.mxu0 %v1794_v19  ;;  %v1632_v19 = vsel %vm1600_vm6, %v1599_v28, %v6262_v35 }
 0x2ee   : > { %v1665_v38 = vsel %vm1633_vm5, %v1632_v19, %v6342_v18  ;;  %v13390_v19 = vld [vmem:[#allocation27_spill] sm:$0xff] }
 0x2ef   : > { %v1698_v25 = vsel %vm1666_vm7, %v1665_v38, %v6422_v48 }
 0x2f0   : > { %v1731_v60 = vsel %vm1699_vm9, %v1698_v25, %v6502_v23  ;;  %v13391_v25 = vld [vmem:[#allocation30_spill] sm:$0xff] }
 0x2f1   : > { %v1764_v17 = vsel %vm1732_vm8, %v1731_v60, %v6582_v5 }
 0x2f2   : > { %v9888_v20 = vpop.f32.mrf.mxu0  ;;  %v1797_v3 = vsel %vm1765_vm10, %v1764_v17, %v6662_v22 }
 0x2f3   : > { %v2055_v44 = vpop.f32.mrf.mxu1 }
 0x2f5   : > { %1968 = vmatmul.f32.gmra.mxu0 %v1795_v10 }
 0x2fa   : > { %v1924_v30 = vpop.f32.mrf.mxu0 }
 0x2fb   : > { %v1925_v61 = vadd.f32 %v9905_v9, %v1924_v30  ;;  %v2058_v24 = vpop.f32.mrf.mxu1 }
 0x2fd   : > { %v2038_v11 = vadd.f32 %v9838_v34, %v1925_v61  ;;  %1971 = vmatmul.f32.gmra.mxu0 %v1796_v32  ;;  %v13388_v61 = vld [vmem:[#allocation23_spill] sm:$0xff] }
 0x2ff   : > { %2151 = vrot.lane.b32.xlu0 %v2038_v11, %s7930_s17  ;;  %v13389_v11 = vld [vmem:[#allocation26_spill] sm:$0xff] }
 0x302   : > { %v1927_v34 = vpop.f32.mrf.mxu0 }
 0x303   : > { %v1928_v36 = vadd.f32 %v9905_v9, %v1927_v34  ;;  %v2061_v7 = vpop.f32.mrf.mxu1 }
 0x305   : > { %v2041_v15 = vadd.f32 %v9859_v37, %v1928_v36  ;;  %1974 = vmatmul.f32.gmra.mxu0 %v1797_v3  ;;  %v13384_v37 = vld [vmem:[#allocation21_spill] sm:$0xff]  ;;  %v13392_v3 = vld [vmem:[#allocation31_spill] sm:$0xff] }
 0x307   : > { %2153 = vrot.lane.b32.xlu1 %v2041_v15, %s7930_s17 }
 0x30a   : > { %v1930_v13 = vpop.f32.mrf.mxu0 }
 0x30b   : > { %v1931_v54 = vadd.f32 %v9905_v9, %v1930_v13  ;;  %v2064_v30 = vpop.f32.mrf.mxu1 }
 0x30d   : > { %v2044_v39 = vadd.f32 %v9878_v12, %v1931_v54  ;;  %5945 = vmatmul.msk.f32.vlgmr.msrb.gmra.mxu0 %vm223_vm0, %v13383_v55  ;;  %v13385_v12 = vld [vmem:[#allocation24_spill] sm:$0xff] }
 0x30f   : > { %2155 = vrot.lane.b32.xlu2 %v2044_v39, %s7930_s17  ;;  %v13393_v39 = vld [vmem:[#allocation28_spill] sm:$0xff] }
 0x312   : > { %v1933_v1 = vpop.f32.mrf.mxu0 }
 0x313   : > { %v1934_v63 = vadd.f32 %v9905_v9, %v1933_v1  ;;  %v2067_v32 = vpop.f32.mrf.mxu1 }
 0x315   : > { %v2047_v10 = vadd.f32 %v2046_v59, %v1934_v63  ;;  %5946 = vmatmul.msk.f32.gmra.mxu0 %vm223_vm0, %v13384_v37  ;;  %v13386_v59 = vld [vmem:[#allocation25_spill] sm:$0xff] }
 0x317   : > { %2157 = vrot.lane.b32.xlu0 %v2047_v10, %s7930_s17  ;;  %v13394_v10 = vld [vmem:[#allocation29_spill] sm:$0xff] }
 0x31a   : > { %v1936_v58 = vpop.f32.mrf.mxu0 }
 0x31b   : > { %v1937_v50 = vadd.f32 %v9905_v9, %v1936_v58  ;;  %v2070_v5 = vpop.f32.mrf.mxu1 }
 0x31d   : > { %v2050_v33 = vadd.f32 %v2049_v53, %v1937_v50  ;;  %5947 = vmatmul.msk.f32.gmra.mxu0 %vm223_vm0, %v13385_v12 }
 0x31f   : > { %2159 = vrot.lane.b32.xlu1 %v2050_v33, %s7930_s17 }
 0x322   : > { %v1939_v42 = vpop.f32.mrf.mxu0 }
 0x323   : > { %v1940_v46 = vadd.f32 %v9905_v9, %v1939_v42  ;;  %v2073_v34 = vpop.f32.mrf.mxu1  ;;  %v13395_v42 = vld [vmem:[#allocation32_spill] sm:$0xff] }
 0x325   : > { %v2053_v26 = vadd.f32 %v2052_v47, %v1940_v46  ;;  %5948 = vmatmul.msk.f32.gmra.mxu0 %vm223_vm0, %v13386_v59  ;;  %v9990_v46 = vld [vmem:[%s13014_s1 + $0x1] ss:$0 sm:$0xff] }
 0x327   : > { %2161 = vrot.lane.b32.xlu2 %v2053_v26, %s7930_s17 }
 0x32a   : > { %v1942_v62 = vpop.f32.mrf.mxu0 }
 0x32b   : > { %v1943_v0 = vadd.f32 %v9905_v9, %v1942_v62  ;;  %v2076_v13 = vpop.f32.mrf.mxu1 }
 0x32d   : > { %v2056_v43 = vadd.f32 %v2055_v44, %v1943_v0  ;;  %5949 = vmatmul.msk.f32.gmra.mxu0 %vm223_vm0, %v13387_v2 }
 0x32f   : > { %2163 = vrot.lane.b32.xlu0 %v2056_v43, %s7930_s17 }
 0x332   : > { %v1945_v8 = vpop.f32.mrf.mxu0 }
 0x333   : > { %v1946_v29 = vadd.f32 %v9905_v9, %v1945_v8  ;;  %v2079_v63 = vpop.f32.mrf.mxu1 }
 0x335   : > { %v2059_v35 = vadd.f32 %v2058_v24, %v1946_v29  ;;  %5950 = vmatmul.msk.f32.gmra.mxu0 %vm223_vm0, %v13388_v61  ;;  %v9977_v37 = vpop.permute.xlu1 %6669 }
 0x337   : > { %2165 = vrot.lane.b32.xlu1 %v2059_v35, %s7930_s17  ;;  %v13397_v35 = vld [vmem:[#allocation33_spill] sm:$0xff] }
 0x339   : > { %v9980_v58 = vpop.permute.xlu0 %6664 }
 0x33a   : > { %v1948_v16 = vpop.f32.mrf.mxu0 }
 0x33b   : > { %v1949_v18 = vadd.f32 %v9905_v9, %v1948_v16  ;;  %v2082_v26 = vpop.f32.mrf.mxu1 }
 0x33d   : > { %v2062_v48 = vadd.f32 %v2061_v7, %v1949_v18  ;;  %5951 = vmatmul.msk.f32.gmra.mxu0 %vm223_vm0, %v13389_v11  ;;  %v9993_v59 = vpop.permute.xlu1 %6674  ;;  %v9998_v7 = vld [vmem:[%s13015_s2 + $0x1] ss:$0 sm:$0xff] }
 0x33e   : > { %13396 = vst [vmem:[#allocation9_spill] sm:$0xff] %v9993_v59 }
 0x33f   : > { %2167 = vrot.lane.b32.xlu2 %v2062_v48, %s7930_s17 }
 0x342   : > { %v1951_v21 = vpop.f32.mrf.mxu0 }
 0x343   : > { %v1952_v28 = vadd.f32 %v9905_v9, %v1951_v21  ;;  %v2085_v16 = vpop.f32.mrf.mxu1 }
 0x345   : > { %v2065_v23 = vadd.f32 %v2064_v30, %v1952_v28  ;;  %5952 = vmatmul.msk.f32.gmra.mxu0 %vm223_vm0, %v13390_v19 }
 0x347   : > { %2169 = vrot.lane.b32.xlu0 %v2065_v23, %s7930_s17 }
 0x34a   : > { %v1954_v38 = vpop.f32.mrf.mxu0 }
 0x34b   : > { %v1955_v22 = vadd.f32 %v9905_v9, %v1954_v38 }
 0x34d   : > { %v2068_v53 = vadd.f32 %v2067_v32, %v1955_v22  ;;  %5953 = vmatmul.msk.f32.gmra.mxu0 %vm223_vm0, %v13391_v25 }
 0x34f   : > { %2171 = vrot.lane.b32.xlu1 %v2068_v53, %s7930_s17 }
 0x352   : > { %v1957_v60 = vpop.f32.mrf.mxu0 }
 0x353   : > { %v1958_v36 = vadd.f32 %v9905_v9, %v1957_v60  ;;  %v416_v60 = vld [vmem:[%s13016_s3 + $0x110] sm:$0xff] }
 0x355   : > { %v2071_v17 = vadd.f32 %v2070_v5, %v1958_v36  ;;  %5954 = vmatmul.msk.f32.gmra.mxu0 %vm223_vm0, %v13392_v3  ;;  %v417_v5 = vld [vmem:[%s13016_s3 + $0x118] sm:$0xff] }
 0x356   : > { %6050 = vmatpush.msra.mxu3 %v417_v5 }
 0x357   : > { %2173 = vrot.lane.b32.xlu2 %v2071_v17, %s7930_s17 }
 0x358   : > { %6051 = vmatpush.msra.mxu3 %v416_v60 }
 0x35a   : > { %v1960_v15 = vpop.f32.mrf.mxu0 }
 0x35b   : > { %v1961_v47 = vadd.f32 %v9905_v9, %v1960_v15 }
 0x35d   : > { %v2074_v54 = vadd.f32 %v2073_v34, %v1961_v47  ;;  %5955 = vmatmul.msk.f32.gmra.mxu0 %vm223_vm0, %v13393_v39  ;;  %v2088_v34 = vpop.f32.mrf.mxu1 }
 0x35f   : > { %2175 = vrot.lane.b32.xlu0 %v2074_v54, %s7930_s17 }
 0x362   : > { %v1963_v55 = vpop.f32.mrf.mxu0 }
 0x363   : > { %v1964_v1 = vadd.f32 %v9905_v9, %v1963_v55 }
 0x365   : > { %v2077_v44 = vadd.f32 %v2076_v13, %v1964_v1  ;;  %5956 = vmatmul.msk.f32.gmra.mxu0 %vm223_vm0, %v13394_v10  ;;  %v1883_v13 = vadd.f32 %v9905_v9, %v9655_v6 }
 0x367   : > { %2177 = vrot.lane.b32.xlu1 %v2077_v44, %s7930_s17 }
 0x369   : > { %v2156_v50 = vpop.permute.xlu2 %2155 }
 0x36a   : > { %2236 = vst.msk [vmem:[%s8143_s13 + $0x80] sm:$0xff] %vm2219_vm11, %v2156_v50  ;;  %v1966_v33 = vpop.f32.mrf.mxu0 }
 0x36b   : > { %v1967_v12 = vadd.f32 %v9905_v9, %v1966_v33 }
 0x36d   : > { %v2080_v24 = vadd.f32 %v2079_v63, %v1967_v12  ;;  %5957 = vmatmul.msk.f32.gmra.mxu0 %vm223_vm0, %v13395_v42 }
 0x36f   : > { %2179 = vrot.lane.b32.xlu2 %v2080_v24, %s7930_s17 }
 0x371   : > { %v2268_v62 = vld [vmem:[%s8143_s13 + $0x80] sm:$0xff]  ;;  %v2152_v0 = vpop.permute.xlu0 %2151 }
 0x372   : > { %v2303_v43 = vmul.f32 %v9990_v46, %v2268_v62  ;;  %2234 = vst.msk [vmem:[%s8143_s13 + $0x70] sm:$0xff] %vm2219_vm11, %v2152_v0  ;;  %v1969_v2 = vpop.f32.mrf.mxu0 }
 0x373   : > { %v1970_v8 = vadd.f32 %v9905_v9, %v1969_v2 }
 0x374   : > { %v2338_v30 = vadd.f32 %v9998_v7, %v2303_v43 }
 0x375   : > { %v2083_v29 = vadd.f32 %v2082_v26, %v1970_v8  ;;  %5958 = vmatmul.msk.f32.gmra.mxu0 %vm223_vm0, %v13397_v35 }
 0x376   : > { %v2370_v61 = vmax.f32 %v2338_v30, 0.0 }
 0x377   : > { %2181 = vrot.lane.b32.xlu0 %v2083_v29, %s7930_s17 }
 0x378   : > { %2402 = vst.msk [vmem:[#allocation2 + $0xd9] sm:$0xff] %vm223_vm0, %v2370_v61 }
 0x379   : > { %v2266_v18 = vld [vmem:[%s8143_s13 + $0x70] sm:$0xff]  ;;  %v2154_v32 = vpop.permute.xlu1 %2153 }
 0x37a   : > { %v2301_v48 = vmul.f32 %v9990_v46, %v2266_v18  ;;  %2235 = vst.msk [vmem:[%s8143_s13 + $0x78] sm:$0xff] %vm2219_vm11, %v2154_v32  ;;  %v1972_v11 = vpop.f32.mrf.mxu0 }
 0x37b   : > { %v1973_v21 = vadd.f32 %v9905_v9, %v1972_v11 }
 0x37c   : > { %v2336_v28 = vadd.f32 %v9998_v7, %v2301_v48 }
 0x37d   : > { %v2086_v23 = vadd.f32 %v2085_v16, %v1973_v21 }
 0x37e   : > { %v2368_v19 = vmax.f32 %v2336_v28, 0.0 }
 0x37f   : > { %2183 = vrot.lane.b32.xlu1 %v2086_v23, %s7930_s17  ;;  %v2445_v5 = vld [vmem:[#allocation2 + $0xd8] sm:$0xff] }
 0x380   : > { %2400 = vst.msk [vmem:[#allocation2 + $0xc1] sm:$0xff] %vm223_vm0, %v2368_v19 }
 0x381   : > { %v2267_v38 = vld [vmem:[%s8143_s13 + $0x78] sm:$0xff]  ;;  %v2162_v22 = vpop.permute.xlu2 %2161 }
 0x382   : > { %v2302_v53 = vmul.f32 %v9990_v46, %v2267_v38  ;;  %2239 = vst.msk [vmem:[%s8143_s13 + $0x98] sm:$0xff] %vm2219_vm11, %v2162_v22  ;;  %v1975_v25 = vpop.f32.mrf.mxu0 }
 0x383   : > { %v1976_v36 = vadd.f32 %v9905_v9, %v1975_v25 }
 0x384   : > { %v2337_v17 = vadd.f32 %v9998_v7, %v2302_v53  ;;  %v1889_v53 = vadd.f32 %v9905_v9, %v9689_v4 }
 0x385   : > { %v2089_v3 = vadd.f32 %v2088_v34, %v1976_v36  ;;  %v2645_v36 = vrot.slane %v2445_v5, 2 }
 0x386   : > { %v2369_v15 = vmax.f32 %v2337_v17, 0.0 }
 0x387   : > { %2185 = vrot.lane.b32.xlu2 %v2089_v3, %s7930_s17  ;;  %v2442_v44 = vld [vmem:[#allocation2 + $0xc0] sm:$0xff] }
 0x388   : > { %2401 = vst.msk [vmem:[#allocation2 + $0xc9] sm:$0xff] %vm223_vm0, %v2369_v15  ;;  %v2560_v12 = vrot.slane %v2442_v44, 1  ;;  %v2640_v35 = vrot.slane %v2442_v44, 2 }
 0x389   : > { %v2271_v47 = vld [vmem:[%s8143_s13 + $0x98] sm:$0xff]  ;;  %v2158_v54 = vpop.permute.xlu0 %2157 }
 0x38a   : > { %v2306_v39 = vmul.f32 %v9990_v46, %v2271_v47  ;;  %2237 = vst.msk [vmem:[%s8143_s13 + $0x88] sm:$0xff] %vm2219_vm11, %v2158_v54  ;;  %v1995_v55 = vpop.f32.mrf.mxu0 }
 0x38b   : > { %v1996_v1 = vadd.f32 %v1995_v55, %v1883_v13 }
 0x38c   : > { %v2341_v63 = vadd.f32 %v9998_v7, %v2306_v39 }
 0x38d   : > { %2123 = vrot.lane.b32.xlu1 %v1996_v1, %s7930_s17  ;;  %v2565_v1 = vrot.slane %v2445_v5, 1 }
 0x38e   : > { %v2373_v10 = vmax.f32 %v2341_v63, 0.0 }
 0x38f   : > { %v2443_v50 = vld [vmem:[#allocation2 + $0xc8] sm:$0xff]  ;;  %v2444_v33 = vld [vmem:[#allocation2 + $0xd0] sm:$0x3] }
 0x390   : > { %2405 = vst.msk [vmem:[#allocation2 + $0xf9] sm:$0xff] %vm223_vm0, %v2373_v10  ;;  %v6683_v6 = vpack.i.bf16 %v2443_v50, %v2442_v44  ;;  %v2561_v24 = vrot.slane %v2443_v50, 1  ;;  %v2563_v42 = vrot.slane %v2444_v33, 1  ;;  %v2641_v0 = vrot.slane %v2443_v50, 2 }
 0x391   : > { %v2269_v26 = vld [vmem:[%s8143_s13 + $0x88] sm:$0xff]  ;;  %v2160_v62 = vpop.permute.xlu1 %2159  ;;  %v2643_v43 = vrot.slane %v2444_v33, 2 }
 0x392   : > { %v2304_v2 = vmul.f32 %v9990_v46, %v2269_v26  ;;  %2238 = vst.msk [vmem:[%s8143_s13 + $0x90] sm:$0xff] %vm2219_vm11, %v2160_v62  ;;  %6684 = vrot.lane.b32.xlu2 %v6683_v6, %s7928_s8  ;;  %6679 = vrot.lane.b32.xlu0 %v6683_v6, %s7925_s25  ;;  %v2562_v8 = vsel %vm708_vm2, %v2560_v12, %v2561_v24  ;;  %v1998_v16 = vpop.f32.mrf.mxu0 }
 0x393   : > { %v2564_v30 = vsel %vm708_vm2, %v2561_v24, %v2563_v42  ;;  %v10055_v18 = vsel %vm789_vm4, %v2640_v35, %v2641_v0  ;;  %v10058_v32 = vsel %vm789_vm4, %v2641_v0, %v2643_v43  ;;  %v1886_v12 = vadd.f32 %v9905_v9, %v9672_v41 }
 0x394   : > { %v10049_v29 = vpack.i.bf16 %v2564_v30, %v2562_v8  ;;  %v2339_v61 = vadd.f32 %v9998_v7, %v2304_v2  ;;  %13398 = vst [vmem:[#allocation36_spill] sm:$0xff] %v10055_v18  ;;  %v6693_v11 = vpack.i.bf16 %v10058_v32, %v10055_v18 }
 0x395   : > { %13399 = vst [vmem:[#allocation34_spill] sm:$0xff] %v10058_v32  ;;  %v1999_v62 = vadd.f32 %v1998_v16, %v1886_v12 }
 0x396   : > { %6699 = vrot.lane.b32.xlu1 %v10049_v29, %s7926_s26  ;;  %v2371_v48 = vmax.f32 %v2339_v61, 0.0 }
 0x397   : > { %v2450_v26 = vld [vmem:[#allocation2 + $0x100] sm:$0x3] }
 0x398   : > { %2403 = vst.msk [vmem:[#allocation2 + $0xe1] sm:$0xff] %vm223_vm0, %v2371_v48  ;;  %v2573_v41 = vrot.slane %v2450_v26, 1 }
 0x399   : > { %v2270_v21 = vld [vmem:[%s8143_s13 + $0x90] sm:$0xff]  ;;  %v2168_v28 = vpop.permute.xlu2 %2167 }
 0x39a   : > { %v2305_v23 = vmul.f32 %v9990_v46, %v2270_v21  ;;  %2242 = vst.msk [vmem:[%s8143_s13 + $0xb0] sm:$0xff] %vm2219_vm11, %v2168_v28  ;;  %6694 = vrot.lane.b32.xlu0 %v6693_v11, %s7924_s23  ;;  %6689 = vrot.lane.b32.xlu2 %v10049_v29, %s7923_s30  ;;  %v2001_v22 = vpop.f32.mrf.mxu0  ;;  %v1892_v28 = vadd.f32 %v9905_v9, %v9706_v51 }
 0x39b   : > { %v2002_v15 = vadd.f32 %v2001_v22, %v1889_v53 }
 0x39c   : > { %v2340_v19 = vadd.f32 %v9998_v7, %v2305_v23 }
 0x39e   : > { %v2372_v38 = vmax.f32 %v2340_v19, 0.0 }
 0x39f   : > { %v2446_v25 = vld [vmem:[#allocation2 + $0xe0] sm:$0xff]  ;;  %v2447_v34 = vld [vmem:[#allocation2 + $0xe8] sm:$0x3] }
 0x3a0   : > { %2404 = vst.msk [vmem:[#allocation2 + $0xf1] sm:$0xff] %vm223_vm0, %v2372_v38  ;;  %v6708_v60 = vpack.i.bf16 %v2446_v25, %v2445_v5  ;;  %v2646_v17 = vrot.slane %v2446_v25, 2  ;;  %v2648_v47 = vrot.slane %v2447_v34, 2  ;;  %v2566_v54 = vrot.slane %v2446_v25, 1 }
 0x3a1   : > { %v2274_v3 = vld [vmem:[%s8143_s13 + $0xb0] sm:$0xff]  ;;  %v2164_v13 = vpop.permute.xlu0 %2163  ;;  %v2568_v39 = vrot.slane %v2447_v34, 1 }
 0x3a2   : > { %v2309_v55 = vmul.f32 %v9990_v46, %v2274_v3  ;;  %2240 = vst.msk [vmem:[%s8143_s13 + $0xa0] sm:$0xff] %vm2219_vm11, %v2164_v13  ;;  %6704 = vrot.lane.b32.xlu2 %v6693_v11, %s7927_s6  ;;  %6709 = vrot.lane.b32.xlu1 %v6708_v60, %s7925_s25  ;;  %v2647_v4 = vsel %vm789_vm4, %v2645_v36, %v2646_v17  ;;  %v2004_v61 = vpop.f32.mrf.mxu0  ;;  %v2653_v13 = vrot.slane %v2450_v26, 2 }
 0x3a3   : > { %2127 = vrot.lane.b32.xlu0 %v2002_v15, %s7930_s17  ;;  %5991 = vmatmul.msk.f32.vlgmr.msra.gmra.mxu3 %vm223_vm0, %v2647_v4  ;;  %v2567_v44 = vsel %vm708_vm2, %v2565_v1, %v2566_v54  ;;  %v2569_v10 = vsel %vm708_vm2, %v2566_v54, %v2568_v39  ;;  %v2649_v50 = vsel %vm789_vm4, %v2646_v17, %v2648_v47 }
 0x3a4   : > { %v2344_v63 = vadd.f32 %v9998_v7, %v2309_v55  ;;  %v10087_v33 = vpack.i.bf16 %v2569_v10, %v2567_v44  ;;  %v6723_v0 = vpack.i.bf16 %v2649_v50, %v2647_v4  ;;  %v2005_v38 = vadd.f32 %v2004_v61, %v1892_v28 }
 0x3a5   : > { %v1895_v36 = vadd.f32 %v9905_v9, %v9723_v14 }
 0x3a6   : > { %v2376_v6 = vmax.f32 %v2344_v63, 0.0 }
 0x3a7   : > { %v2448_v24 = vld [vmem:[#allocation2 + $0xf0] sm:$0xff]  ;;  %v2449_v42 = vld [vmem:[#allocation2 + $0xf8] sm:$0xff] }
 0x3a8   : > { %2408 = vst.msk [vmem:[#allocation2 + $0x121] sm:$0xff] %vm223_vm0, %v2376_v6  ;;  %v2570_v8 = vrot.slane %v2448_v24, 1  ;;  %v2571_v30 = vrot.slane %v2449_v42, 1  ;;  %v2650_v19 = vrot.slane %v2448_v24, 2  ;;  %v2651_v5 = vrot.slane %v2449_v42, 2 }
 0x3a9   : > { %v2272_v43 = vld [vmem:[%s8143_s13 + $0xa0] sm:$0xff]  ;;  %v2166_v2 = vpop.permute.xlu1 %2165  ;;  %v6743_v15 = vpack.i.bf16 %v2449_v42, %v2448_v24 }
 0x3aa   : > { %v2307_v35 = vmul.f32 %v9990_v46, %v2272_v43  ;;  %2241 = vst.msk [vmem:[%s8143_s13 + $0xa8] sm:$0xff] %vm2219_vm11, %v2166_v2  ;;  %2125 = vrot.lane.b32.xlu2 %v1999_v62, %s7930_s17  ;;  %6724 = vrot.lane.b32.xlu1 %v6723_v0, %s7924_s23  ;;  %v2572_v48 = vsel %vm708_vm2, %v2570_v8, %v2571_v30 }
 0x3ab   : > { %6714 = vrot.lane.b32.xlu0 %v6708_v60, %s7928_s8  ;;  %5992 = vmatmul.msk.f32.gmra.mxu3 %vm223_vm0, %v2649_v50  ;;  %v2574_v11 = vsel %vm708_vm2, %v2571_v30, %v2573_v41  ;;  %v2652_v51 = vsel %vm789_vm4, %v2650_v19, %v2651_v5  ;;  %v2007_v60 = vpop.f32.mrf.mxu0  ;;  %v2654_v55 = vsel %vm789_vm4, %v2651_v5, %v2653_v13 }
 0x3ac   : > { %v2342_v16 = vadd.f32 %v9998_v7, %v2307_v35  ;;  %v10103_v21 = vpack.i.bf16 %v2574_v11, %v2572_v48  ;;  %v2008_v3 = vadd.f32 %v2007_v60, %v1895_v36  ;;  %v6763_v48 = vpack.i.bf16 %v2654_v55, %v2652_v51 }
 0x3ae   : > { %v2374_v23 = vmax.f32 %v2342_v16, 0.0  ;;  %v1898_v16 = vadd.f32 %v9905_v9, %v9740_v27 }
 0x3b0   : > { %2406 = vst.msk [vmem:[#allocation2 + $0x109] sm:$0xff] %vm223_vm0, %v2374_v23 }
 0x3b1   : > { %v2273_v22 = vld [vmem:[%s8143_s13 + $0xa8] sm:$0xff]  ;;  %v2174_v53 = vpop.permute.xlu2 %2173 }
 0x3b2   : > { %v2308_v25 = vmul.f32 %v9990_v46, %v2273_v22  ;;  %2245 = vst.msk [vmem:[%s8143_s13 + $0xc8] sm:$0xff] %vm2219_vm11, %v2174_v53  ;;  %6729 = vrot.lane.b32.xlu2 %v10087_v33, %s7926_s26  ;;  %2129 = vrot.lane.b32.xlu1 %v2005_v38, %s7930_s17  ;;  %v2454_v22 = vld [vmem:[#allocation2 + $0x120] sm:$0xff]  ;;  %v1901_v53 = vadd.f32 %v9905_v9, %v9757_v52 }
 0x3b3   : > { %6719 = vrot.lane.b32.xlu0 %v10087_v33, %s7923_s30  ;;  %5993 = vmatmul.msk.f32.gmra.mxu3 %vm223_vm0, %v2652_v51  ;;  %v2010_v10 = vpop.f32.mrf.mxu0 }
 0x3b4   : > { %v2343_v34 = vadd.f32 %v9998_v7, %v2308_v25  ;;  %v2011_v11 = vadd.f32 %v2010_v10, %v1898_v16 }
 0x3b6   : > { %v2375_v17 = vmax.f32 %v2343_v34, 0.0  ;;  %v2660_v34 = vrot.slane %v2454_v22, 2 }
 0x3b7   : > { %v2451_v4 = vld [vmem:[#allocation2 + $0x108] sm:$0xff] }
 0x3b8   : > { %2407 = vst.msk [vmem:[#allocation2 + $0x111] sm:$0xff] %vm223_vm0, %v2375_v17  ;;  %v2655_v50 = vrot.slane %v2451_v4, 2  ;;  %v2575_v43 = vrot.slane %v2451_v4, 1 }
 0x3b9   : > { %v2277_v47 = vld [vmem:[%s8143_s13 + $0xc8] sm:$0xff]  ;;  %v2170_v54 = vpop.permute.xlu0 %2169 }
 0x3ba   : > { %v2312_v39 = vmul.f32 %v9990_v46, %v2277_v47  ;;  %2243 = vst.msk [vmem:[%s8143_s13 + $0xb8] sm:$0xff] %vm2219_vm11, %v2170_v54  ;;  %2131 = vrot.lane.b32.xlu2 %v2008_v3, %s7930_s17  ;;  %6744 = vrot.lane.b32.xlu1 %v6743_v15, %s7928_s8 }
 0x3bb   : > { %6734 = vrot.lane.b32.xlu0 %v6723_v0, %s7927_s6  ;;  %5994 = vmatmul.msk.f32.gmra.mxu3 %vm223_vm0, %v2654_v55  ;;  %v2013_v19 = vpop.f32.mrf.mxu0  ;;  %v2580_v55 = vrot.slane %v2454_v22, 1 }
 0x3bc   : > { %v2347_v14 = vadd.f32 %v9998_v7, %v2312_v39  ;;  %v2014_v36 = vadd.f32 %v2013_v19, %v1901_v53 }
 0x3be   : > { %v2379_v1 = vmax.f32 %v2347_v14, 0.0 }
 0x3bf   : > { %v2452_v63 = vld [vmem:[#allocation2 + $0x110] sm:$0xff]  ;;  %v2453_v44 = vld [vmem:[#allocation2 + $0x118] sm:$0x3] }
 0x3c0   : > { %2411 = vst.msk [vmem:[#allocation2 + $0x141] sm:$0xff] %vm223_vm0, %v2379_v1  ;;  %v2656_v12 = vrot.slane %v2452_v63, 2  ;;  %v2578_v6 = vrot.slane %v2453_v44, 1  ;;  %v2576_v26 = vrot.slane %v2452_v63, 1  ;;  %v2658_v61 = vrot.slane %v2453_v44, 2 }
 0x3c1   : > { %v2275_v24 = vld [vmem:[%s8143_s13 + $0xb8] sm:$0xff]  ;;  %v2172_v42 = vpop.permute.xlu1 %2171  ;;  %v6773_v17 = vpack.i.bf16 %v2452_v63, %v2451_v4 }
 0x3c2   : > { %v2310_v62 = vmul.f32 %v9990_v46, %v2275_v24  ;;  %2244 = vst.msk [vmem:[%s8143_s13 + $0xc0] sm:$0xff] %vm2219_vm11, %v2172_v42  ;;  %6739 = vrot.lane.b32.xlu2 %v6743_v15, %s7925_s25  ;;  %6749 = vrot.lane.b32.xlu1 %v10103_v21, %s7923_s30  ;;  %v2657_v0 = vsel %vm789_vm4, %v2655_v50, %v2656_v12 }
 0x3c3   : > { %6759 = vrot.lane.b32.xlu0 %v10103_v21, %s7926_s26  ;;  %5995 = vmatmul.msk.f32.gmra.mxu3 %vm223_vm0, %v2657_v0  ;;  %v2577_v8 = vsel %vm708_vm2, %v2575_v43, %v2576_v26  ;;  %v2579_v30 = vsel %vm708_vm2, %v2576_v26, %v2578_v6  ;;  %v2659_v38 = vsel %vm789_vm4, %v2656_v12, %v2658_v61  ;;  %v2016_v14 = vpop.f32.mrf.mxu0 }
 0x3c4   : > { %v2345_v2 = vadd.f32 %v9998_v7, %v2310_v62  ;;  %v10148_v35 = vpack.i.bf16 %v2579_v30, %v2577_v8  ;;  %v6783_v42 = vpack.i.bf16 %v2659_v38, %v2657_v0 }
 0x3c6   : > { %v2377_v41 = vmax.f32 %v2345_v2, 0.0 }
 0x3c7   : > { %v2459_v24 = vld [vmem:[#allocation2 + $0x148] sm:$0x3] }
 0x3c8   : > { %2409 = vst.msk [vmem:[#allocation2 + $0x129] sm:$0xff] %vm223_vm0, %v2377_v41  ;;  %v2588_v0 = vrot.slane %v2459_v24, 1 }
 0x3c9   : > { %v2276_v28 = vld [vmem:[%s8143_s13 + $0xc0] sm:$0xff]  ;;  %v2180_v23 = vpop.permute.xlu2 %2179 }
 0x3ca   : > { %v2311_v5 = vmul.f32 %v9990_v46, %v2276_v28  ;;  %2248 = vst.msk [vmem:[%s8143_s13 + $0xe0] sm:$0xff] %vm2219_vm11, %v2180_v23  ;;  %6754 = vrot.lane.b32.xlu2 %v6763_v48, %s7924_s23  ;;  %6764 = vrot.lane.b32.xlu1 %v6763_v48, %s7927_s6 }
 0x3cb   : > { %2133 = vrot.lane.b32.xlu0 %v2011_v11, %s7930_s17  ;;  %5996 = vmatmul.msk.f32.gmra.mxu3 %vm223_vm0, %v2659_v38  ;;  %v2019_v11 = vpop.f32.mrf.mxu0 }
 0x3cc   : > { %v2346_v27 = vadd.f32 %v9998_v7, %v2311_v5  ;;  %v1907_v5 = vadd.f32 %v9905_v9, %v9791_v56 }
 0x3ce   : > { %v2378_v25 = vmax.f32 %v2346_v27, 0.0  ;;  %v2020_v27 = vadd.f32 %v2019_v11, %v1907_v5  ;;  %v1913_v11 = vadd.f32 %v9905_v9, %v9831_v49 }
 0x3cf   : > { %v2455_v51 = vld [vmem:[#allocation2 + $0x128] sm:$0xff]  ;;  %v2456_v60 = vld [vmem:[#allocation2 + $0x130] sm:$0x3] }
 0x3d0   : > { %2410 = vst.msk [vmem:[#allocation2 + $0x139] sm:$0xff] %vm223_vm0, %v2378_v25  ;;  %v2661_v3 = vrot.slane %v2455_v51, 2  ;;  %v2583_v15 = vrot.slane %v2456_v60, 1  ;;  %v2581_v54 = vrot.slane %v2455_v51, 1  ;;  %v2663_v50 = vrot.slane %v2456_v60, 2 }
 0x3d1   : > { %v2280_v13 = vld [vmem:[%s8143_s13 + $0xe0] sm:$0xff]  ;;  %v2176_v47 = vpop.permute.xlu0 %2175  ;;  %v6798_v38 = vpack.i.bf16 %v2455_v51, %v2454_v22  ;;  %v1904_v22 = vadd.f32 %v9905_v9, %v9774_v45 }
 0x3d2   : > { %v2315_v39 = vmul.f32 %v9990_v46, %v2280_v13  ;;  %2246 = vst.msk [vmem:[%s8143_s13 + $0xd0] sm:$0xff] %vm2219_vm11, %v2176_v47  ;;  %6774 = vrot.lane.b32.xlu2 %v6773_v17, %s7928_s8  ;;  %2135 = vrot.lane.b32.xlu1 %v2014_v36, %s7930_s17  ;;  %v2662_v52 = vsel %vm789_vm4, %v2660_v34, %v2661_v3 }
 0x3d3   : > { %6769 = vrot.lane.b32.xlu0 %v6773_v17, %s7925_s25  ;;  %5997 = vmatmul.msk.f32.gmra.mxu3 %vm223_vm0, %v2662_v52  ;;  %v2582_v1 = vsel %vm708_vm2, %v2580_v55, %v2581_v54  ;;  %v2584_v63 = vsel %vm708_vm2, %v2581_v54, %v2583_v15  ;;  %v2664_v30 = vsel %vm789_vm4, %v2661_v3, %v2663_v50  ;;  %v2668_v3 = vrot.slane %v2459_v24, 2  ;;  %v2022_v45 = vpop.f32.mrf.mxu0 }
 0x3d4   : > { %v2350_v4 = vadd.f32 %v9998_v7, %v2315_v39  ;;  %v10178_v44 = vpack.i.bf16 %v2584_v63, %v2582_v1  ;;  %v2017_v36 = vadd.f32 %v2016_v14, %v1904_v22  ;;  %v6813_v17 = vpack.i.bf16 %v2664_v30, %v2662_v52 }
 0x3d5   : > { %v1910_v55 = vadd.f32 %v9905_v9, %v9809_v40 }
 0x3d6   : > { %v2382_v10 = vmax.f32 %v2350_v4, 0.0 }
 0x3d7   : > { %v10180_v12 = vld [vmem:[#allocation2 + $0x138] sm:$0xff]  ;;  %v10182_v6 = vld [vmem:[#allocation2 + $0x140] sm:$0xff]  ;;  %v2023_v1 = vadd.f32 %v2022_v45, %v1910_v55 }
 0x3d8   : > { %2414 = vst.msk [vmem:[#allocation2 + $0x169] sm:$0xff] %vm223_vm0, %v2382_v10  ;;  %v2585_v43 = vrot.slane %v10180_v12, 1  ;;  %v2586_v2 = vrot.slane %v10182_v6, 1  ;;  %v2665_v23 = vrot.slane %v10180_v12, 2  ;;  %v2666_v19 = vrot.slane %v10182_v6, 2 }
 0x3d9   : > { %v2278_v26 = vld [vmem:[%s8143_s13 + $0xd0] sm:$0xff]  ;;  %v2178_v62 = vpop.permute.xlu1 %2177 }
 0x3da   : > { %v2313_v8 = vmul.f32 %v9990_v46, %v2278_v26  ;;  %2247 = vst.msk [vmem:[%s8143_s13 + $0xd8] sm:$0xff] %vm2219_vm11, %v2178_v62  ;;  %6779 = vrot.lane.b32.xlu2 %v10148_v35, %s7923_s30  ;;  %6789 = vrot.lane.b32.xlu1 %v10148_v35, %s7926_s26  ;;  %v2587_v61 = vsel %vm708_vm2, %v2585_v43, %v2586_v2 }
 0x3db   : > { %6784 = vrot.lane.b32.xlu0 %v6783_v42, %s7924_s23  ;;  %5998 = vmatmul.msk.f32.gmra.mxu3 %vm223_vm0, %v2664_v30  ;;  %v2589_v16 = vsel %vm708_vm2, %v2586_v2, %v2588_v0  ;;  %v10215_v60 = vsel %vm789_vm4, %v2665_v23, %v2666_v19  ;;  %v10231_v54 = vsel %vm789_vm4, %v2666_v19, %v2668_v3 }
 0x3dc   : > { %v2348_v41 = vadd.f32 %v9998_v7, %v2313_v8  ;;  %v10201_v48 = vpack.i.bf16 %v2589_v16, %v2587_v61  ;;  %v2025_v16 = vpop.f32.mrf.mxu0 }
 0x3dd   : > { %v2026_v5 = vadd.f32 %v2025_v16, %v1913_v11 }
 0x3de   : > { %v2380_v28 = vmax.f32 %v2348_v41, 0.0 }
 0x3e0   : > { %2412 = vst.msk [vmem:[#allocation2 + $0x151] sm:$0xff] %vm223_vm0, %v2380_v28 }
 0x3e1   : > { %v2279_v53 = vld [vmem:[%s8143_s13 + $0xd8] sm:$0xff]  ;;  %v2186_v25 = vpop.permute.xlu2 %2185 }
 0x3e2   : > { %v2314_v34 = vmul.f32 %v9990_v46, %v2279_v53  ;;  %2251 = vst.msk [vmem:[%s8143_s13 + $0xf8] sm:$0xff] %vm2219_vm11, %v2186_v25  ;;  %6794 = vrot.lane.b32.xlu2 %v6783_v42, %s7927_s6  ;;  %6799 = vrot.lane.b32.xlu1 %v6798_v38, %s7925_s25 }
 0x3e3   : > { %2139 = vrot.lane.b32.xlu0 %v2020_v27, %s7930_s17  ;;  %5999 = vmatmul.msk.f32.gmra.mxu3 %vm223_vm0, %v10215_v60 }
 0x3e4   : > { %v2349_v56 = vadd.f32 %v9998_v7, %v2314_v34  ;;  %v2028_v45 = vpop.f32.mrf.mxu0 }
 0x3e6   : > { %v2381_v51 = vmax.f32 %v2349_v56, 0.0 }
 0x3e7   : > { %v10241_v14 = vld [vmem:[#allocation2 + $0x150] sm:$0xff] }
 0x3e8   : > { %2413 = vst.msk [vmem:[#allocation2 + $0x159] sm:$0xff] %vm223_vm0, %v2381_v51  ;;  %v2670_v50 = vrot.slane %v10241_v14, 2  ;;  %v2590_v8 = vrot.slane %v10241_v14, 1 }
 0x3e9   : > { %v2283_v15 = vld [vmem:[%s8143_s13 + $0xf8] sm:$0xff]  ;;  %v2182_v13 = vpop.permute.xlu0 %2181 }
 0x3ea   : > { %v2318_v47 = vmul.f32 %v9990_v46, %v2283_v15  ;;  %2249 = vst.msk [vmem:[%s8143_s13 + $0xe8] sm:$0xff] %vm2219_vm11, %v2182_v13  ;;  %2137 = vrot.lane.b32.xlu2 %v2017_v36, %s7930_s17  ;;  %6814 = vrot.lane.b32.xlu1 %v6813_v17, %s7924_s23 }
 0x3eb   : > { %6804 = vrot.lane.b32.xlu0 %v6798_v38, %s7928_s8  ;;  %6000 = vmatmul.msk.f32.gmra.mxu3 %vm223_vm0, %v10231_v54  ;;  %v6833_v38 = vpack.i.bf16 %v10182_v6, %v10180_v12  ;;  %v10289_v12 = vld [vmem:[#allocation2 + $0x168] sm:$0xff] }
 0x3ec   : > { %v2353_v39 = vadd.f32 %v9998_v7, %v2318_v47  ;;  %v10237_v52 = vpop.permute.xlu2 %6684  ;;  %v2675_v36 = vrot.slane %v10289_v12, 2  ;;  %v2595_v15 = vrot.slane %v10289_v12, 1 }
 0x3ee   : > { %v2385_v4 = vmax.f32 %v2353_v39, 0.0 }
 0x3ef   : > { %v10243_v63 = vld [vmem:[#allocation2 + $0x158] sm:$0xff]  ;;  %v2462_v10 = vld [vmem:[#allocation2 + $0x160] sm:$0x3] }
 0x3f0   : > { %2417 = vst.msk [vmem:[#allocation2 + $0x189] sm:$0xff] %vm223_vm0, %v2385_v4  ;;  %v2671_v24 = vrot.slane %v10243_v63, 2  ;;  %v2593_v42 = vrot.slane %v2462_v10, 1  ;;  %v2591_v43 = vrot.slane %v10243_v63, 1  ;;  %v2673_v23 = vrot.slane %v2462_v10, 2 }
 0x3f1   : > { %v2281_v26 = vld [vmem:[%s8143_s13 + $0xe8] sm:$0xff]  ;;  %v2184_v62 = vpop.permute.xlu1 %2183 }
 0x3f2   : > { %v2316_v40 = vmul.f32 %v9990_v46, %v2281_v26  ;;  %2250 = vst.msk [vmem:[%s8143_s13 + $0xf0] sm:$0xff] %vm2219_vm11, %v2184_v62  ;;  %6819 = vrot.lane.b32.xlu2 %v10178_v44, %s7926_s26  ;;  %2141 = vrot.lane.b32.xlu1 %v2023_v1, %s7930_s17  ;;  %v10257_v2 = vsel %vm789_vm4, %v2670_v50, %v2671_v24 }
 0x3f3   : > { %6809 = vrot.lane.b32.xlu0 %v10178_v44, %s7923_s30  ;;  %6001 = vmatmul.msk.f32.gmra.mxu3 %vm223_vm0, %v10257_v2  ;;  %v2592_v41 = vsel %vm708_vm2, %v2590_v8, %v2591_v43  ;;  %v2594_v61 = vsel %vm708_vm2, %v2591_v43, %v2593_v42  ;;  %v10281_v49 = vsel %vm789_vm4, %v2671_v24, %v2673_v23 }
 0x3f4   : > { %v2351_v30 = vadd.f32 %v9998_v7, %v2316_v40  ;;  %v10265_v0 = vpop.permute.xlu2 %6689  ;;  %v10271_v19 = vpack.i.bf16 %v2594_v61, %v2592_v41  ;;  %v1916_v24 = vadd.f32 %v9905_v9, %v9852_v57  ;;  %v6853_v43 = vpack.i.bf16 %v10231_v54, %v10215_v60 }
 0x3f6   : > { %v2383_v28 = vmax.f32 %v2351_v30, 0.0  ;;  %v2029_v8 = vadd.f32 %v2028_v45, %v1916_v24 }
 0x3f7   : > { %v2468_v62 = vld [vmem:[#allocation2 + $0x190] sm:$0x3] }
 0x3f8   : > { %2415 = vst.msk [vmem:[#allocation2 + $0x171] sm:$0xff] %vm223_vm0, %v2383_v28  ;;  %v2686_v9 = vrot.slane %v2468_v62, 1 }
 0x3f9   : > { %v2282_v27 = vld [vmem:[%s8143_s13 + $0xf0] sm:$0xff] }
 0x3fa   : > { %v2317_v53 = vmul.f32 %v9990_v46, %v2282_v27  ;;  %2143 = vrot.lane.b32.xlu2 %v2026_v5, %s7930_s17  ;;  %6834 = vrot.lane.b32.xlu1 %v6833_v38, %s7928_s8 }
 0x3fb   : > { %6824 = vrot.lane.b32.xlu0 %v6813_v17, %s7927_s6  ;;  %6002 = vmatmul.msk.f32.gmra.mxu3 %vm223_vm0, %v10281_v49 }
 0x3fc   : > { %v2352_v25 = vadd.f32 %v9998_v7, %v2317_v53  ;;  %v10287_v34 = vpop.permute.xlu2 %6704 }
 0x3fe   : > { %v2384_v6 = vmax.f32 %v2352_v25, 0.0  ;;  %v7812_v25 = vld [vmem:[%s13017_s4] ss:$0 sm:$0xff] }
 0x3ff   : > { %v2124_v56 = vpop.permute.xlu1 %2123  ;;  %v10291_v22 = vld [vmem:[#allocation2 + $0x170] sm:$0xff]  ;;  %v2465_v51 = vld [vmem:[#allocation2 + $0x178] sm:$0x3] }
 0x400   : > { %2416 = vst.msk [vmem:[#allocation2 + $0x181] sm:$0xff] %vm223_vm0, %v2384_v6  ;;  %v2676_v17 = vrot.slane %v10291_v22, 2  ;;  %v2598_v3 = vrot.slane %v2465_v51, 1  ;;  %v2596_v13 = vrot.slane %v10291_v22, 1  ;;  %v2678_v10 = vrot.slane %v2465_v51, 2 }
 0x401   : > { %2220 = vst.msk [vmem:[%s8143_s13] sm:$0xff] %vm2219_vm11, %v2124_v56  ;;  %v1919_v6 = vadd.f32 %v7812_v25, %v9871_v31 }
 0x402   : > { %6829 = vrot.lane.b32.xlu2 %v6833_v38, %s7925_s25  ;;  %6839 = vrot.lane.b32.xlu1 %v10201_v48, %s7923_s30  ;;  %v10304_v47 = vsel %vm789_vm4, %v2675_v36, %v2676_v17  ;;  %v2597_v39 = vsel %vm708_vm2, %v2595_v15, %v2596_v13  ;;  %v2599_v1 = vsel %vm708_vm2, %v2596_v13, %v2598_v3  ;;  %v2031_v38 = vpop.f32.mrf.mxu0 }
 0x403   : > { %6849 = vrot.lane.b32.xlu0 %v10201_v48, %s7926_s26  ;;  %6003 = vmatmul.msk.f32.gmra.mxu3 %vm223_vm0, %v10304_v47  ;;  %v10316_v50 = vpack.i.bf16 %v2599_v1, %v2597_v39  ;;  %v10333_v57 = vsel %vm789_vm4, %v2676_v17, %v2678_v10  ;;  %v2032_v3 = vadd.f32 %v2031_v38, %v1919_v6 }
 0x404   : > { %v2126_v55 = vpop.permute.xlu2 %2125  ;;  %v10311_v4 = vpop.permute.xlu0 %6679  ;;  %v6863_v15 = vpack.i.bf16 %v10243_v63, %v10241_v14  ;;  %v2691_v63 = vrot.slane %v2468_v62, 2  ;;  %v6903_v38 = vpack.i.bf16 %v10333_v57, %v10304_v47 }
 0x405   : > { %2221 = vst.msk [vmem:[%s8143_s13 + $0x8] sm:$0xff] %vm2219_vm11, %v2126_v55  ;;  %v6873_v55 = vpack.i.bf16 %v10281_v49, %v10257_v2 }
 0x407   : > { %v10320_v42 = vld [vmem:[#allocation2 + $0x180] sm:$0xff]  ;;  %v10322_v26 = vld [vmem:[#allocation2 + $0x188] sm:$0xff] }
 0x408   : > { %v2252_v40 = vld [vmem:[%s8143_s13] sm:$0xff]  ;;  %v2683_v41 = vrot.slane %v10320_v42, 1  ;;  %v2684_v61 = vrot.slane %v10322_v26, 1  ;;  %v10336_v11 = vpop.permute.xlu1 %6699  ;;  %v2688_v56 = vrot.slane %v10320_v42, 2  ;;  %v2689_v51 = vrot.slane %v10322_v26, 2 }
 0x409   : > { %v2287_v30 = vmul.f32 %v9990_v46, %v2252_v40 }
 0x40a   : > { %6844 = vrot.lane.b32.xlu2 %v6853_v43, %s7924_s23  ;;  %6854 = vrot.lane.b32.xlu1 %v6853_v43, %s7927_s6  ;;  %v2685_v60 = vsel %vm708_vm2, %v2683_v41, %v2684_v61  ;;  %v2687_v5 = vsel %vm708_vm2, %v2684_v61, %v2686_v9  ;;  %v2690_v31 = vsel %vm789_vm4, %v2688_v56, %v2689_v51 }
 0x40b   : > { %v2322_v16 = vadd.f32 %v9998_v7, %v2287_v30  ;;  %2145 = vrot.lane.b32.xlu0 %v2029_v8, %s7930_s17  ;;  %6004 = vmatmul.msk.f32.gmra.mxu3 %vm223_vm0, %v10333_v57  ;;  %v10355_v36 = vpack.i.bf16 %v2687_v5, %v2685_v60  ;;  %v2692_v1 = vsel %vm789_vm4, %v2689_v51, %v2691_v63 }
 0x40c   : > { %v2253_v54 = vld [vmem:[%s8143_s13 + $0x8] sm:$0xff]  ;;  %v10343_v28 = vpop.permute.xlu2 %6729  ;;  %v10345_v23 = vpop.permute.xlu0 %6694  ;;  %v6888_v41 = vpack.i.bf16 %v10291_v22, %v10289_v12  ;;  %v1922_v22 = vadd.f32 %v7812_v25, %v9888_v20  ;;  %v6933_v57 = vpack.i.bf16 %v2692_v1, %v2690_v31 }
 0x40d   : > { %v2354_v27 = vmax.f32 %v2322_v16, 0.0  ;;  %v2288_v53 = vmul.f32 %v9990_v46, %v2253_v54  ;;  %v2034_v54 = vpop.f32.mrf.mxu0 }
 0x40e   : > { %v2035_v5 = vadd.f32 %v2034_v54, %v1922_v22 }
 0x40f   : > { %2386 = vst.msk [vmem:[#allocation2 + $0x19] sm:$0xff] %vm223_vm0, %v2354_v27  ;;  %v2323_v17 = vadd.f32 %v9998_v7, %v2288_v53 }
 0x411   : > { %v2355_v13 = vmax.f32 %v2323_v17, 0.0 }
 0x412   : > { %6864 = vrot.lane.b32.xlu2 %v6863_v15, %s7928_s8  ;;  %2147 = vrot.lane.b32.xlu1 %v2032_v3, %s7930_s17 }
 0x413   : > { %2387 = vst.msk [vmem:[#allocation2 + $0x21] sm:$0xff] %vm223_vm0, %v2355_v13  ;;  %6859 = vrot.lane.b32.xlu0 %v6863_v15, %s7925_s25  ;;  %6005 = vmatmul.msk.f32.gmra.mxu3 %vm223_vm0, %v2690_v31 }
 0x414   : > { %v10367_v45 = vpop.permute.xlu1 %6709  ;;  %v2132_v39 = vpop.permute.xlu2 %2131 }
 0x415   : > { %2224 = vst.msk [vmem:[%s8143_s13 + $0x20] sm:$0xff] %vm2219_vm11, %v2132_v39  ;;  %v2128_v14 = vpop.permute.xlu0 %2127 }
 0x416   : > { %2222 = vst.msk [vmem:[%s8143_s13 + $0x10] sm:$0xff] %vm2219_vm11, %v2128_v14  ;;  %v10425_v17 = vld [vmem:[#allocation2 + $0x18] sm:$0xff] }
 0x41a   : > { %6869 = vrot.lane.b32.xlu2 %v10271_v19, %s7923_s30  ;;  %6879 = vrot.lane.b32.xlu1 %v10271_v19, %s7926_s26  ;;  %v10422_v20 = vld [vmem:[#allocation2 + $0x20] sm:$0xff]  ;;  %v2423_v25 = vld [vmem:[#allocation2 + $0x28] sm:$0x3] }
 0x41b   : > { %6874 = vrot.lane.b32.xlu0 %v6873_v55, %s7924_s23  ;;  %6006 = vmatmul.msk.f32.gmra.mxu3 %vm223_vm0, %v2692_v1  ;;  %v2526_v15 = vrot.slane %v10422_v20, 1  ;;  %v2528_v13 = vrot.slane %v2423_v25, 1 }
 0x41c   : > { %v2256_v10 = vld [vmem:[%s8143_s13 + $0x20] sm:$0xff]  ;;  %v10383_v24 = vpop.permute.xlu1 %6724  ;;  %v10385_v43 = vpop.permute.xlu2 %6739 }
 0x41d   : > { %v2291_v62 = vmul.f32 %v9990_v46, %v2256_v10  ;;  %v2254_v2 = vld [vmem:[%s8143_s13 + $0x10] sm:$0xff]  ;;  %v10389_v49 = vpop.permute.xlu0 %6714  ;;  %v2529_v63 = vsel %vm708_vm2, %v2526_v15, %v2528_v13  ;;  %v2606_v10 = vrot.slane %v10422_v20, 2 }
 0x41e   : > { %v2289_v40 = vmul.f32 %v9990_v46, %v2254_v2  ;;  %v2605_v2 = vrot.slane %v10425_v17, 2  ;;  %v10485_v13 = vld [vmem:[%s13015_s2 + $0x1] ss:$0 sm:$0xff] }
 0x41f   : > { %v2326_v8 = vadd.f32 %v9998_v7, %v2291_v62  ;;  %v2608_v62 = vrot.slane %v2423_v25, 2 }
 0x420   : > { %v2324_v30 = vadd.f32 %v9998_v7, %v2289_v40 }
 0x421   : > { %v2358_v61 = vmax.f32 %v2326_v8, 0.0 }
 0x422   : > { %v2356_v9 = vmax.f32 %v2324_v30, 0.0  ;;  %6884 = vrot.lane.b32.xlu2 %v6873_v55, %s7927_s6  ;;  %6889 = vrot.lane.b32.xlu1 %v6888_v41, %s7925_s25  ;;  %v6918_v55 = vpack.i.bf16 %v10322_v26, %v10320_v42  ;;  %v2607_v42 = vsel %vm789_vm4, %v2605_v2, %v2606_v10  ;;  %v2609_v26 = vsel %vm789_vm4, %v2606_v10, %v2608_v62 }
 0x423   : > { %2390 = vst.msk [vmem:[#allocation2 + $0x49] sm:$0xff] %vm223_vm0, %v2358_v61  ;;  %6894 = vrot.lane.b32.xlu0 %v6888_v41, %s7928_s8 }
 0x424   : > { %2388 = vst.msk [vmem:[#allocation2 + $0x31] sm:$0xff] %vm223_vm0, %v2356_v9  ;;  %v10401_v16 = vpop.permute.xlu2 %6754  ;;  %v2130_v60 = vpop.permute.xlu1 %2129  ;;  %v6958_v9 = vpack.i.bf16 %v2609_v26, %v2607_v42 }
 0x425   : > { %13400 = vst [vmem:[#allocation11_spill] sm:$0xff] %v10401_v16  ;;  %v10405_v12 = vpop.permute.xlu0 %6719 }
 0x426   : > { %2223 = vst.msk [vmem:[%s8143_s13 + $0x18] sm:$0xff] %vm2219_vm11, %v2130_v60 }
 0x42a   : > { %2149 = vrot.lane.b32.xlu2 %v2035_v5, %s7930_s17  ;;  %6904 = vrot.lane.b32.xlu1 %v6903_v38, %s7924_s23  ;;  %s5861_s17 = scalar_lea.sflag [#allocation4], %s13570_s12 }
 0x42b   : > { %6899 = vrot.lane.b32.xlu0 %v10316_v50, %s7923_s30  ;;  %v10460_v60 = vld [vmem:[#allocation2 + $0x30] sm:$0xff] }
 0x42c   : > { %v10415_v53 = vpop.permute.xlu2 %6774  ;;  %v10417_v6 = vpop.permute.xlu1 %6744  ;;  %v2530_v5 = vrot.slane %v10460_v60, 1  ;;  %v2610_v26 = vrot.slane %v10460_v60, 2 }
 0x42d   : > { %v2255_v27 = vld [vmem:[%s8143_s13 + $0x18] sm:$0xff]  ;;  %13401 = vst [vmem:[#allocation10_spill] sm:$0xff] %v10415_v53  ;;  %v10420_v51 = vpop.permute.xlu0 %6734 }
 0x42e   : > { %v2290_v56 = vmul.f32 %v9990_v46, %v2255_v27  ;;  %v2525_v46 = vrot.slane %v10425_v17, 1 }
 0x430   : > { %v2325_v47 = vadd.f32 %v9998_v7, %v2290_v56  ;;  %v2527_v14 = vsel %vm708_vm2, %v2525_v46, %v2526_v15 }
 0x431   : > { %v6943_v1 = vpack.i.bf16 %v2529_v63, %v2527_v14  ;;  %v6938_v14 = vpack.i.bf16 %v10422_v20, %v10425_v17 }
 0x432   : > { %v2357_v3 = vmax.f32 %v2325_v47, 0.0  ;;  %6909 = vrot.lane.b32.xlu2 %v10316_v50, %s7926_s26  ;;  %6934 = vrot.lane.b32.xlu1 %v6933_v57, %s7927_s6 }
 0x433   : > { %6914 = vrot.lane.b32.xlu0 %v6903_v38, %s7927_s6 }
 0x434   : > { %2389 = vst.msk [vmem:[#allocation2 + $0x39] sm:$0xff] %vm223_vm0, %v2357_v3  ;;  %v10434_v39 = vpop.permute.xlu2 %6779  ;;  %v10436_v7 = vpop.permute.xlu1 %6749  ;;  %v10477_v3 = vld [vmem:[%s13014_s1 + $0x1] ss:$0 sm:$0xff] }
 0x435   : > { %13402 = vst [vmem:[#allocation74_spill] sm:$0xff] %v10434_v39  ;;  %v10438_v31 = vpop.permute.xlu0 %6759  ;;  %v7815_v39 = vld [vmem:[%s13016_s3 + $0x118] sm:$0xff] }
 0x436   : > { %13403 = vst [vmem:[#allocation82_spill] sm:$0xff] %v10436_v7 }
 0x43a   : > { %6919 = vrot.lane.b32.xlu2 %v6918_v55, %s7925_s25  ;;  %6944 = vrot.lane.b32.xlu1 %v6943_v1, %s7923_s30 }
 0x43b   : > { %6929 = vrot.lane.b32.xlu0 %v10355_v36, %s7926_s26  ;;  %v10458_v41 = vld [vmem:[#allocation2 + $0x38] sm:$0xff]  ;;  %v2426_v61 = vld [vmem:[#allocation2 + $0x40] sm:$0x3] }
 0x43c   : > { %v10450_v40 = vpop.permute.xlu2 %6794  ;;  %v10452_v8 = vpop.permute.xlu1 %6764  ;;  %v2531_v54 = vrot.slane %v10458_v41, 1  ;;  %v2533_v22 = vrot.slane %v2426_v61, 1  ;;  %v2611_v10 = vrot.slane %v10458_v41, 2  ;;  %v2613_v62 = vrot.slane %v2426_v61, 2 }
 0x43d   : > { %13404 = vst [vmem:[#allocation35_spill] sm:$0xff] %v10450_v40  ;;  %v2134_v30 = vpop.permute.xlu0 %2133 }
 0x43e   : > { %13405 = vst [vmem:[#allocation37_spill] sm:$0xff] %v10452_v8  ;;  %v2532_v47 = vsel %vm708_vm2, %v2530_v5, %v2531_v54  ;;  %v2534_v57 = vsel %vm708_vm2, %v2531_v54, %v2533_v22  ;;  %v10512_v61 = vsel %vm789_vm4, %v2610_v26, %v2611_v10 }
 0x43f   : > { %2225 = vst.msk [vmem:[%s8143_s13 + $0x28] sm:$0xff] %vm2219_vm11, %v2134_v30  ;;  %v10490_v63 = vpack.i.bf16 %v2534_v57, %v2532_v47 }
 0x440   : > { %13410 = vst [vmem:[#allocation73_spill] sm:$0xff] %v10512_v61 }
 0x442   : > { %6924 = vrot.lane.b32.xlu2 %v6918_v55, %s7928_s8  ;;  %6959 = vrot.lane.b32.xlu1 %v6958_v9, %s7927_s6  ;;  %v6963_v55 = vpack.i.bf16 %v10458_v41, %v10460_v60 }
 0x443   : > { %6954 = vrot.lane.b32.xlu0 %v6943_v1, %s7926_s26 }
 0x444   : > { %v2138_v38 = vpop.permute.xlu2 %2137  ;;  %v2136_v27 = vpop.permute.xlu1 %2135 }
 0x445   : > { %2227 = vst.msk [vmem:[%s8143_s13 + $0x38] sm:$0xff] %vm2219_vm11, %v2138_v38  ;;  %v10470_v25 = vpop.permute.xlu0 %6769 }
 0x446   : > { %v2257_v56 = vld [vmem:[%s8143_s13 + $0x28] sm:$0xff]  ;;  %13406 = vst [vmem:[#allocation6_spill] sm:$0xff] %v10470_v25  ;;  %v6672_v25 = vunpack.i.h.bf16 %v9977_v37 }
 0x447   : > { %v2292_v15 = vmul.f32 %v10477_v3, %v2257_v56  ;;  %2226 = vst.msk [vmem:[%s8143_s13 + $0x30] sm:$0xff] %vm2219_vm11, %v2136_v27  ;;  %v10515_v27 = vsel %vm789_vm4, %v2611_v10, %v2613_v62 }
 0x448   : > { %13411 = vst [vmem:[#allocation83_spill] sm:$0xff] %v10515_v27 }
 0x449   : > { %v2327_v46 = vadd.f32 %v10485_v13, %v2292_v15  ;;  %v6978_v15 = vpack.i.bf16 %v10515_v27, %v10512_v61 }
 0x44a   : > { %6939 = vrot.lane.b32.xlu2 %v6938_v14, %s7925_s25  ;;  %6984 = vrot.lane.b32.xlu1 %v10490_v63, %s7926_s26 }
 0x44b   : > { %v2359_v1 = vmax.f32 %v2327_v46, 0.0  ;;  %6964 = vrot.lane.b32.xlu0 %v6963_v55, %s7925_s25 }
 0x44c   : > { %v2259_v2 = vld [vmem:[%s8143_s13 + $0x38] sm:$0xff]  ;;  %v10501_v30 = vpop.permute.xlu2 %6819  ;;  %v10503_v42 = vpop.permute.xlu1 %6789 }
 0x44d   : > { %2391 = vst.msk [vmem:[#allocation2 + $0x51] sm:$0xff] %vm223_vm0, %v2359_v1  ;;  %v2294_v54 = vmul.f32 %v10477_v3, %v2259_v2  ;;  %v10508_v5 = vpop.permute.xlu0 %6784  ;;  %v10535_v2 = vld [vmem:[#allocation2 + $0x48] sm:$0xff] }
 0x44e   : > { %13407 = vst [vmem:[#allocation18_spill] sm:$0xff] %v10501_v30  ;;  %v2258_v22 = vld [vmem:[%s8143_s13 + $0x30] sm:$0xff] }
 0x44f   : > { %13408 = vst [vmem:[#allocation56_spill] sm:$0xff] %v10503_v42  ;;  %v2293_v38 = vmul.f32 %v10477_v3, %v2258_v22  ;;  %v2329_v56 = vadd.f32 %v10485_v13, %v2294_v54 }
 0x450   : > { %13409 = vst [vmem:[#allocation63_spill] sm:$0xff] %v10508_v5 }
 0x451   : > { %v2328_v47 = vadd.f32 %v10485_v13, %v2293_v38  ;;  %v2361_v57 = vmax.f32 %v2329_v56, 0.0 }
 0x452   : > { %6949 = vrot.lane.b32.xlu2 %v6958_v9, %s7924_s23  ;;  %6994 = vrot.lane.b32.xlu1 %v10490_v63, %s7929_s9 }
 0x453   : > { %v2360_v46 = vmax.f32 %v2328_v47, 0.0  ;;  %2393 = vst.msk [vmem:[#allocation2 + $0x69] sm:$0xff] %vm223_vm0, %v2361_v57  ;;  %6979 = vrot.lane.b32.xlu0 %v6978_v15, %s7924_s23  ;;  %v2615_v47 = vrot.slane %v10535_v2, 2 }
 0x454   : > { %v2144_v14 = vpop.permute.xlu2 %2143  ;;  %v10527_v1 = vpop.permute.xlu1 %6799  ;;  %v10531_v62 = vld [vmem:[#allocation2 + $0x50] sm:$0xff]  ;;  %v2429_v9 = vld [vmem:[#allocation2 + $0x58] sm:$0x3] }
 0x455   : > { %2392 = vst.msk [vmem:[#allocation2 + $0x61] sm:$0xff] %vm223_vm0, %v2360_v46  ;;  %v2140_v10 = vpop.permute.xlu0 %2139  ;;  %v6998_v26 = vpack.i.bf16 %v10531_v62, %v10535_v2  ;;  %v2616_v54 = vrot.slane %v10531_v62, 2  ;;  %v2618_v22 = vrot.slane %v2429_v9, 2  ;;  %v2536_v38 = vrot.slane %v10531_v62, 1 }
 0x456   : > { %13412 = vst [vmem:[#allocation38_spill] sm:$0xff] %v10527_v1  ;;  %v2538_v56 = vrot.slane %v2429_v9, 1 }
 0x457   : > { %2230 = vst.msk [vmem:[%s8143_s13 + $0x50] sm:$0xff] %vm2219_vm11, %v2144_v14  ;;  %v10556_v27 = vsel %vm789_vm4, %v2615_v47, %v2616_v54  ;;  %v10559_v9 = vsel %vm789_vm4, %v2616_v54, %v2618_v22 }
 0x458   : > { %2228 = vst.msk [vmem:[%s8143_s13 + $0x40] sm:$0xff] %vm2219_vm11, %v2140_v10  ;;  %v2535_v10 = vrot.slane %v10535_v2, 1  ;;  %v2539_v59 = vsel %vm708_vm2, %v2536_v38, %v2538_v56 }
 0x459   : > { %13416 = vst [vmem:[#allocation54_spill] sm:$0xff] %v10556_v27 }
 0x45a   : > { %6969 = vrot.lane.b32.xlu2 %v6963_v55, %s7928_s8  ;;  %6999 = vrot.lane.b32.xlu1 %v6998_v26, %s7925_s25  ;;  %13417 = vst [vmem:[#allocation64_spill] sm:$0xff] %v10559_v9  ;;  %v2537_v61 = vsel %vm708_vm2, %v2535_v10, %v2536_v38 }
 0x45b   : > { %7004 = vrot.lane.b32.xlu0 %v6998_v26, %s7928_s8  ;;  %v7008_v47 = vpack.i.bf16 %v2539_v59, %v2537_v61 }
 0x45c   : > { %v10546_v46 = vpop.permute.xlu2 %6829  ;;  %v10548_v14 = vpop.permute.xlu1 %6814  ;;  %v10580_v59 = vld [vmem:[#allocation2 + $0x60] sm:$0xff]  ;;  %v10582_v61 = vld [vmem:[#allocation2 + $0x68] sm:$0xff] }
 0x45d   : > { %13413 = vst [vmem:[#allocation41_spill] sm:$0xff] %v10546_v46  ;;  %v10553_v55 = vpop.permute.xlu0 %6804  ;;  %v2540_v22 = vrot.slane %v10580_v59, 1  ;;  %v2541_v38 = vrot.slane %v10582_v61, 1 }
 0x45e   : > { %v2262_v57 = vld [vmem:[%s8143_s13 + $0x50] sm:$0xff]  ;;  %13414 = vst [vmem:[#allocation8_spill] sm:$0xff] %v10548_v14  ;;  %v7013_v14 = vpack.i.bf16 %v10559_v9, %v10556_v27 }
 0x45f   : > { %v2297_v32 = vmul.f32 %v10477_v3, %v2262_v57  ;;  %v2260_v18 = vld [vmem:[%s8143_s13 + $0x40] sm:$0xff]  ;;  %13415 = vst [vmem:[#allocation16_spill] sm:$0xff] %v10553_v55 }
 0x460   : > { %v2295_v26 = vmul.f32 %v10477_v3, %v2260_v18 }
 0x461   : > { %v2332_v46 = vadd.f32 %v10485_v13, %v2297_v32 }
 0x462   : > { %v2330_v57 = vadd.f32 %v10485_v13, %v2295_v26  ;;  %6974 = vrot.lane.b32.xlu2 %v10490_v63, %s7923_s30  ;;  %7014 = vrot.lane.b32.xlu1 %v7013_v14, %s7924_s23  ;;  %v2432_v63 = vld [vmem:[#allocation2 + $0x70] sm:$0x3] }
 0x463   : > { %v2364_v30 = vmax.f32 %v2332_v46, 0.0  ;;  %7009 = vrot.lane.b32.xlu0 %v7008_v47, %s7923_s30  ;;  %v2623_v5 = vrot.slane %v2432_v63, 2 }
 0x464   : > { %v2362_v1 = vmax.f32 %v2330_v57, 0.0  ;;  %v10574_v18 = vpop.permute.xlu2 %6844  ;;  %v2142_v32 = vpop.permute.xlu1 %2141 }
 0x465   : > { %2396 = vst.msk [vmem:[#allocation2 + $0x91] sm:$0xff] %vm223_vm0, %v2364_v30  ;;  %v10578_v54 = vpop.permute.xlu0 %6809  ;;  %v7038_v30 = vpack.i.bf16 %v10582_v61, %v10580_v59 }
 0x466   : > { %2394 = vst.msk [vmem:[#allocation2 + $0x79] sm:$0xff] %vm223_vm0, %v2362_v1  ;;  %v2543_v1 = vrot.slane %v2432_v63, 1 }
 0x467   : > { %13418 = vst [vmem:[#allocation75_spill] sm:$0xff] %v10574_v18 }
 0x468   : > { %2229 = vst.msk [vmem:[%s8143_s13 + $0x48] sm:$0xff] %vm2219_vm11, %v2142_v32  ;;  %v2542_v32 = vsel %vm708_vm2, %v2540_v22, %v2541_v38  ;;  %v2544_v9 = vsel %vm708_vm2, %v2541_v38, %v2543_v1 }
 0x469   : > { %13419 = vst [vmem:[#allocation42_spill] sm:$0xff] %v10578_v54  ;;  %v2620_v54 = vrot.slane %v10580_v59, 2 }
 0x46a   : > { %6989 = vrot.lane.b32.xlu2 %v6978_v15, %s7927_s6  ;;  %7039 = vrot.lane.b32.xlu1 %v7038_v30, %s7928_s8  ;;  %v7043_v15 = vpack.i.bf16 %v2544_v9, %v2542_v32 }
 0x46b   : > { %7024 = vrot.lane.b32.xlu0 %v7013_v14, %s7927_s6  ;;  %v2621_v14 = vrot.slane %v10582_v61, 2 }
 0x46c   : > { %v10592_v46 = vpop.permute.xlu2 %6864  ;;  %v10594_v10 = vpop.permute.xlu1 %6834 }
 0x46d   : > { %13420 = vst [vmem:[#allocation39_spill] sm:$0xff] %v10592_v46  ;;  %v10597_v57 = vpop.permute.xlu0 %6824  ;;  %v10618_v9 = vsel %vm789_vm4, %v2621_v14, %v2623_v5 }
 0x46e   : > { %13421 = vst [vmem:[#allocation7_spill] sm:$0xff] %v10594_v10 }
 0x46f   : > { %v2261_v56 = vld [vmem:[%s8143_s13 + $0x48] sm:$0xff]  ;;  %13422 = vst [vmem:[#allocation13_spill] sm:$0xff] %v10597_v57 }
 0x470   : > { %v2296_v26 = vmul.f32 %v10477_v3, %v2261_v56  ;;  %13427 = vst [vmem:[#allocation40_spill] sm:$0xff] %v10618_v9  ;;  %v10622_v56 = vld [vmem:[#allocation2 + $0x78] sm:$0xff] }
 0x472   : > { %v2331_v27 = vadd.f32 %v10485_v13, %v2296_v26  ;;  %7044 = vrot.lane.b32.xlu1 %v7043_v15, %s7923_s30  ;;  %7019 = vrot.lane.b32.xlu2 %v7008_v47, %s7926_s26 }
 0x473   : > { %7029 = vrot.lane.b32.xlu0 %v7008_v47, %s7929_s9 }
 0x474   : > { %v2363_v18 = vmax.f32 %v2331_v27, 0.0  ;;  %v10608_v22 = vpop.permute.xlu2 %6869  ;;  %v10610_v38 = vpop.permute.xlu1 %6839  ;;  %v10615_v27 = vsel %vm789_vm4, %v2620_v54, %v2621_v14  ;;  %v2545_v14 = vrot.slane %v10622_v56, 1 }
 0x475   : > { %13423 = vst [vmem:[#allocation57_spill] sm:$0xff] %v10608_v22  ;;  %v10612_v1 = vpop.permute.xlu0 %6849  ;;  %v7058_v63 = vpack.i.bf16 %v10618_v9, %v10615_v27 }
 0x476   : > { %2395 = vst.msk [vmem:[#allocation2 + $0x81] sm:$0xff] %vm223_vm0, %v2363_v18 }
 0x477   : > { %13424 = vst [vmem:[#allocation66_spill] sm:$0xff] %v10610_v38 }
 0x478   : > { %13425 = vst [vmem:[#allocation77_spill] sm:$0xff] %v10612_v1 }
 0x479   : > { %13426 = vst [vmem:[#allocation84_spill] sm:$0xff] %v10615_v27 }
 0x47a   : > { %7059 = vrot.lane.b32.xlu1 %v7058_v63, %s7927_s6  ;;  %7034 = vrot.lane.b32.xlu2 %v7038_v30, %s7925_s25 }
 0x47b   : > { %7054 = vrot.lane.b32.xlu0 %v7043_v15, %s7926_s26 }
 0x47c   : > { %v10630_v32 = vpop.permute.xlu2 %6884  ;;  %v10632_v5 = vpop.permute.xlu1 %6854 }
 0x47d   : > { %v10626_v47 = vld [vmem:[#allocation2 + $0x80] sm:$0xff]  ;;  %v2435_v18 = vld [vmem:[#allocation2 + $0x88] sm:$0x3]  ;;  %13428 = vst [vmem:[#allocation43_spill] sm:$0xff] %v10630_v32  ;;  %v2146_v9 = vpop.permute.xlu0 %2145 }
 0x47e   : > { %v2546_v54 = vrot.slane %v10626_v47, 1  ;;  %v2548_v26 = vrot.slane %v2435_v18, 1  ;;  %13429 = vst [vmem:[#allocation47_spill] sm:$0xff] %v10632_v5  ;;  %v7068_v38 = vpack.i.bf16 %v10626_v47, %v10622_v56  ;;  %v2626_v32 = vrot.slane %v10626_v47, 2 }
 0x47f   : > { %2231 = vst.msk [vmem:[%s8143_s13 + $0x58] sm:$0xff] %vm2219_vm11, %v2146_v9  ;;  %v2628_v46 = vrot.slane %v2435_v18, 2  ;;  %v2625_v5 = vrot.slane %v10622_v56, 2 }
 0x480   : > { %v2547_v30 = vsel %vm708_vm2, %v2545_v14, %v2546_v54  ;;  %v2549_v27 = vsel %vm708_vm2, %v2546_v54, %v2548_v26 }
 0x481   : > { %v10639_v22 = vpack.i.bf16 %v2549_v27, %v2547_v30  ;;  %v10658_v26 = vsel %vm789_vm4, %v2625_v5, %v2626_v32  ;;  %v10661_v18 = vsel %vm789_vm4, %v2626_v32, %v2628_v46  ;;  %v415_v30 = vld [vmem:[%s13016_s3 + $0x108] sm:$0xff]  ;;  %v414_v5 = vld [vmem:[%s13016_s3 + $0x100] sm:$0xff] }
 0x482   : > { %7049 = vrot.lane.b32.xlu2 %v7058_v63, %s7924_s23  ;;  %13431 = vst [vmem:[#allocation59_spill] sm:$0xff] %v10658_v26  ;;  %3669 = vmatpush.msra.mxu2 %v415_v30 }
 0x483   : > { %7089 = vrot.lane.b32.xlu1 %v10639_v22, %s7926_s26  ;;  %7069 = vrot.lane.b32.xlu0 %v7068_v38, %s7925_s25  ;;  %13432 = vst [vmem:[#allocation65_spill] sm:$0xff] %v10661_v18 }
 0x484   : > { %v2150_v9 = vpop.permute.xlu2 %2149  ;;  %v2148_v14 = vpop.permute.xlu1 %2147  ;;  %3670 = vmatpush.msra.mxu2 %v414_v5  ;;  %v412_v5 = vld [vmem:[%s13016_s3 + $0xf0] sm:$0xff] }
 0x485   : > { %2233 = vst.msk [vmem:[%s8143_s13 + $0x68] sm:$0xff] %vm2219_vm11, %v2150_v9  ;;  %v10652_v27 = vpop.permute.xlu0 %6859 }
 0x486   : > { %v2263_v54 = vld [vmem:[%s8143_s13 + $0x58] sm:$0xff]  ;;  %13430 = vst [vmem:[#allocation19_spill] sm:$0xff] %v10652_v27  ;;  %v10669_v27 = vpack.i.bf16 %v10661_v18, %v10658_v26 }
 0x487   : > { %v2298_v63 = vmul.f32 %v10477_v3, %v2263_v54  ;;  %2232 = vst.msk [vmem:[%s8143_s13 + $0x60] sm:$0xff] %vm2219_vm11, %v2148_v14 }
 0x489   : > { %v2333_v9 = vadd.f32 %v10485_v13, %v2298_v63 }
 0x48a   : > { %7064 = vrot.lane.b32.xlu2 %v7043_v15, %s7929_s9 }
 0x48b   : > { %v2365_v54 = vmax.f32 %v2333_v9, 0.0  ;;  %7084 = vrot.lane.b32.xlu0 %v10669_v27, %s7924_s23 }
 0x48c   : > { %v2265_v46 = vld [vmem:[%s8143_s13 + $0x68] sm:$0xff]  ;;  %v10679_v32 = vpop.permute.xlu2 %6909  ;;  %v10681_v14 = vpop.permute.xlu1 %6879 }
 0x48d   : > { %2397 = vst.msk [vmem:[#allocation2 + $0x99] sm:$0xff] %vm223_vm0, %v2365_v54  ;;  %v2300_v63 = vmul.f32 %v10477_v3, %v2265_v46  ;;  %v10685_v9 = vpop.permute.xlu0 %6874  ;;  %v413_v54 = vld [vmem:[%s13016_s3 + $0xf8] sm:$0xff] }
 0x48e   : > { %13433 = vst [vmem:[#allocation76_spill] sm:$0xff] %v10679_v32  ;;  %v2264_v30 = vld [vmem:[%s8143_s13 + $0x60] sm:$0xff]  ;;  %3671 = vmatpush.msra.mxu2 %v413_v54 }
 0x48f   : > { %13434 = vst [vmem:[#allocation85_spill] sm:$0xff] %v10681_v14  ;;  %v2299_v15 = vmul.f32 %v10477_v3, %v2264_v30  ;;  %v2335_v18 = vadd.f32 %v10485_v13, %v2300_v63  ;;  %v411_v3 = vld [vmem:[%s13016_s3 + $0xe8] sm:$0xff] }
 0x490   : > { %13435 = vst [vmem:[#allocation44_spill] sm:$0xff] %v10685_v9  ;;  %3672 = vmatpush.msra.mxu2 %v412_v5  ;;  %v409_v5 = vld [vmem:[%s13016_s3 + $0xd8] sm:$0xff] }
 0x491   : > { %v2334_v26 = vadd.f32 %v10485_v13, %v2299_v15  ;;  %v2367_v32 = vmax.f32 %v2335_v18, 0.0  ;;  %v10701_v13 = vld [vmem:[#allocation2 + $0x90] sm:$0xff] }
 0x492   : > { %7074 = vrot.lane.b32.xlu2 %v7068_v38, %s7928_s8  ;;  %3673 = vmatpush.msra.mxu2 %v411_v3  ;;  %v408_v3 = vld [vmem:[%s13016_s3 + $0xd0] sm:$0xff] }
 0x493   : > { %v2366_v46 = vmax.f32 %v2334_v26, 0.0  ;;  %2399 = vst.msk [vmem:[#allocation2 + $0xb1] sm:$0xff] %vm223_vm0, %v2367_v32  ;;  %v410_v26 = vld [vmem:[%s13016_s3 + $0xe0] sm:$0xff] }
 0x494   : > { %v10703_v63 = vld [vmem:[#allocation2 + $0x98] sm:$0xff]  ;;  %v2438_v30 = vld [vmem:[#allocation2 + $0xa0] sm:$0x3]  ;;  %v10706_v15 = vpop.permute.xlu2 %6919  ;;  %v10708_v18 = vpop.permute.xlu1 %6889  ;;  %3674 = vmatpush.msra.mxu2 %v410_v26 }
 0x495   : > { %2398 = vst.msk [vmem:[#allocation2 + $0xa9] sm:$0xff] %vm223_vm0, %v2366_v46  ;;  %v7103_v38 = vpack.i.bf16 %v10703_v63, %v10701_v13  ;;  %v10715_v32 = vpop.permute.xlu0 %6894  ;;  %v2631_v54 = vrot.slane %v10703_v63, 2  ;;  %v2633_v9 = vrot.slane %v2438_v30, 2  ;;  %v2630_v46 = vrot.slane %v10701_v13, 2 }
 0x496   : > { %13436 = vst [vmem:[#allocation45_spill] sm:$0xff] %v10706_v15  ;;  %v2550_v15 = vrot.slane %v10701_v13, 1  ;;  %3675 = vmatpush.msra.mxu2 %v409_v5 }
 0x497   : > { %13437 = vst [vmem:[#allocation12_spill] sm:$0xff] %v10708_v18  ;;  %7104 = vrot.lane.b32.xlu0 %v7103_v38, %s7928_s8  ;;  %7099 = vrot.lane.b32.xlu1 %v7103_v38, %s7925_s25  ;;  %v2551_v18 = vrot.slane %v10703_v63, 1  ;;  %v10730_v14 = vsel %vm789_vm4, %v2630_v46, %v2631_v54  ;;  %v10733_v38 = vsel %vm789_vm4, %v2631_v54, %v2633_v9 }
 0x498   : > { %13438 = vst [vmem:[#allocation49_spill] sm:$0xff] %v10715_v32  ;;  %v2553_v32 = vrot.slane %v2438_v30, 1  ;;  %v407_v30 = vld [vmem:[%s13016_s3 + $0xc8] sm:$0xff]  ;;  %3676 = vmatpush.msra.mxu2 %v408_v3  ;;  %v7113_v9 = vpack.i.bf16 %v10733_v38, %v10730_v14 }
 0x499   : > { %13439 = vst [vmem:[#allocation55_spill] sm:$0xff] %v10730_v14  ;;  %v2552_v1 = vsel %vm708_vm2, %v2550_v15, %v2551_v18  ;;  %v406_v15 = vld [vmem:[%s13016_s3 + $0xc0] sm:$0xff] }
 0x49a   : > { %13440 = vst [vmem:[#allocation67_spill] sm:$0xff] %v10733_v38  ;;  %7079 = vrot.lane.b32.xlu2 %v10639_v22, %s7923_s30  ;;  %v2554_v10 = vsel %vm708_vm2, %v2551_v18, %v2553_v32  ;;  %3677 = vmatpush.msra.mxu2 %v407_v30  ;;  %v405_v18 = vld [vmem:[%s13016_s3 + $0xb8] sm:$0xff]  ;;  %v403_v30 = vld [vmem:[%s13016_s3 + $0xa8] sm:$0xff] }
 0x49b   : > { %v10748_v54 = vpack.i.bf16 %v2554_v10, %v2552_v1  ;;  %v404_v10 = vld [vmem:[%s13016_s3 + $0xb0] sm:$0xff]  ;;  %v2441_v3 = vld [vmem:[#allocation2 + $0xb8] sm:$0x3] }
 0x49c   : > { %v10742_v26 = vpop.permute.xlu2 %6924  ;;  %v10744_v46 = vpop.permute.xlu1 %6904  ;;  %3678 = vmatpush.msra.mxu2 %v406_v15  ;;  %v10764_v1 = vld [vmem:[#allocation2 + $0xa8] sm:$0xff]  ;;  %v10766_v32 = vld [vmem:[#allocation2 + $0xb0] sm:$0xff] }
 0x49d   : > { %13441 = vst [vmem:[#allocation78_spill] sm:$0xff] %v10742_v26  ;;  %v10753_v5 = vpop.permute.xlu0 %6899  ;;  %v7138_v14 = vpack.i.bf16 %v10766_v32, %v10764_v1  ;;  %v2558_v26 = vrot.slane %v2441_v3, 1 }
 0x49e   : > { %13442 = vst [vmem:[#allocation46_spill] sm:$0xff] %v10744_v46  ;;  %3679 = vmatpush.msra.mxu2 %v405_v18  ;;  %v402_v18 = vld [vmem:[%s13016_s3 + $0xa0] sm:$0xff] }
 0x49f   : > { %13443 = vst [vmem:[#allocation52_spill] sm:$0xff] %v10753_v5  ;;  %7114 = vrot.lane.b32.xlu1 %v7113_v9, %s7924_s23  ;;  %7109 = vrot.lane.b32.xlu0 %v10748_v54, %s7923_s30  ;;  %v2556_v5 = vrot.slane %v10766_v32, 1 }
 0x4a0   : > { %3680 = vmatpush.msra.mxu2 %v404_v10  ;;  %v401_v10 = vld [vmem:[%s13016_s3 + $0x98] sm:$0xff] }
 0x4a1   : > { %v2559_v57 = vsel %vm708_vm2, %v2556_v5, %v2558_v26  ;;  %v2636_v26 = vrot.slane %v10766_v32, 2 }
 0x4a2   : > { %7094 = vrot.lane.b32.xlu2 %v10669_v27, %s7927_s6  ;;  %v2555_v27 = vrot.slane %v10764_v1, 1  ;;  %3681 = vmatpush.msra.mxu2 %v403_v30 }
 0x4a4   : > { %v10773_v15 = vpop.permute.xlu2 %6939  ;;  %v10775_v38 = vpop.permute.xlu1 %6934  ;;  %3682 = vmatpush.msra.mxu2 %v402_v18 }
 0x4a5   : > { %13444 = vst [vmem:[#allocation14_spill] sm:$0xff] %v10775_v38  ;;  %v10782_v46 = vpop.permute.xlu0 %6914  ;;  %v400_v38 = vld [vmem:[%s13016_s3 + $0x90] sm:$0xff] }
 0x4a6   : > { %13445 = vst [vmem:[#allocation17_spill] sm:$0xff] %v10782_v46  ;;  %v2557_v46 = vsel %vm708_vm2, %v2555_v27, %v2556_v5  ;;  %3683 = vmatpush.msra.mxu2 %v401_v10  ;;  %v2635_v27 = vrot.slane %v10764_v1, 2  ;;  %v2638_v5 = vrot.slane %v2441_v3, 2 }
 0x4a7   : > { %7139 = vrot.lane.b32.xlu1 %v7138_v14, %s7928_s8  ;;  %7124 = vrot.lane.b32.xlu0 %v7113_v9, %s7927_s6  ;;  %v7143_v18 = vpack.i.bf16 %v2559_v57, %v2557_v46  ;;  %v7816_v57 = vld [vmem:[%s13016_s3 + $0x110] sm:$0xff] }
 0x4a8   : > { %3684 = vmatpush.msra.mxu2 %v400_v38  ;;  %v10816_v38 = vsel %vm789_vm4, %v2635_v27, %v2636_v26  ;;  %v6671_v27 = vunpack.i.l.bf16 %v9977_v37 }
 0x4a9   : > { %13447 = vst [vmem:[#allocation69_spill] sm:$0xff] %v10816_v38 }
 0x4aa   : > { %7119 = vrot.lane.b32.xlu2 %v10748_v54, %s7926_s26  ;;  %3796 = vmatpush.msrb.mxu2 %v7815_v39  ;;  %v10819_v39 = vsel %vm789_vm4, %v2636_v26, %v2638_v5  ;;  %v7817_v26 = vld [vmem:[#allocation2] sm:$0xff] }
 0x4ab   : > { %13448 = vst [vmem:[#allocation81_spill] sm:$0xff] %v10819_v39  ;;  %v7158_v3 = vpack.i.bf16 %v10819_v39, %v10816_v38 }
 0x4ac   : > { %v10798_v30 = vpop.permute.xlu2 %6949  ;;  %v10800_v9 = vpop.permute.xlu1 %6944  ;;  %3797 = vmatpush.msrb.mxu2 %v7816_v57 }
 0x4ad   : > { %v10805_v40 = vpop.permute.xlu0 %6929 }
 0x4ae   : > { %13446 = vst [vmem:[#allocation60_spill] sm:$0xff] %v10805_v40 }
 0x4af   : > { %7144 = vrot.lane.b32.xlu1 %v7143_v18, %s7923_s30  ;;  %7129 = vrot.lane.b32.xlu0 %v10639_v22, %s7929_s9  ;;  %v6666_v22 = vunpack.i.l.bf16 %v9980_v58 }
 0x4b1   : > { %v3378_v5 = vsel %vm223_vm0, %v7817_v26, %v6666_v22 }
 0x4b2   : > { %7134 = vrot.lane.b32.xlu2 %v7138_v14, %s7925_s25  ;;  %v6941_v14 = vunpack.i.l.bf16 %v10773_v15  ;;  %v3410_v38 = vsel %vm1600_vm6, %v3378_v5, %v6671_v27  ;;  %v7818_v27 = vld [vmem:[#allocation2 + $0x8] sm:$0xff] }
 0x4b4   : > { %v6960_v46 = vpop.permute.xlu1 %6959  ;;  %v6970_v10 = vpop.permute.xlu2 %6969  ;;  %v3442_v42 = vsel %vm1633_vm5, %v3410_v38, %v6941_v14 }
 0x4b5   : > { %v6955_v40 = vpop.permute.xlu0 %6954  ;;  %v6961_v22 = vunpack.i.l.bf16 %v6960_v46  ;;  %v6971_v7 = vunpack.i.l.bf16 %v6970_v10 }
 0x4b6   : > { %v6956_v57 = vunpack.i.l.bf16 %v6955_v40 }
 0x4b7   : > { %7159 = vrot.lane.b32.xlu1 %v7158_v3, %s7927_s6  ;;  %7154 = vrot.lane.b32.xlu0 %v7143_v18, %s7926_s26 }
 0x4b8   : > { %v3474_v16 = vsel %vm1666_vm7, %v3442_v42, %v6956_v57 }
 0x4ba   : > { %7149 = vrot.lane.b32.xlu2 %v7158_v3, %s7924_s23  ;;  %v6667_v3 = vunpack.i.h.bf16 %v9980_v58  ;;  %v6957_v58 = vunpack.i.h.bf16 %v6955_v40 }
 0x4bc   : > { %v10831_v55 = vpop.permute.xlu1 %6984  ;;  %v10842_v26 = vpop.permute.xlu2 %6974  ;;  %v3379_v5 = vsel %vm223_vm0, %v7818_v27, %v6667_v3 }
 0x4bd   : > { %v10833_v39 = vpop.permute.xlu0 %6964  ;;  %v3411_v8 = vsel %vm1600_vm6, %v3379_v5, %v6672_v25 }
 0x4bf   : > { %7164 = vrot.lane.b32.xlu1 %v10748_v54, %s7929_s9  ;;  %7174 = vrot.lane.b32.xlu0 %v10049_v29, %s7929_s9  ;;  %v6942_v54 = vunpack.i.h.bf16 %v10773_v15  ;;  %v3506_v29 = vsel %vm1699_vm9, %v3474_v16, %v6961_v22  ;;  %v6962_v15 = vunpack.i.h.bf16 %v6960_v46 }
 0x4c0   : > { %v3538_v37 = vsel %vm1732_vm8, %v3506_v29, %v6971_v7  ;;  %v6972_v7 = vunpack.i.h.bf16 %v6970_v10  ;;  %v13450_v10 = vld [vmem:[#allocation72_spill] sm:$0xff] }
 0x4c1   : > { %v3443_v42 = vsel %vm1633_vm5, %v3411_v8, %v6942_v54 }
 0x4c2   : > { %7169 = vrot.lane.b32.xlu2 %v7143_v18, %s7929_s9  ;;  %v3475_v40 = vsel %vm1666_vm7, %v3443_v42, %v6957_v58  ;;  %v10861_v18 = vld [vmem:[#allocation2 + $0x1a8] sm:$0x3] }
 0x4c3   : > { %v3507_v25 = vsel %vm1699_vm9, %v3475_v40, %v6962_v15  ;;  %v6947_v15 = vunpack.i.h.bf16 %v10800_v9 }
 0x4c4   : > { %v6995_v53 = vpop.permute.xlu1 %6994  ;;  %v6990_v57 = vpop.permute.xlu2 %6989  ;;  %v3539_v46 = vsel %vm1732_vm8, %v3507_v25, %v6972_v7  ;;  %v6952_v25 = vunpack.i.h.bf16 %v10798_v30 }
 0x4c5   : > { %v6996_v38 = vunpack.i.l.bf16 %v6995_v53  ;;  %v10850_v14 = vpop.permute.xlu0 %6979 }
 0x4c7   : > { %7179 = vrot.lane.b32.xlu1 %v10087_v33, %s7929_s9  ;;  %7189 = vrot.lane.b32.xlu0 %v10148_v35, %s7929_s9  ;;  %v3570_v16 = vsel %vm1765_vm10, %v3538_v37, %v6996_v38  ;;  %v6997_v33 = vunpack.i.h.bf16 %v6995_v53  ;;  %v2699_v35 = vrot.slane %v10861_v18, 1  ;;  %v6986_v37 = vunpack.i.l.bf16 %v10831_v55 }
 0x4c8   : > { %3685 = vmatmul.f32.vlgmr.msra.gmra.mxu2 %v3570_v16 }
 0x4c9   : > { %v3571_v22 = vsel %vm1765_vm10, %v3539_v46, %v6997_v33  ;;  %v6967_v46 = vunpack.i.h.bf16 %v10833_v39 }
 0x4ca   : > { %7184 = vrot.lane.b32.xlu2 %v10103_v21, %s7929_s9  ;;  %v13449_v21 = vld [vmem:[#allocation71_spill] sm:$0xff] }
 0x4cb   : > { %v2700_v53 = vsel %vm708_vm2, %v13449_v21, %v2699_v35 }
 0x4cc   : > { %v10867_v8 = vpop.permute.xlu1 %6999  ;;  %v7218_v27 = vpack.i.bf16 %v2700_v53, %v13450_v10  ;;  %v10880_v5 = vpop.permute.xlu2 %7019 }
 0x4cd   : > { %v7005_v3 = vpop.permute.xlu0 %7004 }
 0x4ce   : > { %v7006_v33 = vunpack.i.l.bf16 %v7005_v3 }
 0x4cf   : > { %7194 = vrot.lane.b32.xlu1 %v10178_v44, %s7929_s9  ;;  %7204 = vrot.lane.b32.xlu0 %v10271_v19, %s7929_s9  ;;  %v6946_v19 = vunpack.i.l.bf16 %v10800_v9 }
 0x4d0   : > { %3688 = vmatmul.f32.gmra.mxu2 %v3571_v22 }
 0x4d1   : > { %v3380_v38 = vsel %vm223_vm0, %v10425_v17, %v6946_v19  ;;  %v3381_v17 = vsel %vm223_vm0, %v10422_v20, %v6947_v15  ;;  %v6976_v19 = vunpack.i.l.bf16 %v10842_v26 }
 0x4d2   : > { %7199 = vrot.lane.b32.xlu2 %v10201_v48, %s7929_s9  ;;  %v6951_v48 = vunpack.i.l.bf16 %v10798_v30  ;;  %v3413_v30 = vsel %vm1600_vm6, %v3381_v17, %v6952_v25 }
 0x4d3   : > { %v3445_v20 = vsel %vm1633_vm5, %v3413_v30, %v6967_v46  ;;  %v6977_v46 = vunpack.i.h.bf16 %v10842_v26  ;;  %v7022_v26 = vunpack.i.h.bf16 %v10880_v5 }
 0x4d4   : > { %v10887_v44 = vpop.permute.xlu1 %7014  ;;  %v10893_v29 = vpop.permute.xlu2 %7034  ;;  %v3412_v42 = vsel %vm1600_vm6, %v3380_v38, %v6951_v48  ;;  %v6992_v48 = vunpack.i.h.bf16 %v6990_v57  ;;  %v7007_v38 = vunpack.i.h.bf16 %v7005_v3 }
 0x4d5   : > { %v10882_v54 = vpop.permute.xlu0 %7009  ;;  %v3383_v30 = vsel %vm223_vm0, %v10458_v41, %v6977_v46 }
 0x4d7   : > { %7209 = vrot.lane.b32.xlu1 %v10316_v50, %s7929_s9  ;;  %7219 = vrot.lane.b32.xlu0 %v7218_v27, %s7929_s9  ;;  %v6966_v50 = vunpack.i.l.bf16 %v10833_v39  ;;  %v6987_v27 = vunpack.i.h.bf16 %v10831_v55  ;;  %v6981_v39 = vunpack.i.l.bf16 %v10850_v14 }
 0x4d9   : > { %v3444_v16 = vsel %vm1633_vm5, %v3412_v42, %v6966_v50  ;;  %v7001_v50 = vunpack.i.l.bf16 %v10867_v8  ;;  %v3477_v55 = vsel %vm1666_vm7, %v3445_v20, %v6987_v27 }
 0x4da   : > { %7214 = vrot.lane.b32.xlu2 %v10355_v36, %s7929_s9  ;;  %v6991_v36 = vunpack.i.l.bf16 %v6990_v57  ;;  %v3476_v7 = vsel %vm1666_vm7, %v3444_v16, %v6986_v37  ;;  %v3382_v16 = vsel %vm223_vm0, %v10460_v60, %v6976_v19  ;;  %v7021_v57 = vunpack.i.l.bf16 %v10880_v5 }
 0x4db   : > { %v6982_v60 = vunpack.i.h.bf16 %v10850_v14 }
 0x4dc   : > { %v7040_v40 = vpop.permute.xlu1 %7039  ;;  %v3508_v21 = vsel %vm1699_vm9, %v3476_v7, %v6991_v36  ;;  %v10910_v53 = vpop.permute.xlu2 %7049  ;;  %v3509_v36 = vsel %vm1699_vm9, %v3477_v55, %v6992_v48 }
 0x4dd   : > { %v10895_v58 = vpop.permute.xlu0 %7024  ;;  %v3540_v9 = vsel %vm1732_vm8, %v3508_v21, %v7006_v33  ;;  %v3414_v33 = vsel %vm1600_vm6, %v3382_v16, %v6981_v39  ;;  %v3541_v3 = vsel %vm1732_vm8, %v3509_v36, %v7007_v38  ;;  %v3415_v48 = vsel %vm1600_vm6, %v3383_v30, %v6982_v60 }
 0x4de   : > { %v3446_v25 = vsel %vm1633_vm5, %v3414_v33, %v7001_v50  ;;  %v7026_v7 = vunpack.i.l.bf16 %v10895_v58  ;;  %v7027_v38 = vunpack.i.h.bf16 %v10895_v58  ;;  %v7042_v50 = vunpack.i.h.bf16 %v7040_v40 }
 0x4df   : > { %v3478_v21 = vsel %vm1666_vm7, %v3446_v25, %v7021_v57  ;;  %v7012_v30 = vunpack.i.h.bf16 %v10882_v54 }
 0x4e0   : > { %v3510_v27 = vsel %vm1699_vm9, %v3478_v21, %v7026_v7 }
 0x4e4   : > { %v10920_v37 = vpop.permute.xlu1 %7044  ;;  %v7065_v17 = vpop.permute.xlu2 %7064 }
 0x4e5   : > { %v7030_v35 = vpop.permute.xlu0 %7029  ;;  %v7067_v41 = vunpack.i.h.bf16 %v7065_v17 }
 0x4e6   : > { %v7031_v22 = vunpack.i.l.bf16 %v7030_v35  ;;  %v7032_v42 = vunpack.i.h.bf16 %v7030_v35 }
 0x4e8   : > { %v3572_v10 = vsel %vm1765_vm10, %v3540_v9, %v7031_v22  ;;  %v3573_v35 = vsel %vm1765_vm10, %v3541_v3, %v7032_v42  ;;  %v7041_v22 = vunpack.i.l.bf16 %v7040_v40  ;;  %v7002_v9 = vunpack.i.h.bf16 %v10867_v8 }
 0x4e9   : > { %3691 = vmatmul.f32.gmra.mxu2 %v3572_v10  ;;  %v7066_v10 = vunpack.i.l.bf16 %v7065_v17  ;;  %v7016_v17 = vunpack.i.l.bf16 %v10887_v44 }
 0x4ea   : > { %v3542_v14 = vsel %vm1732_vm8, %v3510_v27, %v7041_v22  ;;  %v3447_v39 = vsel %vm1633_vm5, %v3415_v48, %v7002_v9  ;;  %v7036_v27 = vunpack.i.l.bf16 %v10893_v29 }
 0x4eb   : > { %v3574_v8 = vsel %vm1765_vm10, %v3542_v14, %v7066_v10  ;;  %v3479_v42 = vsel %vm1666_vm7, %v3447_v39, %v7022_v26  ;;  %v7017_v14 = vunpack.i.h.bf16 %v10887_v44 }
 0x4ec   : > { %v7060_v19 = vpop.permute.xlu1 %7059  ;;  %v3511_v55 = vsel %vm1699_vm9, %v3479_v42, %v7027_v38  ;;  %v7075_v16 = vpop.permute.xlu2 %7074 }
 0x4ed   : > { %v10922_v15 = vpop.permute.xlu0 %7054  ;;  %v3543_v36 = vsel %vm1732_vm8, %v3511_v55, %v7042_v50  ;;  %v7061_v48 = vunpack.i.l.bf16 %v7060_v19  ;;  %v7076_v42 = vunpack.i.l.bf16 %v7075_v16 }
 0x4ee   : > { %v3575_v57 = vsel %vm1765_vm10, %v3543_v36, %v7067_v41  ;;  %v7056_v21 = vunpack.i.l.bf16 %v10922_v15  ;;  %v7057_v41 = vunpack.i.h.bf16 %v10922_v15  ;;  %v7037_v36 = vunpack.i.h.bf16 %v10893_v29 }
 0x4f1   : > { %3694 = vmatmul.f32.gmra.mxu2 %v3573_v35  ;;  %v7011_v35 = vunpack.i.l.bf16 %v10882_v54 }
 0x4f3   : > { %v3384_v60 = vsel %vm223_vm0, %v10535_v2, %v7011_v35  ;;  %v3385_v2 = vsel %vm223_vm0, %v10531_v62, %v7012_v30  ;;  %v7062_v35 = vunpack.i.h.bf16 %v7060_v19 }
 0x4f4   : > { %v10961_v40 = vpop.permute.xlu2 %7079  ;;  %v3416_v22 = vsel %vm1600_vm6, %v3384_v60, %v7016_v17  ;;  %v3417_v50 = vsel %vm1600_vm6, %v3385_v2, %v7017_v14 }
 0x4f5   : > { %v10941_v20 = vpop.permute.xlu0 %7069  ;;  %v10952_v33 = vpop.permute.xlu1 %7089  ;;  %v3448_v26 = vsel %vm1633_vm5, %v3416_v22, %v7036_v27  ;;  %v3449_v17 = vsel %vm1633_vm5, %v3417_v50, %v7037_v36  ;;  %v7046_v22 = vunpack.i.l.bf16 %v10920_v37  ;;  %v7077_v27 = vunpack.i.h.bf16 %v7075_v16 }
 0x4f6   : > { %v3480_v39 = vsel %vm1666_vm7, %v3448_v26, %v7056_v21  ;;  %v3481_v60 = vsel %vm1666_vm7, %v3449_v17, %v7057_v41  ;;  %v7051_v26 = vunpack.i.l.bf16 %v10910_v53  ;;  %v7091_v2 = vunpack.i.l.bf16 %v10952_v33 }
 0x4f7   : > { %v3513_v15 = vsel %vm1699_vm9, %v3481_v60, %v7062_v35  ;;  %v3386_v19 = vsel %vm223_vm0, %v10580_v59, %v7046_v22  ;;  %v7047_v16 = vunpack.i.h.bf16 %v10920_v37  ;;  %v7092_v22 = vunpack.i.h.bf16 %v10952_v33 }
 0x4f8   : > { %v3545_v14 = vsel %vm1732_vm8, %v3513_v15, %v7077_v27 }
 0x4f9   : > { %3697 = vmatmul.f32.gmra.mxu2 %v3574_v8  ;;  %v3512_v8 = vsel %vm1699_vm9, %v3480_v39, %v7061_v48  ;;  %v7071_v48 = vunpack.i.l.bf16 %v10941_v20  ;;  %v3387_v36 = vsel %vm223_vm0, %v10582_v61, %v7047_v16  ;;  %v7081_v61 = vunpack.i.l.bf16 %v10961_v40 }
 0x4fb   : > { %v3388_v33 = vsel %vm223_vm0, %v10622_v56, %v7081_v61 }
 0x4fc   : > { %v10969_v46 = vpop.permute.xlu2 %7094 }
 0x4fd   : > { %v10954_v5 = vpop.permute.xlu0 %7084  ;;  %v7097_v15 = vunpack.i.h.bf16 %v10969_v46 }
 0x4fe   : > { %v7086_v27 = vunpack.i.l.bf16 %v10954_v5  ;;  %v7087_v56 = vunpack.i.h.bf16 %v10954_v5 }
 0x501   : > { %3700 = vmatmul.f32.gmra.mxu2 %v3575_v57  ;;  %v3544_v57 = vsel %vm1732_vm8, %v3512_v8, %v7076_v42  ;;  %v3418_v8 = vsel %vm1600_vm6, %v3386_v19, %v7051_v26  ;;  %v7096_v42 = vunpack.i.l.bf16 %v10969_v46 }
 0x502   : > { %v3450_v50 = vsel %vm1633_vm5, %v3418_v8, %v7071_v48 }
 0x504   : > { %v10986_v38 = vpop.permute.xlu2 %7119 }
 0x505   : > { %v7121_v16 = vunpack.i.l.bf16 %v10986_v38 }
 0x509   : > { %v10957_v58 = vpop.permute.xlu1 %7099  ;;  %v10959_v3 = vpop.permute.xlu0 %7104 }
 0x50a   : > { %v7106_v59 = vunpack.i.l.bf16 %v10959_v3  ;;  %v7101_v19 = vunpack.i.l.bf16 %v10957_v58 }
 0x50c   : > { %v11000_v30 = vpop.permute.xlu2 %7134 }
 0x511   : > { %v10963_v25 = vpop.permute.xlu1 %7114  ;;  %v10965_v7 = vpop.permute.xlu0 %7109 }
 0x514   : > { %v11022_v37 = vpop.permute.xlu2 %7149 }
 0x519   : > { %v10975_v9 = vpop.permute.xlu1 %7139  ;;  %v10977_v10 = vpop.permute.xlu0 %7124 }
 0x51a   : > { %v7126_v8 = vunpack.i.l.bf16 %v10977_v10  ;;  %v7142_v61 = vunpack.i.h.bf16 %v10975_v9 }
 0x521   : > { %v10991_v54 = vpop.permute.xlu1 %7144  ;;  %v7130_v55 = vpop.permute.xlu0 %7129 }
 0x522   : > { %v7131_v44 = vunpack.i.l.bf16 %v7130_v55  ;;  %v7132_v21 = vunpack.i.h.bf16 %v7130_v55  ;;  %v3482_v55 = vsel %vm1666_vm7, %v3450_v50, %v7091_v2  ;;  %v7170_v50 = vpop.permute.xlu2 %7169 }
 0x523   : > { %v3514_v35 = vsel %vm1699_vm9, %v3482_v55, %v7096_v42  ;;  %v7082_v42 = vunpack.i.h.bf16 %v10961_v40  ;;  %v7102_v55 = vunpack.i.h.bf16 %v10957_v58  ;;  %v7122_v58 = vunpack.i.h.bf16 %v10986_v38 }
 0x524   : > { %v3576_v62 = vsel %vm1765_vm10, %v3544_v57, %v7131_v44  ;;  %v3577_v39 = vsel %vm1765_vm10, %v3545_v14, %v7132_v21  ;;  %v7072_v44 = vunpack.i.h.bf16 %v10941_v20  ;;  %v3546_v17 = vsel %vm1732_vm8, %v3514_v35, %v7106_v59 }
 0x525   : > { %3703 = vmatmul.f32.gmra.mxu2 %v3576_v62  ;;  %v7052_v62 = vunpack.i.h.bf16 %v10910_v53  ;;  %v7107_v53 = vunpack.i.h.bf16 %v10959_v3  ;;  %v7141_v59 = vunpack.i.l.bf16 %v10975_v9  ;;  %v7111_v35 = vunpack.i.l.bf16 %v10965_v7 }
 0x526   : > { %v7112_v38 = vunpack.i.h.bf16 %v10965_v7 }
 0x527   : > { %v3419_v21 = vsel %vm1600_vm6, %v3387_v36, %v7052_v62  ;;  %v7171_v36 = vunpack.i.l.bf16 %v7170_v50 }
 0x528   : > { %v3451_v20 = vsel %vm1633_vm5, %v3419_v21, %v7072_v44  ;;  %v7116_v21 = vunpack.i.l.bf16 %v10963_v25 }
 0x529   : > { %v11002_v29 = vpop.permute.xlu1 %7159  ;;  %v3483_v26 = vsel %vm1666_vm7, %v3451_v20, %v7092_v22 }
 0x52a   : > { %v3515_v14 = vsel %vm1699_vm9, %v3483_v26, %v7097_v15  ;;  %v7172_v15 = vunpack.i.h.bf16 %v7170_v50  ;;  %v7161_v26 = vunpack.i.l.bf16 %v11002_v29 }
 0x52b   : > { %v3547_v2 = vsel %vm1732_vm8, %v3515_v14, %v7107_v53 }
 0x52d   : > { %3706 = vmatmul.f32.gmra.mxu2 %v3577_v39  ;;  %v3420_v39 = vsel %vm1600_vm6, %v3388_v33, %v7086_v27  ;;  %v7117_v33 = vunpack.i.h.bf16 %v10963_v25 }
 0x52e   : > { %v3452_v46 = vsel %vm1633_vm5, %v3420_v39, %v7101_v19  ;;  %v7136_v19 = vunpack.i.l.bf16 %v11000_v30 }
 0x531   : > { %v7165_v41 = vpop.permute.xlu1 %7164 }
 0x532   : > { %v7166_v57 = vunpack.i.l.bf16 %v7165_v41  ;;  %v7167_v48 = vunpack.i.h.bf16 %v7165_v41  ;;  %v3484_v41 = vsel %vm1666_vm7, %v3452_v46, %v7121_v16  ;;  %v7146_v46 = vunpack.i.l.bf16 %v10991_v54 }
 0x533   : > { %v3516_v44 = vsel %vm1699_vm9, %v3484_v41, %v7126_v8 }
 0x534   : > { %v3578_v60 = vsel %vm1765_vm10, %v3546_v17, %v7166_v57  ;;  %v3579_v3 = vsel %vm1765_vm10, %v3547_v2, %v7167_v48  ;;  %v3389_v57 = vsel %vm223_vm0, %v10626_v47, %v7082_v42  ;;  %v7155_v17 = vpop.permute.xlu0 %7154  ;;  %v3548_v40 = vsel %vm1732_vm8, %v3516_v44, %v7141_v59 }
 0x535   : > { %3709 = vmatmul.f32.gmra.mxu2 %v3578_v60  ;;  %v3421_v62 = vsel %vm1600_vm6, %v3389_v57, %v7087_v56  ;;  %v7127_v60 = vunpack.i.h.bf16 %v10977_v10  ;;  %v3580_v22 = vsel %vm1765_vm10, %v3548_v40, %v7171_v36  ;;  %v3390_v47 = vsel %vm223_vm0, %v10701_v13, %v7111_v35 }
 0x536   : > { %v3453_v5 = vsel %vm1633_vm5, %v3421_v62, %v7102_v55  ;;  %v3422_v53 = vsel %vm1600_vm6, %v3390_v47, %v7116_v21  ;;  %v7156_v10 = vunpack.i.l.bf16 %v7155_v17  ;;  %v3391_v2 = vsel %vm223_vm0, %v10703_v63, %v7112_v38 }
 0x537   : > { %v3485_v20 = vsel %vm1666_vm7, %v3453_v5, %v7122_v58  ;;  %v3454_v9 = vsel %vm1633_vm5, %v3422_v53, %v7136_v19  ;;  %v3423_v16 = vsel %vm1600_vm6, %v3391_v2, %v7117_v33  ;;  %v7157_v50 = vunpack.i.h.bf16 %v7155_v17 }
 0x538   : > { %v3517_v27 = vsel %vm1699_vm9, %v3485_v20, %v7127_v60  ;;  %v3486_v39 = vsel %vm1666_vm7, %v3454_v9, %v7156_v10  ;;  %v7137_v42 = vunpack.i.h.bf16 %v11000_v30  ;;  %v3392_v56 = vsel %vm223_vm0, %v10764_v1, %v7146_v46  ;;  %v7819_v9 = vld [vmem:[#allocation2 + $0xc0] sm:$0xff] }
 0x539   : > { %v3549_v48 = vsel %vm1732_vm8, %v3517_v27, %v7142_v61  ;;  %v3518_v8 = vsel %vm1699_vm9, %v3486_v39, %v7161_v26  ;;  %v7162_v59 = vunpack.i.h.bf16 %v11002_v29  ;;  %v7151_v55 = vunpack.i.l.bf16 %v11022_v37  ;;  %v7180_v58 = vpop.permute.xlu1 %7179 }
 0x53a   : > { %v3581_v13 = vsel %vm1765_vm10, %v3549_v48, %v7172_v15  ;;  %v3455_v41 = vsel %vm1633_vm5, %v3423_v16, %v7137_v42  ;;  %v6681_v30 = vunpack.i.l.bf16 %v10311_v4  ;;  %v7147_v57 = vunpack.i.h.bf16 %v10991_v54 }
 0x53b   : > { %v3487_v36 = vsel %vm1666_vm7, %v3455_v41, %v7157_v50  ;;  %v3424_v44 = vsel %vm1600_vm6, %v3392_v56, %v7151_v55  ;;  %v6687_v29 = vunpack.i.h.bf16 %v10237_v52  ;;  %v6701_v17 = vunpack.i.l.bf16 %v10336_v11 }
 0x53c   : > { %v7175_v14 = vpop.permute.xlu0 %7174  ;;  %v3519_v1 = vsel %vm1699_vm9, %v3487_v36, %v7162_v59  ;;  %v3456_v62 = vsel %vm1633_vm5, %v3424_v44, %v6681_v30  ;;  %v3393_v5 = vsel %vm223_vm0, %v10766_v32, %v7147_v57  ;;  %v6706_v21 = vunpack.i.l.bf16 %v10287_v34 }
 0x53d   : > { %3712 = vmatmul.f32.gmra.mxu2 %v3579_v3  ;;  %v7176_v7 = vunpack.i.l.bf16 %v7175_v14  ;;  %v6686_v3 = vunpack.i.l.bf16 %v10237_v52  ;;  %v7177_v35 = vunpack.i.h.bf16 %v7175_v14  ;;  %v3551_v40 = vsel %vm1732_vm8, %v3519_v1, %v6687_v29  ;;  %v7821_v1 = vld [vmem:[#allocation2 + $0xd8] sm:$0xff] }
 0x53e   : > { %v3488_v54 = vsel %vm1666_vm7, %v3456_v62, %v6701_v17  ;;  %v6682_v47 = vunpack.i.h.bf16 %v10311_v4  ;;  %v7181_v61 = vunpack.i.l.bf16 %v7180_v58  ;;  %v6716_v15 = vunpack.i.l.bf16 %v10389_v49 }
 0x53f   : > { %v3550_v25 = vsel %vm1732_vm8, %v3518_v8, %v6686_v3  ;;  %v3583_v60 = vsel %vm1765_vm10, %v3551_v40, %v7177_v35  ;;  %v3520_v20 = vsel %vm1699_vm9, %v3488_v54, %v6706_v21  ;;  %v6702_v27 = vunpack.i.h.bf16 %v10336_v11  ;;  %v7185_v8 = vpop.permute.xlu2 %7184 }
 0x540   : > { %v3582_v63 = vsel %vm1765_vm10, %v3550_v25, %v7176_v7  ;;  %v6691_v19 = vunpack.i.l.bf16 %v10265_v0  ;;  %v6707_v4 = vunpack.i.h.bf16 %v10287_v34  ;;  %v6696_v38 = vunpack.i.l.bf16 %v10345_v23 }
 0x541   : > { %v6711_v48 = vunpack.i.l.bf16 %v10367_v45  ;;  %v7182_v26 = vunpack.i.h.bf16 %v7180_v58  ;;  %v6717_v11 = vunpack.i.h.bf16 %v10389_v49  ;;  %v6736_v34 = vunpack.i.l.bf16 %v10420_v51  ;;  %v13451_v58 = vld [vmem:[#allocation37_spill] sm:$0xff] }
 0x542   : > { %v3394_v33 = vsel %vm223_vm0, %v7819_v9, %v6691_v19  ;;  %v6731_v7 = vunpack.i.l.bf16 %v10343_v28  ;;  %v6692_v3 = vunpack.i.h.bf16 %v10265_v0  ;;  %v6697_v49 = vunpack.i.h.bf16 %v10345_v23 }
 0x543   : > { %v3426_v14 = vsel %vm1600_vm6, %v3394_v33, %v6696_v38  ;;  %v6746_v16 = vunpack.i.l.bf16 %v10417_v6  ;;  %v6712_v42 = vunpack.i.h.bf16 %v10367_v45  ;;  %v7186_v25 = vunpack.i.l.bf16 %v7185_v8 }
 0x544   : > { %v3458_v2 = vsel %vm1633_vm5, %v3426_v14, %v6711_v48  ;;  %v6721_v36 = vunpack.i.l.bf16 %v10405_v12  ;;  %v6737_v44 = vunpack.i.h.bf16 %v10420_v51  ;;  %v6732_v30 = vunpack.i.h.bf16 %v10343_v28 }
 0x545   : > { %3715 = vmatmul.f32.gmra.mxu2 %v3580_v22  ;;  %v7152_v22 = vunpack.i.h.bf16 %v11022_v37  ;;  %v3552_v37 = vsel %vm1732_vm8, %v3520_v20, %v6716_v15  ;;  %v3490_v50 = vsel %vm1666_vm7, %v3458_v2, %v6731_v7  ;;  %v6747_v57 = vunpack.i.h.bf16 %v10417_v6  ;;  %v7822_v20 = vld [vmem:[#allocation2 + $0xe0] sm:$0xff]  ;;  %v7823_v2 = vld [vmem:[#allocation2 + $0xf0] sm:$0xff]  ;;  %v13455_v7 = vld [vmem:[#allocation11_spill] sm:$0xff] }
 0x546   : > { %v3584_v53 = vsel %vm1765_vm10, %v3552_v37, %v7181_v61  ;;  %v3522_v59 = vsel %vm1699_vm9, %v3490_v50, %v6736_v34  ;;  %v3396_v29 = vsel %vm223_vm0, %v7821_v1, %v6721_v36  ;;  %v7187_v62 = vunpack.i.h.bf16 %v7185_v8  ;;  %v13458_v36 = vld [vmem:[#allocation35_spill] sm:$0xff] }
 0x547   : > { %v3425_v52 = vsel %vm1600_vm6, %v3393_v5, %v7152_v22  ;;  %v3554_v0 = vsel %vm1732_vm8, %v3522_v59, %v6746_v16  ;;  %v6726_v40 = vunpack.i.l.bf16 %v10383_v24  ;;  %v6741_v6 = vunpack.i.l.bf16 %v10385_v43  ;;  %v7195_v59 = vpop.permute.xlu1 %7194 }
 0x548   : > { %v3457_v32 = vsel %vm1633_vm5, %v3425_v52, %v6682_v47  ;;  %v3586_v45 = vsel %vm1765_vm10, %v3554_v0, %v7186_v25  ;;  %v6722_v22 = vunpack.i.h.bf16 %v10405_v12  ;;  %v6766_v54 = vunpack.i.l.bf16 %v13451_v58  ;;  %v7190_v52 = vpop.permute.xlu0 %7189 }
 0x549   : > { %v3489_v10 = vsel %vm1666_vm7, %v3457_v32, %v6702_v27  ;;  %v3428_v51 = vsel %vm1600_vm6, %v3396_v29, %v6726_v40  ;;  %v7191_v32 = vunpack.i.l.bf16 %v7190_v52  ;;  %v6727_v37 = vunpack.i.h.bf16 %v10383_v24 }
 0x54a   : > { %v3460_v47 = vsel %vm1633_vm5, %v3428_v51, %v6741_v6  ;;  %v3397_v15 = vsel %vm223_vm0, %v7822_v20, %v6722_v22  ;;  %v6742_v48 = vunpack.i.h.bf16 %v10385_v43  ;;  %v7192_v14 = vunpack.i.h.bf16 %v7190_v52  ;;  %v13454_v43 = vld [vmem:[#allocation6_spill] sm:$0xff] }
 0x54b   : > { %v11130_v56 = vpop.f32.mrf.mxu2  ;;  %v3429_v19 = vsel %vm1600_vm6, %v3397_v15, %v6727_v37  ;;  %v6756_v8 = vunpack.i.l.bf16 %v13455_v7  ;;  %v6757_v29 = vunpack.i.h.bf16 %v13455_v7  ;;  %v7197_v15 = vunpack.i.h.bf16 %v7195_v59 }
 0x54c   : > { %v3461_v24 = vsel %vm1633_vm5, %v3429_v19, %v6742_v48 }
 0x54d   : > { %3718 = vmatmul.f32.gmra.mxu2 %v3581_v13  ;;  %v3521_v13 = vsel %vm1699_vm9, %v3489_v10, %v6707_v4  ;;  %v6762_v4 = vunpack.i.h.bf16 %v10438_v31 }
 0x54e   : > { %v3553_v39 = vsel %vm1732_vm8, %v3521_v13, %v6717_v11  ;;  %v13453_v11 = vld [vmem:[#allocation82_spill] sm:$0xff] }
 0x54f   : > { %v3585_v46 = vsel %vm1765_vm10, %v3553_v39, %v7182_v26  ;;  %v6767_v26 = vunpack.i.h.bf16 %v13451_v58  ;;  %v6751_v9 = vunpack.i.l.bf16 %v13453_v11  ;;  %v3493_v33 = vsel %vm1666_vm7, %v3461_v24, %v6762_v4  ;;  %v13460_v58 = vld [vmem:[#allocation63_spill] sm:$0xff]  ;;  %v13462_v4 = vld [vmem:[#allocation13_spill] sm:$0xff] }
 0x550   : > { %v6787_v24 = vunpack.i.h.bf16 %v13460_v58 }
 0x551   : > { %v3525_v39 = vsel %vm1699_vm9, %v3493_v33, %v6767_v26  ;;  %v3398_v34 = vsel %vm223_vm0, %v7823_v2, %v6751_v9  ;;  %v13463_v26 = vld [vmem:[#allocation18_spill] sm:$0xff]  ;;  %v13464_v33 = vld [vmem:[#allocation7_spill] sm:$0xff] }
 0x552   : > { %v3430_v25 = vsel %vm1600_vm6, %v3398_v34, %v6756_v8 }
 0x553   : > { %v11146_v5 = vpop.f32.mrf.mxu2 }
 0x555   : > { %3721 = vmatmul.f32.gmra.mxu2 %v3582_v63  ;;  %v7820_v63 = vld [vmem:[#allocation2 + $0xc8] sm:$0xff] }
 0x556   : > { %v3395_v41 = vsel %vm223_vm0, %v7820_v63, %v6692_v3  ;;  %v13456_v3 = vld [vmem:[#allocation56_spill] sm:$0xff]  ;;  %v6752_v63 = vunpack.i.h.bf16 %v13453_v11  ;;  %v7200_v11 = vpop.permute.xlu2 %7199 }
 0x557   : > { %v3427_v55 = vsel %vm1600_vm6, %v3395_v41, %v6697_v49  ;;  %v6791_v49 = vunpack.i.l.bf16 %v13456_v3  ;;  %v7201_v2 = vunpack.i.l.bf16 %v7200_v11 }
 0x558   : > { %v3459_v23 = vsel %vm1633_vm5, %v3427_v55, %v6712_v42  ;;  %v13457_v55 = vld [vmem:[#allocation16_spill] sm:$0xff] }
 0x559   : > { %v3491_v35 = vsel %vm1666_vm7, %v3459_v23, %v6732_v30  ;;  %v6806_v0 = vunpack.i.l.bf16 %v13457_v55  ;;  %v7824_v30 = vld [vmem:[#allocation2 + $0xf8] sm:$0xff] }
 0x55a   : > { %v3523_v17 = vsel %vm1699_vm9, %v3491_v35, %v6737_v44  ;;  %v6796_v44 = vunpack.i.l.bf16 %v13458_v36  ;;  %v6772_v35 = vunpack.i.h.bf16 %v13454_v43 }
 0x55b   : > { %v3555_v28 = vsel %vm1732_vm8, %v3523_v17, %v6747_v57  ;;  %v3399_v57 = vsel %vm223_vm0, %v7824_v30, %v6752_v63  ;;  %v6822_v63 = vunpack.i.h.bf16 %v13463_v26  ;;  %v13466_v30 = vld [vmem:[#allocation8_spill] sm:$0xff] }
 0x55c   : > { %v3587_v21 = vsel %vm1765_vm10, %v3555_v28, %v7187_v62  ;;  %v6792_v62 = vunpack.i.h.bf16 %v13456_v3  ;;  %v3431_v51 = vsel %vm1600_vm6, %v3399_v57, %v6757_v29  ;;  %v6816_v57 = vunpack.i.l.bf16 %v13466_v30 }
 0x55d   : > { %3724 = vmatmul.f32.gmra.mxu2 %v3583_v60  ;;  %v6761_v60 = vunpack.i.l.bf16 %v10438_v31  ;;  %v3463_v6 = vsel %vm1633_vm5, %v3431_v51, %v6772_v35 }
 0x55e   : > { %v3495_v52 = vsel %vm1666_vm7, %v3463_v6, %v6792_v62 }
 0x55f   : > { %v3492_v61 = vsel %vm1666_vm7, %v3460_v47, %v6761_v60  ;;  %v13459_v60 = vld [vmem:[#allocation74_spill] sm:$0xff]  ;;  %v6797_v47 = vunpack.i.h.bf16 %v13458_v36  ;;  %v7202_v36 = vunpack.i.h.bf16 %v7200_v11 }
 0x560   : > { %v3524_v27 = vsel %vm1699_vm9, %v3492_v61, %v6766_v54  ;;  %v6781_v28 = vunpack.i.l.bf16 %v13459_v60  ;;  %v6786_v54 = vunpack.i.l.bf16 %v13460_v58  ;;  %v13461_v61 = vld [vmem:[#allocation38_spill] sm:$0xff]  ;;  %v6782_v9 = vunpack.i.h.bf16 %v13459_v60  ;;  %v13469_v60 = vld [vmem:[#allocation47_spill] sm:$0xff]  ;;  %v7205_v58 = vpop.permute.xlu0 %7204 }
 0x561   : > { %v6801_v20 = vunpack.i.l.bf16 %v13461_v61  ;;  %v3527_v37 = vsel %vm1699_vm9, %v3495_v52, %v6797_v47  ;;  %v7828_v52 = vld [vmem:[#allocation2 + $0x128] sm:$0xff] }
 0x565   : > { %3727 = vmatmul.f32.gmra.mxu2 %v3584_v53  ;;  %v13452_v53 = vld [vmem:[#allocation10_spill] sm:$0xff] }
 0x566   : > { %v6776_v12 = vunpack.i.l.bf16 %v13452_v53  ;;  %v6777_v31 = vunpack.i.h.bf16 %v13452_v53 }
 0x568   : > { %v3556_v38 = vsel %vm1732_vm8, %v3524_v27, %v6776_v12  ;;  %v3557_v16 = vsel %vm1732_vm8, %v3525_v39, %v6777_v31  ;;  %v6802_v31 = vunpack.i.h.bf16 %v13461_v61  ;;  %v7206_v61 = vunpack.i.l.bf16 %v7205_v58 }
 0x569   : > { %v3588_v13 = vsel %vm1765_vm10, %v3556_v38, %v7191_v32  ;;  %v3589_v42 = vsel %vm1765_vm10, %v3557_v16, %v7192_v14  ;;  %v7825_v32 = vld [vmem:[#allocation2 + $0x108] sm:$0xff]  ;;  %v6826_v38 = vunpack.i.l.bf16 %v13462_v4  ;;  %v6836_v14 = vunpack.i.l.bf16 %v13464_v33  ;;  %v13465_v16 = vld [vmem:[#allocation42_spill] sm:$0xff] }
 0x56a   : > { %v3400_v27 = vsel %vm223_vm0, %v7825_v32, %v6781_v28  ;;  %v6812_v51 = vunpack.i.h.bf16 %v13465_v16  ;;  %v6856_v28 = vunpack.i.l.bf16 %v13469_v60  ;;  %v6817_v32 = vunpack.i.h.bf16 %v13466_v30 }
 0x56b   : > { %v3432_v53 = vsel %vm1600_vm6, %v3400_v27, %v6786_v54  ;;  %v13470_v27 = vld [vmem:[#allocation39_spill] sm:$0xff] }
 0x56c   : > { %v11161_v10 = vpop.f32.mrf.mxu2  ;;  %v3464_v19 = vsel %vm1633_vm5, %v3432_v53, %v6801_v20  ;;  %v3403_v47 = vsel %vm223_vm0, %v7828_v52, %v6812_v51  ;;  %v13477_v52 = vld [vmem:[#allocation57_spill] sm:$0xff] }
 0x56d   : > { %3730 = vmatmul.f32.gmra.mxu2 %v3585_v46  ;;  %v6771_v46 = vunpack.i.l.bf16 %v13454_v43  ;;  %v3435_v53 = vsel %vm1600_vm6, %v3403_v47, %v6817_v32  ;;  %v6871_v47 = vunpack.i.l.bf16 %v13477_v52 }
 0x56f   : > { %v3462_v41 = vsel %vm1633_vm5, %v3430_v25, %v6771_v46  ;;  %v7826_v46 = vld [vmem:[#allocation2 + $0x110] sm:$0xff]  ;;  %v6827_v25 = vunpack.i.h.bf16 %v13462_v4 }
 0x570   : > { %v3494_v23 = vsel %vm1666_vm7, %v3462_v41, %v6791_v49  ;;  %v3401_v7 = vsel %vm223_vm0, %v7826_v46, %v6782_v9  ;;  %v6837_v41 = vunpack.i.h.bf16 %v13464_v33 }
 0x571   : > { %v3526_v1 = vsel %vm1699_vm9, %v3494_v23, %v6796_v44  ;;  %v3433_v8 = vsel %vm1600_vm6, %v3401_v7, %v6787_v24  ;;  %v7207_v24 = vunpack.i.h.bf16 %v7205_v58  ;;  %v13473_v7 = vld [vmem:[#allocation75_spill] sm:$0xff] }
 0x572   : > { %v3558_v17 = vsel %vm1732_vm8, %v3526_v1, %v6806_v0  ;;  %v3465_v49 = vsel %vm1633_vm5, %v3433_v8, %v6802_v31  ;;  %v7827_v0 = vld [vmem:[#allocation2 + $0x120] sm:$0xff]  ;;  %v13467_v1 = vld [vmem:[#allocation77_spill] sm:$0xff]  ;;  %v7829_v31 = vld [vmem:[#allocation2 + $0x138] sm:$0xff]  ;;  %v6846_v8 = vunpack.i.l.bf16 %v13473_v7  ;;  %v6847_v58 = vunpack.i.h.bf16 %v13473_v7 }
 0x573   : > { %v6851_v29 = vunpack.i.l.bf16 %v13467_v1 }
 0x574   : > { %v11179_v50 = vpop.f32.mrf.mxu2 }
 0x575   : > { %3733 = vmatmul.f32.gmra.mxu2 %v3586_v45  ;;  %v7196_v45 = vunpack.i.l.bf16 %v7195_v59 }
 0x577   : > { %v3590_v40 = vsel %vm1765_vm10, %v3558_v17, %v7196_v45  ;;  %v13468_v17 = vld [vmem:[#allocation41_spill] sm:$0xff] }
 0x578   : > { %v6832_v4 = vunpack.i.h.bf16 %v13468_v17 }
 0x57a   : > { %v3467_v11 = vsel %vm1633_vm5, %v3435_v53, %v6832_v4  ;;  %v7831_v53 = vld [vmem:[#allocation2 + $0x198] sm:$0xff] }
 0x57c   : > { %v11198_v22 = vpop.f32.mrf.mxu2 }
 0x57d   : > { %3736 = vmatmul.f32.gmra.mxu2 %v3587_v21  ;;  %v6807_v21 = vunpack.i.h.bf16 %v13457_v55  ;;  %v3497_v55 = vsel %vm1666_vm7, %v3465_v49, %v6822_v63  ;;  %v7210_v63 = vpop.permute.xlu1 %7209 }
 0x57e   : > { %v3529_v45 = vsel %vm1699_vm9, %v3497_v55, %v6827_v25  ;;  %v7211_v30 = vunpack.i.l.bf16 %v7210_v63 }
 0x57f   : > { %v3559_v12 = vsel %vm1732_vm8, %v3527_v37, %v6807_v21  ;;  %v3561_v62 = vsel %vm1732_vm8, %v3529_v45, %v6837_v41  ;;  %v6866_v37 = vunpack.i.l.bf16 %v13470_v27 }
 0x580   : > { %v3591_v48 = vsel %vm1765_vm10, %v3559_v12, %v7197_v15  ;;  %v3593_v6 = vsel %vm1765_vm10, %v3561_v62, %v7202_v36  ;;  %v6852_v12 = vunpack.i.h.bf16 %v13467_v1  ;;  %v13476_v36 = vld [vmem:[#allocation43_spill] sm:$0xff]  ;;  %v4222_v62 = vld [vmem:[#allocation2] sm:$0xff] }
 0x581   : > { %v6886_v45 = vunpack.i.l.bf16 %v13476_v36 }
 0x582   : > { %v3499_v9 = vsel %vm1666_vm7, %v3467_v11, %v6852_v12  ;;  %v2701_v12 = vrot.slane %v7831_v53, 2 }
 0x584   : > { %v11218_v34 = vpop.f32.mrf.mxu2 }
 0x585   : > { %3739 = vmatmul.f32.gmra.mxu2 %v3588_v13  ;;  %v6821_v13 = vunpack.i.l.bf16 %v13463_v26  ;;  %v13471_v26 = vld [vmem:[#allocation66_spill] sm:$0xff] }
 0x586   : > { %v6842_v25 = vunpack.i.h.bf16 %v13471_v26 }
 0x587   : > { %v3496_v39 = vsel %vm1666_vm7, %v3464_v19, %v6821_v13  ;;  %v6841_v13 = vunpack.i.l.bf16 %v13471_v26 }
 0x588   : > { %v3528_v43 = vsel %vm1699_vm9, %v3496_v39, %v6826_v38  ;;  %v6857_v38 = vunpack.i.h.bf16 %v13469_v60  ;;  %v6867_v39 = vunpack.i.h.bf16 %v13470_v27  ;;  %v4324_v60 = vrot.slane %v4222_v62, 1 }
 0x589   : > { %v3560_v3 = vsel %vm1732_vm8, %v3528_v43, %v6836_v14  ;;  %v13472_v43 = vld [vmem:[#allocation19_spill] sm:$0xff] }
 0x58a   : > { %v3592_v59 = vsel %vm1765_vm10, %v3560_v3, %v7201_v2  ;;  %v3531_v14 = vsel %vm1699_vm9, %v3499_v9, %v6857_v38  ;;  %v3404_v2 = vsel %vm223_vm0, %v7829_v31, %v6841_v13  ;;  %v6861_v46 = vunpack.i.l.bf16 %v13472_v43  ;;  %v13474_v3 = vld [vmem:[#allocation85_spill] sm:$0xff] }
 0x58b   : > { %v6881_v49 = vunpack.i.l.bf16 %v13474_v3 }
 0x58d   : > { %3742 = vmatmul.f32.gmra.mxu2 %v3589_v42  ;;  %v6811_v42 = vunpack.i.l.bf16 %v13465_v16  ;;  %v3563_v16 = vsel %vm1732_vm8, %v3531_v14, %v6867_v39  ;;  %v6887_v14 = vunpack.i.h.bf16 %v13476_v36  ;;  %v13479_v39 = vld [vmem:[#allocation12_spill] sm:$0xff]  ;;  %v7215_v36 = vpop.permute.xlu2 %7214 }
 0x58e   : > { %v6891_v31 = vunpack.i.l.bf16 %v13479_v39 }
 0x58f   : > { %v3402_v23 = vsel %vm223_vm0, %v7827_v0, %v6811_v42  ;;  %v3595_v42 = vsel %vm1765_vm10, %v3563_v16, %v7207_v24  ;;  %v13475_v0 = vld [vmem:[#allocation49_spill] sm:$0xff]  ;;  %v11295_v24 = vpop.f32.mrf.mxu3  ;;  %v4404_v16 = vrot.slane %v4222_v62, 2 }
 0x590   : > { %v3434_v35 = vsel %vm1600_vm6, %v3402_v23, %v6816_v57  ;;  %v6896_v23 = vunpack.i.l.bf16 %v13475_v0  ;;  %v6897_v11 = vunpack.i.h.bf16 %v13475_v0  ;;  %v13481_v0 = vld [vmem:[#allocation76_spill] sm:$0xff] }
 0x595   : > { %3745 = vmatmul.f32.gmra.mxu2 %v3590_v40  ;;  %v6831_v40 = vunpack.i.l.bf16 %v13468_v17  ;;  %v4223_v17 = vld [vmem:[#allocation2 + $0x8] sm:$0xff] }
 0x597   : > { %v3466_v54 = vsel %vm1633_vm5, %v3434_v35, %v6831_v40  ;;  %v7830_v35 = vld [vmem:[#allocation2 + $0x140] sm:$0xff]  ;;  %v4224_v40 = vld [vmem:[#allocation2 + $0x10] sm:$0x3] }
 0x598   : > { %v3498_v21 = vsel %vm1666_vm7, %v3466_v54, %v6851_v29  ;;  %v3405_v1 = vsel %vm223_vm0, %v7830_v35, %v6842_v25  ;;  %v6862_v29 = vunpack.i.h.bf16 %v13472_v43  ;;  %v6882_v54 = vunpack.i.h.bf16 %v13474_v3 }
 0x599   : > { %v3530_v15 = vsel %vm1699_vm9, %v3498_v21, %v6856_v28  ;;  %v4325_v28 = vrot.slane %v4223_v17, 1  ;;  %v3437_v27 = vsel %vm1600_vm6, %v3405_v1, %v6847_v58  ;;  %v4407_v25 = vrot.slane %v4224_v40, 2 }
 0x59a   : > { %v3562_v19 = vsel %vm1732_vm8, %v3530_v15, %v6866_v37  ;;  %v3469_v38 = vsel %vm1633_vm5, %v3437_v27, %v6862_v29  ;;  %v2704_v35 = vrot.slane %v10861_v18, 2  ;;  %v6872_v1 = vunpack.i.h.bf16 %v13477_v52  ;;  %v13482_v18 = vld [vmem:[#allocation78_spill] sm:$0xff] }
 0x59b   : > { %v4326_v15 = vsel %vm708_vm2, %v4324_v60, %v4325_v28  ;;  %v3501_v13 = vsel %vm1666_vm7, %v3469_v38, %v6882_v54  ;;  %v7216_v60 = vunpack.i.l.bf16 %v7215_v36  ;;  %v6926_v58 = vunpack.i.l.bf16 %v13482_v18  ;;  %v11324_v54 = vpop.f32.mrf.mxu3  ;;  %v7835_v38 = vld [vmem:[#allocation2 + $0x168] sm:$0xff] }
 0x59c   : > { %v3533_v3 = vsel %vm1699_vm9, %v3501_v13, %v6887_v14  ;;  %v7217_v13 = vunpack.i.h.bf16 %v7215_v36  ;;  %v6927_v14 = vunpack.i.h.bf16 %v13482_v18 }
 0x59d   : > { %3748 = vmatmul.f32.gmra.mxu2 %v3591_v48  ;;  %v3594_v48 = vsel %vm1765_vm10, %v3562_v19, %v7206_v61  ;;  %v7832_v19 = vld [vmem:[#allocation2 + $0x1a0] sm:$0xff] }
 0x59e   : > { %v2702_v4 = vrot.slane %v7832_v19, 2  ;;  %v13484_v19 = vld [vmem:[#allocation46_spill] sm:$0xff] }
 0x5a0   : > { %v2703_v9 = vsel %vm789_vm4, %v2701_v12, %v2702_v4  ;;  %v6912_v12 = vunpack.i.h.bf16 %v13481_v0 }
 0x5a1   : > { %6007 = vmatmul.msk.f32.gmra.mxu3 %vm223_vm0, %v2703_v9 }
 0x5a5   : > { %3751 = vmatmul.f32.gmra.mxu2 %v3592_v59  ;;  %v3436_v59 = vsel %vm1600_vm6, %v3404_v2, %v6846_v8  ;;  %v7212_v2 = vunpack.i.h.bf16 %v7210_v63 }
 0x5a6   : > { %v3468_v41 = vsel %vm1633_vm5, %v3436_v59, %v6861_v46  ;;  %v7833_v46 = vld [vmem:[#allocation2 + $0x150] sm:$0xff] }
 0x5a7   : > { %v3500_v55 = vsel %vm1666_vm7, %v3468_v41, %v6881_v49  ;;  %v3406_v7 = vsel %vm223_vm0, %v7833_v46, %v6871_v47  ;;  %v3565_v49 = vsel %vm1732_vm8, %v3533_v3, %v6897_v11  ;;  %v13480_v41 = vld [vmem:[#allocation17_spill] sm:$0xff]  ;;  %v13483_v47 = vld [vmem:[#allocation52_spill] sm:$0xff] }
 0x5a8   : > { %v11232_v44 = vpop.f32.mrf.mxu2  ;;  %v3532_v51 = vsel %vm1699_vm9, %v3500_v55, %v6886_v45  ;;  %v6916_v63 = vunpack.i.l.bf16 %v13480_v41  ;;  %v3597_v55 = vsel %vm1765_vm10, %v3565_v49, %v7212_v2  ;;  %v13486_v46 = vld [vmem:[#allocation45_spill] sm:$0xff]  ;;  %v3847_v49 = vpop.f32.mrf.mxu3 }
 0x5a9   : > { %v3564_v21 = vsel %vm1732_vm8, %v3532_v51, %v6896_v23  ;;  %v6911_v23 = vunpack.i.l.bf16 %v13481_v0  ;;  %v6892_v51 = vunpack.i.h.bf16 %v13479_v39  ;;  %v13487_v0 = vld [vmem:[#allocation14_spill] sm:$0xff] }
 0x5aa   : > { %v3596_v61 = vsel %vm1765_vm10, %v3564_v21, %v7211_v30  ;;  %v7834_v21 = vld [vmem:[#allocation2 + $0x158] sm:$0xff] }
 0x5ab   : > { %v3407_v52 = vsel %vm223_vm0, %v7834_v21, %v6872_v1  ;;  %v11367_v21 = vld [vmem:[%s13017_s4 + $0x1] ss:$0 sm:$0xff] }
 0x5ad   : > { %3754 = vmatmul.f32.gmra.mxu2 %v3593_v6  ;;  %v4327_v6 = vrot.slane %v4224_v40, 1  ;;  %v2705_v40 = vsel %vm789_vm4, %v2702_v4, %v2704_v35  ;;  %v6906_v4 = vunpack.i.l.bf16 %v13484_v19  ;;  %v13488_v35 = vld [vmem:[#allocation9_spill] sm:$0xff] }
 0x5ae   : > { %6008 = vmatmul.msk.f32.gmra.mxu3 %vm223_vm0, %v2705_v40  ;;  %v6676_v1 = vunpack.i.l.bf16 %v13488_v35 }
 0x5af   : > { %v4328_v32 = vsel %vm708_vm2, %v4325_v28, %v4327_v6 }
 0x5b0   : > { %v11246_v20 = vpop.f32.mrf.mxu2  ;;  %v7223_v37 = vpack.i.bf16 %v4328_v32, %v4326_v15  ;;  %v3850_v18 = vpop.f32.mrf.mxu3 }
 0x5b2   : > { %7224 = vrot.lane.b32.xlu0 %v7223_v37, %s7923_s30  ;;  %v6917_v37 = vunpack.i.h.bf16 %v13480_v41  ;;  %v7220_v41 = vpop.permute.xlu0 %7219 }
 0x5b3   : > { %v7221_v36 = vunpack.i.l.bf16 %v7220_v41 }
 0x5b5   : > { %3757 = vmatmul.f32.gmra.mxu2 %v3594_v48  ;;  %v13478_v48 = vld [vmem:[#allocation44_spill] sm:$0xff] }
 0x5b6   : > { %v6876_v26 = vunpack.i.l.bf16 %v13478_v48  ;;  %v6877_v62 = vunpack.i.h.bf16 %v13478_v48 }
 0x5b8   : > { %v11260_v33 = vpop.f32.mrf.mxu2  ;;  %v3438_v8 = vsel %vm1600_vm6, %v3406_v7, %v6876_v26  ;;  %v3439_v15 = vsel %vm1600_vm6, %v3407_v52, %v6877_v62  ;;  %v6921_v7 = vunpack.i.l.bf16 %v13486_v46  ;;  %v7222_v52 = vunpack.i.h.bf16 %v7220_v41  ;;  %v13493_v41 = vld [vmem:[#allocation84_spill] sm:$0xff] }
 0x5b9   : > { %v3470_v59 = vsel %vm1633_vm5, %v3438_v8, %v6891_v31  ;;  %v3471_v27 = vsel %vm1633_vm5, %v3439_v15, %v6892_v51  ;;  %v13485_v31 = vld [vmem:[#allocation60_spill] sm:$0xff]  ;;  %v6902_v8 = vunpack.i.h.bf16 %v13483_v47  ;;  %v6677_v15 = vunpack.i.h.bf16 %v13488_v35 }
 0x5ba   : > { %v3503_v26 = vsel %vm1666_vm7, %v3471_v27, %v6912_v12  ;;  %v6931_v2 = vunpack.i.l.bf16 %v13485_v31  ;;  %v6932_v62 = vunpack.i.h.bf16 %v13485_v31  ;;  %v3853_v12 = vpop.f32.mrf.mxu3 }
 0x5bb   : > { %v3535_v9 = vsel %vm1699_vm9, %v3503_v26, %v6917_v37 }
 0x5bc   : > { %v3567_v3 = vsel %vm1732_vm8, %v3535_v9, %v6927_v14  ;;  %v13490_v14 = vld [vmem:[#allocation83_spill] sm:$0xff] }
 0x5bd   : > { %3760 = vmatmul.f32.gmra.mxu2 %v3595_v42  ;;  %v4405_v42 = vrot.slane %v4223_v17, 2  ;;  %v3502_v17 = vsel %vm1666_vm7, %v3470_v59, %v6911_v23  ;;  %v6936_v23 = vunpack.i.l.bf16 %v13487_v0 }
 0x5be   : > { %v3534_v6 = vsel %vm1699_vm9, %v3502_v17, %v6916_v63  ;;  %v7836_v63 = vld [vmem:[#allocation2 + $0x170] sm:$0xff]  ;;  %v6922_v17 = vunpack.i.h.bf16 %v13486_v46 }
 0x5bf   : > { %v4406_v45 = vsel %vm789_vm4, %v4404_v16, %v4405_v42  ;;  %v4408_v30 = vsel %vm789_vm4, %v4405_v42, %v4407_v25  ;;  %v3566_v32 = vsel %vm1732_vm8, %v3534_v6, %v6926_v58  ;;  %v3599_v42 = vsel %vm1765_vm10, %v3567_v3, %v7217_v13  ;;  %v13491_v46 = vld [vmem:[#allocation54_spill] sm:$0xff] }
 0x5c0   : > { %v11276_v57 = vpop.f32.mrf.mxu2  ;;  %v7228_v29 = vpack.i.bf16 %v4408_v30, %v4406_v45  ;;  %v3598_v53 = vsel %vm1765_vm10, %v3566_v32, %v7216_v60  ;;  %v6907_v25 = vunpack.i.h.bf16 %v13484_v19  ;;  %v6937_v58 = vunpack.i.h.bf16 %v13487_v0 }
 0x5c2   : > { %7229 = vrot.lane.b32.xlu1 %v7228_v29, %s7924_s23  ;;  %v3856_v13 = vpop.f32.mrf.mxu3 }
 0x5c5   : > { %3763 = vmatmul.f32.gmra.mxu2 %v3596_v61  ;;  %v6901_v61 = vunpack.i.l.bf16 %v13483_v47 }
 0x5c7   : > { %v3408_v48 = vsel %vm223_vm0, %v7835_v38, %v6901_v61 }
 0x5c8   : > { %v11299_v43 = vpop.f32.mrf.mxu2  ;;  %v3440_v39 = vsel %vm1600_vm6, %v3408_v48, %v6906_v4  ;;  %v13489_v48 = vld [vmem:[#allocation73_spill] sm:$0xff] }
 0x5c9   : > { %v3472_v16 = vsel %vm1633_vm5, %v3440_v39, %v6921_v7 }
 0x5ca   : > { %v3504_v59 = vsel %vm1666_vm7, %v3472_v16, %v6931_v2 }
 0x5cb   : > { %v3536_v30 = vsel %vm1699_vm9, %v3504_v59, %v6936_v23 }
 0x5cc   : > { %v3568_v40 = vsel %vm1732_vm8, %v3536_v30, %v6676_v1 }
 0x5cd   : > { %3766 = vmatmul.f32.gmra.mxu2 %v3597_v55  ;;  %v3409_v55 = vsel %vm223_vm0, %v7836_v63, %v6902_v8  ;;  %v3600_v60 = vsel %vm1765_vm10, %v3568_v40, %v7221_v36  ;;  %v13494_v36 = vld [vmem:[#allocation40_spill] sm:$0xff] }
 0x5ce   : > { %v3441_v29 = vsel %vm1600_vm6, %v3409_v55, %v6907_v25 }
 0x5cf   : > { %v3473_v51 = vsel %vm1633_vm5, %v3441_v29, %v6922_v17 }
 0x5d0   : > { %v11318_v28 = vpop.f32.mrf.mxu2  ;;  %v3505_v6 = vsel %vm1666_vm7, %v3473_v51, %v6932_v62  ;;  %v13495_v62 = vld [vmem:[#allocation59_spill] sm:$0xff] }
 0x5d1   : > { %v3537_v61 = vsel %vm1699_vm9, %v3505_v6, %v6937_v58  ;;  %v13496_v6 = vld [vmem:[#allocation65_spill] sm:$0xff] }
 0x5d2   : > { %v3569_v37 = vsel %vm1732_vm8, %v3537_v61, %v6677_v15 }
 0x5d5   : > { %3769 = vmatmul.f32.gmra.mxu2 %v3598_v53  ;;  %v3601_v53 = vsel %vm1765_vm10, %v3569_v37, %v7222_v52  ;;  %v13498_v37 = vld [vmem:[#allocation67_spill] sm:$0xff] }
 0x5d8   : > { %v11337_v11 = vpop.f32.mrf.mxu2 }
 0x5dd   : > { %3772 = vmatmul.f32.gmra.mxu2 %v3599_v42 }
 0x5e0   : > { %v11352_v45 = vpop.f32.mrf.mxu2 }
 0x5e5   : > { %3775 = vmatmul.f32.gmra.mxu2 %v3600_v60 }
 0x5e8   : > { %v3728_v47 = vpop.f32.mrf.mxu2 }
 0x5e9   : > { %v3729_v32 = vadd.f32 %v11367_v21, %v3728_v47  ;;  %v13497_v47 = vld [vmem:[#allocation55_spill] sm:$0xff] }
 0x5eb   : > { %v3842_v27 = vadd.f32 %v11295_v24, %v3729_v32 }
 0x5ed   : > { %3778 = vmatmul.f32.gmra.mxu2 %v3601_v53  ;;  %3955 = vrot.lane.b32.xlu0 %v3842_v27, %s7931_s14 }
 0x5f0   : > { %v3731_v19 = vpop.f32.mrf.mxu2 }
 0x5f1   : > { %v3732_v4 = vadd.f32 %v11367_v21, %v3731_v19 }
 0x5f3   : > { %v3845_v38 = vadd.f32 %v11324_v54, %v3732_v4  ;;  %v3859_v54 = vpop.f32.mrf.mxu3 }
 0x5f5   : > { %5977 = vmatmul.msk.f32.vlgmr.msrb.gmra.mxu2 %vm223_vm0, %v13489_v48  ;;  %3957 = vrot.lane.b32.xlu1 %v3845_v38, %s7931_s14  ;;  %v13499_v38 = vld [vmem:[#allocation69_spill] sm:$0xff] }
 0x5f8   : > { %v3734_v24 = vpop.f32.mrf.mxu2 }
 0x5f9   : > { %v3735_v26 = vadd.f32 %v11367_v21, %v3734_v24 }
 0x5fb   : > { %v3848_v9 = vadd.f32 %v3847_v49, %v3735_v26  ;;  %v13492_v49 = vld [vmem:[#allocation64_spill] sm:$0xff]  ;;  %v3862_v16 = vpop.f32.mrf.mxu3 }
 0x5fd   : > { %5978 = vmatmul.msk.f32.gmra.mxu2 %vm223_vm0, %v13490_v14  ;;  %3959 = vrot.lane.b32.xlu2 %v3848_v9, %s7931_s14  ;;  %v13500_v9 = vld [vmem:[#allocation81_spill] sm:$0xff] }
 0x600   : > { %v3737_v39 = vpop.f32.mrf.mxu2 }
 0x601   : > { %v3738_v31 = vadd.f32 %v11367_v21, %v3737_v39 }
 0x603   : > { %v3851_v2 = vadd.f32 %v3850_v18, %v3738_v31  ;;  %v3865_v63 = vpop.f32.mrf.mxu3 }
 0x605   : > { %5979 = vmatmul.msk.f32.gmra.mxu2 %vm223_vm0, %v13491_v46  ;;  %3961 = vrot.lane.b32.xlu0 %v3851_v2, %s7931_s14 }
 0x608   : > { %v3740_v7 = vpop.f32.mrf.mxu2 }
 0x609   : > { %v3741_v8 = vadd.f32 %v11367_v21, %v3740_v7 }
 0x60b   : > { %v3854_v3 = vadd.f32 %v3853_v12, %v3741_v8  ;;  %v3868_v1 = vpop.f32.mrf.mxu3 }
 0x60d   : > { %5980 = vmatmul.msk.f32.gmra.mxu2 %vm223_vm0, %v13492_v49  ;;  %3963 = vrot.lane.b32.xlu1 %v3854_v3, %s7931_s14 }
 0x610   : > { %v3743_v42 = vpop.f32.mrf.mxu2 }
 0x611   : > { %v3744_v25 = vadd.f32 %v11367_v21, %v3743_v42  ;;  %v13502_v42 = vld [vmem:[#allocation34_spill] sm:$0xff] }
 0x613   : > { %v3857_v59 = vadd.f32 %v3856_v13, %v3744_v25  ;;  %v3871_v60 = vpop.f32.mrf.mxu3 }
 0x615   : > { %5981 = vmatmul.msk.f32.gmra.mxu2 %vm223_vm0, %v13493_v41  ;;  %3965 = vrot.lane.b32.xlu2 %v3857_v59, %s7931_s14  ;;  %v11447_v41 = vld [vmem:[%s13015_s2 + $0x2] ss:$0 sm:$0xff] }
 0x618   : > { %v3746_v55 = vpop.f32.mrf.mxu2 }
 0x619   : > { %v3747_v0 = vadd.f32 %v11367_v21, %v3746_v55 }
 0x61b   : > { %v3860_v23 = vadd.f32 %v3859_v54, %v3747_v0  ;;  %v3874_v61 = vpop.f32.mrf.mxu3  ;;  %v13501_v54 = vld [vmem:[#allocation36_spill] sm:$0xff] }
 0x61d   : > { %5982 = vmatmul.msk.f32.gmra.mxu2 %vm223_vm0, %v13494_v36  ;;  %3967 = vrot.lane.b32.xlu0 %v3860_v23, %s7931_s14 }
 0x620   : > { %v3749_v30 = vpop.f32.mrf.mxu2 }
 0x621   : > { %v3750_v35 = vadd.f32 %v11367_v21, %v3749_v30 }
 0x623   : > { %v3863_v29 = vadd.f32 %v3862_v16, %v3750_v35  ;;  %v3877_v53 = vpop.f32.mrf.mxu3  ;;  %v11437_v16 = vld [vmem:[%s13014_s1 + $0x2] ss:$0 sm:$0xff] }
 0x624   : > { %v11429_v46 = vpop.permute.xlu0 %7224 }
 0x625   : > { %5983 = vmatmul.msk.f32.gmra.mxu2 %vm223_vm0, %v13495_v62  ;;  %3969 = vrot.lane.b32.xlu1 %v3863_v29, %s7931_s14 }
 0x628   : > { %v3752_v17 = vpop.f32.mrf.mxu2 }
 0x629   : > { %v3753_v40 = vadd.f32 %v11367_v21, %v3752_v17 }
 0x62b   : > { %v3866_v51 = vadd.f32 %v3865_v63, %v3753_v40  ;;  %v3880_v26 = vpop.f32.mrf.mxu3 }
 0x62d   : > { %5984 = vmatmul.msk.f32.gmra.mxu2 %vm223_vm0, %v13496_v6  ;;  %3971 = vrot.lane.b32.xlu2 %v3866_v51, %s7931_s14 }
 0x630   : > { %v3755_v18 = vpop.f32.mrf.mxu2 }
 0x631   : > { %v3756_v58 = vadd.f32 %v11367_v21, %v3755_v18 }
 0x633   : > { %v3869_v52 = vadd.f32 %v3868_v1, %v3756_v58  ;;  %v3883_v2 = vpop.f32.mrf.mxu3 }
 0x634   : > { %v11442_v25 = vpop.permute.xlu1 %7229 }
 0x635   : > { %5985 = vmatmul.msk.f32.gmra.mxu2 %vm223_vm0, %v13497_v47  ;;  %3973 = vrot.lane.b32.xlu0 %v3869_v52, %s7931_s14 }
 0x638   : > { %v3758_v15 = vpop.f32.mrf.mxu2 }
 0x639   : > { %v3759_v32 = vadd.f32 %v11367_v21, %v3758_v15 }
 0x63b   : > { %v3872_v27 = vadd.f32 %v3871_v60, %v3759_v32  ;;  %v3886_v59 = vpop.f32.mrf.mxu3 }
 0x63d   : > { %5986 = vmatmul.msk.f32.gmra.mxu2 %vm223_vm0, %v13498_v37  ;;  %3975 = vrot.lane.b32.xlu1 %v3872_v27, %s7931_s14 }
 0x640   : > { %v3761_v12 = vpop.f32.mrf.mxu2 }
 0x641   : > { %v3762_v19 = vadd.f32 %v11367_v21, %v3761_v12 }
 0x643   : > { %v3875_v4 = vadd.f32 %v3874_v61, %v3762_v19  ;;  %v3889_v29 = vpop.f32.mrf.mxu3  ;;  %v3687_v19 = vadd.f32 %v11367_v21, %v11130_v56 }
 0x645   : > { %5987 = vmatmul.msk.f32.gmra.mxu2 %vm223_vm0, %v13499_v38  ;;  %3977 = vrot.lane.b32.xlu2 %v3875_v4, %s7931_s14 }
 0x648   : > { %v3764_v48 = vpop.f32.mrf.mxu2 }
 0x649   : > { %v3765_v24 = vadd.f32 %v11367_v21, %v3764_v48 }
 0x64b   : > { %v3878_v13 = vadd.f32 %v3877_v53, %v3765_v24  ;;  %v3892_v32 = vpop.f32.mrf.mxu3 }
 0x64d   : > { %5988 = vmatmul.msk.f32.gmra.mxu2 %vm223_vm0, %v13500_v9  ;;  %3979 = vrot.lane.b32.xlu0 %v3878_v13, %s7931_s14 }
 0x650   : > { %v3767_v14 = vpop.f32.mrf.mxu2 }
 0x651   : > { %v3768_v39 = vadd.f32 %v11367_v21, %v3767_v14 }
 0x653   : > { %v3881_v31 = vadd.f32 %v3880_v26, %v3768_v39 }
 0x655   : > { %5989 = vmatmul.msk.f32.gmra.mxu2 %vm223_vm0, %v13501_v54  ;;  %3981 = vrot.lane.b32.xlu1 %v3881_v31, %s7931_s14 }
 0x657   : > { %v3960_v7 = vpop.permute.xlu2 %3959 }
 0x658   : > { %4040 = vst.msk [vmem:[%s8143_s13 + $0x80] sm:$0xff] %vm4023_vm12, %v3960_v7  ;;  %v3770_v8 = vpop.f32.mrf.mxu2 }
 0x659   : > { %v3771_v3 = vadd.f32 %v11367_v21, %v3770_v8 }
 0x65b   : > { %v3884_v49 = vadd.f32 %v3883_v2, %v3771_v3 }
 0x65d   : > { %5990 = vmatmul.msk.f32.gmra.mxu2 %vm223_vm0, %v13502_v42  ;;  %3983 = vrot.lane.b32.xlu2 %v3884_v49, %s7931_s14 }
 0x65f   : > { %v4072_v63 = vld [vmem:[%s8143_s13 + $0x80] sm:$0xff]  ;;  %v3956_v55 = vpop.permute.xlu0 %3955 }
 0x660   : > { %v4107_v0 = vmul.f32 %v11437_v16, %v4072_v63  ;;  %4038 = vst.msk [vmem:[%s8143_s13 + $0x70] sm:$0xff] %vm4023_vm12, %v3956_v55  ;;  %v3773_v23 = vpop.f32.mrf.mxu2 }
 0x661   : > { %v3774_v36 = vadd.f32 %v11367_v21, %v3773_v23 }
 0x662   : > { %v4142_v30 = vadd.f32 %v11447_v41, %v4107_v0 }
 0x663   : > { %v3887_v35 = vadd.f32 %v3886_v59, %v3774_v36 }
 0x664   : > { %v4174_v1 = vmax.f32 %v4142_v30, 0.0 }
 0x665   : > { %3985 = vrot.lane.b32.xlu0 %v3887_v35, %s7931_s14 }
 0x666   : > { %4206 = vst.msk [vmem:[#allocation2 + $0xd9] sm:$0xff] %vm223_vm0, %v4174_v1 }
 0x667   : > { %v4070_v62 = vld [vmem:[%s8143_s13 + $0x70] sm:$0xff]  ;;  %v3958_v17 = vpop.permute.xlu1 %3957 }
 0x668   : > { %v4105_v40 = vmul.f32 %v11437_v16, %v4070_v62  ;;  %4039 = vst.msk [vmem:[%s8143_s13 + $0x78] sm:$0xff] %vm4023_vm12, %v3958_v17  ;;  %v3776_v51 = vpop.f32.mrf.mxu2  ;;  %v3690_v17 = vadd.f32 %v11367_v21, %v11146_v5 }
 0x669   : > { %v3777_v60 = vadd.f32 %v11367_v21, %v3776_v51 }
 0x66a   : > { %v4140_v6 = vadd.f32 %v11447_v41, %v4105_v40 }
 0x66b   : > { %v3890_v18 = vadd.f32 %v3889_v29, %v3777_v60 }
 0x66c   : > { %v4172_v58 = vmax.f32 %v4140_v6, 0.0 }
 0x66d   : > { %3987 = vrot.lane.b32.xlu1 %v3890_v18, %s7931_s14 }
 0x66e   : > { %4204 = vst.msk [vmem:[#allocation2 + $0xc1] sm:$0xff] %vm223_vm0, %v4172_v58 }
 0x66f   : > { %v4071_v52 = vld [vmem:[%s8143_s13 + $0x78] sm:$0xff]  ;;  %v3966_v47 = vpop.permute.xlu2 %3965 }
 0x670   : > { %v4106_v61 = vmul.f32 %v11437_v16, %v4071_v52  ;;  %4043 = vst.msk [vmem:[%s8143_s13 + $0x98] sm:$0xff] %vm4023_vm12, %v3966_v47  ;;  %v3779_v15 = vpop.f32.mrf.mxu2  ;;  %v3693_v52 = vadd.f32 %v11367_v21, %v11161_v10  ;;  %v4249_v47 = vld [vmem:[#allocation2 + $0xd8] sm:$0xff] }
 0x671   : > { %v3780_v27 = vadd.f32 %v11367_v21, %v3779_v15 }
 0x672   : > { %v4141_v37 = vadd.f32 %v11447_v41, %v4106_v61 }
 0x673   : > { %v3893_v53 = vadd.f32 %v3892_v32, %v3780_v27 }
 0x674   : > { %v4173_v12 = vmax.f32 %v4141_v37, 0.0 }
 0x675   : > { %3989 = vrot.lane.b32.xlu2 %v3893_v53, %s7931_s14  ;;  %v4246_v9 = vld [vmem:[#allocation2 + $0xc0] sm:$0xff] }
 0x676   : > { %4205 = vst.msk [vmem:[#allocation2 + $0xc9] sm:$0xff] %vm223_vm0, %v4173_v12  ;;  %v4364_v2 = vrot.slane %v4246_v9, 1  ;;  %v4444_v36 = vrot.slane %v4246_v9, 2 }
 0x677   : > { %v4075_v4 = vld [vmem:[%s8143_s13 + $0x98] sm:$0xff]  ;;  %v3962_v38 = vpop.permute.xlu0 %3961 }
 0x678   : > { %v4110_v48 = vmul.f32 %v11437_v16, %v4075_v4  ;;  %4041 = vst.msk [vmem:[%s8143_s13 + $0x88] sm:$0xff] %vm4023_vm12, %v3962_v38  ;;  %v3799_v24 = vpop.f32.mrf.mxu2  ;;  %v4369_v38 = vrot.slane %v4249_v47, 1 }
 0x679   : > { %v3800_v26 = vadd.f32 %v3799_v24, %v3687_v19 }
 0x67a   : > { %v4145_v13 = vadd.f32 %v11447_v41, %v4110_v48 }
 0x67b   : > { %3927 = vrot.lane.b32.xlu1 %v3800_v26, %s7931_s14  ;;  %v4449_v26 = vrot.slane %v4249_v47, 2 }
 0x67c   : > { %v4177_v14 = vmax.f32 %v4145_v13, 0.0 }
 0x67d   : > { %v4247_v39 = vld [vmem:[#allocation2 + $0xc8] sm:$0xff]  ;;  %v4248_v31 = vld [vmem:[#allocation2 + $0xd0] sm:$0x3] }
 0x67e   : > { %4209 = vst.msk [vmem:[#allocation2 + $0xf9] sm:$0xff] %vm223_vm0, %v4177_v14  ;;  %v7233_v56 = vpack.i.bf16 %v4247_v39, %v4246_v9  ;;  %v4365_v54 = vrot.slane %v4247_v39, 1  ;;  %v4367_v7 = vrot.slane %v4248_v31, 1  ;;  %v4445_v49 = vrot.slane %v4247_v39, 2 }
 0x67f   : > { %v4073_v8 = vld [vmem:[%s8143_s13 + $0x88] sm:$0xff]  ;;  %v3964_v3 = vpop.permute.xlu1 %3963  ;;  %v4447_v42 = vrot.slane %v4248_v31, 2 }
 0x680   : > { %v4108_v59 = vmul.f32 %v11437_v16, %v4073_v8  ;;  %4042 = vst.msk [vmem:[%s8143_s13 + $0x90] sm:$0xff] %vm4023_vm12, %v3964_v3  ;;  %v3802_v63 = vpop.f32.mrf.mxu2  ;;  %7234 = vrot.lane.b32.xlu0 %v7233_v56, %s7925_s25  ;;  %v4366_v55 = vsel %vm708_vm2, %v4364_v2, %v4365_v54  ;;  %v4368_v0 = vsel %vm708_vm2, %v4365_v54, %v4367_v7 }
 0x681   : > { %v11489_v23 = vpack.i.bf16 %v4368_v0, %v4366_v55  ;;  %v11495_v35 = vsel %vm789_vm4, %v4444_v36, %v4445_v49  ;;  %v11498_v1 = vsel %vm789_vm4, %v4445_v49, %v4447_v42  ;;  %v3803_v18 = vadd.f32 %v3802_v63, %v3690_v17 }
 0x682   : > { %v4143_v30 = vadd.f32 %v11447_v41, %v4108_v59  ;;  %v11503_v62 = vpack.i.bf16 %v11498_v1, %v11495_v35  ;;  %v3699_v63 = vadd.f32 %v11367_v21, %v11198_v22 }
 0x683   : > { %7239 = vrot.lane.b32.xlu2 %v11489_v23, %s7923_s30 }
 0x684   : > { %v4175_v29 = vmax.f32 %v4143_v30, 0.0 }
 0x685   : > { %v4254_v39 = vld [vmem:[#allocation2 + $0x100] sm:$0x3] }
 0x686   : > { %4207 = vst.msk [vmem:[#allocation2 + $0xe1] sm:$0xff] %vm223_vm0, %v4175_v29  ;;  %v4377_v3 = vrot.slane %v4254_v39, 1 }
 0x687   : > { %v4074_v40 = vld [vmem:[%s8143_s13 + $0x90] sm:$0xff]  ;;  %v3972_v51 = vpop.permute.xlu2 %3971 }
 0x688   : > { %v4109_v60 = vmul.f32 %v11437_v16, %v4074_v40  ;;  %4046 = vst.msk [vmem:[%s8143_s13 + $0xb0] sm:$0xff] %vm4023_vm12, %v3972_v51  ;;  %v3805_v6 = vpop.f32.mrf.mxu2  ;;  %7244 = vrot.lane.b32.xlu0 %v11503_v62, %s7924_s23 }
 0x689   : > { %v3806_v32 = vadd.f32 %v3805_v6, %v3693_v52 }
 0x68a   : > { %v4144_v58 = vadd.f32 %v11447_v41, %v4109_v60  ;;  %v3696_v60 = vadd.f32 %v11367_v21, %v11179_v50 }
 0x68b   : > { %3929 = vrot.lane.b32.xlu2 %v3803_v18, %s7931_s14 }
 0x68c   : > { %v4176_v5 = vmax.f32 %v4144_v58, 0.0  ;;  %v3702_v58 = vadd.f32 %v11367_v21, %v11218_v34 }
 0x68d   : > { %v4250_v61 = vld [vmem:[#allocation2 + $0xe0] sm:$0xff]  ;;  %v4251_v15 = vld [vmem:[#allocation2 + $0xe8] sm:$0x3] }
 0x68e   : > { %4208 = vst.msk [vmem:[#allocation2 + $0xf1] sm:$0xff] %vm223_vm0, %v4176_v5  ;;  %v7248_v27 = vpack.i.bf16 %v4250_v61, %v4249_v47  ;;  %v4370_v37 = vrot.slane %v4250_v61, 1  ;;  %v4450_v19 = vrot.slane %v4250_v61, 2  ;;  %v4452_v4 = vrot.slane %v4251_v15, 2 }
 0x68f   : > { %v4078_v53 = vld [vmem:[%s8143_s13 + $0xb0] sm:$0xff]  ;;  %v3968_v12 = vpop.permute.xlu0 %3967  ;;  %v4372_v48 = vrot.slane %v4251_v15, 1 }
 0x690   : > { %v4113_v24 = vmul.f32 %v11437_v16, %v4078_v53  ;;  %4044 = vst.msk [vmem:[%s8143_s13 + $0xa0] sm:$0xff] %vm4023_vm12, %v3968_v12  ;;  %v3808_v10 = vpop.f32.mrf.mxu2  ;;  %3931 = vrot.lane.b32.xlu0 %v3806_v32, %s7931_s14  ;;  %7249 = vrot.lane.b32.xlu1 %v7248_v27, %s7925_s25  ;;  %v4371_v13 = vsel %vm708_vm2, %v4369_v38, %v4370_v37  ;;  %v4457_v53 = vrot.slane %v4254_v39, 2 }
 0x691   : > { %v4373_v9 = vsel %vm708_vm2, %v4370_v37, %v4372_v48  ;;  %v11530_v56 = vsel %vm789_vm4, %v4449_v26, %v4450_v19  ;;  %v11533_v2 = vsel %vm789_vm4, %v4450_v19, %v4452_v4  ;;  %v3809_v18 = vadd.f32 %v3808_v10, %v3696_v60 }
 0x692   : > { %v4148_v14 = vadd.f32 %v11447_v41, %v4113_v24  ;;  %v11527_v31 = vpack.i.bf16 %v4373_v9, %v4371_v13  ;;  %v11542_v49 = vpack.i.bf16 %v11533_v2, %v11530_v56  ;;  %v3705_v9 = vadd.f32 %v11367_v21, %v11232_v44 }
 0x694   : > { %v4180_v54 = vmax.f32 %v4148_v14, 0.0 }
 0x695   : > { %v11535_v7 = vld [vmem:[#allocation2 + $0xf0] sm:$0xff]  ;;  %v11537_v8 = vld [vmem:[#allocation2 + $0xf8] sm:$0xff] }
 0x696   : > { %4212 = vst.msk [vmem:[#allocation2 + $0x121] sm:$0xff] %vm223_vm0, %v4180_v54  ;;  %v4374_v42 = vrot.slane %v11535_v7, 1  ;;  %v4375_v59 = vrot.slane %v11537_v8, 1  ;;  %v7263_v50 = vpack.i.bf16 %v11537_v8, %v11535_v7  ;;  %v4454_v27 = vrot.slane %v11535_v7, 2 }
 0x697   : > { %v4076_v55 = vld [vmem:[%s8143_s13 + $0xa0] sm:$0xff]  ;;  %v3970_v0 = vpop.permute.xlu1 %3969  ;;  %v4455_v34 = vrot.slane %v11537_v8, 2 }
 0x698   : > { %v4111_v36 = vmul.f32 %v11437_v16, %v4076_v55  ;;  %4045 = vst.msk [vmem:[%s8143_s13 + $0xa8] sm:$0xff] %vm4023_vm12, %v3970_v0  ;;  %v3811_v30 = vpop.f32.mrf.mxu2  ;;  %7259 = vrot.lane.b32.xlu1 %v11542_v49, %s7924_s23  ;;  %7254 = vrot.lane.b32.xlu0 %v11527_v31, %s7923_s30  ;;  %v4376_v29 = vsel %vm708_vm2, %v4374_v42, %v4375_v59 }
 0x699   : > { %v4378_v17 = vsel %vm708_vm2, %v4375_v59, %v4377_v3  ;;  %v3812_v22 = vadd.f32 %v3811_v30, %v3699_v63  ;;  %v11581_v12 = vsel %vm789_vm4, %v4454_v27, %v4455_v34  ;;  %v11584_v19 = vsel %vm789_vm4, %v4455_v34, %v4457_v53 }
 0x69a   : > { %v4146_v40 = vadd.f32 %v11447_v41, %v4111_v36  ;;  %v11559_v51 = vpack.i.bf16 %v4378_v17, %v4376_v29  ;;  %v11594_v10 = vpack.i.bf16 %v11584_v19, %v11581_v12  ;;  %v3711_v53 = vadd.f32 %v11367_v21, %v11260_v33 }
 0x69b   : > { %3935 = vrot.lane.b32.xlu2 %v3812_v22, %s7931_s14 }
 0x69c   : > { %v4178_v6 = vmax.f32 %v4146_v40, 0.0 }
 0x69e   : > { %4210 = vst.msk [vmem:[#allocation2 + $0x109] sm:$0xff] %vm223_vm0, %v4178_v6 }
 0x69f   : > { %v4077_v52 = vld [vmem:[%s8143_s13 + $0xa8] sm:$0xff]  ;;  %v3978_v5 = vpop.permute.xlu2 %3977 }
 0x6a0   : > { %v4112_v47 = vmul.f32 %v11437_v16, %v4077_v52  ;;  %4049 = vst.msk [vmem:[%s8143_s13 + $0xc8] sm:$0xff] %vm4023_vm12, %v3978_v5  ;;  %v3814_v61 = vpop.f32.mrf.mxu2  ;;  %3933 = vrot.lane.b32.xlu1 %v3809_v18, %s7931_s14 }
 0x6a1   : > { %v3815_v15 = vadd.f32 %v3814_v61, %v3702_v58  ;;  %v3708_v61 = vadd.f32 %v11367_v21, %v11246_v20 }
 0x6a2   : > { %v4147_v32 = vadd.f32 %v11447_v41, %v4112_v47 }
 0x6a3   : > { %7264 = vrot.lane.b32.xlu2 %v7263_v50, %s7925_s25  ;;  %3937 = vrot.lane.b32.xlu0 %v3815_v15, %s7931_s14 }
 0x6a4   : > { %v4179_v37 = vmax.f32 %v4147_v32, 0.0 }
 0x6a5   : > { %v11597_v13 = vld [vmem:[#allocation2 + $0x108] sm:$0xff] }
 0x6a6   : > { %4211 = vst.msk [vmem:[#allocation2 + $0x111] sm:$0xff] %vm223_vm0, %v4179_v37  ;;  %v4379_v3 = vrot.slane %v11597_v13, 1  ;;  %v4459_v6 = vrot.slane %v11597_v13, 2 }
 0x6a7   : > { %v4081_v4 = vld [vmem:[%s8143_s13 + $0xc8] sm:$0xff]  ;;  %v3974_v38 = vpop.permute.xlu0 %3973 }
 0x6a8   : > { %v4116_v48 = vmul.f32 %v11437_v16, %v4081_v4  ;;  %4047 = vst.msk [vmem:[%s8143_s13 + $0xb8] sm:$0xff] %vm4023_vm12, %v3974_v38  ;;  %v3817_v24 = vpop.f32.mrf.mxu2  ;;  %7269 = vrot.lane.b32.xlu1 %v11559_v51, %s7923_s30  ;;  %v11648_v4 = vld [vmem:[#allocation2 + $0x120] sm:$0xff] }
 0x6a9   : > { %v3818_v42 = vadd.f32 %v3817_v24, %v3705_v9 }
 0x6aa   : > { %v4151_v26 = vadd.f32 %v11447_v41, %v4116_v48 }
 0x6ab   : > { %7274 = vrot.lane.b32.xlu2 %v11594_v10, %s7924_s23 }
 0x6ac   : > { %v4183_v14 = vmax.f32 %v4151_v26, 0.0 }
 0x6ad   : > { %v11603_v39 = vld [vmem:[#allocation2 + $0x110] sm:$0xff]  ;;  %v4257_v54 = vld [vmem:[#allocation2 + $0x118] sm:$0x3] }
 0x6ae   : > { %4215 = vst.msk [vmem:[#allocation2 + $0x141] sm:$0xff] %vm223_vm0, %v4183_v14  ;;  %v7278_v59 = vpack.i.bf16 %v11603_v39, %v11597_v13  ;;  %v4380_v63 = vrot.slane %v11603_v39, 1  ;;  %v4382_v55 = vrot.slane %v4257_v54, 1  ;;  %v4460_v30 = vrot.slane %v11603_v39, 2 }
 0x6af   : > { %v4079_v0 = vld [vmem:[%s8143_s13 + $0xb8] sm:$0xff]  ;;  %v3976_v36 = vpop.permute.xlu1 %3975  ;;  %v4462_v44 = vrot.slane %v4257_v54, 2 }
 0x6b0   : > { %v4114_v29 = vmul.f32 %v11437_v16, %v4079_v0  ;;  %4048 = vst.msk [vmem:[%s8143_s13 + $0xc0] sm:$0xff] %vm4023_vm12, %v3976_v36  ;;  %v3820_v17 = vpop.f32.mrf.mxu2  ;;  %3939 = vrot.lane.b32.xlu1 %v3818_v42, %s7931_s14  ;;  %7279 = vrot.lane.b32.xlu0 %v7278_v59, %s7925_s25  ;;  %v4381_v22 = vsel %vm708_vm2, %v4379_v3, %v4380_v63  ;;  %v4384_v42 = vrot.slane %v11648_v4, 1  ;;  %v4464_v0 = vrot.slane %v11648_v4, 2 }
 0x6b1   : > { %v4383_v40 = vsel %vm708_vm2, %v4380_v63, %v4382_v55  ;;  %v11626_v58 = vsel %vm789_vm4, %v4459_v6, %v4460_v30  ;;  %v11629_v52 = vsel %vm789_vm4, %v4460_v30, %v4462_v44  ;;  %v3821_v34 = vadd.f32 %v3820_v17, %v3708_v61 }
 0x6b2   : > { %v11619_v60 = vpack.i.bf16 %v4383_v40, %v4381_v22  ;;  %v4149_v18 = vadd.f32 %v11447_v41, %v4114_v29  ;;  %v11634_v47 = vpack.i.bf16 %v11629_v52, %v11626_v58 }
 0x6b4   : > { %7284 = vrot.lane.b32.xlu2 %v11619_v60, %s7923_s30  ;;  %v4181_v5 = vmax.f32 %v4149_v18, 0.0 }
 0x6b5   : > { %v4263_v29 = vld [vmem:[#allocation2 + $0x148] sm:$0x3] }
 0x6b6   : > { %4213 = vst.msk [vmem:[#allocation2 + $0x129] sm:$0xff] %vm223_vm0, %v4181_v5  ;;  %v4392_v61 = vrot.slane %v4263_v29, 1 }
 0x6b7   : > { %v4080_v15 = vld [vmem:[%s8143_s13 + $0xc0] sm:$0xff]  ;;  %v3984_v50 = vpop.permute.xlu2 %3983 }
 0x6b8   : > { %v4115_v32 = vmul.f32 %v11437_v16, %v4080_v15  ;;  %4052 = vst.msk [vmem:[%s8143_s13 + $0xe0] sm:$0xff] %vm4023_vm12, %v3984_v50  ;;  %v3823_v27 = vpop.f32.mrf.mxu2  ;;  %7289 = vrot.lane.b32.xlu0 %v11634_v47, %s7924_s23 }
 0x6b9   : > { %v3824_v24 = vadd.f32 %v3823_v27, %v3711_v53  ;;  %v3717_v27 = vadd.f32 %v11367_v21, %v11299_v43 }
 0x6ba   : > { %v4150_v37 = vadd.f32 %v11447_v41, %v4115_v32 }
 0x6bc   : > { %3941 = vrot.lane.b32.xlu2 %v3821_v34, %s7931_s14  ;;  %v4182_v20 = vmax.f32 %v4150_v37, 0.0 }
 0x6bd   : > { %v11650_v38 = vld [vmem:[#allocation2 + $0x128] sm:$0xff]  ;;  %v4260_v48 = vld [vmem:[#allocation2 + $0x130] sm:$0x3] }
 0x6be   : > { %4214 = vst.msk [vmem:[#allocation2 + $0x139] sm:$0xff] %vm223_vm0, %v4182_v20  ;;  %v7293_v26 = vpack.i.bf16 %v11650_v38, %v11648_v4  ;;  %v4385_v9 = vrot.slane %v11650_v38, 1  ;;  %v4465_v3 = vrot.slane %v11650_v38, 2  ;;  %v4467_v33 = vrot.slane %v4260_v48, 2 }
 0x6bf   : > { %v4084_v14 = vld [vmem:[%s8143_s13 + $0xe0] sm:$0xff]  ;;  %v3980_v54 = vpop.permute.xlu0 %3979  ;;  %v4387_v59 = vrot.slane %v4260_v48, 1 }
 0x6c0   : > { %v4119_v63 = vmul.f32 %v11437_v16, %v4084_v14  ;;  %4050 = vst.msk [vmem:[%s8143_s13 + $0xd0] sm:$0xff] %vm4023_vm12, %v3980_v54  ;;  %v3826_v55 = vpop.f32.mrf.mxu2  ;;  %3943 = vrot.lane.b32.xlu0 %v3824_v24, %s7931_s14  ;;  %7294 = vrot.lane.b32.xlu1 %v7293_v26, %s7925_s25  ;;  %v4386_v36 = vsel %vm708_vm2, %v4384_v42, %v4385_v9 }
 0x6c1   : > { %v4388_v30 = vsel %vm708_vm2, %v4385_v9, %v4387_v59  ;;  %v11671_v22 = vsel %vm789_vm4, %v4464_v0, %v4465_v3  ;;  %v11674_v40 = vsel %vm789_vm4, %v4465_v3, %v4467_v33  ;;  %v3714_v14 = vadd.f32 %v11367_v21, %v11276_v57 }
 0x6c2   : > { %v4154_v44 = vadd.f32 %v11447_v41, %v4119_v63  ;;  %v11668_v17 = vpack.i.bf16 %v4388_v30, %v4386_v36  ;;  %v11683_v15 = vpack.i.bf16 %v11674_v40, %v11671_v22  ;;  %v3720_v33 = vadd.f32 %v11367_v21, %v11318_v28 }
 0x6c3   : > { %v3827_v3 = vadd.f32 %v3826_v55, %v3714_v14 }
 0x6c4   : > { %v4186_v6 = vmax.f32 %v4154_v44, 0.0 }
 0x6c5   : > { %v11676_v18 = vld [vmem:[#allocation2 + $0x138] sm:$0xff]  ;;  %v11678_v5 = vld [vmem:[#allocation2 + $0x140] sm:$0xff] }
 0x6c6   : > { %4218 = vst.msk [vmem:[#allocation2 + $0x169] sm:$0xff] %vm223_vm0, %v4186_v6  ;;  %v4389_v50 = vrot.slane %v11676_v18, 1  ;;  %v4390_v32 = vrot.slane %v11678_v5, 1  ;;  %v7308_v57 = vpack.i.bf16 %v11678_v5, %v11676_v18  ;;  %v4469_v30 = vrot.slane %v11676_v18, 2 }
 0x6c7   : > { %v4082_v34 = vld [vmem:[%s8143_s13 + $0xd0] sm:$0xff]  ;;  %v3982_v37 = vpop.permute.xlu1 %3981  ;;  %v4470_v28 = vrot.slane %v11678_v5, 2  ;;  %v4472_v6 = vrot.slane %v4263_v29, 2 }
 0x6c8   : > { %v4117_v53 = vmul.f32 %v11437_v16, %v4082_v34  ;;  %4051 = vst.msk [vmem:[%s8143_s13 + $0xd8] sm:$0xff] %vm4023_vm12, %v3982_v37  ;;  %v3829_v20 = vpop.f32.mrf.mxu2  ;;  %7304 = vrot.lane.b32.xlu1 %v11683_v15, %s7924_s23  ;;  %7299 = vrot.lane.b32.xlu0 %v11668_v17, %s7923_s30  ;;  %v4391_v48 = vsel %vm708_vm2, %v4389_v50, %v4390_v32 }
 0x6c9   : > { %v4393_v24 = vsel %vm708_vm2, %v4390_v32, %v4392_v61  ;;  %v3830_v43 = vadd.f32 %v3829_v20, %v3717_v27  ;;  %v11722_v61 = vsel %vm789_vm4, %v4469_v30, %v4470_v28  ;;  %v11725_v50 = vsel %vm789_vm4, %v4470_v28, %v4472_v6 }
 0x6ca   : > { %v4152_v26 = vadd.f32 %v11447_v41, %v4117_v53  ;;  %v11700_v9 = vpack.i.bf16 %v4393_v24, %v4391_v48  ;;  %13503 = vst [vmem:[#allocation86_spill] sm:$0xff] %v11722_v61  ;;  %v11735_v29 = vpack.i.bf16 %v11725_v50, %v11722_v61  ;;  %v3723_v20 = vadd.f32 %v11367_v21, %v11337_v11 }
 0x6cb   : > { %3947 = vrot.lane.b32.xlu2 %v3830_v43, %s7931_s14  ;;  %13504 = vst [vmem:[#allocation53_spill] sm:$0xff] %v11725_v50 }
 0x6cc   : > { %v4184_v54 = vmax.f32 %v4152_v26, 0.0 }
 0x6ce   : > { %4216 = vst.msk [vmem:[#allocation2 + $0x151] sm:$0xff] %vm223_vm0, %v4184_v54 }
 0x6cf   : > { %v4083_v42 = vld [vmem:[%s8143_s13 + $0xd8] sm:$0xff]  ;;  %v3990_v59 = vpop.permute.xlu2 %3989 }
 0x6d0   : > { %v4118_v63 = vmul.f32 %v11437_v16, %v4083_v42  ;;  %4055 = vst.msk [vmem:[%s8143_s13 + $0xf8] sm:$0xff] %vm4023_vm12, %v3990_v59  ;;  %v3832_v0 = vpop.f32.mrf.mxu2  ;;  %3945 = vrot.lane.b32.xlu1 %v3827_v3, %s7931_s14 }
 0x6d1   : > { %v3833_v36 = vadd.f32 %v3832_v0, %v3720_v33 }
 0x6d2   : > { %v4153_v55 = vadd.f32 %v11447_v41, %v4118_v63 }
 0x6d3   : > { %7309 = vrot.lane.b32.xlu2 %v7308_v57, %s7925_s25  ;;  %3949 = vrot.lane.b32.xlu0 %v3833_v36, %s7931_s14 }
 0x6d4   : > { %v4185_v44 = vmax.f32 %v4153_v55, 0.0 }
 0x6d5   : > { %v11742_v24 = vld [vmem:[#allocation2 + $0x150] sm:$0xff] }
 0x6d6   : > { %4217 = vst.msk [vmem:[#allocation2 + $0x159] sm:$0xff] %vm223_vm0, %v4185_v44  ;;  %v4394_v11 = vrot.slane %v11742_v24, 1  ;;  %v4474_v28 = vrot.slane %v11742_v24, 2 }
 0x6d7   : > { %v4087_v32 = vld [vmem:[%s8143_s13 + $0xf8] sm:$0xff]  ;;  %v3986_v27 = vpop.permute.xlu0 %3985 }
 0x6d8   : > { %v4122_v34 = vmul.f32 %v11437_v16, %v4087_v32  ;;  %4053 = vst.msk [vmem:[%s8143_s13 + $0xe8] sm:$0xff] %vm4023_vm12, %v3986_v27  ;;  %7314 = vrot.lane.b32.xlu1 %v11700_v9, %s7923_s30  ;;  %v3835_v53 = vpop.f32.mrf.mxu2 }
 0x6d9   : > { %v3836_v54 = vadd.f32 %v3835_v53, %v3723_v20 }
 0x6da   : > { %v4157_v37 = vadd.f32 %v11447_v41, %v4122_v34 }
 0x6db   : > { %7319 = vrot.lane.b32.xlu2 %v11735_v29, %s7924_s23 }
 0x6dc   : > { %v4189_v48 = vmax.f32 %v4157_v37, 0.0 }
 0x6dd   : > { %v11744_v43 = vpop.permute.xlu2 %7239  ;;  %v11746_v26 = vld [vmem:[#allocation2 + $0x158] sm:$0xff]  ;;  %v4266_v14 = vld [vmem:[#allocation2 + $0x160] sm:$0x3] }
 0x6de   : > { %13505 = vst [vmem:[#allocation62_spill] sm:$0xff] %v11744_v43  ;;  %v7323_v3 = vpack.i.bf16 %v11746_v26, %v11742_v24  ;;  %v4395_v33 = vrot.slane %v11746_v26, 1  ;;  %v4397_v63 = vrot.slane %v4266_v14, 1  ;;  %v4475_v0 = vrot.slane %v11746_v26, 2 }
 0x6df   : > { %4221 = vst.msk [vmem:[#allocation2 + $0x189] sm:$0xff] %vm223_vm0, %v4189_v48  ;;  %v4085_v42 = vld [vmem:[%s8143_s13 + $0xe8] sm:$0xff]  ;;  %v3988_v59 = vpop.permute.xlu1 %3987  ;;  %v4477_v36 = vrot.slane %v4266_v14, 2  ;;  %v3726_v14 = vadd.f32 %v11367_v21, %v11352_v45 }
 0x6e0   : > { %v4120_v57 = vmul.f32 %v11437_v16, %v4085_v42  ;;  %4054 = vst.msk [vmem:[%s8143_s13 + $0xf0] sm:$0xff] %vm4023_vm12, %v3988_v59  ;;  %3951 = vrot.lane.b32.xlu1 %v3836_v54, %s7931_s14  ;;  %7324 = vrot.lane.b32.xlu0 %v7323_v3, %s7925_s25  ;;  %v4396_v55 = vsel %vm708_vm2, %v4394_v11, %v4395_v33  ;;  %v3838_v48 = vpop.f32.mrf.mxu2  ;;  %v11788_v42 = vld [vmem:[#allocation2 + $0x168] sm:$0xff] }
 0x6e1   : > { %v4398_v30 = vsel %vm708_vm2, %v4395_v33, %v4397_v63  ;;  %v11767_v32 = vsel %vm789_vm4, %v4474_v28, %v4475_v0  ;;  %v11770_v27 = vsel %vm789_vm4, %v4475_v0, %v4477_v36  ;;  %v3839_v33 = vadd.f32 %v3838_v48, %v3726_v14 }
 0x6e2   : > { %v4155_v44 = vadd.f32 %v11447_v41, %v4120_v57  ;;  %v11764_v6 = vpack.i.bf16 %v4398_v30, %v4396_v55  ;;  %13506 = vst [vmem:[#allocation48_spill] sm:$0xff] %v11767_v32  ;;  %v11777_v53 = vpack.i.bf16 %v11770_v27, %v11767_v32  ;;  %v4399_v45 = vrot.slane %v11788_v42, 1 }
 0x6e3   : > { %13507 = vst [vmem:[#allocation50_spill] sm:$0xff] %v11770_v27 }
 0x6e4   : > { %v4187_v34 = vmax.f32 %v4155_v44, 0.0  ;;  %7329 = vrot.lane.b32.xlu2 %v11764_v6, %s7923_s30  ;;  %13508 = vst [vmem:[#allocation61_spill] sm:$0xff] %v11777_v53 }
 0x6e5   : > { %v3930_v37 = vpop.permute.xlu2 %3929 }
 0x6e6   : > { %4219 = vst.msk [vmem:[#allocation2 + $0x171] sm:$0xff] %vm223_vm0, %v4187_v34 }
 0x6e7   : > { %v4086_v20 = vld [vmem:[%s8143_s13 + $0xf0] sm:$0xff]  ;;  %4025 = vst.msk [vmem:[%s8143_s13 + $0x8] sm:$0xff] %vm4023_vm12, %v3930_v37 }
 0x6e8   : > { %v4121_v54 = vmul.f32 %v11437_v16, %v4086_v20  ;;  %7334 = vrot.lane.b32.xlu0 %v11777_v53, %s7924_s23  ;;  %v4479_v20 = vrot.slane %v11788_v42, 2 }
 0x6ea   : > { %v4156_v3 = vadd.f32 %v11447_v41, %v4121_v54 }
 0x6ec   : > { %v4188_v59 = vmax.f32 %v4156_v3, 0.0  ;;  %3953 = vrot.lane.b32.xlu2 %v3839_v33, %s7931_s14 }
 0x6ed   : > { %v3928_v11 = vpop.permute.xlu1 %3927  ;;  %v11791_v63 = vld [vmem:[#allocation2 + $0x170] sm:$0xff]  ;;  %v4269_v0 = vld [vmem:[#allocation2 + $0x178] sm:$0x3] }
 0x6ee   : > { %4220 = vst.msk [vmem:[#allocation2 + $0x181] sm:$0xff] %vm223_vm0, %v4188_v59  ;;  %v4057_v21 = vld [vmem:[%s8143_s13 + $0x8] sm:$0xff]  ;;  %v7338_v36 = vpack.i.bf16 %v11791_v63, %v11788_v42  ;;  %v4400_v57 = vrot.slane %v11791_v63, 1  ;;  %v4402_v55 = vrot.slane %v4269_v0, 1  ;;  %v4480_v30 = vrot.slane %v11791_v63, 2 }
 0x6ef   : > { %v4092_v28 = vmul.f32 %v11437_v16, %v4057_v21  ;;  %4024 = vst.msk [vmem:[%s8143_s13] sm:$0xff] %vm4023_vm12, %v3928_v11  ;;  %v4482_v44 = vrot.slane %v4269_v0, 2  ;;  %v4272_v59 = vld [vmem:[#allocation2 + $0x190] sm:$0x3] }
 0x6f0   : > { %7339 = vrot.lane.b32.xlu1 %v7338_v36, %s7925_s25  ;;  %v4401_v34 = vsel %vm708_vm2, %v4399_v45, %v4400_v57  ;;  %v4403_v37 = vsel %vm708_vm2, %v4400_v57, %v4402_v55  ;;  %v11813_v3 = vsel %vm789_vm4, %v4479_v20, %v4480_v30  ;;  %v4490_v57 = vrot.slane %v4272_v59, 1 }
 0x6f1   : > { %v4127_v48 = vadd.f32 %v11447_v41, %v4092_v28  ;;  %v11808_v14 = vpack.i.bf16 %v4403_v37, %v4401_v34  ;;  %13511 = vst [vmem:[#allocation87_spill] sm:$0xff] %v11813_v3  ;;  %v11816_v33 = vsel %vm789_vm4, %v4480_v30, %v4482_v44 }
 0x6f2   : > { %v11810_v54 = vpop.permute.xlu0 %7234  ;;  %13512 = vst [vmem:[#allocation15_spill] sm:$0xff] %v11816_v33  ;;  %v11825_v36 = vpack.i.bf16 %v11816_v33, %v11813_v3 }
 0x6f3   : > { %13509 = vst [vmem:[#allocation68_spill] sm:$0xff] %v11808_v14  ;;  %v4159_v11 = vmax.f32 %v4127_v48, 0.0  ;;  %7344 = vrot.lane.b32.xlu0 %v11808_v14, %s7923_s30 }
 0x6f4   : > { %13510 = vst [vmem:[#allocation79_spill] sm:$0xff] %v11810_v54 }
 0x6f5   : > { %4191 = vst.msk [vmem:[#allocation2 + $0x21] sm:$0xff] %vm223_vm0, %v4159_v11  ;;  %v3936_v0 = vpop.permute.xlu2 %3935  ;;  %v4270_v45 = vld [vmem:[#allocation2 + $0x180] sm:$0xff]  ;;  %v11821_v21 = vld [vmem:[#allocation2 + $0x188] sm:$0xff] }
 0x6f6   : > { %13513 = vst [vmem:[#allocation51_spill] sm:$0xff] %v11821_v21  ;;  %v4056_v55 = vld [vmem:[%s8143_s13] sm:$0xff]  ;;  %v11831_v30 = vpack.i.bf16 %v11821_v21, %v4270_v45  ;;  %v4487_v28 = vrot.slane %v4270_v45, 1  ;;  %v4488_v44 = vrot.slane %v11821_v21, 1  ;;  %v4492_v37 = vrot.slane %v4270_v45, 2 }
 0x6f7   : > { %13514 = vst [vmem:[#allocation58_spill] sm:$0xff] %v11825_v36  ;;  %v4091_v34 = vmul.f32 %v11437_v16, %v4056_v55  ;;  %v13184_v20 = vrot.slane %v11821_v21, 2 }
 0x6f8   : > { %4028 = vst.msk [vmem:[%s8143_s13 + $0x20] sm:$0xff] %vm4023_vm12, %v3936_v0  ;;  %7354 = vrot.lane.b32.xlu2 %v11831_v30, %s7925_s25  ;;  %7349 = vrot.lane.b32.xlu1 %v11825_v36, %s7924_s23  ;;  %v4489_v48 = vsel %vm708_vm2, %v4487_v28, %v4488_v44  ;;  %v4491_v59 = vsel %vm708_vm2, %v4488_v44, %v4490_v57 }
 0x6f9   : > { %13515 = vst [vmem:[#allocation70_spill] sm:$0xff] %v11831_v30  ;;  %v4126_v11 = vadd.f32 %v11447_v41, %v4091_v34  ;;  %v11843_v0 = vpack.i.bf16 %v4491_v59, %v4489_v48  ;;  %v11848_v45 = vsel %vm789_vm4, %v4492_v37, %v13184_v20 }
 0x6fa   : > { %13517 = vst [vmem:[#allocation20_spill] sm:$0xff] %v11848_v45  ;;  %v11850_v55 = vpop.permute.xlu0 %7244 }
 0x6fb   : > { %13516 = vst [vmem:[#allocation80_spill] sm:$0xff] %v11843_v0  ;;  %v4158_v43 = vmax.f32 %v4126_v11, 0.0 }
 0x6fc   : > { %13518 = vst [vmem:[#allocation21_spill] sm:$0xff] %v11850_v55  ;;  %v4227_v37 = vld [vmem:[#allocation2 + $0x28] sm:$0x3] }
 0x6fd   : > { %4190 = vst.msk [vmem:[#allocation2 + $0x19] sm:$0xff] %vm223_vm0, %v4158_v43  ;;  %v11854_v33 = vpop.permute.xlu2 %7264  ;;  %v4332_v20 = vrot.slane %v4227_v37, 1  ;;  %v4412_v55 = vrot.slane %v4227_v37, 2 }
 0x6fe   : > { %13519 = vst [vmem:[#allocation24_spill] sm:$0xff] %v11854_v33 }
 0x6ff   : > { %v4060_v54 = vld [vmem:[%s8143_s13 + $0x20] sm:$0xff] }
 0x700   : > { %v4095_v28 = vmul.f32 %v11437_v16, %v4060_v54 }
 0x702   : > { %v4130_v57 = vadd.f32 %v11447_v41, %v4095_v28  ;;  %v11858_v34 = vpop.permute.xlu1 %7249  ;;  %v3932_v48 = vpop.permute.xlu0 %3931 }
 0x703   : > { %13520 = vst [vmem:[#allocation25_spill] sm:$0xff] %v11858_v34 }
 0x704   : > { %v4162_v44 = vmax.f32 %v4130_v57, 0.0  ;;  %4026 = vst.msk [vmem:[%s8143_s13 + $0x10] sm:$0xff] %vm4023_vm12, %v3932_v48  ;;  %v11863_v59 = vld [vmem:[#allocation2 + $0x18] sm:$0xff]  ;;  %v11865_v43 = vld [vmem:[#allocation2 + $0x20] sm:$0xff] }
 0x705   : > { %v11867_v11 = vpop.permute.xlu2 %7274  ;;  %v7358_v54 = vpack.i.bf16 %v11865_v43, %v11863_v59  ;;  %v4329_v28 = vrot.slane %v11863_v59, 1  ;;  %v4330_v57 = vrot.slane %v11865_v43, 1  ;;  %v4409_v48 = vrot.slane %v11863_v59, 2 }
 0x706   : > { %4194 = vst.msk [vmem:[#allocation2 + $0x49] sm:$0xff] %vm223_vm0, %v4162_v44  ;;  %v4410_v44 = vrot.slane %v11865_v43, 2 }
 0x707   : > { %7359 = vrot.lane.b32.xlu2 %v7358_v54, %s7925_s25  ;;  %v4331_v33 = vsel %vm708_vm2, %v4329_v28, %v4330_v57  ;;  %v4333_v34 = vsel %vm708_vm2, %v4330_v57, %v4332_v20 }
 0x708   : > { %v7363_v21 = vpack.i.bf16 %v4333_v34, %v4331_v33  ;;  %v4411_v27 = vsel %vm789_vm4, %v4409_v48, %v4410_v44  ;;  %v4413_v0 = vsel %vm789_vm4, %v4410_v44, %v4412_v55 }
 0x709   : > { %v7368_v33 = vpack.i.bf16 %v4413_v0, %v4411_v27  ;;  %v434_v27 = vld [vmem:[%s13016_s3 + $0x1a0] sm:$0xff]  ;;  %v432_v0 = vld [vmem:[%s13016_s3 + $0x190] sm:$0xff] }
 0x70a   : > { %v11879_v45 = vpop.permute.xlu1 %7259  ;;  %7364 = vrot.lane.b32.xlu1 %v7363_v21, %s7923_s30  ;;  %7374 = vrot.lane.b32.xlu0 %v7363_v21, %s7926_s26  ;;  %v11887_v28 = vpop.permute.xlu0 %7254 }
 0x70b   : > { %v4058_v3 = vld [vmem:[%s8143_s13 + $0x10] sm:$0xff]  ;;  %13521 = vst [vmem:[#allocation22_spill] sm:$0xff] %v11879_v45 }
 0x70c   : > { %v4093_v30 = vmul.f32 %v11437_v16, %v4058_v3  ;;  %13522 = vst [vmem:[#allocation23_spill] sm:$0xff] %v11887_v28  ;;  %v435_v3 = vld [vmem:[%s13016_s3 + $0x1a8] sm:$0xff] }
 0x70d   : > { %5600 = vmatpush.msrb.mxu3 %v435_v3 }
 0x70e   : > { %v4128_v54 = vadd.f32 %v11447_v41, %v4093_v30  ;;  %v11889_v20 = vpop.permute.xlu2 %7284  ;;  %v433_v30 = vld [vmem:[%s13016_s3 + $0x198] sm:$0xff] }
 0x70f   : > { %7369 = vrot.lane.b32.xlu2 %v7368_v33, %s7924_s23  ;;  %5601 = vmatpush.msrb.mxu3 %v434_v27 }
 0x710   : > { %v4160_v34 = vmax.f32 %v4128_v54, 0.0  ;;  %5473 = vmatpush.msrb.mxu1 %v433_v30 }
 0x712   : > { %4192 = vst.msk [vmem:[#allocation2 + $0x31] sm:$0xff] %vm223_vm0, %v4160_v34  ;;  %v3934_v21 = vpop.permute.xlu1 %3933  ;;  %7379 = vrot.lane.b32.xlu1 %v7368_v33, %s7927_s6  ;;  %5474 = vmatpush.msrb.mxu1 %v432_v0 }
 0x713   : > { %4027 = vst.msk [vmem:[%s8143_s13 + $0x18] sm:$0xff] %vm4023_vm12, %v3934_v21 }
 0x715   : > { %v3938_v37 = vpop.permute.xlu0 %3937 }
 0x716   : > { %v3942_v55 = vpop.permute.xlu2 %3941  ;;  %4029 = vst.msk [vmem:[%s8143_s13 + $0x28] sm:$0xff] %vm4023_vm12, %v3938_v37 }
 0x717   : > { %4031 = vst.msk [vmem:[%s8143_s13 + $0x38] sm:$0xff] %vm4023_vm12, %v3942_v55 }
 0x71a   : > { %v4059_v57 = vld [vmem:[%s8143_s13 + $0x18] sm:$0xff]  ;;  %v7270_v48 = vpop.permute.xlu1 %7269 }
 0x71b   : > { %v4094_v44 = vmul.f32 %v11437_v16, %v4059_v57  ;;  %v7272_v34 = vunpack.i.h.bf16 %v7270_v48  ;;  %v7271_v3 = vunpack.i.l.bf16 %v7270_v48  ;;  %v431_v48 = vld [vmem:[%s13016_s3 + $0x188] sm:$0xff] }
 0x71c   : > { %5475 = vmatpush.msrb.mxu1 %v431_v48  ;;  %v7286_v48 = vunpack.i.l.bf16 %v11889_v20 }
 0x71d   : > { %v4129_v54 = vadd.f32 %v11447_v41, %v4094_v44  ;;  %v4061_v27 = vld [vmem:[%s8143_s13 + $0x28] sm:$0xff]  ;;  %v5203_v37 = vsel %vm223_vm0, %v11537_v8, %v7272_v34  ;;  %v5202_v57 = vsel %vm223_vm0, %v11535_v7, %v7271_v3  ;;  %v7277_v44 = vunpack.i.h.bf16 %v11867_v11 }
 0x71e   : > { %v4063_v33 = vld [vmem:[%s8143_s13 + $0x38] sm:$0xff]  ;;  %v4096_v30 = vmul.f32 %v11437_v16, %v4061_v27  ;;  %v5204_v28 = vsel %vm223_vm0, %v11597_v13, %v7286_v48  ;;  %v11983_v13 = vld [vmem:[%s13014_s1 + $0x2] ss:$0 sm:$0xff] }
 0x71f   : > { %v4098_v21 = vmul.f32 %v11437_v16, %v4063_v33  ;;  %v4161_v45 = vmax.f32 %v4129_v54, 0.0  ;;  %v7276_v54 = vunpack.i.l.bf16 %v11867_v11  ;;  %v5235_v3 = vsel %vm1600_vm6, %v5203_v37, %v7277_v44 }
 0x720   : > { %v4131_v0 = vadd.f32 %v11447_v41, %v4096_v30 }
 0x721   : > { %v4133_v55 = vadd.f32 %v11447_v41, %v4098_v21  ;;  %4193 = vst.msk [vmem:[#allocation2 + $0x39] sm:$0xff] %vm223_vm0, %v4161_v45  ;;  %v5234_v7 = vsel %vm1600_vm6, %v5202_v57, %v7276_v54 }
 0x722   : > { %v3940_v21 = vpop.permute.xlu1 %3939  ;;  %v7280_v45 = vpop.permute.xlu0 %7279  ;;  %v4163_v41 = vmax.f32 %v4131_v0, 0.0  ;;  %v7287_v0 = vunpack.i.h.bf16 %v11889_v20 }
 0x723   : > { %v4165_v33 = vmax.f32 %v4133_v55, 0.0  ;;  %4030 = vst.msk [vmem:[%s8143_s13 + $0x30] sm:$0xff] %vm4023_vm12, %v3940_v21  ;;  %v7282_v8 = vunpack.i.h.bf16 %v7280_v45  ;;  %v7281_v34 = vunpack.i.l.bf16 %v7280_v45  ;;  %v11945_v55 = vld [vmem:[#allocation2 + $0x30] sm:$0xff] }
 0x724   : > { %4195 = vst.msk [vmem:[#allocation2 + $0x51] sm:$0xff] %vm223_vm0, %v4163_v41  ;;  %v4414_v54 = vrot.slane %v11945_v55, 2 }
 0x725   : > { %4197 = vst.msk [vmem:[#allocation2 + $0x69] sm:$0xff] %vm223_vm0, %v4165_v33  ;;  %v11938_v11 = vsel %vm1633_vm5, %v5235_v3, %v7282_v8  ;;  %v11941_v27 = vsel %vm1633_vm5, %v5234_v7, %v7281_v34  ;;  %v3948_v30 = vpop.permute.xlu2 %3947  ;;  %v4334_v8 = vrot.slane %v11945_v55, 1 }
 0x726   : > { %13523 = vst [vmem:[#allocation26_spill] sm:$0xff] %v11938_v11 }
 0x727   : > { %13524 = vst [vmem:[#allocation27_spill] sm:$0xff] %v11941_v27  ;;  %v5205_v27 = vsel %vm223_vm0, %v11603_v39, %v7287_v0 }
 0x728   : > { %4034 = vst.msk [vmem:[%s8143_s13 + $0x50] sm:$0xff] %vm4023_vm12, %v3948_v30  ;;  %v11949_v57 = vld [vmem:[#allocation2 + $0x38] sm:$0xff]  ;;  %v4230_v37 = vld [vmem:[#allocation2 + $0x40] sm:$0x3] }
 0x729   : > { %v7388_v44 = vpack.i.bf16 %v11949_v57, %v11945_v55  ;;  %v4415_v33 = vrot.slane %v11949_v57, 2  ;;  %v4417_v41 = vrot.slane %v4230_v37, 2  ;;  %v4335_v34 = vrot.slane %v11949_v57, 1 }
 0x72a   : > { %v4062_v21 = vld [vmem:[%s8143_s13 + $0x30] sm:$0xff]  ;;  %v7290_v45 = vpop.permute.xlu0 %7289  ;;  %v4337_v7 = vrot.slane %v4230_v37, 1 }
 0x72b   : > { %v4097_v20 = vmul.f32 %v11437_v16, %v4062_v21  ;;  %v7292_v3 = vunpack.i.h.bf16 %v7290_v45  ;;  %v7291_v30 = vunpack.i.l.bf16 %v7290_v45  ;;  %7389 = vrot.lane.b32.xlu2 %v7388_v44, %s7928_s8  ;;  %7384 = vrot.lane.b32.xlu0 %v7388_v44, %s7925_s25  ;;  %v4416_v11 = vsel %vm789_vm4, %v4414_v54, %v4415_v33  ;;  %v11972_v21 = vld [vmem:[%s13015_s2 + $0x2] ss:$0 sm:$0xff] }
 0x72c   : > { %6009 = vmatmul.msk.f32.vlgmr.msrb.gmra.mxu3 %vm223_vm0, %v4416_v11  ;;  %v4336_v37 = vsel %vm708_vm2, %v4334_v8, %v4335_v34  ;;  %v4338_v16 = vsel %vm708_vm2, %v4335_v34, %v4337_v7  ;;  %v4418_v8 = vsel %vm789_vm4, %v4415_v33, %v4417_v41 }
 0x72d   : > { %v4132_v44 = vadd.f32 %v11972_v21, %v4097_v20  ;;  %v5237_v45 = vsel %vm1600_vm6, %v5205_v27, %v7292_v3  ;;  %v5236_v39 = vsel %vm1600_vm6, %v5204_v28, %v7291_v30  ;;  %v11978_v0 = vpop.permute.xlu2 %7309  ;;  %v7403_v7 = vpack.i.bf16 %v4338_v16, %v4336_v37  ;;  %v430_v28 = vld [vmem:[%s13016_s3 + $0x180] sm:$0xff]  ;;  %v429_v16 = vld [vmem:[%s13016_s3 + $0x178] sm:$0xff] }
 0x72e   : > { %v7398_v27 = vpack.i.bf16 %v4418_v8, %v4416_v11  ;;  %5476 = vmatpush.msrb.mxu1 %v430_v28  ;;  %v11997_v11 = vld [vmem:[#allocation2 + $0x50] sm:$0xff]  ;;  %v7311_v14 = vunpack.i.l.bf16 %v11978_v0 }
 0x72f   : > { %v4066_v54 = vld [vmem:[%s8143_s13 + $0x50] sm:$0xff]  ;;  %v4164_v34 = vmax.f32 %v4132_v44, 0.0  ;;  %7404 = vrot.lane.b32.xlu1 %v7403_v7, %s7926_s26  ;;  %13525 = vst [vmem:[#allocation30_spill] sm:$0xff] %v11997_v11  ;;  %v4420_v44 = vrot.slane %v11997_v11, 2  ;;  %v4340_v28 = vrot.slane %v11997_v11, 1 }
 0x730   : > { %v4101_v48 = vmul.f32 %v11983_v13, %v4066_v54  ;;  %5477 = vmatpush.msrb.mxu1 %v429_v16 }
 0x731   : > { %4196 = vst.msk [vmem:[#allocation2 + $0x61] sm:$0xff] %vm223_vm0, %v4164_v34 }
 0x732   : > { %v4136_v20 = vadd.f32 %v11972_v21, %v4101_v48  ;;  %v7295_v30 = vpop.permute.xlu1 %7294  ;;  %v3944_v32 = vpop.permute.xlu0 %3943  ;;  %v4233_v48 = vld [vmem:[#allocation2 + $0x58] sm:$0x3] }
 0x733   : > { %v7297_v54 = vunpack.i.h.bf16 %v7295_v30  ;;  %v7296_v36 = vunpack.i.l.bf16 %v7295_v30  ;;  %4032 = vst.msk [vmem:[%s8143_s13 + $0x40] sm:$0xff] %vm4023_vm12, %v3944_v32  ;;  %7399 = vrot.lane.b32.xlu0 %v7398_v27, %s7924_s23  ;;  %7394 = vrot.lane.b32.xlu2 %v7403_v7, %s7923_s30  ;;  %v12009_v32 = vld [vmem:[#allocation2 + $0x48] sm:$0xff]  ;;  %v4422_v61 = vrot.slane %v4233_v48, 2 }
 0x734   : > { %v4168_v3 = vmax.f32 %v4136_v20, 0.0  ;;  %6010 = vmatmul.msk.f32.gmra.mxu3 %vm223_vm0, %v4418_v8  ;;  %13528 = vst [vmem:[#allocation29_spill] sm:$0xff] %v12009_v32  ;;  %v4419_v8 = vrot.slane %v12009_v32, 2 }
 0x735   : > { %v12002_v33 = vsel %vm1633_vm5, %v5236_v39, %v7296_v36  ;;  %v12005_v41 = vsel %vm1633_vm5, %v5237_v45, %v7297_v54  ;;  %v12007_v37 = vpop.permute.xlu2 %7319  ;;  %v7423_v36 = vpack.i.bf16 %v11997_v11, %v12009_v32 }
 0x736   : > { %4200 = vst.msk [vmem:[#allocation2 + $0x91] sm:$0xff] %vm223_vm0, %v4168_v3  ;;  %v4421_v20 = vsel %vm789_vm4, %v4419_v8, %v4420_v44  ;;  %v4342_v3 = vrot.slane %v4233_v48, 1 }
 0x737   : > { %13526 = vst [vmem:[#allocation31_spill] sm:$0xff] %v12002_v33  ;;  %7414 = vrot.lane.b32.xlu1 %v7398_v27, %s7927_s6  ;;  %v4339_v33 = vrot.slane %v12009_v32, 1 }
 0x738   : > { %13527 = vst [vmem:[#allocation28_spill] sm:$0xff] %v12005_v41  ;;  %v4343_v50 = vsel %vm708_vm2, %v4340_v28, %v4342_v3 }
 0x73a   : > { %v4064_v45 = vld [vmem:[%s8143_s13 + $0x40] sm:$0xff]  ;;  %v7305_v39 = vpop.permute.xlu1 %7304  ;;  %v7300_v34 = vpop.permute.xlu0 %7299 }
 0x73b   : > { %v4099_v30 = vmul.f32 %v11983_v13, %v4064_v45  ;;  %v7307_v54 = vunpack.i.h.bf16 %v7305_v39  ;;  %v7306_v16 = vunpack.i.l.bf16 %v7305_v39  ;;  %v7302_v41 = vunpack.i.h.bf16 %v7300_v34  ;;  %7409 = vrot.lane.b32.xlu0 %v7403_v7, %s7929_s9  ;;  %7424 = vrot.lane.b32.xlu2 %v7423_v36, %s7928_s8 }
 0x73c   : > { %v7301_v27 = vunpack.i.l.bf16 %v7300_v34  ;;  %6011 = vmatmul.msk.f32.gmra.mxu3 %vm223_vm0, %v4421_v20  ;;  %v4341_v34 = vsel %vm708_vm2, %v4339_v33, %v4340_v28 }
 0x73d   : > { %v4134_v8 = vadd.f32 %v11972_v21, %v4099_v30  ;;  %v5207_v11 = vsel %vm223_vm0, %v11650_v38, %v7302_v41  ;;  %v7312_v30 = vunpack.i.h.bf16 %v11978_v0  ;;  %v7438_v38 = vpack.i.bf16 %v4343_v50, %v4341_v34  ;;  %v12060_v0 = vld [vmem:[#allocation2 + $0x60] sm:$0xff] }
 0x73e   : > { %v5239_v45 = vsel %vm1600_vm6, %v5207_v11, %v7307_v54  ;;  %v5206_v39 = vsel %vm223_vm0, %v11648_v4, %v7301_v27  ;;  %v12034_v7 = vpop.permute.xlu2 %7329  ;;  %v428_v4 = vld [vmem:[%s13016_s3 + $0x170] sm:$0xff]  ;;  %v427_v11 = vld [vmem:[%s13016_s3 + $0x168] sm:$0xff]  ;;  %v4423_v50 = vsel %vm789_vm4, %v4420_v44, %v4422_v61  ;;  %v4424_v28 = vrot.slane %v12060_v0, 2 }
 0x73f   : > { %v4166_v53 = vmax.f32 %v4134_v8, 0.0  ;;  %v5238_v32 = vsel %vm1600_vm6, %v5206_v39, %v7306_v16  ;;  %7419 = vrot.lane.b32.xlu1 %v7423_v36, %s7925_s25  ;;  %5478 = vmatpush.msrb.mxu1 %v428_v4  ;;  %v7433_v36 = vpack.i.bf16 %v4423_v50, %v4421_v20  ;;  %v4236_v44 = vld [vmem:[#allocation2 + $0x70] sm:$0x3]  ;;  %v4344_v54 = vrot.slane %v12060_v0, 1  ;;  %v426_v20 = vld [vmem:[%s13016_s3 + $0x160] sm:$0xff] }
 0x740   : > { %v12049_v33 = vsel %vm1633_vm5, %v5238_v32, %v7311_v14  ;;  %v12062_v14 = vld [vmem:[#allocation2 + $0x68] sm:$0xff]  ;;  %v7322_v4 = vunpack.i.h.bf16 %v12007_v37 }
 0x741   : > { %4198 = vst.msk [vmem:[#allocation2 + $0x79] sm:$0xff] %vm223_vm0, %v4166_v53  ;;  %v12052_v53 = vsel %vm1633_vm5, %v5239_v45, %v7312_v30  ;;  %5479 = vmatpush.msrb.mxu1 %v427_v11  ;;  %v4425_v3 = vrot.slane %v12062_v14, 2  ;;  %v7453_v61 = vpack.i.bf16 %v12062_v14, %v12060_v0  ;;  %v4345_v16 = vrot.slane %v12062_v14, 1 }
 0x742   : > { %13529 = vst [vmem:[#allocation32_spill] sm:$0xff] %v12049_v33  ;;  %v3946_v41 = vpop.permute.xlu1 %3945  ;;  %v7321_v11 = vunpack.i.l.bf16 %v12007_v37 }
 0x743   : > { %13530 = vst [vmem:[#allocation33_spill] sm:$0xff] %v12052_v53  ;;  %7439 = vrot.lane.b32.xlu2 %v7438_v38, %s7926_s26  ;;  %7429 = vrot.lane.b32.xlu0 %v7438_v38, %s7923_s30  ;;  %v4426_v30 = vsel %vm789_vm4, %v4424_v28, %v4425_v3 }
 0x744   : > { %4033 = vst.msk [vmem:[%s8143_s13 + $0x48] sm:$0xff] %vm4023_vm12, %v3946_v41  ;;  %6012 = vmatmul.msk.f32.gmra.mxu3 %vm223_vm0, %v4423_v50  ;;  %5480 = vmatpush.msrb.mxu1 %v426_v20  ;;  %v4347_v41 = vrot.slane %v4236_v44, 1 }
 0x745   : > { %v3950_v32 = vpop.permute.xlu0 %3949 }
 0x746   : > { %v3954_v48 = vpop.permute.xlu2 %3953  ;;  %4035 = vst.msk [vmem:[%s8143_s13 + $0x58] sm:$0xff] %vm4023_vm12, %v3950_v32  ;;  %v4348_v53 = vsel %vm708_vm2, %v4345_v16, %v4347_v41 }
 0x747   : > { %4037 = vst.msk [vmem:[%s8143_s13 + $0x68] sm:$0xff] %vm4023_vm12, %v3954_v48  ;;  %7434 = vrot.lane.b32.xlu1 %v7433_v36, %s7924_s23 }
 0x74a   : > { %v7315_v8 = vpop.permute.xlu1 %7314 }
 0x74b   : > { %v4065_v27 = vld [vmem:[%s8143_s13 + $0x48] sm:$0xff]  ;;  %v7317_v39 = vunpack.i.h.bf16 %v7315_v8  ;;  %v7316_v34 = vunpack.i.l.bf16 %v7315_v8  ;;  %7454 = vrot.lane.b32.xlu2 %v7453_v61, %s7925_s25  ;;  %7444 = vrot.lane.b32.xlu0 %v7438_v38, %s7929_s9  ;;  %v4346_v38 = vsel %vm708_vm2, %v4344_v54, %v4345_v16 }
 0x74c   : > { %v4100_v45 = vmul.f32 %v11983_v13, %v4065_v27  ;;  %6013 = vmatmul.msk.f32.gmra.mxu3 %vm223_vm0, %v4426_v30  ;;  %v7473_v54 = vpack.i.bf16 %v4348_v53, %v4346_v38 }
 0x74d   : > { %v4067_v32 = vld [vmem:[%s8143_s13 + $0x58] sm:$0xff]  ;;  %v5209_v48 = vsel %vm223_vm0, %v11678_v5, %v7317_v39  ;;  %v5208_v20 = vsel %vm223_vm0, %v11676_v18, %v7316_v34  ;;  %v4427_v39 = vrot.slane %v4236_v44, 2  ;;  %v425_v34 = vld [vmem:[%s13016_s3 + $0x158] sm:$0xff] }
 0x74e   : > { %v4135_v50 = vadd.f32 %v11972_v21, %v4100_v45  ;;  %v4069_v27 = vld [vmem:[%s8143_s13 + $0x68] sm:$0xff]  ;;  %v4102_v28 = vmul.f32 %v11983_v13, %v4067_v32  ;;  %v5240_v8 = vsel %vm1600_vm6, %v5208_v20, %v7321_v11  ;;  %v5241_v37 = vsel %vm1600_vm6, %v5209_v48, %v7322_v4  ;;  %5481 = vmatpush.msrb.mxu1 %v425_v34 }
 0x74f   : > { %v4104_v33 = vmul.f32 %v11983_v13, %v4069_v27  ;;  %7449 = vrot.lane.b32.xlu1 %v7433_v36, %s7927_s6  ;;  %v7332_v32 = vunpack.i.h.bf16 %v12034_v7  ;;  %v7331_v20 = vunpack.i.l.bf16 %v12034_v7 }
 0x750   : > { %v4167_v45 = vmax.f32 %v4135_v50, 0.0  ;;  %v4137_v5 = vadd.f32 %v11972_v21, %v4102_v28  ;;  %v424_v28 = vld [vmem:[%s13016_s3 + $0x150] sm:$0xff] }
 0x751   : > { %v4139_v18 = vadd.f32 %v11972_v21, %v4104_v33  ;;  %v4428_v33 = vsel %vm789_vm4, %v4425_v3, %v4427_v39  ;;  %5482 = vmatpush.msrb.mxu1 %v424_v28  ;;  %v5211_v39 = vsel %vm223_vm0, %v11746_v26, %v7332_v32  ;;  %v5210_v34 = vsel %vm223_vm0, %v11742_v24, %v7331_v20  ;;  %v423_v24 = vld [vmem:[%s13016_s3 + $0x148] sm:$0xff] }
 0x752   : > { %4199 = vst.msk [vmem:[#allocation2 + $0x81] sm:$0xff] %vm223_vm0, %v4167_v45  ;;  %v4169_v4 = vmax.f32 %v4137_v5, 0.0  ;;  %v3952_v11 = vpop.permute.xlu1 %3951  ;;  %v7325_v41 = vpop.permute.xlu0 %7324  ;;  %v7468_v3 = vpack.i.bf16 %v4428_v33, %v4426_v30 }
 0x753   : > { %v4171_v16 = vmax.f32 %v4139_v18, 0.0  ;;  %4036 = vst.msk [vmem:[%s8143_s13 + $0x60] sm:$0xff] %vm4023_vm12, %v3952_v11  ;;  %7459 = vrot.lane.b32.xlu2 %v7453_v61, %s7928_s8  ;;  %7474 = vrot.lane.b32.xlu0 %v7473_v54, %s7926_s26  ;;  %v7327_v53 = vunpack.i.h.bf16 %v7325_v41  ;;  %v7326_v36 = vunpack.i.l.bf16 %v7325_v41  ;;  %v12120_v61 = vld [vmem:[#allocation2 + $0x78] sm:$0xff] }
 0x754   : > { %4201 = vst.msk [vmem:[#allocation2 + $0x99] sm:$0xff] %vm223_vm0, %v4169_v4  ;;  %6014 = vmatmul.msk.f32.gmra.mxu3 %vm223_vm0, %v4428_v33  ;;  %v4429_v38 = vrot.slane %v12120_v61, 2  ;;  %5483 = vmatpush.msrb.mxu1 %v423_v24 }
 0x755   : > { %4203 = vst.msk [vmem:[#allocation2 + $0xb1] sm:$0xff] %vm223_vm0, %v4171_v16  ;;  %v12115_v44 = vsel %vm1633_vm5, %v5241_v37, %v7327_v53  ;;  %v12118_v50 = vsel %vm1633_vm5, %v5240_v8, %v7326_v36  ;;  %v4349_v53 = vrot.slane %v12120_v61, 1 }
 0x756   : > { %13531 = vst [vmem:[#allocation71_spill] sm:$0xff] %v12115_v44 }
 0x757   : > { %7464 = vrot.lane.b32.xlu1 %v7473_v54, %s7923_s30 }
 0x759   : > { %v12123_v48 = vld [vmem:[#allocation2 + $0x80] sm:$0xff]  ;;  %v4239_v18 = vld [vmem:[#allocation2 + $0x88] sm:$0x3] }
 0x75a   : > { %v4430_v27 = vrot.slane %v12123_v48, 2  ;;  %v4068_v8 = vld [vmem:[%s8143_s13 + $0x60] sm:$0xff]  ;;  %v7335_v45 = vpop.permute.xlu0 %7334  ;;  %v4432_v16 = vrot.slane %v4239_v18, 2  ;;  %v4352_v41 = vrot.slane %v4239_v18, 1  ;;  %v4350_v33 = vrot.slane %v12123_v48, 1 }
 0x75b   : > { %v4103_v37 = vmul.f32 %v11983_v13, %v4068_v8  ;;  %7469 = vrot.lane.b32.xlu2 %v7468_v3, %s7924_s23  ;;  %7479 = vrot.lane.b32.xlu0 %v7473_v54, %s7929_s9  ;;  %v7337_v30 = vunpack.i.h.bf16 %v7335_v45  ;;  %v7336_v5 = vunpack.i.l.bf16 %v7335_v45  ;;  %v7493_v26 = vpack.i.bf16 %v12123_v48, %v12120_v61  ;;  %v12160_v28 = vld [vmem:[#allocation2 + $0x98] sm:$0xff] }
 0x75c   : > { %v4431_v7 = vsel %vm789_vm4, %v4429_v38, %v4430_v27  ;;  %v4433_v20 = vsel %vm789_vm4, %v4430_v27, %v4432_v16  ;;  %v4353_v38 = vsel %vm708_vm2, %v4350_v33, %v4352_v41  ;;  %v4435_v27 = vrot.slane %v12160_v28, 2 }
 0x75d   : > { %6015 = vmatmul.msk.f32.gmra.mxu3 %vm223_vm0, %v4431_v7  ;;  %v4138_v13 = vadd.f32 %v11972_v21, %v4103_v37  ;;  %v5243_v4 = vsel %vm1600_vm6, %v5211_v39, %v7337_v30  ;;  %v5242_v11 = vsel %vm1600_vm6, %v5210_v34, %v7336_v5  ;;  %v12168_v30 = vld [vmem:[#allocation2 + $0x90] sm:$0xff]  ;;  %v7355_v34 = vpop.permute.xlu2 %7354 }
 0x75f   : > { %v4170_v54 = vmax.f32 %v4138_v13, 0.0  ;;  %7484 = vrot.lane.b32.xlu1 %v7468_v3, %s7927_s6  ;;  %v4351_v3 = vsel %vm708_vm2, %v4349_v53, %v4350_v33  ;;  %v7503_v13 = vpack.i.bf16 %v4433_v20, %v4431_v7  ;;  %v422_v33 = vld [vmem:[%s13016_s3 + $0x140] sm:$0xff]  ;;  %v7357_v53 = vunpack.i.h.bf16 %v7355_v34 }
 0x760   : > { %v7513_v5 = vpack.i.bf16 %v4353_v38, %v4351_v3  ;;  %5484 = vmatpush.msrb.mxu1 %v422_v33  ;;  %v7523_v3 = vpack.i.bf16 %v12160_v28, %v12168_v30 }
 0x761   : > { %4202 = vst.msk [vmem:[#allocation2 + $0xa9] sm:$0xff] %vm223_vm0, %v4170_v54  ;;  %v4434_v54 = vrot.slane %v12168_v30, 2 }
 0x762   : > { %v7340_v21 = vpop.permute.xlu1 %7339 }
 0x763   : > { %v7342_v36 = vunpack.i.h.bf16 %v7340_v21  ;;  %v7341_v32 = vunpack.i.l.bf16 %v7340_v21  ;;  %7494 = vrot.lane.b32.xlu2 %v7493_v26, %s7928_s8  ;;  %7489 = vrot.lane.b32.xlu0 %v7493_v26, %s7925_s25  ;;  %v7356_v26 = vunpack.i.l.bf16 %v7355_v34  ;;  %v4242_v21 = vld [vmem:[#allocation2 + $0xa0] sm:$0x3]  ;;  %v4354_v34 = vrot.slane %v12168_v30, 1 }
 0x764   : > { %v4437_v38 = vrot.slane %v4242_v21, 2 }
 0x765   : > { %6016 = vmatmul.msk.f32.gmra.mxu3 %vm223_vm0, %v4433_v20  ;;  %v12163_v8 = vsel %vm1633_vm5, %v5242_v11, %v7341_v32  ;;  %v12166_v37 = vsel %vm1633_vm5, %v5243_v4, %v7342_v36  ;;  %v7345_v45 = vpop.permute.xlu0 %7344  ;;  %v4436_v4 = vsel %vm789_vm4, %v4434_v54, %v4435_v27 }
 0x766   : > { %13532 = vst [vmem:[#allocation72_spill] sm:$0xff] %v12163_v8  ;;  %v7347_v18 = vunpack.i.h.bf16 %v7345_v45  ;;  %v7346_v39 = vunpack.i.l.bf16 %v7345_v45  ;;  %v4355_v45 = vrot.slane %v12160_v28, 1 }
 0x767   : > { %13533 = vst [vmem:[#allocation37_spill] sm:$0xff] %v12166_v37  ;;  %7514 = vrot.lane.b32.xlu1 %v7513_v5, %s7926_s26  ;;  %v7845_v37 = vld [vmem:[#allocation2 + $0xf0] sm:$0xff] }
 0x768   : > { %v5213_v7 = vsel %vm223_vm0, %v11791_v63, %v7347_v18  ;;  %v5212_v24 = vsel %vm223_vm0, %v11788_v42, %v7346_v39  ;;  %v4357_v42 = vrot.slane %v4242_v21, 1  ;;  %v12196_v18 = vpop.permute.xlu2 %7359  ;;  %v4438_v39 = vsel %vm789_vm4, %v4435_v27, %v4437_v38  ;;  %v12203_v54 = vld [vmem:[#allocation2 + $0xa8] sm:$0xff]  ;;  %v4245_v21 = vld [vmem:[#allocation2 + $0xb8] sm:$0x3] }
 0x769   : > { %v4439_v27 = vrot.slane %v12203_v54, 2  ;;  %v4359_v38 = vrot.slane %v12203_v54, 1 }
 0x76a   : > { %v7350_v16 = vpop.permute.xlu1 %7349 }
 0x76b   : > { %v7352_v11 = vunpack.i.h.bf16 %v7350_v16  ;;  %v7351_v41 = vunpack.i.l.bf16 %v7350_v16  ;;  %7504 = vrot.lane.b32.xlu0 %v7503_v13, %s7924_s23  ;;  %7499 = vrot.lane.b32.xlu2 %v7513_v5, %s7923_s30  ;;  %v12205_v16 = vld [vmem:[#allocation2 + $0xb0] sm:$0xff] }
 0x76c   : > { %v4440_v33 = vrot.slane %v12205_v16, 2 }
 0x76d   : > { %6017 = vmatmul.msk.f32.gmra.mxu3 %vm223_vm0, %v4436_v4  ;;  %v5244_v36 = vsel %vm1600_vm6, %v5212_v24, %v7351_v41  ;;  %v5245_v32 = vsel %vm1600_vm6, %v5213_v7, %v7352_v11  ;;  %v421_v11 = vld [vmem:[%s13016_s3 + $0x138] sm:$0xff]  ;;  %v4356_v41 = vsel %vm708_vm2, %v4354_v34, %v4355_v45  ;;  %v4362_v34 = vrot.slane %v4245_v21, 1 }
 0x76e   : > { %v12187_v20 = vsel %vm1633_vm5, %v5244_v36, %v7356_v26  ;;  %v12192_v63 = vsel %vm1633_vm5, %v5245_v32, %v7357_v53  ;;  %5485 = vmatpush.msrb.mxu1 %v421_v11  ;;  %v4441_v7 = vsel %vm789_vm4, %v4439_v27, %v4440_v33  ;;  %v7558_v53 = vpack.i.bf16 %v12205_v16, %v12203_v54 }
 0x76f   : > { %13534 = vst [vmem:[#allocation10_spill] sm:$0xff] %v12187_v20  ;;  %7524 = vrot.lane.b32.xlu1 %v7523_v3, %s7925_s25  ;;  %v4442_v36 = vrot.slane %v4245_v21, 2  ;;  %v12262_v21 = vld [vmem:[#allocation2 + $0xc8] sm:$0xff] }
 0x770   : > { %13535 = vst [vmem:[#allocation82_spill] sm:$0xff] %v12192_v63  ;;  %v12219_v24 = vpop.permute.xlu2 %7369 }
 0x771   : > { %v4443_v32 = vsel %vm789_vm4, %v4440_v33, %v4442_v36 }
 0x773   : > { %7509 = vrot.lane.b32.xlu0 %v7513_v5, %s7929_s9  ;;  %7519 = vrot.lane.b32.xlu2 %v7503_v13, %s7927_s6  ;;  %v4358_v5 = vsel %vm708_vm2, %v4355_v45, %v4357_v42  ;;  %v7538_v13 = vpack.i.bf16 %v4438_v39, %v4436_v4  ;;  %v420_v4 = vld [vmem:[%s13016_s3 + $0x130] sm:$0xff]  ;;  %v4360_v42 = vrot.slane %v12205_v16, 1  ;;  %v7573_v45 = vpack.i.bf16 %v4443_v32, %v4441_v7 }
 0x774   : > { %v7548_v26 = vpack.i.bf16 %v4358_v5, %v4356_v41  ;;  %5486 = vmatpush.msrb.mxu1 %v420_v4 }
 0x775   : > { %6018 = vmatmul.msk.f32.gmra.mxu3 %vm223_vm0, %v4438_v39  ;;  %v419_v39 = vld [vmem:[%s13016_s3 + $0x128] sm:$0xff]  ;;  %v4361_v11 = vsel %vm708_vm2, %v4359_v38, %v4360_v42  ;;  %v4363_v41 = vsel %vm708_vm2, %v4360_v42, %v4362_v34  ;;  %v12279_v38 = vld [vmem:[#allocation2 + $0xe0] sm:$0xff] }
 0x776   : > { %5487 = vmatpush.msrb.mxu1 %v419_v39  ;;  %v7568_v27 = vpack.i.bf16 %v4363_v41, %v4361_v11  ;;  %v7843_v34 = vld [vmem:[#allocation2] sm:$0xff]  ;;  %v7361_v41 = vunpack.i.l.bf16 %v12196_v18 }
 0x777   : > { %7539 = vrot.lane.b32.xlu1 %v7538_v13, %s7924_s23 }
 0x77b   : > { %7529 = vrot.lane.b32.xlu0 %v7523_v3, %s7928_s8  ;;  %7549 = vrot.lane.b32.xlu2 %v7548_v26, %s7926_s26 }
 0x77c   : > { %v12247_v33 = vpop.permute.xlu1 %7364 }
 0x77d   : > { %6019 = vmatmul.msk.f32.gmra.mxu3 %vm223_vm0, %v4441_v7  ;;  %v12260_v7 = vld [vmem:[#allocation2 + $0xc0] sm:$0xff] }
 0x77e   : > { %v7593_v4 = vpack.i.bf16 %v12262_v21, %v12260_v7 }
 0x77f   : > { %7544 = vrot.lane.b32.xlu1 %v7548_v26, %s7929_s9 }
 0x783   : > { %7559 = vrot.lane.b32.xlu2 %v7558_v53, %s7925_s25  ;;  %7534 = vrot.lane.b32.xlu0 %v7548_v26, %s7923_s30  ;;  %v418_v26 = vld [vmem:[%s13016_s3 + $0x120] sm:$0xff] }
 0x784   : > { %5488 = vmatpush.msrb.mxu1 %v418_v26 }
 0x785   : > { %6020 = vmatmul.msk.f32.gmra.mxu3 %vm223_vm0, %v4443_v32  ;;  %v12231_v3 = vpop.permute.xlu2 %7389  ;;  %v12277_v32 = vld [vmem:[#allocation2 + $0xd8] sm:$0xff] }
 0x786   : > { %v7613_v42 = vpack.i.bf16 %v12279_v38, %v12277_v32  ;;  %v7391_v20 = vunpack.i.l.bf16 %v12231_v3 }
 0x787   : > { %7564 = vrot.lane.b32.xlu1 %v7558_v53, %s7928_s8  ;;  %v7380_v53 = vpop.permute.xlu1 %7379 }
 0x788   : > { %v7381_v26 = vunpack.i.l.bf16 %v7380_v53  ;;  %v7382_v44 = vunpack.i.h.bf16 %v7380_v53 }
 0x78b   : > { %7574 = vrot.lane.b32.xlu2 %v7573_v45, %s7924_s23  ;;  %7554 = vrot.lane.b32.xlu0 %v7538_v13, %s7927_s6 }
 0x78d   : > { %6021 = vmatmul.msk.f32.gmra.mxu3 %vm223_vm0, %v11495_v35  ;;  %v12245_v5 = vpop.permute.xlu2 %7394  ;;  %v7375_v35 = vpop.permute.xlu0 %7374 }
 0x78f   : > { %7569 = vrot.lane.b32.xlu1 %v7568_v27, %s7923_s30  ;;  %s7878_s30 = scalar_lea.hbm %s13018_s5, 512 }
 0x793   : > { %7579 = vrot.lane.b32.xlu2 %v7568_v27, %s7929_s9  ;;  %7584 = vrot.lane.b32.xlu0 %v7568_v27, %s7926_s26  ;;  %v7376_v27 = vunpack.i.l.bf16 %v7375_v35 }
 0x795   : > { %6022 = vmatmul.msk.f32.gmra.mxu3 %vm223_vm0, %v11498_v1  ;;  %v12257_v13 = vpop.permute.xlu2 %7424 }
 0x797   : > { %7589 = vrot.lane.b32.xlu1 %v7573_v45, %s7927_s6  ;;  %v7226_v45 = vunpack.i.l.bf16 %v11429_v46 }
 0x799   : > { %v5182_v11 = vsel %vm223_vm0, %v7843_v34, %v7226_v45 }
 0x79b   : > { %7594 = vrot.lane.b32.xlu2 %v7593_v4, %s7928_s8  ;;  %7599 = vrot.lane.b32.xlu0 %v11489_v23, %s7929_s9 }
 0x79d   : > { %6023 = vmatmul.msk.f32.gmra.mxu3 %vm223_vm0, %v11530_v56  ;;  %v12271_v1 = vpop.permute.xlu0 %7384  ;;  %v12273_v36 = vpop.permute.xlu2 %7439 }
 0x79f   : > { %7604 = vrot.lane.b32.xlu1 %v11489_v23, %s7926_s26  ;;  %v7231_v23 = vunpack.i.l.bf16 %v11442_v25 }
 0x7a1   : > { %v12284_v39 = vpop.permute.xlu1 %7404  ;;  %v5214_v4 = vsel %vm1600_vm6, %v5182_v11, %v7231_v23  ;;  %v7844_v11 = vld [vmem:[#allocation2 + $0x8] sm:$0xff] }
 0x7a3   : > { %7609 = vrot.lane.b32.xlu2 %v11503_v62, %s7927_s6  ;;  %7614 = vrot.lane.b32.xlu0 %v7613_v42, %s7928_s8  ;;  %v7227_v62 = vunpack.i.h.bf16 %v11429_v46  ;;  %v7232_v46 = vunpack.i.h.bf16 %v11442_v25 }
 0x7a5   : > { %6024 = vmatmul.msk.f32.gmra.mxu3 %vm223_vm0, %v11533_v2  ;;  %v12292_v56 = vpop.permute.xlu0 %7399  ;;  %v12297_v63 = vpop.permute.xlu2 %7454  ;;  %v5246_v2 = vsel %vm1633_vm5, %v5214_v4, %v7361_v41  ;;  %v5183_v41 = vsel %vm223_vm0, %v7844_v11, %v7227_v62  ;;  %v7366_v62 = vunpack.i.l.bf16 %v12247_v33  ;;  %v7371_v11 = vunpack.i.l.bf16 %v12219_v24 }
 0x7a6   : > { %v5278_v42 = vsel %vm1666_vm7, %v5246_v2, %v7376_v27  ;;  %v7362_v27 = vunpack.i.h.bf16 %v12196_v18  ;;  %v7377_v2 = vunpack.i.h.bf16 %v7375_v35  ;;  %v7392_v35 = vunpack.i.h.bf16 %v12231_v3 }
 0x7a7   : > { %7619 = vrot.lane.b32.xlu1 %v11527_v31, %s7929_s9  ;;  %v5310_v23 = vsel %vm1699_vm9, %v5278_v42, %v7381_v26  ;;  %v5215_v26 = vsel %vm1600_vm6, %v5183_v41, %v7232_v46  ;;  %v5184_v3 = vsel %vm223_vm0, %v11863_v59, %v7366_v62  ;;  %v7406_v41 = vunpack.i.l.bf16 %v12284_v39 }
 0x7a8   : > { %v5247_v25 = vsel %vm1633_vm5, %v5215_v26, %v7362_v27  ;;  %v5216_v59 = vsel %vm1600_vm6, %v5184_v3, %v7371_v11  ;;  %v7387_v62 = vunpack.i.h.bf16 %v12271_v1 }
 0x7a9   : > { %v12305_v45 = vpop.permute.xlu1 %7414  ;;  %v5279_v18 = vsel %vm1666_vm7, %v5247_v25, %v7377_v2 }
 0x7ab   : > { %7624 = vrot.lane.b32.xlu2 %v11527_v31, %s7926_s26  ;;  %7629 = vrot.lane.b32.xlu0 %v11542_v49, %s7927_s6  ;;  %v7846_v31 = vld [vmem:[#allocation2 + $0xf8] sm:$0xff]  ;;  %v5342_v49 = vsel %vm1732_vm8, %v5310_v23, %v7391_v20  ;;  %v5311_v20 = vsel %vm1699_vm9, %v5279_v18, %v7382_v44  ;;  %v7386_v23 = vunpack.i.l.bf16 %v12271_v1  ;;  %v7848_v44 = vld [vmem:[#allocation2 + $0x110] sm:$0xff]  ;;  %v7396_v1 = vunpack.i.l.bf16 %v12245_v5 }
 0x7ac   : > { %v7633_v8 = vpack.i.bf16 %v7846_v31, %v7845_v37  ;;  %v5343_v46 = vsel %vm1732_vm8, %v5311_v20, %v7392_v35  ;;  %v7372_v35 = vunpack.i.h.bf16 %v12219_v24 }
 0x7ad   : > { %6025 = vmatmul.msk.f32.gmra.mxu3 %vm223_vm0, %v11581_v12  ;;  %v7410_v34 = vpop.permute.xlu0 %7409  ;;  %v12325_v42 = vpop.permute.xlu2 %7459  ;;  %v5248_v2 = vsel %vm1633_vm5, %v5216_v59, %v7386_v23  ;;  %v7849_v23 = vld [vmem:[#allocation2 + $0x120] sm:$0xff] }
 0x7ae   : > { %v7411_v4 = vunpack.i.l.bf16 %v7410_v34 }
 0x7af   : > { %7634 = vrot.lane.b32.xlu1 %v7633_v8, %s7928_s8  ;;  %v7412_v8 = vunpack.i.h.bf16 %v7410_v34  ;;  %v7416_v34 = vunpack.i.l.bf16 %v12305_v45 }
 0x7b0   : > { %v5374_v12 = vsel %vm1765_vm10, %v5342_v49, %v7411_v4  ;;  %v7367_v4 = vunpack.i.h.bf16 %v12247_v33  ;;  %v5280_v49 = vsel %vm1666_vm7, %v5248_v2, %v7406_v41  ;;  %v7426_v33 = vunpack.i.l.bf16 %v12257_v13 }
 0x7b1   : > { %5489 = vmatmul.f32.vlgmr.msrb.gmra.mxu1 %v5374_v12  ;;  %v12327_v37 = vpop.permute.xlu1 %7419  ;;  %v5312_v26 = vsel %vm1699_vm9, %v5280_v49, %v7416_v34 }
 0x7b2   : > { %v5185_v25 = vsel %vm223_vm0, %v11865_v43, %v7367_v4  ;;  %v5344_v20 = vsel %vm1732_vm8, %v5312_v26, %v7426_v33  ;;  %v7421_v41 = vunpack.i.l.bf16 %v12327_v37  ;;  %v7402_v26 = vunpack.i.h.bf16 %v12292_v56 }
 0x7b3   : > { %7639 = vrot.lane.b32.xlu2 %v11559_v51, %s7929_s9  ;;  %7644 = vrot.lane.b32.xlu0 %v11559_v51, %s7926_s26  ;;  %v5375_v51 = vsel %vm1765_vm10, %v5343_v46, %v7412_v8  ;;  %v7407_v8 = vunpack.i.h.bf16 %v12284_v39  ;;  %v7850_v46 = vld [vmem:[#allocation2 + $0x128] sm:$0xff]  ;;  %v5217_v43 = vsel %vm1600_vm6, %v5185_v25, %v7372_v35  ;;  %v7422_v25 = vunpack.i.h.bf16 %v12327_v37 }
 0x7b4   : > { %v7673_v11 = vpack.i.bf16 %v7850_v46, %v7849_v23  ;;  %v5249_v24 = vsel %vm1633_vm5, %v5217_v43, %v7387_v62  ;;  %v7442_v46 = vunpack.i.h.bf16 %v12273_v36 }
 0x7b5   : > { %6026 = vmatmul.msk.f32.gmra.mxu3 %vm223_vm0, %v11584_v19  ;;  %v12336_v53 = vpop.permute.xlu0 %7429  ;;  %v7847_v19 = vld [vmem:[#allocation2 + $0x108] sm:$0xff] }
 0x7b6   : > { %v7653_v27 = vpack.i.bf16 %v7848_v44, %v7847_v19  ;;  %v7427_v44 = vunpack.i.h.bf16 %v12257_v13  ;;  %v7397_v13 = vunpack.i.h.bf16 %v12245_v5 }
 0x7b7   : > { %7649 = vrot.lane.b32.xlu1 %v11594_v10, %s7927_s6  ;;  %v12359_v10 = vpop.permute.xlu2 %7469 }
 0x7b9   : > { %5492 = vmatmul.f32.gmra.mxu1 %v5375_v51  ;;  %v12351_v31 = vpop.permute.xlu1 %7434 }
 0x7bb   : > { %7654 = vrot.lane.b32.xlu2 %v7653_v27, %s7928_s8  ;;  %7659 = vrot.lane.b32.xlu0 %v11619_v60, %s7929_s9 }
 0x7bd   : > { %6027 = vmatmul.msk.f32.gmra.mxu3 %vm223_vm0, %v11626_v58  ;;  %v7445_v12 = vpop.permute.xlu0 %7444  ;;  %v7417_v58 = vunpack.i.h.bf16 %v12305_v45  ;;  %v7401_v45 = vunpack.i.l.bf16 %v12292_v56 }
 0x7be   : > { %v7446_v18 = vunpack.i.l.bf16 %v7445_v12  ;;  %v7447_v51 = vunpack.i.h.bf16 %v7445_v12  ;;  %v7441_v12 = vunpack.i.l.bf16 %v12273_v36  ;;  %v7462_v36 = vunpack.i.h.bf16 %v12325_v42 }
 0x7bf   : > { %7664 = vrot.lane.b32.xlu1 %v11619_v60, %s7926_s26  ;;  %v5281_v60 = vsel %vm1666_vm7, %v5249_v24, %v7407_v8  ;;  %v12390_v27 = vpop.permute.xlu2 %7494  ;;  %v7851_v8 = vld [vmem:[#allocation2 + $0x138] sm:$0xff] }
 0x7c0   : > { %v5376_v3 = vsel %vm1765_vm10, %v5344_v20, %v7446_v18  ;;  %v5313_v19 = vsel %vm1699_vm9, %v5281_v60, %v7417_v58  ;;  %v7461_v18 = vunpack.i.l.bf16 %v12325_v42  ;;  %v7436_v42 = vunpack.i.l.bf16 %v12351_v31 }
 0x7c1   : > { %5495 = vmatmul.f32.gmra.mxu1 %v5376_v3  ;;  %v7450_v39 = vpop.permute.xlu1 %7449  ;;  %v5345_v4 = vsel %vm1732_vm8, %v5313_v19, %v7427_v44 }
 0x7c2   : > { %v7451_v2 = vunpack.i.l.bf16 %v7450_v39  ;;  %v5377_v49 = vsel %vm1765_vm10, %v5345_v4, %v7447_v51  ;;  %v7452_v3 = vunpack.i.h.bf16 %v7450_v39 }
 0x7c3   : > { %7669 = vrot.lane.b32.xlu2 %v11634_v47, %s7927_s6  ;;  %7674 = vrot.lane.b32.xlu0 %v7673_v11, %s7928_s8  ;;  %v5186_v47 = vsel %vm223_vm0, %v11945_v55, %v7396_v1 }
 0x7c4   : > { %v5218_v59 = vsel %vm1600_vm6, %v5186_v47, %v7401_v45  ;;  %v7854_v45 = vld [vmem:[#allocation2 + $0x158] sm:$0xff]  ;;  %v13537_v47 = vld [vmem:[#allocation29_spill] sm:$0xff] }
 0x7c5   : > { %6028 = vmatmul.msk.f32.gmra.mxu3 %vm223_vm0, %v11629_v52  ;;  %v12384_v34 = vpop.permute.xlu0 %7474  ;;  %v5250_v52 = vsel %vm1633_vm5, %v5218_v59, %v7421_v41 }
 0x7c6   : > { %v5282_v33 = vsel %vm1666_vm7, %v5250_v52, %v7441_v12  ;;  %v7476_v52 = vunpack.i.l.bf16 %v12384_v34  ;;  %v7855_v12 = vld [vmem:[#allocation2 + $0x168] sm:$0xff] }
 0x7c7   : > { %7679 = vrot.lane.b32.xlu1 %v11668_v17, %s7929_s9  ;;  %v5314_v5 = vsel %vm1699_vm9, %v5282_v33, %v7451_v2  ;;  %v12418_v37 = vpop.permute.xlu2 %7499  ;;  %v7456_v2 = vunpack.i.l.bf16 %v12297_v63  ;;  %v12461_v33 = vpop.f32.mrf.mxu3 }
 0x7c9   : > { %5498 = vmatmul.f32.gmra.mxu1 %v5377_v49  ;;  %v12400_v55 = vpop.permute.xlu1 %7464 }
 0x7cb   : > { %7684 = vrot.lane.b32.xlu2 %v11668_v17, %s7926_s26  ;;  %7689 = vrot.lane.b32.xlu0 %v11683_v15, %s7927_s6  ;;  %v5187_v17 = vsel %vm223_vm0, %v11949_v57, %v7397_v13  ;;  %v7852_v15 = vld [vmem:[#allocation2 + $0x140] sm:$0xff]  ;;  %v7856_v13 = vld [vmem:[#allocation2 + $0x170] sm:$0xff] }
 0x7cc   : > { %v7693_v20 = vpack.i.bf16 %v7852_v15, %v7851_v8  ;;  %v5219_v56 = vsel %vm1600_vm6, %v5187_v17, %v7402_v26  ;;  %v7733_v26 = vpack.i.bf16 %v7856_v13, %v7855_v12  ;;  %v7437_v17 = vunpack.i.h.bf16 %v12351_v31  ;;  %v12516_v13 = vld [vmem:[#allocation2 + $0x198] sm:$0xff] }
 0x7cd   : > { %6029 = vmatmul.msk.f32.gmra.mxu3 %vm223_vm0, %v11671_v22  ;;  %v7480_v62 = vpop.permute.xlu0 %7479  ;;  %v5346_v22 = vsel %vm1732_vm8, %v5314_v5, %v7461_v18  ;;  %v5251_v58 = vsel %vm1633_vm5, %v5219_v56, %v7422_v25  ;;  %v7432_v25 = vunpack.i.h.bf16 %v12336_v53  ;;  %v13538_v18 = vld [vmem:[#allocation61_spill] sm:$0xff]  ;;  %v13540_v56 = vld [vmem:[#allocation30_spill] sm:$0xff]  ;;  %v7477_v31 = vunpack.i.h.bf16 %v12384_v34 }
 0x7ce   : > { %v7481_v35 = vunpack.i.l.bf16 %v7480_v62  ;;  %v5283_v11 = vsel %vm1666_vm7, %v5251_v58, %v7442_v46  ;;  %v7482_v43 = vunpack.i.h.bf16 %v7480_v62  ;;  %v7457_v46 = vunpack.i.h.bf16 %v12297_v63  ;;  %v13542_v34 = vld [vmem:[#allocation58_spill] sm:$0xff] }
 0x7cf   : > { %7694 = vrot.lane.b32.xlu1 %v7693_v20, %s7928_s8  ;;  %v5315_v24 = vsel %vm1699_vm9, %v5283_v11, %v7452_v3  ;;  %v12441_v51 = vpop.permute.xlu2 %7519  ;;  %v7496_v20 = vunpack.i.l.bf16 %v12390_v27  ;;  %v12496_v63 = vpop.f32.mrf.mxu3 }
 0x7d0   : > { %v5378_v23 = vsel %vm1765_vm10, %v5346_v22, %v7481_v35  ;;  %v5347_v39 = vsel %vm1732_vm8, %v5315_v24, %v7462_v36  ;;  %v13539_v35 = vld [vmem:[#allocation53_spill] sm:$0xff]  ;;  %v5189_v22 = vsel %vm223_vm0, %v13540_v56, %v7432_v25 }
 0x7d1   : > { %5501 = vmatmul.f32.gmra.mxu1 %v5378_v23  ;;  %v12423_v57 = vpop.permute.xlu1 %7484  ;;  %v5379_v60 = vsel %vm1765_vm10, %v5347_v39, %v7482_v43  ;;  %v5221_v3 = vsel %vm1600_vm6, %v5189_v22, %v7437_v17  ;;  %v13541_v43 = vld [vmem:[#allocation68_spill] sm:$0xff]  ;;  %v7466_v39 = vunpack.i.l.bf16 %v12400_v55 }
 0x7d2   : > { %v7486_v49 = vunpack.i.l.bf16 %v12423_v57  ;;  %v7487_v11 = vunpack.i.h.bf16 %v12423_v57  ;;  %v5253_v36 = vsel %vm1633_vm5, %v5221_v3, %v7457_v46 }
 0x7d3   : > { %7699 = vrot.lane.b32.xlu2 %v11700_v9, %s7929_s9  ;;  %7704 = vrot.lane.b32.xlu0 %v11700_v9, %s7926_s26  ;;  %v7853_v9 = vld [vmem:[#allocation2 + $0x150] sm:$0xff]  ;;  %v5285_v57 = vsel %vm1666_vm7, %v5253_v36, %v7477_v31 }
 0x7d4   : > { %v7713_v41 = vpack.i.bf16 %v7854_v45, %v7853_v9  ;;  %v13543_v9 = vld [vmem:[#allocation48_spill] sm:$0xff] }
 0x7d5   : > { %6030 = vmatmul.msk.f32.gmra.mxu3 %vm223_vm0, %v11674_v40  ;;  %v12432_v1 = vpop.permute.xlu0 %7489  ;;  %v7431_v40 = vunpack.i.l.bf16 %v12336_v53 }
 0x7d6   : > { %v7492_v3 = vunpack.i.h.bf16 %v12432_v1 }
 0x7d7   : > { %7709 = vrot.lane.b32.xlu1 %v11735_v29, %s7927_s6  ;;  %v13536_v29 = vld [vmem:[#allocation86_spill] sm:$0xff]  ;;  %v5188_v59 = vsel %vm223_vm0, %v13537_v47, %v7431_v40  ;;  %v12474_v8 = vpop.permute.xlu2 %7549  ;;  %v5317_v40 = vsel %vm1699_vm9, %v5285_v57, %v7487_v11  ;;  %v7491_v47 = vunpack.i.l.bf16 %v12432_v1  ;;  %v12536_v22 = vpop.f32.mrf.mxu3  ;;  %v12552_v1 = vld [vmem:[#allocation2 + $0x1a8] sm:$0x3] }
 0x7d8   : > { %v5220_v4 = vsel %vm1600_vm6, %v5188_v59, %v7436_v42  ;;  %v7497_v42 = vunpack.i.h.bf16 %v12390_v27  ;;  %v12518_v27 = vld [vmem:[#allocation2 + $0x1a0] sm:$0xff] }
 0x7d9   : > { %5504 = vmatmul.f32.gmra.mxu1 %v5379_v60  ;;  %v12443_v19 = vpop.permute.xlu1 %7514  ;;  %v5252_v62 = vsel %vm1633_vm5, %v5220_v4, %v7456_v2  ;;  %v7471_v4 = vunpack.i.l.bf16 %v12359_v10 }
 0x7da   : > { %v5349_v2 = vsel %vm1732_vm8, %v5317_v40, %v7497_v42  ;;  %v7517_v46 = vunpack.i.h.bf16 %v12443_v19  ;;  %v13548_v42 = vld [vmem:[#allocation87_spill] sm:$0xff] }
 0x7db   : > { %7714 = vrot.lane.b32.xlu2 %v7713_v41, %s7928_s8  ;;  %7719 = vrot.lane.b32.xlu0 %v11764_v6, %s7929_s9 }
 0x7dd   : > { %6031 = vmatmul.msk.f32.gmra.mxu3 %vm223_vm0, %v13536_v29  ;;  %v12451_v44 = vpop.permute.xlu0 %7504  ;;  %v5190_v29 = vsel %vm223_vm0, %v12060_v0, %v7466_v39  ;;  %v13547_v39 = vld [vmem:[#allocation20_spill] sm:$0xff] }
 0x7de   : > { %v5222_v0 = vsel %vm1600_vm6, %v5190_v29, %v7471_v4  ;;  %v4503_v29 = vrot.slane %v12552_v1, 1  ;;  %v7522_v4 = vunpack.i.h.bf16 %v12441_v51 }
 0x7df   : > { %7724 = vrot.lane.b32.xlu1 %v11764_v6, %s7926_s26  ;;  %v5284_v6 = vsel %vm1666_vm7, %v5252_v62, %v7476_v52  ;;  %v12508_v59 = vpop.permute.xlu2 %7559  ;;  %v7516_v52 = vunpack.i.l.bf16 %v12443_v19  ;;  %v5254_v25 = vsel %vm1633_vm5, %v5222_v0, %v7491_v47 }
 0x7e0   : > { %v5316_v53 = vsel %vm1699_vm9, %v5284_v6, %v7486_v49  ;;  %v13544_v49 = vld [vmem:[#allocation70_spill] sm:$0xff] }
 0x7e1   : > { %v12465_v5 = vpop.permute.xlu1 %7524  ;;  %v5348_v23 = vsel %vm1732_vm8, %v5316_v53, %v7496_v20  ;;  %v5286_v17 = vsel %vm1666_vm7, %v5254_v25, %v7516_v52  ;;  %v7521_v53 = vunpack.i.l.bf16 %v12441_v51 }
 0x7e2   : > { %v7526_v57 = vunpack.i.l.bf16 %v12465_v5 }
 0x7e3   : > { %7729 = vrot.lane.b32.xlu2 %v13538_v18, %s7927_s6  ;;  %7734 = vrot.lane.b32.xlu0 %v7733_v26, %s7928_s8  ;;  %v7467_v26 = vunpack.i.h.bf16 %v12400_v55  ;;  %v13545_v18 = vld [vmem:[#allocation80_spill] sm:$0xff]  ;;  %v4501_v55 = vrot.slane %v12518_v27, 1  ;;  %v5318_v31 = vsel %vm1699_vm9, %v5286_v17, %v7521_v53  ;;  %v7551_v17 = vunpack.i.l.bf16 %v12474_v8 }
 0x7e5   : > { %6032 = vmatmul.msk.f32.gmra.mxu3 %vm223_vm0, %v13539_v35  ;;  %v7510_v15 = vpop.permute.xlu0 %7509  ;;  %v13546_v35 = vld [vmem:[#allocation50_spill] sm:$0xff] }
 0x7e6   : > { %v7511_v58 = vunpack.i.l.bf16 %v7510_v15  ;;  %v7512_v45 = vunpack.i.h.bf16 %v7510_v15  ;;  %v4500_v15 = vrot.slane %v12516_v13, 1 }
 0x7e7   : > { %7739 = vrot.lane.b32.xlu1 %v13541_v43, %s7929_s9  ;;  %v12547_v36 = vpop.permute.xlu2 %7574 }
 0x7e8   : > { %v5380_v24 = vsel %vm1765_vm10, %v5348_v23, %v7511_v58  ;;  %v5381_v12 = vsel %vm1765_vm10, %v5349_v2, %v7512_v45  ;;  %v5191_v58 = vsel %vm223_vm0, %v12062_v14, %v7467_v26  ;;  %v7472_v23 = vunpack.i.h.bf16 %v12359_v10 }
 0x7e9   : > { %5507 = vmatmul.f32.gmra.mxu1 %v5380_v24  ;;  %v12490_v60 = vpop.permute.xlu1 %7539  ;;  %v7501_v24 = vunpack.i.l.bf16 %v12418_v37  ;;  %v7506_v10 = vunpack.i.l.bf16 %v12451_v44 }
 0x7eb   : > { %7744 = vrot.lane.b32.xlu2 %v13541_v43, %s7926_s26  ;;  %7749 = vrot.lane.b32.xlu0 %v13542_v34, %s7927_s6  ;;  %v4502_v43 = vsel %vm708_vm2, %v4500_v15, %v4501_v55  ;;  %v5223_v34 = vsel %vm1600_vm6, %v5191_v58, %v7472_v23  ;;  %v5192_v47 = vsel %vm223_vm0, %v12120_v61, %v7501_v24  ;;  %v7502_v15 = vunpack.i.h.bf16 %v12418_v37 }
 0x7ec   : > { %v5255_v19 = vsel %vm1633_vm5, %v5223_v34, %v7492_v3  ;;  %v7527_v3 = vunpack.i.h.bf16 %v12465_v5  ;;  %v7552_v34 = vunpack.i.h.bf16 %v12474_v8 }
 0x7ed   : > { %6033 = vmatmul.msk.f32.gmra.mxu3 %vm223_vm0, %v13543_v9  ;;  %v12501_v41 = vpop.permute.xlu0 %7529  ;;  %v5287_v45 = vsel %vm1666_vm7, %v5255_v19, %v7517_v46  ;;  %v13551_v46 = vld [vmem:[#allocation15_spill] sm:$0xff] }
 0x7ee   : > { %v7531_v6 = vunpack.i.l.bf16 %v12501_v41  ;;  %v7532_v40 = vunpack.i.h.bf16 %v12501_v41  ;;  %v5319_v41 = vsel %vm1699_vm9, %v5287_v45, %v7522_v4 }
 0x7ef   : > { %7754 = vrot.lane.b32.xlu1 %v13544_v49, %s7928_s8  ;;  %v5224_v49 = vsel %vm1600_vm6, %v5192_v47, %v7506_v10  ;;  %v7541_v47 = vunpack.i.l.bf16 %v12490_v60 }
 0x7f0   : > { %v5350_v11 = vsel %vm1732_vm8, %v5318_v31, %v7531_v6  ;;  %v5256_v26 = vsel %vm1633_vm5, %v5224_v49, %v7526_v57  ;;  %v13549_v6 = vld [vmem:[#allocation51_spill] sm:$0xff]  ;;  %v5351_v51 = vsel %vm1732_vm8, %v5319_v41, %v7532_v40  ;;  %v7580_v31 = vpop.permute.xlu2 %7579 }
 0x7f1   : > { %5510 = vmatmul.f32.gmra.mxu1 %v5381_v12  ;;  %v7545_v62 = vpop.permute.xlu1 %7544  ;;  %v7857_v12 = vld [vmem:[#allocation2 + $0x190] sm:$0x3]  ;;  %v5288_v58 = vsel %vm1666_vm7, %v5256_v26, %v7551_v17  ;;  %v7581_v24 = vunpack.i.l.bf16 %v7580_v31 }
 0x7f2   : > { %v7546_v20 = vunpack.i.l.bf16 %v7545_v62  ;;  %v7547_v52 = vunpack.i.h.bf16 %v7545_v62  ;;  %v4495_v0 = vrot.slane %v7857_v12, 2  ;;  %v4504_v62 = vsel %vm708_vm2, %v4501_v55, %v4503_v29 }
 0x7f3   : > { %7759 = vrot.lane.b32.xlu2 %v13545_v18, %s7929_s9  ;;  %7764 = vrot.lane.b32.xlu0 %v13545_v18, %s7926_s26  ;;  %v12572_v18 = vpop.f32.mrf.mxu3  ;;  %s7932_s26 = smov 12  }
 0x7f4   : > { %v5382_v14 = vsel %vm1765_vm10, %v5350_v11, %v7546_v20  ;;  %v5383_v53 = vsel %vm1765_vm10, %v5351_v51, %v7547_v52  ;;  %v7507_v20 = vunpack.i.h.bf16 %v12451_v44  ;;  %v5193_v44 = vsel %vm223_vm0, %v12123_v48, %v7502_v15 }
 0x7f5   : > { %6034 = vmatmul.msk.f32.gmra.mxu3 %vm223_vm0, %v13546_v35  ;;  %v12534_v56 = vpop.permute.xlu0 %7534  ;;  %v13550_v35 = vrot.slane %v13549_v6, 2 }
 0x7f6   : > { %v5225_v11 = vsel %vm1600_vm6, %v5193_v44, %v7507_v20  ;;  %v7536_v19 = vunpack.i.l.bf16 %v12534_v56 }
 0x7f7   : > { %4954 = vrot.lane.b32.xlu1 %v13547_v39, %s7927_s6  ;;  %v4496_v61 = vsel %vm789_vm4, %v13550_v35, %v4495_v0  ;;  %v7561_v0 = vunpack.i.l.bf16 %v12508_v59 }
 0x7f8   : > { %v7595_v29 = vpop.permute.xlu2 %7594  ;;  %v5194_v8 = vsel %vm223_vm0, %v12168_v30, %v7536_v19 }
 0x7f9   : > { %5513 = vmatmul.f32.gmra.mxu1 %v5382_v14  ;;  %v7565_v9 = vpop.permute.xlu1 %7564  ;;  %v5226_v49 = vsel %vm1600_vm6, %v5194_v8, %v7541_v47 }
 0x7fa   : > { %v7566_v37 = vunpack.i.l.bf16 %v7565_v9  ;;  %v5258_v30 = vsel %vm1633_vm5, %v5226_v49, %v7561_v0 }
 0x7fb   : > { %5146 = vrot.lane.b32.xlu0 %v4502_v43, %s7929_s9  ;;  %5050 = vrot.lane.b32.xlu2 %v12516_v13, %s7928_s8  ;;  %v5257_v43 = vsel %vm1633_vm5, %v5225_v11, %v7527_v3  ;;  %v12602_v45 = vpop.f32.mrf.mxu3 }
 0x7fc   : > { %v5289_v48 = vsel %vm1666_vm7, %v5257_v43, %v7552_v34  ;;  %v7597_v43 = vunpack.i.h.bf16 %v7595_v29  ;;  %v13552_v34 = vld [vmem:[#allocation79_spill] sm:$0xff] }
 0x7fd   : > { %6035 = vmatmul.msk.f32.gmra.mxu3 %vm223_vm0, %v13548_v42  ;;  %v7555_v2 = vpop.permute.xlu0 %7554  ;;  %v7567_v42 = vunpack.i.h.bf16 %v7565_v9  ;;  %v7537_v9 = vunpack.i.h.bf16 %v12534_v56  ;;  %v7542_v56 = vunpack.i.h.bf16 %v12490_v60 }
 0x7fe   : > { %v7556_v25 = vunpack.i.l.bf16 %v7555_v2  ;;  %v7557_v14 = vunpack.i.h.bf16 %v7555_v2  ;;  %v7582_v2 = vunpack.i.h.bf16 %v7580_v31  ;;  %v7562_v31 = vunpack.i.h.bf16 %v12508_v59 }
 0x7ff   : > { %4956 = vrot.lane.b32.xlu1 %v4496_v61, %s7927_s6  ;;  %v5195_v6 = vsel %vm223_vm0, %v12160_v28, %v7537_v9  ;;  %v7237_v9 = vunpack.i.h.bf16 %v13552_v34  ;;  %s6047_s6 = sshll.u32 %s7985_s22, 8 }
 0x800   : > { %v5320_v23 = vsel %vm1699_vm9, %v5288_v58, %v7556_v25  ;;  %v5321_v40 = vsel %vm1699_vm9, %v5289_v48, %v7557_v14  ;;  %v7610_v15 = vpop.permute.xlu2 %7609  ;;  %s5872_s16 = scalar_lea.hbm %s13018_s5, %s6047_s6 }
 0x801   : > { %5516 = vmatmul.f32.gmra.mxu1 %v5383_v53  ;;  %v12590_v55 = vpop.permute.xlu1 %7569  ;;  %v5352_v5 = vsel %vm1732_vm8, %v5320_v23, %v7566_v37  ;;  %v5353_v52 = vsel %vm1732_vm8, %v5321_v40, %v7567_v42  ;;  %v5227_v53 = vsel %vm1600_vm6, %v5195_v6, %v7542_v56  ;;  %v7611_v47 = vunpack.i.l.bf16 %v7610_v15  ;;  %v13554_v56 = vld [vmem:[#allocation21_spill] sm:$0xff]  ;;  %s5875_s11 = sshll.u32 %s5872_s16, 4  ;;  %s5876_s11 = int_to_ptr.hbm [resolvable:$true] %s5875_s11 }
 0x802   : > { %v5384_v57 = vsel %vm1765_vm10, %v5352_v5, %v7581_v24  ;;  %v5259_v37 = vsel %vm1633_vm5, %v5227_v53, %v7562_v31  ;;  %v7576_v5 = vunpack.i.l.bf16 %v12547_v36  ;;  %v7572_v19 = vunpack.i.h.bf16 %v12590_v55  ;;  %s7872_s7 = sshra.s32 %s5876_s11, 4  ;;  %s7873_s7 = int_to_ptr.hbm [resolvable:$true] %s7872_s7 }
 0x803   : > { %5148 = vrot.lane.b32.xlu0 %v4504_v62, %s7929_s9  ;;  %5052 = vrot.lane.b32.xlu2 %v12518_v27, %s7928_s8  ;;  %v12617_v41 = vpop.f32.mrf.mxu3  ;;  %v7596_v62 = vunpack.i.l.bf16 %v7595_v29  ;;  %s7874_s25 = scalar_lea.hbm %s7873_s7, 256  ;;  %p7879_p0 = scmp.lt.s32.totalorder %s7873_s7, %s13018_s5 }
 0x804   : > { %p7875_p11 = scmp.ne.s32.totalorder %s7873_s7, %s7874_s25  ;;  %p7880_p1 = scmp.lt.s32.totalorder %s7878_s30, %s7874_s25 }
 0x805   : > { %6036 = vmatmul.msk.f32.gmra.mxu3 %vm223_vm0, %v13551_v46  ;;  %v7585_v10 = vpop.permute.xlu0 %7584 }
 0x806   : > { %v7586_v12 = vunpack.i.l.bf16 %v7585_v10  ;;  %v7587_v20 = vunpack.i.h.bf16 %v7585_v10  ;;  %v7236_v10 = vunpack.i.l.bf16 %v13552_v34  ;;  %p7876_p12 = pnand %p7875_p11, %p8002_p5  ;;  %p7881_p2 = por %p7880_p1, %p7879_p0 }
 0x808   : > { %v5290_v17 = vsel %vm1666_vm7, %v5258_v30, %v7586_v12  ;;  %v5291_v60 = vsel %vm1666_vm7, %v5259_v37, %v7587_v20  ;;  %p7877_p13 = pneg %p7876_p12 }
 0x809   : > { %5519 = vmatmul.f32.gmra.mxu1 %v5384_v57  ;;  %v7590_v4 = vpop.permute.xlu1 %7589  ;;  %v12640_v57 = vpop.permute.xlu2 %7624 }
 0x80a   : > { %v7591_v26 = vunpack.i.l.bf16 %v7590_v4  ;;  %v7592_v23 = vunpack.i.h.bf16 %v7590_v4  ;;  %v5197_v4 = vsel %vm223_vm0, %v12205_v16, %v7572_v19  ;;  %v12659_v16 = vld [vmem:[%s13017_s4 + $0x2] ss:$0 sm:$0xff]  ;;  %p7882_p3 = pnand %p7881_p2, %p7877_p13 }
 0x80c   : > { %v5322_v51 = vsel %vm1699_vm9, %v5290_v17, %v7591_v26  ;;  %v5323_v11 = vsel %vm1699_vm9, %v5291_v60, %v7592_v23  ;;  %v13553_v17 = vld [vmem:[#allocation62_spill] sm:$0xff] }
 0x80d   : > { %6037 = vmatmul.msk.f32.gmra.mxu3 %vm223_vm0, %v13547_v39  ;;  %v5385_v39 = vsel %vm1765_vm10, %v5353_v52, %v7582_v2  ;;  %v7600_v25 = vpop.permute.xlu0 %7599  ;;  %v5354_v3 = vsel %vm1732_vm8, %v5322_v51, %v7596_v62  ;;  %v5355_v14 = vsel %vm1732_vm8, %v5323_v11, %v7597_v43  ;;  %v7577_v2 = vunpack.i.h.bf16 %v12547_v36 }
 0x80e   : > { %v7601_v35 = vunpack.i.l.bf16 %v7600_v25  ;;  %v7602_v44 = vunpack.i.h.bf16 %v7600_v25  ;;  %v7241_v6 = vunpack.i.l.bf16 %v13553_v17  ;;  %v7246_v62 = vunpack.i.l.bf16 %v13554_v56 }
 0x80f   : > { %v5229_v49 = vsel %vm1600_vm6, %v5197_v4, %v7577_v2 }
 0x810   : > { %v5386_v28 = vsel %vm1765_vm10, %v5354_v3, %v7601_v35  ;;  %v5261_v25 = vsel %vm1633_vm5, %v5229_v49, %v7237_v9  ;;  %v7612_v35 = vunpack.i.h.bf16 %v7610_v15  ;;  %v5198_v60 = vsel %vm223_vm0, %v12260_v7, %v7241_v6  ;;  %v13557_v9 = vld [vmem:[#allocation22_spill] sm:$0xff] }
 0x811   : > { %5522 = vmatmul.f32.gmra.mxu1 %v5385_v39  ;;  %v7605_v58 = vpop.permute.xlu1 %7604  ;;  %v12653_v39 = vpop.permute.xlu2 %7639  ;;  %v5230_v11 = vsel %vm1600_vm6, %v5198_v60, %v7246_v62  ;;  %v13558_v62 = vld [vmem:[#allocation24_spill] sm:$0xff] }
 0x812   : > { %v7606_v24 = vunpack.i.l.bf16 %v7605_v58  ;;  %v7607_v12 = vunpack.i.h.bf16 %v7605_v58  ;;  %v13555_v58 = vld [vmem:[#allocation25_spill] sm:$0xff] }
 0x813   : > { %v7251_v3 = vunpack.i.l.bf16 %v13555_v58  ;;  %v7252_v19 = vunpack.i.h.bf16 %v13555_v58 }
 0x814   : > { %v5293_v36 = vsel %vm1666_vm7, %v5261_v25, %v7607_v12 }
 0x815   : > { %6038 = vmatmul.msk.f32.gmra.mxu3 %vm223_vm0, %v4496_v61  ;;  %v7571_v61 = vunpack.i.l.bf16 %v12590_v55  ;;  %v7615_v48 = vpop.permute.xlu0 %7614  ;;  %v5325_v23 = vsel %vm1699_vm9, %v5293_v36, %v7612_v35  ;;  %v5262_v43 = vsel %vm1633_vm5, %v5230_v11, %v7251_v3 }
 0x816   : > { %v7616_v8 = vunpack.i.l.bf16 %v7615_v48  ;;  %v7617_v30 = vunpack.i.h.bf16 %v7615_v48  ;;  %v12684_v48 = vpop.f32.mrf.mxu3 }
 0x817   : > { %v5196_v46 = vsel %vm223_vm0, %v12203_v54, %v7571_v61  ;;  %v5387_v54 = vsel %vm1765_vm10, %v5355_v14, %v7602_v44 }
 0x818   : > { %v5228_v59 = vsel %vm1600_vm6, %v5196_v46, %v7576_v5  ;;  %v5357_v37 = vsel %vm1732_vm8, %v5325_v23, %v7617_v30  ;;  %v7642_v30 = vunpack.i.h.bf16 %v12653_v39  ;;  %v7262_v23 = vunpack.i.h.bf16 %v13557_v9 }
 0x819   : > { %5525 = vmatmul.f32.gmra.mxu1 %v5386_v28  ;;  %v7620_v40 = vpop.permute.xlu1 %7619  ;;  %v5260_v42 = vsel %vm1633_vm5, %v5228_v59, %v7236_v10  ;;  %v7626_v28 = vunpack.i.l.bf16 %v12640_v57  ;;  %v7242_v59 = vunpack.i.h.bf16 %v13553_v17  ;;  %v12678_v14 = vpop.permute.xlu2 %7654 }
 0x81a   : > { %v5292_v29 = vsel %vm1666_vm7, %v5260_v42, %v7606_v24  ;;  %v7621_v52 = vunpack.i.l.bf16 %v7620_v40  ;;  %v7622_v51 = vunpack.i.h.bf16 %v7620_v40 }
 0x81b   : > { %v5324_v55 = vsel %vm1699_vm9, %v5292_v29, %v7611_v47  ;;  %v5294_v24 = vsel %vm1666_vm7, %v5262_v43, %v7626_v28  ;;  %v5199_v42 = vsel %vm223_vm0, %v12262_v21, %v7242_v59  ;;  %v7627_v29 = vunpack.i.h.bf16 %v12640_v57  ;;  %v13556_v47 = vld [vmem:[#allocation23_spill] sm:$0xff] }
 0x81c   : > { %v5356_v0 = vsel %vm1732_vm8, %v5324_v55, %v7616_v8  ;;  %v5389_v44 = vsel %vm1765_vm10, %v5357_v37, %v7622_v51  ;;  %v7256_v4 = vunpack.i.l.bf16 %v13556_v47  ;;  %v7261_v21 = vunpack.i.l.bf16 %v13557_v9 }
 0x81d   : > { %v5388_v26 = vsel %vm1765_vm10, %v5356_v0, %v7621_v52  ;;  %v7630_v53 = vpop.permute.xlu0 %7629  ;;  %v7267_v59 = vunpack.i.h.bf16 %v13558_v62 }
 0x81e   : > { %v7631_v15 = vunpack.i.l.bf16 %v7630_v53  ;;  %v7632_v52 = vunpack.i.h.bf16 %v7630_v53  ;;  %v7266_v53 = vunpack.i.l.bf16 %v13558_v62 }
 0x820   : > { %v5326_v7 = vsel %vm1699_vm9, %v5294_v24, %v7631_v15 }
 0x821   : > { %5528 = vmatmul.f32.gmra.mxu1 %v5387_v54  ;;  %v7635_v31 = vpop.permute.xlu1 %7634  ;;  %v7641_v54 = vunpack.i.l.bf16 %v12653_v39  ;;  %v12704_v17 = vpop.permute.xlu2 %7669 }
 0x822   : > { %v7636_v5 = vunpack.i.l.bf16 %v7635_v31  ;;  %v7637_v12 = vunpack.i.h.bf16 %v7635_v31 }
 0x824   : > { %v5358_v10 = vsel %vm1732_vm8, %v5326_v7, %v7636_v5 }
 0x825   : > { %v7645_v8 = vpop.permute.xlu0 %7644  ;;  %v5390_v55 = vsel %vm1765_vm10, %v5358_v10, %v7641_v54 }
 0x826   : > { %v7646_v51 = vunpack.i.l.bf16 %v7645_v8  ;;  %v7647_v11 = vunpack.i.h.bf16 %v7645_v8 }
 0x829   : > { %5531 = vmatmul.f32.gmra.mxu1 %v5388_v26  ;;  %v5200_v26 = vsel %vm223_vm0, %v12277_v32, %v7256_v4  ;;  %v12710_v32 = vpop.f32.mrf.mxu3  ;;  %v12725_v24 = vpop.permute.xlu2 %7684 }
 0x82a   : > { %v5232_v35 = vsel %vm1600_vm6, %v5200_v26, %v7261_v21 }
 0x82d   : > { %v7660_v31 = vpop.permute.xlu0 %7659 }
 0x82e   : > { %v5490_v20 = vpop.f32.mrf.mxu1  ;;  %v7661_v60 = vunpack.i.l.bf16 %v7660_v31 }
 0x82f   : > { %v5491_v61 = vadd.f32 %v12659_v16, %v5490_v20  ;;  %v7257_v20 = vunpack.i.h.bf16 %v13556_v47 }
 0x831   : > { %v5604_v46 = vadd.f32 %v12461_v33, %v5491_v61  ;;  %5534 = vmatmul.f32.gmra.mxu1 %v5389_v44  ;;  %v7247_v33 = vunpack.i.h.bf16 %v13554_v56  ;;  %v5264_v61 = vsel %vm1633_vm5, %v5232_v35, %v7266_v53  ;;  %v5201_v37 = vsel %vm223_vm0, %v12279_v38, %v7257_v20 }
 0x832   : > { %v5296_v28 = vsel %vm1666_vm7, %v5264_v61, %v7646_v51  ;;  %v13560_v51 = vld [vmem:[#allocation26_spill] sm:$0xff]  ;;  %v7672_v53 = vunpack.i.h.bf16 %v12704_v17 }
 0x833   : > { %5731 = vrot.lane.b32.xlu1 %v5604_v46, %s7932_s26  ;;  %v5231_v49 = vsel %vm1600_vm6, %v5199_v42, %v7247_v33  ;;  %v7656_v46 = vunpack.i.l.bf16 %v12678_v14 }
 0x834   : > { %v5263_v0 = vsel %vm1633_vm5, %v5231_v49, %v7252_v19 }
 0x835   : > { %v5295_v57 = vsel %vm1666_vm7, %v5263_v0, %v7627_v29  ;;  %v7657_v29 = vunpack.i.h.bf16 %v12678_v14  ;;  %v13559_v0 = vld [vmem:[#allocation27_spill] sm:$0xff] }
 0x836   : > { %v5493_v34 = vpop.f32.mrf.mxu1  ;;  %v5327_v25 = vsel %vm1699_vm9, %v5295_v57, %v7632_v52  ;;  %v7671_v57 = vunpack.i.l.bf16 %v12704_v17 }
 0x837   : > { %v5494_v40 = vadd.f32 %v12659_v16, %v5493_v34  ;;  %v5359_v36 = vsel %vm1732_vm8, %v5327_v25, %v7637_v12  ;;  %v12729_v34 = vpop.f32.mrf.mxu3  ;;  %v7700_v12 = vpop.permute.xlu2 %7699 }
 0x838   : > { %v5391_v3 = vsel %vm1765_vm10, %v5359_v36, %v7642_v30 }
 0x839   : > { %v5607_v2 = vadd.f32 %v12496_v63, %v5494_v40  ;;  %5537 = vmatmul.f32.gmra.mxu1 %v5390_v55  ;;  %v7650_v63 = vpop.permute.xlu1 %7649  ;;  %v7662_v40 = vunpack.i.h.bf16 %v7660_v31 }
 0x83a   : > { %v7651_v58 = vunpack.i.l.bf16 %v7650_v63  ;;  %v7652_v7 = vunpack.i.h.bf16 %v7650_v63 }
 0x83b   : > { %5733 = vrot.lane.b32.xlu2 %v5607_v2, %s7932_s26  ;;  %v7675_v2 = vpop.permute.xlu0 %7674 }
 0x83c   : > { %v5328_v15 = vsel %vm1699_vm9, %v5296_v28, %v7651_v58  ;;  %v7676_v21 = vunpack.i.l.bf16 %v7675_v2  ;;  %v7677_v62 = vunpack.i.h.bf16 %v7675_v2 }
 0x83d   : > { %v5360_v43 = vsel %vm1732_vm8, %v5328_v15, %v7656_v46  ;;  %v13561_v15 = vld [vmem:[#allocation31_spill] sm:$0xff] }
 0x83e   : > { %v5496_v6 = vpop.f32.mrf.mxu1  ;;  %v5392_v38 = vsel %vm1765_vm10, %v5360_v43, %v7661_v60  ;;  %v7687_v43 = vunpack.i.h.bf16 %v12725_v24 }
 0x83f   : > { %v5497_v56 = vadd.f32 %v12659_v16, %v5496_v6  ;;  %v12744_v14 = vpop.f32.mrf.mxu3  ;;  %v12756_v20 = vpop.permute.xlu2 %7714 }
 0x841   : > { %v5610_v39 = vadd.f32 %v12536_v22, %v5497_v56  ;;  %5540 = vmatmul.f32.gmra.mxu1 %v5391_v3  ;;  %v5233_v22 = vsel %vm1600_vm6, %v5201_v37, %v7262_v23  ;;  %v7665_v5 = vpop.permute.xlu1 %7664 }
 0x842   : > { %v5265_v10 = vsel %vm1633_vm5, %v5233_v22, %v7267_v59  ;;  %v7666_v47 = vunpack.i.l.bf16 %v7665_v5  ;;  %v7667_v36 = vunpack.i.h.bf16 %v7665_v5  ;;  %v7701_v22 = vunpack.i.l.bf16 %v7700_v12 }
 0x843   : > { %5735 = vrot.lane.b32.xlu0 %v5610_v39, %s7932_s26  ;;  %v5297_v54 = vsel %vm1666_vm7, %v5265_v10, %v7647_v11  ;;  %v7690_v3 = vpop.permute.xlu0 %7689 }
 0x844   : > { %v5329_v42 = vsel %vm1699_vm9, %v5297_v54, %v7652_v7  ;;  %v5298_v9 = vsel %vm1666_vm7, %v13559_v0, %v7666_v47  ;;  %v5299_v56 = vsel %vm1666_vm7, %v13560_v51, %v7667_v36  ;;  %v7691_v28 = vunpack.i.l.bf16 %v7690_v3 }
 0x845   : > { %v5361_v52 = vsel %vm1732_vm8, %v5329_v42, %v7657_v29  ;;  %v5330_v63 = vsel %vm1699_vm9, %v5298_v9, %v7671_v57  ;;  %v5331_v61 = vsel %vm1699_vm9, %v5299_v56, %v7672_v53  ;;  %v13562_v42 = vld [vmem:[#allocation28_spill] sm:$0xff]  ;;  %v7702_v47 = vunpack.i.h.bf16 %v7700_v12 }
 0x846   : > { %v5499_v44 = vpop.f32.mrf.mxu1  ;;  %v5393_v55 = vsel %vm1765_vm10, %v5361_v52, %v7662_v40  ;;  %v5363_v23 = vsel %vm1732_vm8, %v5331_v61, %v7677_v62  ;;  %v5301_v29 = vsel %vm1666_vm7, %v13562_v42, %v7687_v43  ;;  %v13564_v62 = vld [vmem:[#allocation33_spill] sm:$0xff]  ;;  %v7717_v61 = vunpack.i.h.bf16 %v12756_v20  ;;  %v13565_v42 = vld [vmem:[#allocation71_spill] sm:$0xff] }
 0x847   : > { %v5500_v33 = vadd.f32 %v12659_v16, %v5499_v44  ;;  %v12758_v31 = vpop.f32.mrf.mxu3  ;;  %v12768_v11 = vpop.permute.xlu2 %7729 }
 0x848   : > { %v7731_v43 = vunpack.i.l.bf16 %v12768_v11 }
 0x849   : > { %5543 = vmatmul.f32.gmra.mxu1 %v5392_v38  ;;  %v5613_v19 = vadd.f32 %v12572_v18, %v5500_v33  ;;  %v7680_v49 = vpop.permute.xlu1 %7679  ;;  %v7692_v38 = vunpack.i.h.bf16 %v7690_v3 }
 0x84a   : > { %v7681_v26 = vunpack.i.l.bf16 %v7680_v49  ;;  %v7682_v58 = vunpack.i.h.bf16 %v7680_v49 }
 0x84b   : > { %5737 = vrot.lane.b32.xlu1 %v5613_v19, %s7932_s26  ;;  %v7705_v59 = vpop.permute.xlu0 %7704 }
 0x84c   : > { %v5395_v37 = vsel %vm1765_vm10, %v5363_v23, %v7682_v58  ;;  %v7706_v52 = vunpack.i.l.bf16 %v7705_v59 }
 0x84e   : > { %v5502_v8 = vpop.f32.mrf.mxu1 }
 0x84f   : > { %v5503_v4 = vadd.f32 %v12659_v16, %v5502_v8  ;;  %v12772_v33 = vpop.f32.mrf.mxu3 }
 0x851   : > { %v5616_v18 = vadd.f32 %v12602_v45, %v5503_v4  ;;  %5546 = vmatmul.f32.gmra.mxu1 %v5393_v55  ;;  %v5362_v45 = vsel %vm1732_vm8, %v5330_v63, %v7676_v21  ;;  %v7695_v39 = vpop.permute.xlu1 %7694  ;;  %v12782_v55 = vpop.permute.xlu2 %7744  ;;  %v13563_v21 = vld [vmem:[#allocation32_spill] sm:$0xff]  ;;  %v7716_v63 = vunpack.i.l.bf16 %v12756_v20  ;;  %v4505_v20 = vrot.slane %v12516_v13, 2 }
 0x852   : > { %v5394_v6 = vsel %vm1765_vm10, %v5362_v45, %v7681_v26  ;;  %v7696_v60 = vunpack.i.l.bf16 %v7695_v39  ;;  %v7697_v19 = vunpack.i.h.bf16 %v7695_v39  ;;  %v5302_v57 = vsel %vm1666_vm7, %v13563_v21, %v7706_v52 }
 0x853   : > { %5739 = vrot.lane.b32.xlu2 %v5616_v18, %s7932_s26  ;;  %v7720_v18 = vpop.permute.xlu0 %7719 }
 0x854   : > { %v7721_v12 = vunpack.i.l.bf16 %v7720_v18  ;;  %v7722_v3 = vunpack.i.h.bf16 %v7720_v18  ;;  %v7746_v18 = vunpack.i.l.bf16 %v12782_v55 }
 0x856   : > { %v5505_v25 = vpop.f32.mrf.mxu1 }
 0x857   : > { %v5506_v30 = vadd.f32 %v12659_v16, %v5505_v25  ;;  %v12786_v9 = vpop.f32.mrf.mxu3 }
 0x859   : > { %v5619_v35 = vadd.f32 %v12617_v41, %v5506_v30  ;;  %5549 = vmatmul.f32.gmra.mxu1 %v5394_v6  ;;  %v7686_v41 = vunpack.i.l.bf16 %v12725_v24  ;;  %v7710_v40 = vpop.permute.xlu1 %7709  ;;  %v5333_v24 = vsel %vm1699_vm9, %v5301_v29, %v7692_v38  ;;  %v7707_v30 = vunpack.i.h.bf16 %v7705_v59  ;;  %v12797_v56 = vpop.permute.xlu2 %7759 }
 0x85a   : > { %v5365_v8 = vsel %vm1732_vm8, %v5333_v24, %v7697_v19  ;;  %v7711_v49 = vunpack.i.l.bf16 %v7710_v40  ;;  %v7712_v6 = vunpack.i.h.bf16 %v7710_v40 }
 0x85b   : > { %5741 = vrot.lane.b32.xlu0 %v5619_v35, %s7932_s26  ;;  %v5300_v17 = vsel %vm1666_vm7, %v13561_v15, %v7686_v41  ;;  %v5303_v53 = vsel %vm1666_vm7, %v13564_v62, %v7707_v30 }
 0x85c   : > { %v5332_v46 = vsel %vm1699_vm9, %v5300_v17, %v7691_v28  ;;  %v5334_v25 = vsel %vm1699_vm9, %v5302_v57, %v7711_v49  ;;  %v5335_v39 = vsel %vm1699_vm9, %v5303_v53, %v7712_v6  ;;  %v7761_v6 = vunpack.i.l.bf16 %v12797_v56 }
 0x85d   : > { %v5364_v44 = vsel %vm1732_vm8, %v5332_v46, %v7696_v60  ;;  %v7735_v60 = vpop.permute.xlu0 %7734 }
 0x85e   : > { %v5396_v10 = vsel %vm1765_vm10, %v5364_v44, %v7701_v22  ;;  %v7736_v22 = vunpack.i.l.bf16 %v7735_v60  ;;  %v7737_v24 = vunpack.i.h.bf16 %v7735_v60 }
 0x85f   : > { %v12802_v58 = vpop.f32.mrf.mxu3 }
 0x861   : > { %5552 = vmatmul.f32.gmra.mxu1 %v5395_v37  ;;  %v7725_v26 = vpop.permute.xlu1 %7724  ;;  %v5367_v37 = vsel %vm1732_vm8, %v5335_v39, %v7717_v61  ;;  %v12810_v46 = vpop.permute.xlu2 %5050 }
 0x862   : > { %v7726_v28 = vunpack.i.l.bf16 %v7725_v26  ;;  %v5399_v15 = vsel %vm1765_vm10, %v5367_v37, %v7722_v3 }
 0x864   : > { %v5304_v44 = vsel %vm1666_vm7, %v12118_v50, %v7726_v28  ;;  %v7727_v50 = vunpack.i.h.bf16 %v7725_v26 }
 0x866   : > { %v5508_v5 = vpop.f32.mrf.mxu1  ;;  %v5305_v29 = vsel %vm1666_vm7, %v13565_v42, %v7727_v50 }
 0x867   : > { %v5509_v7 = vadd.f32 %v12659_v16, %v5508_v5  ;;  %v4506_v5 = vrot.slane %v12518_v27, 2  ;;  %v12819_v38 = vpop.f32.mrf.mxu3 }
 0x869   : > { %v5622_v54 = vadd.f32 %v12684_v48, %v5509_v7  ;;  %5555 = vmatmul.f32.gmra.mxu1 %v5396_v10  ;;  %v5397_v48 = vsel %vm1765_vm10, %v5365_v8, %v7702_v47  ;;  %v7740_v41 = vpop.permute.xlu1 %7739  ;;  %v4507_v7 = vsel %vm789_vm4, %v4505_v20, %v4506_v5  ;;  %v5336_v10 = vsel %vm1699_vm9, %v5304_v44, %v7731_v43  ;;  %v12832_v52 = vpop.permute.xlu2 %5052 }
 0x86a   : > { %v7741_v59 = vunpack.i.l.bf16 %v7740_v41  ;;  %6039 = vmatmul.msk.f32.gmra.mxu3 %vm223_vm0, %v4507_v7  ;;  %v4508_v8 = vrot.slane %v12552_v1, 2  ;;  %v7732_v47 = vunpack.i.h.bf16 %v12768_v11 }
 0x86b   : > { %5743 = vrot.lane.b32.xlu1 %v5622_v54, %s7932_s26  ;;  %v5368_v54 = vsel %vm1732_vm8, %v5336_v10, %v7736_v22  ;;  %v13568_v22 = vld [vmem:[#allocation10_spill] sm:$0xff] }
 0x86c   : > { %v5400_v27 = vsel %vm1765_vm10, %v5368_v54, %v7741_v59  ;;  %v4509_v49 = vsel %vm789_vm4, %v4506_v5, %v4508_v8 }
 0x86e   : > { %v5511_v4 = vpop.f32.mrf.mxu1 }
 0x86f   : > { %v5512_v2 = vadd.f32 %v12659_v16, %v5511_v4  ;;  %v7742_v4 = vunpack.i.h.bf16 %v7740_v41  ;;  %v12840_v21 = vpop.f32.mrf.mxu3 }
 0x871   : > { %v5625_v0 = vadd.f32 %v12710_v32, %v5512_v2  ;;  %5558 = vmatmul.f32.gmra.mxu1 %v5397_v48  ;;  %v5366_v32 = vsel %vm1732_vm8, %v5334_v25, %v7716_v63  ;;  %v7755_v13 = vpop.permute.xlu1 %7754  ;;  %v7750_v2 = vpop.permute.xlu0 %7749  ;;  %v13566_v63 = vld [vmem:[#allocation72_spill] sm:$0xff] }
 0x872   : > { %v5398_v35 = vsel %vm1765_vm10, %v5366_v32, %v7721_v12  ;;  %6040 = vmatmul.msk.f32.gmra.mxu3 %vm223_vm0, %v4509_v49  ;;  %v7751_v11 = vunpack.i.l.bf16 %v7750_v2  ;;  %v7756_v12 = vunpack.i.l.bf16 %v7755_v13  ;;  %v7752_v62 = vunpack.i.h.bf16 %v7750_v2 }
 0x873   : > { %5745 = vrot.lane.b32.xlu2 %v5625_v0, %s7932_s26  ;;  %v7757_v3 = vunpack.i.h.bf16 %v7755_v13  ;;  %v13569_v13 = vld [vmem:[#allocation82_spill] sm:$0xff] }
 0x876   : > { %v5514_v36 = vpop.f32.mrf.mxu1 }
 0x877   : > { %v5515_v45 = vadd.f32 %v12659_v16, %v5514_v36  ;;  %v5306_v36 = vsel %vm1666_vm7, %v13566_v63, %v7746_v18  ;;  %v5651_v41 = vpop.f32.mrf.mxu3 }
 0x879   : > { %v5628_v51 = vadd.f32 %v12729_v34, %v5515_v45  ;;  %5561 = vmatmul.f32.gmra.mxu1 %v5398_v35  ;;  %v4955_v25 = vpop.permute.xlu1 %4954  ;;  %v5338_v45 = vsel %vm1699_vm9, %v5306_v36, %v7751_v11  ;;  %v7765_v39 = vpop.permute.xlu0 %7764 }
 0x87a   : > { %v5370_v32 = vsel %vm1732_vm8, %v5338_v45, %v7756_v12  ;;  %v7766_v37 = vunpack.i.l.bf16 %v7765_v39  ;;  %v7767_v10 = vunpack.i.h.bf16 %v7765_v39 }
 0x87b   : > { %5747 = vrot.lane.b32.xlu0 %v5628_v51, %s7932_s26  ;;  %v5402_v53 = vsel %vm1765_vm10, %v5370_v32, %v7761_v6 }
 0x87c   : > { %v5308_v20 = vsel %vm1666_vm7, %v13568_v22, %v7766_v37 }
 0x87d   : > { %v5340_v7 = vsel %vm1699_vm9, %v5308_v20, %v4955_v25 }
 0x87e   : > { %v5517_v23 = vpop.f32.mrf.mxu1  ;;  %v5372_v50 = vsel %vm1732_vm8, %v5340_v7, %v12810_v46 }
 0x87f   : > { %v5518_v34 = vadd.f32 %v12659_v16, %v5517_v23  ;;  %v13567_v23 = vld [vmem:[#allocation37_spill] sm:$0xff]  ;;  %v5654_v59 = vpop.f32.mrf.mxu3 }
 0x881   : > { %v5631_v17 = vadd.f32 %v12744_v14, %v5518_v34  ;;  %5564 = vmatmul.f32.gmra.mxu1 %v5399_v15  ;;  %v4957_v34 = vpop.permute.xlu1 %4956  ;;  %v7762_v15 = vunpack.i.h.bf16 %v12797_v56  ;;  %v5147_v43 = vpop.permute.xlu0 %5146 }
 0x883   : > { %5749 = vrot.lane.b32.xlu1 %v5631_v17, %s7932_s26 }
 0x886   : > { %v5520_v14 = vpop.f32.mrf.mxu1 }
 0x887   : > { %v5521_v19 = vadd.f32 %v12659_v16, %v5520_v14 }
 0x889   : > { %v5634_v40 = vadd.f32 %v12758_v31, %v5521_v19  ;;  %5567 = vmatmul.f32.gmra.mxu1 %v5400_v27  ;;  %v5337_v31 = vsel %vm1699_vm9, %v5305_v29, %v7732_v47  ;;  %v5309_v27 = vsel %vm1666_vm7, %v13569_v13, %v7767_v10  ;;  %v5149_v42 = vpop.permute.xlu0 %5148 }
 0x88a   : > { %v5369_v1 = vsel %vm1732_vm8, %v5337_v31, %v7737_v24  ;;  %v5657_v24 = vpop.f32.mrf.mxu3 }
 0x88b   : > { %5751 = vrot.lane.b32.xlu2 %v5634_v40, %s7932_s26  ;;  %v5401_v57 = vsel %vm1765_vm10, %v5369_v1, %v7742_v4  ;;  %v5341_v40 = vsel %vm1699_vm9, %v5309_v27, %v4957_v34 }
 0x88c   : > { %v5373_v8 = vsel %vm1732_vm8, %v5341_v40, %v12832_v52 }
 0x88d   : > { %v5405_v47 = vsel %vm1765_vm10, %v5373_v8, %v5149_v42 }
 0x88e   : > { %v5523_v48 = vpop.f32.mrf.mxu1 }
 0x88f   : > { %v5524_v0 = vadd.f32 %v12659_v16, %v5523_v48 }
 0x891   : > { %v5637_v26 = vadd.f32 %v12772_v33, %v5524_v0  ;;  %5570 = vmatmul.f32.gmra.mxu1 %v5401_v57  ;;  %v7747_v33 = vunpack.i.h.bf16 %v12782_v55 }
 0x892   : > { %v5660_v31 = vpop.f32.mrf.mxu3 }
 0x893   : > { %5753 = vrot.lane.b32.xlu0 %v5637_v26, %s7932_s26  ;;  %v5307_v28 = vsel %vm1666_vm7, %v13567_v23, %v7747_v33 }
 0x894   : > { %v5339_v55 = vsel %vm1699_vm9, %v5307_v28, %v7752_v62 }
 0x895   : > { %v5734_v30 = vpop.permute.xlu2 %5733  ;;  %v5371_v60 = vsel %vm1732_vm8, %v5339_v55, %v7757_v3 }
 0x896   : > { %5829 = vst.msk [vmem:[%s8143_s13 + $0x8] sm:$0xff] %vm5827_vm13, %v5734_v30  ;;  %v5526_v35 = vpop.f32.mrf.mxu1 }
 0x897   : > { %v5527_v51 = vadd.f32 %v12659_v16, %v5526_v35 }
 0x899   : > { %v5640_v61 = vadd.f32 %v12786_v9, %v5527_v51  ;;  %5573 = vmatmul.f32.gmra.mxu1 %v5402_v53  ;;  %v5403_v9 = vsel %vm1765_vm10, %v5371_v60, %v7762_v15 }
 0x89a   : > { %v5663_v11 = vpop.f32.mrf.mxu3 }
 0x89b   : > { %5755 = vrot.lane.b32.xlu1 %v5640_v61, %s7932_s26 }
 0x89e   : > { %v5529_v17 = vpop.f32.mrf.mxu1 }
 0x89f   : > { %v5530_v44 = vadd.f32 %v12659_v16, %v5529_v17 }
 0x8a1   : > { %v5643_v5 = vadd.f32 %v12802_v58, %v5530_v44  ;;  %5576 = vmatmul.f32.gmra.mxu1 %v5403_v9  ;;  %v5404_v58 = vsel %vm1765_vm10, %v5372_v50, %v5147_v43 }
 0x8a2   : > { %v5666_v25 = vpop.f32.mrf.mxu3 }
 0x8a3   : > { %5757 = vrot.lane.b32.xlu2 %v5643_v5, %s7932_s26 }
 0x8a5   : > { %v5732_v14 = vpop.permute.xlu1 %5731 }
 0x8a6   : > { %5828 = vst.msk [vmem:[%s8143_s13] sm:$0xff] %vm5827_vm13, %v5732_v14  ;;  %v5532_v56 = vpop.f32.mrf.mxu1 }
 0x8a7   : > { %v5533_v19 = vadd.f32 %v12659_v16, %v5532_v56 }
 0x8a9   : > { %v5646_v54 = vadd.f32 %v12819_v38, %v5533_v19  ;;  %5579 = vmatmul.f32.gmra.mxu1 %v5404_v58 }
 0x8aa   : > { %v5669_v6 = vpop.f32.mrf.mxu3 }
 0x8ab   : > { %5759 = vrot.lane.b32.xlu0 %v5646_v54, %s7932_s26 }
 0x8ad   : > { %v5740_v29 = vpop.permute.xlu2 %5739 }
 0x8ae   : > { %5832 = vst.msk [vmem:[%s8143_s13 + $0x20] sm:$0xff] %vm5827_vm13, %v5740_v29  ;;  %v5535_v46 = vpop.f32.mrf.mxu1 }
 0x8af   : > { %v5536_v38 = vadd.f32 %v12659_v16, %v5535_v46 }
 0x8b1   : > { %v5649_v4 = vadd.f32 %v12840_v21, %v5536_v38  ;;  %5582 = vmatmul.f32.gmra.mxu1 %v5405_v47 }
 0x8b2   : > { %v5672_v39 = vpop.f32.mrf.mxu3 }
 0x8b3   : > { %5761 = vrot.lane.b32.xlu1 %v5649_v4, %s7932_s26 }
 0x8b5   : > { %v5736_v2 = vpop.permute.xlu0 %5735 }
 0x8b6   : > { %5830 = vst.msk [vmem:[%s8143_s13 + $0x10] sm:$0xff] %vm5827_vm13, %v5736_v2  ;;  %v5538_v49 = vpop.f32.mrf.mxu1 }
 0x8b7   : > { %v5539_v48 = vadd.f32 %v12659_v16, %v5538_v49 }
 0x8b9   : > { %v5652_v18 = vadd.f32 %v5651_v41, %v5539_v48 }
 0x8ba   : > { %v5675_v55 = vpop.f32.mrf.mxu3 }
 0x8bb   : > { %5763 = vrot.lane.b32.xlu2 %v5652_v18, %s7932_s26 }
 0x8bd   : > { %v5738_v52 = vpop.permute.xlu1 %5737 }
 0x8be   : > { %v5541_v0 = vpop.f32.mrf.mxu1  ;;  %5831 = vst.msk [vmem:[%s8143_s13 + $0x18] sm:$0xff] %vm5827_vm13, %v5738_v52 }
 0x8bf   : > { %v5542_v1 = vadd.f32 %v12659_v16, %v5541_v0 }
 0x8c1   : > { %v5655_v21 = vadd.f32 %v5654_v59, %v5542_v1 }
 0x8c2   : > { %v5678_v44 = vpop.f32.mrf.mxu3 }
 0x8c3   : > { %5765 = vrot.lane.b32.xlu0 %v5655_v21, %s7932_s26 }
 0x8c6   : > { %v5544_v57 = vpop.f32.mrf.mxu1 }
 0x8c7   : > { %v5545_v12 = vadd.f32 %v12659_v16, %v5544_v57 }
 0x8c9   : > { %v5658_v26 = vadd.f32 %v5657_v24, %v5545_v12 }
 0x8ca   : > { %v5681_v59 = vpop.f32.mrf.mxu3 }
 0x8cb   : > { %5767 = vrot.lane.b32.xlu1 %v5658_v26, %s7932_s26 }
 0x8cd   : > { %v5742_v63 = vpop.permute.xlu0 %5741  ;;  %v5746_v36 = vpop.permute.xlu2 %5745 }
 0x8ce   : > { %5833 = vst.msk [vmem:[%s8143_s13 + $0x28] sm:$0xff] %vm5827_vm13, %v5742_v63  ;;  %v5547_v30 = vpop.f32.mrf.mxu1 }
 0x8cf   : > { %5835 = vst.msk [vmem:[%s8143_s13 + $0x38] sm:$0xff] %vm5827_vm13, %v5746_v36  ;;  %v5548_v45 = vadd.f32 %v12659_v16, %v5547_v30 }
 0x8d1   : > { %v5661_v32 = vadd.f32 %v5660_v31, %v5548_v45 }
 0x8d2   : > { %v5684_v58 = vpop.f32.mrf.mxu3 }
 0x8d3   : > { %5769 = vrot.lane.b32.xlu2 %v5661_v32, %s7932_s26 }
 0x8d6   : > { %v5550_v35 = vpop.f32.mrf.mxu1 }
 0x8d7   : > { %v5551_v33 = vadd.f32 %v12659_v16, %v5550_v35 }
 0x8d9   : > { %v5664_v51 = vadd.f32 %v5663_v11, %v5551_v33 }
 0x8da   : > { %v5687_v29 = vpop.f32.mrf.mxu3 }
 0x8db   : > { %5771 = vrot.lane.b32.xlu0 %v5664_v51, %s7932_s26 }
 0x8dd   : > { %v5744_v62 = vpop.permute.xlu1 %5743 }
 0x8de   : > { %5834 = vst.msk [vmem:[%s8143_s13 + $0x30] sm:$0xff] %vm5827_vm13, %v5744_v62  ;;  %v5553_v53 = vpop.f32.mrf.mxu1 }
 0x8df   : > { %v5554_v3 = vadd.f32 %v12659_v16, %v5553_v53 }
 0x8e1   : > { %v5667_v61 = vadd.f32 %v5666_v25, %v5554_v3 }
 0x8e2   : > { %v5690_v47 = vpop.f32.mrf.mxu3 }
 0x8e3   : > { %5773 = vrot.lane.b32.xlu1 %v5667_v61, %s7932_s26 }
 0x8e5   : > { %v5752_v41 = vpop.permute.xlu2 %5751 }
 0x8e6   : > { %5838 = vst.msk [vmem:[%s8143_s13 + $0x50] sm:$0xff] %vm5827_vm13, %v5752_v41  ;;  %v5556_v23 = vpop.f32.mrf.mxu1 }
 0x8e7   : > { %v5557_v28 = vadd.f32 %v12659_v16, %v5556_v23 }
 0x8e9   : > { %v5670_v34 = vadd.f32 %v5669_v6, %v5557_v28 }
 0x8eb   : > { %5775 = vrot.lane.b32.xlu2 %v5670_v34, %s7932_s26 }
 0x8ed   : > { %v5748_v37 = vpop.permute.xlu0 %5747  ;;  %v5693_v31 = vpop.f32.mrf.mxu3 }
 0x8ee   : > { %5836 = vst.msk [vmem:[%s8143_s13 + $0x40] sm:$0xff] %vm5827_vm13, %v5748_v37  ;;  %v5559_v60 = vpop.f32.mrf.mxu1 }
 0x8ef   : > { %v5560_v15 = vadd.f32 %v12659_v16, %v5559_v60 }
 0x8f1   : > { %v5673_v17 = vadd.f32 %v5672_v39, %v5560_v15 }
 0x8f3   : > { %5777 = vrot.lane.b32.xlu0 %v5673_v17, %s7932_s26 }
 0x8f5   : > { %v5750_v9 = vpop.permute.xlu1 %5749  ;;  %v5696_v57 = vpop.f32.mrf.mxu3 }
 0x8f6   : > { %5837 = vst.msk [vmem:[%s8143_s13 + $0x48] sm:$0xff] %vm5827_vm13, %v5750_v9  ;;  %v5562_v22 = vpop.f32.mrf.mxu1 }
 0x8f7   : > { %v5563_v20 = vadd.f32 %v12659_v16, %v5562_v22 }
 0x8f9   : > { %v5676_v5 = vadd.f32 %v5675_v55, %v5563_v20 }
 0x8fb   : > { %5779 = vrot.lane.b32.xlu1 %v5676_v5, %s7932_s26 }
 0x8fd   : > { %v5758_v43 = vpop.permute.xlu2 %5757 }
 0x8fe   : > { %5841 = vst.msk [vmem:[%s8143_s13 + $0x68] sm:$0xff] %vm5827_vm13, %v5758_v43  ;;  %v5565_v7 = vpop.f32.mrf.mxu1 }
 0x8ff   : > { %v5566_v14 = vadd.f32 %v12659_v16, %v5565_v7 }
 0x901   : > { %v5679_v56 = vadd.f32 %v5678_v44, %v5566_v14 }
 0x903   : > { %5781 = vrot.lane.b32.xlu2 %v5679_v56, %s7932_s26 }
 0x905   : > { %v5754_v10 = vpop.permute.xlu0 %5753 }
 0x906   : > { %5839 = vst.msk [vmem:[%s8143_s13 + $0x58] sm:$0xff] %vm5827_vm13, %v5754_v10  ;;  %v5568_v50 = vpop.f32.mrf.mxu1 }
 0x907   : > { %v5569_v19 = vadd.f32 %v12659_v16, %v5568_v50 }
 0x909   : > { %v5682_v54 = vadd.f32 %v5681_v59, %v5569_v19 }
 0x90b   : > { %5783 = vrot.lane.b32.xlu0 %v5682_v54, %s7932_s26 }
 0x90d   : > { %v5756_v13 = vpop.permute.xlu1 %5755 }
 0x90e   : > { %5840 = vst.msk [vmem:[%s8143_s13 + $0x60] sm:$0xff] %vm5827_vm13, %v5756_v13  ;;  %v5571_v27 = vpop.f32.mrf.mxu1 }
 0x90f   : > { %v5572_v40 = vadd.f32 %v12659_v16, %v5571_v27 }
 0x911   : > { %v5685_v42 = vadd.f32 %v5684_v58, %v5572_v40 }
 0x913   : > { %5785 = vrot.lane.b32.xlu1 %v5685_v42, %s7932_s26 }
 0x915   : > { %v5764_v24 = vpop.permute.xlu2 %5763 }
 0x916   : > { %5844 = vst.msk [vmem:[%s8143_s13 + $0x80] sm:$0xff] %vm5827_vm13, %v5764_v24  ;;  %v5574_v46 = vpop.f32.mrf.mxu1 }
 0x917   : > { %v5575_v8 = vadd.f32 %v12659_v16, %v5574_v46 }
 0x919   : > { %v5688_v38 = vadd.f32 %v5687_v29, %v5575_v8 }
 0x91b   : > { %5787 = vrot.lane.b32.xlu2 %v5688_v38, %s7932_s26 }
 0x91d   : > { %v5760_v4 = vpop.permute.xlu0 %5759 }
 0x91e   : > { %5842 = vst.msk [vmem:[%s8143_s13 + $0x70] sm:$0xff] %vm5827_vm13, %v5760_v4  ;;  %v5577_v2 = vpop.f32.mrf.mxu1 }
 0x91f   : > { %v5578_v49 = vadd.f32 %v12659_v16, %v5577_v2 }
 0x921   : > { %v5691_v48 = vadd.f32 %v5690_v47, %v5578_v49 }
 0x923   : > { %5789 = vrot.lane.b32.xlu0 %v5691_v48, %s7932_s26 }
 0x925   : > { %v5762_v18 = vpop.permute.xlu1 %5761 }
 0x926   : > { %5843 = vst.msk [vmem:[%s8143_s13 + $0x78] sm:$0xff] %vm5827_vm13, %v5762_v18  ;;  %v5580_v52 = vpop.f32.mrf.mxu1 }
 0x927   : > { %v5581_v0 = vadd.f32 %v12659_v16, %v5580_v52 }
 0x929   : > { %v5694_v1 = vadd.f32 %v5693_v31, %v5581_v0 }
 0x92b   : > { %5791 = vrot.lane.b32.xlu1 %v5694_v1, %s7932_s26 }
 0x92d   : > { %v5770_v21 = vpop.permute.xlu2 %5769 }
 0x92e   : > { %5847 = vst.msk [vmem:[%s8143_s13 + $0x98] sm:$0xff] %vm5827_vm13, %v5770_v21  ;;  %v5583_v11 = vpop.f32.mrf.mxu1 }
 0x92f   : > { %v5584_v12 = vadd.f32 %v12659_v16, %v5583_v11 }
 0x931   : > { %v5697_v26 = vadd.f32 %v5696_v57, %v5584_v12 }
 0x933   : > { %5793 = vrot.lane.b32.xlu2 %v5697_v26, %s7932_s26 }
 0x935   : > { %v5766_v25 = vpop.permute.xlu0 %5765 }
 0x936   : > { %5845 = vst.msk [vmem:[%s8143_s13 + $0x88] sm:$0xff] %vm5827_vm13, %v5766_v25 }
 0x93d   : > { %v5768_v63 = vpop.permute.xlu1 %5767 }
 0x93e   : > { %5846 = vst.msk [vmem:[%s8143_s13 + $0x90] sm:$0xff] %vm5827_vm13, %v5768_v63 }
 0x945   : > { %v5776_v36 = vpop.permute.xlu2 %5775 }
 0x946   : > { %5850 = vst.msk [vmem:[%s8143_s13 + $0xb0] sm:$0xff] %vm5827_vm13, %v5776_v36 }
 0x94d   : > { %v5772_v30 = vpop.permute.xlu0 %5771 }
 0x94e   : > { %5848 = vst.msk [vmem:[%s8143_s13 + $0xa0] sm:$0xff] %vm5827_vm13, %v5772_v30 }
 0x955   : > { %v5774_v16 = vpop.permute.xlu1 %5773 }
 0x956   : > { %5849 = vst.msk [vmem:[%s8143_s13 + $0xa8] sm:$0xff] %vm5827_vm13, %v5774_v16 }
 0x95d   : > { %v5782_v45 = vpop.permute.xlu2 %5781 }
 0x95e   : > { %5853 = vst.msk [vmem:[%s8143_s13 + $0xc8] sm:$0xff] %vm5827_vm13, %v5782_v45 }
 0x965   : > { %v5778_v32 = vpop.permute.xlu0 %5777 }
 0x966   : > { %5851 = vst.msk [vmem:[%s8143_s13 + $0xb8] sm:$0xff] %vm5827_vm13, %v5778_v32 }
 0x96d   : > { %v5780_v6 = vpop.permute.xlu1 %5779 }
 0x96e   : > { %5852 = vst.msk [vmem:[%s8143_s13 + $0xc0] sm:$0xff] %vm5827_vm13, %v5780_v6 }
 0x975   : > { %v5788_v35 = vpop.permute.xlu2 %5787 }
 0x976   : > { %5856 = vst.msk [vmem:[%s8143_s13 + $0xe0] sm:$0xff] %vm5827_vm13, %v5788_v35 }
 0x97d   : > { %v5784_v33 = vpop.permute.xlu0 %5783 }
 0x97e   : > { %5854 = vst.msk [vmem:[%s8143_s13 + $0xd0] sm:$0xff] %vm5827_vm13, %v5784_v33 }
 0x985   : > { %v5786_v51 = vpop.permute.xlu1 %5785 }
 0x986   : > { %5855 = vst.msk [vmem:[%s8143_s13 + $0xd8] sm:$0xff] %vm5827_vm13, %v5786_v51 }
 0x98d   : > { %v5794_v62 = vpop.permute.xlu2 %5793 }
 0x98e   : > { %5859 = vst.msk [vmem:[%s8143_s13 + $0xf8] sm:$0xff] %vm5827_vm13, %v5794_v62 }
 0x995   : > { %v5790_v53 = vpop.permute.xlu0 %5789 }
 0x996   : > { %5857 = vst.msk [vmem:[%s8143_s13 + $0xe8] sm:$0xff] %vm5827_vm13, %v5790_v53 }
 0x99d   : > { %v5792_v3 = vpop.permute.xlu1 %5791 }
 0x99e   : > { %5858 = vst.msk [vmem:[%s8143_s13 + $0xf0] sm:$0xff] %vm5827_vm13, %v5792_v3 }
 0x99f   : > { %7885 = shalt.err (!%p7882_p3)
}
 0x9a0   : > { %s7933_s13 = smov 128  }
 0x9a1   : > { %6052 = dma.vmem_to_hbm [thread:$0]  (%p8002_p5), %s5874_s10, 4096, %s5876_s11, %s5861_s17, %s7933_s13, %s7933_s13, %s7931_s14  }
 0x9a2 PF: > { %p6058_p4 = scmp.ge.s32.totalorder %s7920_s21, 2  ;;  %s5890_s6 = sand.u32 1, %s7908_s18  }
 0x9a3   : > { %s5891_s8 = scalar_lea.sflag [#allocation4], %s5890_s6 }
 0x9a4   : > { %p6055_p7 = pnand %p6058_p4, %p8006_p6 }
 0x9a6   : > { %p6056_p8 = pneg %p6055_p7 }
 0x9a8   : > { %7903 = dma.done.wait (%p6056_p8), %s5891_s8, 4096  }
 0x9a9   : > { %7905 = vsyncadd (%p6056_p8), %s5891_s8, 4294963200  ;;  %p15_p9 = scmp.ge.s32.totalorder %s7989_s24, 4   ;;  %s13571_s18 = smov %s7912_s19 }
 0x9aa   : > { %s13572_s19 = smov %s7916_s20  ;;  %s13573_s20 = smov %s8000_s27 }
 0x9ab   : > { %s13574_s21 = smov %s7989_s24  ;;  %17 = sbr.rel (!%p15_p9) target bundleno = 3 (0x3), region = 76 }
 0x9b0   :  { %5897 = vsyncpa [#allocation4], 1 }
 0x9b1   :  { %5899 = vsyncpa [#allocation4 + $0x1], 1 }

</bundles_post_ra>
